<compile_context>
chip_gen: v7x
topology: tpu7x:2x2x1
jax: 0.10.0
libtpu: 0.0.40
codegen_flags: <defaults>
</compile_context>

<pallas_src>
import math

import jax
import jax.numpy as jnp
from jax.experimental import pallas as pl
from jax.experimental.pallas import tpu as pltpu


_PARAM_ORDER = ("w1", "b1", "w2", "b2", "w3", "b3", "w4", "b4",
                "ln_g", "ln_b", "wfc1", "bfc1", "wfc2", "bfc2")
_CIN_PAD = 8   # conv1 input channels padded 3/4 -> 8 for aligned patch slabs


def _pad_hw_1(x):
    """Zero-pad H and W by 1 on each side as a value (no scratch round trip)."""
    bt, h, w, c = x.shape
    zr = jnp.zeros((bt, 1, w, c), x.dtype)
    x = jnp.concatenate([zr, x, zr], axis=1)
    zc = jnp.zeros((bt, h + 2, 1, c), x.dtype)
    return jnp.concatenate([zc, x, zc], axis=2)


def _conv3x3_im2col(xp, w_ref, b_ref):
    """3x3 'valid' cross-correlation as one im2col matmul.

    xp:    (Bt, Hp, Wp, Cin) bf16 (already zero-padded if 'same')
    w_ref: (9*Cin, Cout) bf16 VMEM ref (flattened HWIO weights, [dy, dx, c])
    b_ref: (1, Cout) f32 VMEM ref
    returns (Bt, Hp-2, Wp-2, Cout) f32
    """
    bt, hp, wp, cin = xp.shape
    ho, wo = hp - 2, wp - 2
    cols = [xp[:, dy:dy + ho, dx:dx + wo, :].reshape(bt * ho * wo, cin)
            for dy in range(3) for dx in range(3)]
    patches = jnp.concatenate(cols, axis=-1)                    # (M, 9*Cin) bf16
    acc = jnp.dot(patches, w_ref[...], preferred_element_type=jnp.float32)
    acc = acc + b_ref[...]
    return acc.reshape(bt, ho, wo, -1)


def value_kernel(x_ref,
                 w1_ref, b1_ref, w2_ref, b2_ref, w3_ref, b3_ref,
                 w4_ref, b4_ref,
                 ln_g_ref, ln_b_ref, wfc1_ref, bfc1_ref, wfc2_ref, bfc2_ref,
                 o_ref):
    # x_ref block: (Bt, W+2, W+2, Cin_pad) bf16 -- conv1 'same' pad pre-applied.
    bt, hp, _, _ = x_ref.shape
    wsz = hp - 2                                                # W

    xp = x_ref[...]                                             # bf16

    # conv1: 3x3 'same' (pre-padded), Cin_pad -> 32, ReLU  (f32 after matmul)
    h1 = jax.nn.relu(_conv3x3_im2col(xp, w1_ref, b1_ref))       # (Bt, W, W, 32)
    # conv2: 3x3 valid, 32 -> 32, ReLU
    h2 = jax.nn.relu(_conv3x3_im2col(h1.astype(jnp.bfloat16), w2_ref, b2_ref))
    # conv3: 'same' padding built as a value, 32 -> 32, ReLU
    h2p = _pad_hw_1(h2).astype(jnp.bfloat16)                    # (Bt, W, W, 32)
    h3 = jax.nn.relu(_conv3x3_im2col(h2p, w3_ref, b3_ref))      # (Bt, W-2, W-2, 32)

    # conv4 (valid, 32->64, no activation) folded through the spatial mean:
    #   mean_hw(conv4(h3)) == concat_{dy,dx}[ mean_hw_window(h3) ] @ w4_flat + b4
    ho = wsz - 4
    inv = 1.0 / float(ho * ho)
    taps = [jnp.sum(h3[:, dy:dy + ho, dx:dx + ho, :], axis=(1, 2)) * inv
            for dy in range(3) for dx in range(3)]              # 9 x (Bt, 32) f32
    t = jnp.concatenate(taps, axis=-1)                          # (Bt, 288) f32
    v = (jnp.dot(t.astype(jnp.bfloat16), w4_ref[...],
                 preferred_element_type=jnp.float32) + b4_ref[...])   # (Bt, 64)

    # LayerNorm(64) (torch default eps=1e-5, biased variance, affine) -- f32 VPU
    mu = jnp.mean(v, axis=-1, keepdims=True)
    var = jnp.mean((v - mu) ** 2, axis=-1, keepdims=True)
    ln = (v - mu) * jax.lax.rsqrt(var + 1e-5) * ln_g_ref[...] + ln_b_ref[...]

    # Linear(64, 64) + ReLU
    hfc = jax.nn.relu(
        jnp.dot(ln.astype(jnp.bfloat16), wfc1_ref[...],
                preferred_element_type=jnp.float32) + bfc1_ref[...])
    # Linear(64, out_dim)
    out = (jnp.dot(hfc.astype(jnp.bfloat16), wfc2_ref[...],
                   preferred_element_type=jnp.float32) + bfc2_ref[...])
    o_ref[...] = out[None].astype(o_ref.dtype)                  # (1, Bt, out_dim)


def _vmem_capacity_bytes():
    try:
        return int(pltpu.get_tpu_info().vmem_capacity_bytes)
    except Exception:
        return 64 * 1024 * 1024          # conservative (v7x per-core figure)


def _select_batch_tile(B, W, block_b=None):
    """VMEM-aware batch tile; guarantees >=2 grid steps when B > 1 (v7x 2 TCs)."""
    cap = _vmem_capacity_bytes()
    # Per-image live-set estimate (bytes), dominated by the bf16 im2col patch
    # matrices of conv2/conv3 (K = 288) plus the f32/bf16 activations.
    per_img = ((W + 2) ** 2 * _CIN_PAD * 2        # padded bf16 input
               + W * W * 32 * 6                   # h1 (f32 + bf16 copy)
               + 2 * (W - 2) ** 2 * 288 * 2       # conv2/conv3 patch matrices
               + (W - 2) ** 2 * 32 * 10           # h2, h3 f32
               + W * W * 32 * 2)                  # padded conv3 input bf16
    budget = min(cap // 3, 24 * 1024 * 1024)
    if block_b is None:
        block_b = max(1, min(32, budget // max(per_img, 1)))
    bt = max(1, min(block_b, B))
    if B > 1 and bt >= B:                         # force >=2 steps for megacore
        bt = -(-B // 2)
    return bt


def make_value_params(key, use_antigoal=False, like_q=False):
    """Deterministic parameter init matching the module's __init__ shapes."""
    cin = 4 if use_antigoal else 3
    out_dim = 9 if like_q else 1
    ks = jax.random.split(key, 12)

    def uconv(k, ci, co):
        bound = 1.0 / math.sqrt(ci * 9)
        return jax.random.uniform(k, (3, 3, ci, co), jnp.float32, -bound, bound)

    def ulin(k, ci, co):
        bound = 1.0 / math.sqrt(ci)
        return jax.random.uniform(k, (ci, co), jnp.float32, -bound, bound)

    def ubias(k, n, fan_in):
        bound = 1.0 / math.sqrt(fan_in)
        return jax.random.uniform(k, (1, n), jnp.float32, -bound, bound)

    return {
        "w1": uconv(ks[0], cin, 32), "b1": ubias(ks[1], 32, cin * 9),
        "w2": uconv(ks[2], 32, 32),  "b2": ubias(ks[3], 32, 32 * 9),
        "w3": uconv(ks[4], 32, 32),  "b3": ubias(ks[5], 32, 32 * 9),
        "w4": uconv(ks[6], 32, 64),  "b4": ubias(ks[7], 64, 32 * 9),
        "ln_g": jnp.ones((1, 64), jnp.float32),
        "ln_b": jnp.zeros((1, 64), jnp.float32),
        "wfc1": ulin(ks[8], 64, 64),      "bfc1": ubias(ks[9], 64, 64),
        "wfc2": ulin(ks[10], 64, out_dim), "bfc2": ubias(ks[11], out_dim, 64),
    }


def value_forward(params, s, g, ag=None, like_q=False, block_b=None):
    """Pallas forward. s, g, ag are NCHW (PyTorch convention)."""
    parts = [s, g] if ag is None else [s, g, ag]
    x = jnp.concatenate(parts, axis=1).astype(jnp.float32)   # (B, C, W, W)
    x = jnp.transpose(x, (0, 2, 3, 1))                        # NCHW -> NHWC
    B, W, _, cin = x.shape
    out_dim = params["wfc2"].shape[-1]
    cin_p = max(_CIN_PAD, cin)

    bt = _select_batch_tile(B, W, block_b)
    n_steps = -(-B // bt)
    b_pad = n_steps * bt

    # conv1 'same' padding + channel padding hoisted; input cast to bf16
    # (halves HBM->VMEM traffic; all matmuls accumulate in f32).
    x = jnp.pad(x, ((0, b_pad - B), (1, 1), (1, 1), (0, cin_p - cin)))
    x = x.astype(jnp.bfloat16)                                 # (Bp, W+2, W+2, cin_p)

    # Flatten conv weights to (9*Cin, Cout) for im2col; matmul weights in bf16.
    p = {}
    w1 = jnp.pad(params["w1"], ((0, 0), (0, 0), (0, cin_p - cin), (0, 0)))
    p["w1"] = w1.reshape(9 * cin_p, -1).astype(jnp.bfloat16)
    for k in ("w2", "w3", "w4"):
        w = params[k]
        p[k] = w.reshape(w.shape[0] * w.shape[1] * w.shape[2],
                         w.shape[3]).astype(jnp.bfloat16)
    for k in ("wfc1", "wfc2"):
        p[k] = params[k].astype(jnp.bfloat16)
    for k in ("b1", "b2", "b3", "b4", "ln_g", "ln_b", "bfc1", "bfc2"):
        p[k] = params[k].astype(jnp.float32)

    param_list = [p[k] for k in _PARAM_ORDER]

    def full_spec(a):
        nd = a.ndim
        return pl.BlockSpec(a.shape, lambda b, _nd=nd: (0,) * _nd)

    in_specs = [pl.BlockSpec((bt, W + 2, W + 2, cin_p), lambda b: (b, 0, 0, 0))]
    in_specs += [full_spec(a) for a in param_list]   # constant maps -> DMA'd once

    vmem_limit = int(min(_vmem_capacity_bytes() * 3 // 4, 64 * 1024 * 1024))

    out = pl.pallas_call(
        value_kernel,
        out_shape=jax.ShapeDtypeStruct((n_steps, bt, out_dim), jnp.float32),
        grid_spec=pltpu.PrefetchScalarGridSpec(
            num_scalar_prefetch=0,
            grid=(n_steps,),
            in_specs=in_specs,
            out_specs=pl.BlockSpec((1, bt, out_dim), lambda b: (b, 0, 0)),
        ),
        compiler_params=pltpu.CompilerParams(
            dimension_semantics=("parallel",),       # batch steps independent
            vmem_limit_bytes=vmem_limit),
    )(x, *param_list)

    out = out.reshape(b_pad, out_dim)[:B]
    return out if like_q else out.reshape(-1)


def value_reference(params, s, g, ag=None, like_q=False):
    """Pure-JAX f32 reference for correctness checking."""
    parts = [s, g] if ag is None else [s, g, ag]
    x = jnp.concatenate(parts, axis=1).astype(jnp.float32)
    x = jnp.transpose(x, (0, 2, 3, 1))
    dn = ("NHWC", "HWIO", "NHWC")

    def conv(x, w, b, pad):
        y = jax.lax.conv_general_dilated(
            x, w, (1, 1), [(pad, pad), (pad, pad)], dimension_numbers=dn)
        return y + b.reshape(1, 1, 1, -1)

    x = jax.nn.relu(conv(x, params["w1"], params["b1"], 1))
    x = jax.nn.relu(conv(x, params["w2"], params["b2"], 0))
    x = jax.nn.relu(conv(x, params["w3"], params["b3"], 1))
    x = conv(x, params["w4"], params["b4"], 0)
    v = jnp.mean(x, axis=(1, 2))                               # (B, 64)
    mu = jnp.mean(v, -1, keepdims=True)
    var = jnp.mean((v - mu) ** 2, -1, keepdims=True)
    ln = (v - mu) / jnp.sqrt(var + 1e-5) * params["ln_g"] + params["ln_b"]
    h = jax.nn.relu(ln @ params["wfc1"] + params["bfc1"])
    out = h @ params["wfc2"] + params["bfc2"]
    return out if like_q else out.reshape(-1)


# TODO(synk): q_no_grad only toggles requires_grad (autograd bookkeeping); it has
# no forward-compute analogue and is intentionally not implemented as a kernel.

if __name__ == "__main__":
    use_antigoal, like_q = False, False       # Conv in_channels = 3, output (B,)
    key = jax.random.PRNGKey(0)
    kp, ks, kg = jax.random.split(key, 3)

    params = make_value_params(kp, use_antigoal=use_antigoal, like_q=like_q)

    B, W = 2, 16
    s = jax.random.normal(ks, (B, 2, W, W), jnp.float32)   # NCHW, 2 channels
    g = jax.random.normal(kg, (B, 1, W, W), jnp.float32)   # NCHW, 1 channel

    out = value_forward(params, s, g, None, like_q=like_q)
    out = jax.block_until_ready(out)

    ref = value_reference(params, s, g, None, like_q=like_q)
    assert out.shape == (B,), out.shape
    # bf16 MXU operands (f32 accumulation) loosen the tolerance vs the f32 ref.
    assert bool(jnp.allclose(out, ref, rtol=5e-2, atol=5e-2)), (out, ref)

    print("KERNEL_OK")
</pallas_src>

<mosaic_0001>
module attributes {stable_mosaic.version = 11 : i64} {
  func.func @value_kernel(%arg0: i32, %arg1: memref<1x18x18x8xbf16, #tpu.memory_space<vmem>>, %arg2: memref<72x32xbf16, #tpu.memory_space<vmem>>, %arg3: memref<1x32xf32, #tpu.memory_space<vmem>>, %arg4: memref<288x32xbf16, #tpu.memory_space<vmem>>, %arg5: memref<1x32xf32, #tpu.memory_space<vmem>>, %arg6: memref<288x32xbf16, #tpu.memory_space<vmem>>, %arg7: memref<1x32xf32, #tpu.memory_space<vmem>>, %arg8: memref<288x64xbf16, #tpu.memory_space<vmem>>, %arg9: memref<1x64xf32, #tpu.memory_space<vmem>>, %arg10: memref<1x64xf32, #tpu.memory_space<vmem>>, %arg11: memref<1x64xf32, #tpu.memory_space<vmem>>, %arg12: memref<64x64xbf16, #tpu.memory_space<vmem>>, %arg13: memref<1x64xf32, #tpu.memory_space<vmem>>, %arg14: memref<64x1xbf16, #tpu.memory_space<vmem>>, %arg15: memref<1x1xf32, #tpu.memory_space<vmem>>, %arg16: memref<1x1x1xf32, #tpu.memory_space<vmem>>) attributes {dimension_semantics = [#tpu.dimension_semantics<parallel>], iteration_bounds = array<i64: 2>, scalar_prefetch = 0 : i64, scratch_operands = 0 : i64, tpu.core_type = #tpu.core_type<tc>, window_params = [{transform_indices = @transform_0, window_bounds = array<i64: 1, 18, 18, 8>}, {pipeline_mode = #tpu.pipeline_mode<synchronous>, transform_indices = @transform_1, window_bounds = array<i64: 72, 32>}, {pipeline_mode = #tpu.pipeline_mode<synchronous>, transform_indices = @transform_2, window_bounds = array<i64: 1, 32>}, {pipeline_mode = #tpu.pipeline_mode<synchronous>, transform_indices = @transform_3, window_bounds = array<i64: 288, 32>}, {pipeline_mode = #tpu.pipeline_mode<synchronous>, transform_indices = @transform_4, window_bounds = array<i64: 1, 32>}, {pipeline_mode = #tpu.pipeline_mode<synchronous>, transform_indices = @transform_5, window_bounds = array<i64: 288, 32>}, {pipeline_mode = #tpu.pipeline_mode<synchronous>, transform_indices = @transform_6, window_bounds = array<i64: 1, 32>}, {pipeline_mode = #tpu.pipeline_mode<synchronous>, transform_indices = @transform_7, window_bounds = array<i64: 288, 64>}, {pipeline_mode = #tpu.pipeline_mode<synchronous>, transform_indices = @transform_8, window_bounds = array<i64: 1, 64>}, {pipeline_mode = #tpu.pipeline_mode<synchronous>, transform_indices = @transform_9, window_bounds = array<i64: 1, 64>}, {pipeline_mode = #tpu.pipeline_mode<synchronous>, transform_indices = @transform_10, window_bounds = array<i64: 1, 64>}, {pipeline_mode = #tpu.pipeline_mode<synchronous>, transform_indices = @transform_11, window_bounds = array<i64: 64, 64>}, {pipeline_mode = #tpu.pipeline_mode<synchronous>, transform_indices = @transform_12, window_bounds = array<i64: 1, 64>}, {pipeline_mode = #tpu.pipeline_mode<synchronous>, transform_indices = @transform_13, window_bounds = array<i64: 64, 1>}, {pipeline_mode = #tpu.pipeline_mode<synchronous>, transform_indices = @transform_14, window_bounds = array<i64: 1, 1>}, {transform_indices = @transform_15, window_bounds = array<i64: 1, 1, 1>}]} {
    %c0 = arith.constant 0 : index
    %c0_0 = arith.constant 0 : index
    %c0_1 = arith.constant 0 : index
    %c0_2 = arith.constant 0 : index
    %0 = vector.load %arg1[%c0, %c0_0, %c0_1, %c0_2] : memref<1x18x18x8xbf16, #tpu.memory_space<vmem>>, vector<1x18x18x8xbf16>
    %1 = vector.extract_strided_slice %0 {offsets = [0, 0, 0, 0], sizes = [1, 16, 16, 8], strides = [1, 1, 1, 1]} : vector<1x18x18x8xbf16> to vector<1x16x16x8xbf16>
    %2 = vector.shape_cast %1 : vector<1x16x16x8xbf16> to vector<256x8xbf16>
    %3 = vector.extract_strided_slice %0 {offsets = [0, 0, 1, 0], sizes = [1, 16, 16, 8], strides = [1, 1, 1, 1]} : vector<1x18x18x8xbf16> to vector<1x16x16x8xbf16>
    %4 = vector.shape_cast %3 : vector<1x16x16x8xbf16> to vector<256x8xbf16>
    %5 = vector.extract_strided_slice %0 {offsets = [0, 0, 2, 0], sizes = [1, 16, 16, 8], strides = [1, 1, 1, 1]} : vector<1x18x18x8xbf16> to vector<1x16x16x8xbf16>
    %6 = vector.shape_cast %5 : vector<1x16x16x8xbf16> to vector<256x8xbf16>
    %7 = vector.extract_strided_slice %0 {offsets = [0, 1, 0, 0], sizes = [1, 16, 16, 8], strides = [1, 1, 1, 1]} : vector<1x18x18x8xbf16> to vector<1x16x16x8xbf16>
    %8 = vector.shape_cast %7 : vector<1x16x16x8xbf16> to vector<256x8xbf16>
    %9 = vector.extract_strided_slice %0 {offsets = [0, 1, 1, 0], sizes = [1, 16, 16, 8], strides = [1, 1, 1, 1]} : vector<1x18x18x8xbf16> to vector<1x16x16x8xbf16>
    %10 = vector.shape_cast %9 : vector<1x16x16x8xbf16> to vector<256x8xbf16>
    %11 = vector.extract_strided_slice %0 {offsets = [0, 1, 2, 0], sizes = [1, 16, 16, 8], strides = [1, 1, 1, 1]} : vector<1x18x18x8xbf16> to vector<1x16x16x8xbf16>
    %12 = vector.shape_cast %11 : vector<1x16x16x8xbf16> to vector<256x8xbf16>
    %13 = vector.extract_strided_slice %0 {offsets = [0, 2, 0, 0], sizes = [1, 16, 16, 8], strides = [1, 1, 1, 1]} : vector<1x18x18x8xbf16> to vector<1x16x16x8xbf16>
    %14 = vector.shape_cast %13 : vector<1x16x16x8xbf16> to vector<256x8xbf16>
    %15 = vector.extract_strided_slice %0 {offsets = [0, 2, 1, 0], sizes = [1, 16, 16, 8], strides = [1, 1, 1, 1]} : vector<1x18x18x8xbf16> to vector<1x16x16x8xbf16>
    %16 = vector.shape_cast %15 : vector<1x16x16x8xbf16> to vector<256x8xbf16>
    %17 = vector.extract_strided_slice %0 {offsets = [0, 2, 2, 0], sizes = [1, 16, 16, 8], strides = [1, 1, 1, 1]} : vector<1x18x18x8xbf16> to vector<1x16x16x8xbf16>
    %18 = vector.shape_cast %17 : vector<1x16x16x8xbf16> to vector<256x8xbf16>
    %19 = tpu.concatenate %2, %4, %6, %8, %10, %12, %14, %16, %18 in 1 : vector<256x8xbf16>, vector<256x8xbf16>, vector<256x8xbf16>, vector<256x8xbf16>, vector<256x8xbf16>, vector<256x8xbf16>, vector<256x8xbf16>, vector<256x8xbf16>, vector<256x8xbf16> -> vector<256x72xbf16>
    %c0_3 = arith.constant 0 : index
    %c0_4 = arith.constant 0 : index
    %20 = vector.load %arg2[%c0_3, %c0_4] : memref<72x32xbf16, #tpu.memory_space<vmem>>, vector<72x32xbf16>
    %cst = arith.constant dense<0.000000e+00> : vector<256x32xf32>
    %21 = tpu.matmul %19, %20, %cst {dimension_numbers = #tpu.dot_dimension_numbers<[1], [0], [0], [1], [0, 0, 1, 1], [], []>} : vector<256x72xbf16>, vector<72x32xbf16>, vector<256x32xf32> -> vector<256x32xf32>
    %c0_5 = arith.constant 0 : index
    %c0_6 = arith.constant 0 : index
    %22 = vector.load %arg3[%c0_5, %c0_6] : memref<1x32xf32, #tpu.memory_space<vmem>>, vector<1x32xf32>
    %23 = vector.broadcast %22 : vector<1x32xf32> to vector<256x32xf32>
    %24 = arith.addf %21, %23 : vector<256x32xf32>
    %25 = vector.shape_cast %24 : vector<256x32xf32> to vector<1x16x16x32xf32>
    %cst_7 = arith.constant 0.000000e+00 : f32
    %26 = vector.broadcast %cst_7 : f32 to vector<1x16x16x32xf32>
    %27 = arith.maximumf %25, %26 : vector<1x16x16x32xf32>
    %28 = arith.truncf %27 : vector<1x16x16x32xf32> to vector<1x16x16x32xbf16>
    %29 = vector.extract_strided_slice %28 {offsets = [0, 0, 0, 0], sizes = [1, 14, 14, 32], strides = [1, 1, 1, 1]} : vector<1x16x16x32xbf16> to vector<1x14x14x32xbf16>
    %30 = vector.shape_cast %29 : vector<1x14x14x32xbf16> to vector<196x32xbf16>
    %31 = vector.extract_strided_slice %28 {offsets = [0, 0, 1, 0], sizes = [1, 14, 14, 32], strides = [1, 1, 1, 1]} : vector<1x16x16x32xbf16> to vector<1x14x14x32xbf16>
    %32 = vector.shape_cast %31 : vector<1x14x14x32xbf16> to vector<196x32xbf16>
    %33 = vector.extract_strided_slice %28 {offsets = [0, 0, 2, 0], sizes = [1, 14, 14, 32], strides = [1, 1, 1, 1]} : vector<1x16x16x32xbf16> to vector<1x14x14x32xbf16>
    %34 = vector.shape_cast %33 : vector<1x14x14x32xbf16> to vector<196x32xbf16>
    %35 = vector.extract_strided_slice %28 {offsets = [0, 1, 0, 0], sizes = [1, 14, 14, 32], strides = [1, 1, 1, 1]} : vector<1x16x16x32xbf16> to vector<1x14x14x32xbf16>
    %36 = vector.shape_cast %35 : vector<1x14x14x32xbf16> to vector<196x32xbf16>
    %37 = vector.extract_strided_slice %28 {offsets = [0, 1, 1, 0], sizes = [1, 14, 14, 32], strides = [1, 1, 1, 1]} : vector<1x16x16x32xbf16> to vector<1x14x14x32xbf16>
    %38 = vector.shape_cast %37 : vector<1x14x14x32xbf16> to vector<196x32xbf16>
    %39 = vector.extract_strided_slice %28 {offsets = [0, 1, 2, 0], sizes = [1, 14, 14, 32], strides = [1, 1, 1, 1]} : vector<1x16x16x32xbf16> to vector<1x14x14x32xbf16>
    %40 = vector.shape_cast %39 : vector<1x14x14x32xbf16> to vector<196x32xbf16>
    %41 = vector.extract_strided_slice %28 {offsets = [0, 2, 0, 0], sizes = [1, 14, 14, 32], strides = [1, 1, 1, 1]} : vector<1x16x16x32xbf16> to vector<1x14x14x32xbf16>
    %42 = vector.shape_cast %41 : vector<1x14x14x32xbf16> to vector<196x32xbf16>
    %43 = vector.extract_strided_slice %28 {offsets = [0, 2, 1, 0], sizes = [1, 14, 14, 32], strides = [1, 1, 1, 1]} : vector<1x16x16x32xbf16> to vector<1x14x14x32xbf16>
    %44 = vector.shape_cast %43 : vector<1x14x14x32xbf16> to vector<196x32xbf16>
    %45 = vector.extract_strided_slice %28 {offsets = [0, 2, 2, 0], sizes = [1, 14, 14, 32], strides = [1, 1, 1, 1]} : vector<1x16x16x32xbf16> to vector<1x14x14x32xbf16>
    %46 = vector.shape_cast %45 : vector<1x14x14x32xbf16> to vector<196x32xbf16>
    %47 = tpu.concatenate %30, %32, %34, %36, %38, %40, %42, %44, %46 in 1 : vector<196x32xbf16>, vector<196x32xbf16>, vector<196x32xbf16>, vector<196x32xbf16>, vector<196x32xbf16>, vector<196x32xbf16>, vector<196x32xbf16>, vector<196x32xbf16>, vector<196x32xbf16> -> vector<196x288xbf16>
    %c0_8 = arith.constant 0 : index
    %c0_9 = arith.constant 0 : index
    %48 = vector.load %arg4[%c0_8, %c0_9] : memref<288x32xbf16, #tpu.memory_space<vmem>>, vector<288x32xbf16>
    %cst_10 = arith.constant dense<0.000000e+00> : vector<196x32xf32>
    %49 = tpu.matmul %47, %48, %cst_10 {dimension_numbers = #tpu.dot_dimension_numbers<[1], [0], [0], [1], [0, 0, 1, 1], [], []>} : vector<196x288xbf16>, vector<288x32xbf16>, vector<196x32xf32> -> vector<196x32xf32>
    %c0_11 = arith.constant 0 : index
    %c0_12 = arith.constant 0 : index
    %50 = vector.load %arg5[%c0_11, %c0_12] : memref<1x32xf32, #tpu.memory_space<vmem>>, vector<1x32xf32>
    %51 = vector.broadcast %50 : vector<1x32xf32> to vector<196x32xf32>
    %52 = arith.addf %49, %51 : vector<196x32xf32>
    %53 = vector.shape_cast %52 : vector<196x32xf32> to vector<1x14x14x32xf32>
    %cst_13 = arith.constant 0.000000e+00 : f32
    %54 = vector.broadcast %cst_13 : f32 to vector<1x14x14x32xf32>
    %55 = arith.maximumf %53, %54 : vector<1x14x14x32xf32>
    %cst_14 = arith.constant 0.000000e+00 : f32
    %56 = vector.broadcast %cst_14 : f32 to vector<1x1x14x32xf32>
    %57 = tpu.concatenate %56, %55, %56 in 1 : vector<1x1x14x32xf32>, vector<1x14x14x32xf32>, vector<1x1x14x32xf32> -> vector<1x16x14x32xf32>
    %cst_15 = arith.constant 0.000000e+00 : f32
    %58 = vector.broadcast %cst_15 : f32 to vector<1x16x1x32xf32>
    %59 = tpu.concatenate %58, %57, %58 in 2 : vector<1x16x1x32xf32>, vector<1x16x14x32xf32>, vector<1x16x1x32xf32> -> vector<1x16x16x32xf32>
    %60 = arith.truncf %59 : vector<1x16x16x32xf32> to vector<1x16x16x32xbf16>
    %61 = vector.extract_strided_slice %60 {offsets = [0, 0, 0, 0], sizes = [1, 14, 14, 32], strides = [1, 1, 1, 1]} : vector<1x16x16x32xbf16> to vector<1x14x14x32xbf16>
    %62 = vector.shape_cast %61 : vector<1x14x14x32xbf16> to vector<196x32xbf16>
    %63 = vector.extract_strided_slice %60 {offsets = [0, 0, 1, 0], sizes = [1, 14, 14, 32], strides = [1, 1, 1, 1]} : vector<1x16x16x32xbf16> to vector<1x14x14x32xbf16>
    %64 = vector.shape_cast %63 : vector<1x14x14x32xbf16> to vector<196x32xbf16>
    %65 = vector.extract_strided_slice %60 {offsets = [0, 0, 2, 0], sizes = [1, 14, 14, 32], strides = [1, 1, 1, 1]} : vector<1x16x16x32xbf16> to vector<1x14x14x32xbf16>
    %66 = vector.shape_cast %65 : vector<1x14x14x32xbf16> to vector<196x32xbf16>
    %67 = vector.extract_strided_slice %60 {offsets = [0, 1, 0, 0], sizes = [1, 14, 14, 32], strides = [1, 1, 1, 1]} : vector<1x16x16x32xbf16> to vector<1x14x14x32xbf16>
    %68 = vector.shape_cast %67 : vector<1x14x14x32xbf16> to vector<196x32xbf16>
    %69 = vector.extract_strided_slice %60 {offsets = [0, 1, 1, 0], sizes = [1, 14, 14, 32], strides = [1, 1, 1, 1]} : vector<1x16x16x32xbf16> to vector<1x14x14x32xbf16>
    %70 = vector.shape_cast %69 : vector<1x14x14x32xbf16> to vector<196x32xbf16>
    %71 = vector.extract_strided_slice %60 {offsets = [0, 1, 2, 0], sizes = [1, 14, 14, 32], strides = [1, 1, 1, 1]} : vector<1x16x16x32xbf16> to vector<1x14x14x32xbf16>
    %72 = vector.shape_cast %71 : vector<1x14x14x32xbf16> to vector<196x32xbf16>
    %73 = vector.extract_strided_slice %60 {offsets = [0, 2, 0, 0], sizes = [1, 14, 14, 32], strides = [1, 1, 1, 1]} : vector<1x16x16x32xbf16> to vector<1x14x14x32xbf16>
    %74 = vector.shape_cast %73 : vector<1x14x14x32xbf16> to vector<196x32xbf16>
    %75 = vector.extract_strided_slice %60 {offsets = [0, 2, 1, 0], sizes = [1, 14, 14, 32], strides = [1, 1, 1, 1]} : vector<1x16x16x32xbf16> to vector<1x14x14x32xbf16>
    %76 = vector.shape_cast %75 : vector<1x14x14x32xbf16> to vector<196x32xbf16>
    %77 = vector.extract_strided_slice %60 {offsets = [0, 2, 2, 0], sizes = [1, 14, 14, 32], strides = [1, 1, 1, 1]} : vector<1x16x16x32xbf16> to vector<1x14x14x32xbf16>
    %78 = vector.shape_cast %77 : vector<1x14x14x32xbf16> to vector<196x32xbf16>
    %79 = tpu.concatenate %62, %64, %66, %68, %70, %72, %74, %76, %78 in 1 : vector<196x32xbf16>, vector<196x32xbf16>, vector<196x32xbf16>, vector<196x32xbf16>, vector<196x32xbf16>, vector<196x32xbf16>, vector<196x32xbf16>, vector<196x32xbf16>, vector<196x32xbf16> -> vector<196x288xbf16>
    %c0_16 = arith.constant 0 : index
    %c0_17 = arith.constant 0 : index
    %80 = vector.load %arg6[%c0_16, %c0_17] : memref<288x32xbf16, #tpu.memory_space<vmem>>, vector<288x32xbf16>
    %cst_18 = arith.constant dense<0.000000e+00> : vector<196x32xf32>
    %81 = tpu.matmul %79, %80, %cst_18 {dimension_numbers = #tpu.dot_dimension_numbers<[1], [0], [0], [1], [0, 0, 1, 1], [], []>} : vector<196x288xbf16>, vector<288x32xbf16>, vector<196x32xf32> -> vector<196x32xf32>
    %c0_19 = arith.constant 0 : index
    %c0_20 = arith.constant 0 : index
    %82 = vector.load %arg7[%c0_19, %c0_20] : memref<1x32xf32, #tpu.memory_space<vmem>>, vector<1x32xf32>
    %83 = vector.broadcast %82 : vector<1x32xf32> to vector<196x32xf32>
    %84 = arith.addf %81, %83 : vector<196x32xf32>
    %85 = vector.shape_cast %84 : vector<196x32xf32> to vector<1x14x14x32xf32>
    %cst_21 = arith.constant 0.000000e+00 : f32
    %86 = vector.broadcast %cst_21 : f32 to vector<1x14x14x32xf32>
    %87 = arith.maximumf %85, %86 : vector<1x14x14x32xf32>
    %88 = vector.extract_strided_slice %87 {offsets = [0, 0, 0, 0], sizes = [1, 12, 12, 32], strides = [1, 1, 1, 1]} : vector<1x14x14x32xf32> to vector<1x12x12x32xf32>
    %cst_22 = arith.constant dense<0.000000e+00> : vector<1x32xf32>
    %89 = vector.multi_reduction <add>, %88, %cst_22 [1, 2] : vector<1x12x12x32xf32> to vector<1x32xf32>
    %cst_23 = arith.constant 0.0069444445 : f32
    %90 = vector.broadcast %cst_23 : f32 to vector<1x32xf32>
    %91 = arith.mulf %89, %90 : vector<1x32xf32>
    %92 = vector.extract_strided_slice %87 {offsets = [0, 0, 1, 0], sizes = [1, 12, 12, 32], strides = [1, 1, 1, 1]} : vector<1x14x14x32xf32> to vector<1x12x12x32xf32>
    %cst_24 = arith.constant dense<0.000000e+00> : vector<1x32xf32>
    %93 = vector.multi_reduction <add>, %92, %cst_24 [1, 2] : vector<1x12x12x32xf32> to vector<1x32xf32>
    %cst_25 = arith.constant 0.0069444445 : f32
    %94 = vector.broadcast %cst_25 : f32 to vector<1x32xf32>
    %95 = arith.mulf %93, %94 : vector<1x32xf32>
    %96 = vector.extract_strided_slice %87 {offsets = [0, 0, 2, 0], sizes = [1, 12, 12, 32], strides = [1, 1, 1, 1]} : vector<1x14x14x32xf32> to vector<1x12x12x32xf32>
    %cst_26 = arith.constant dense<0.000000e+00> : vector<1x32xf32>
    %97 = vector.multi_reduction <add>, %96, %cst_26 [1, 2] : vector<1x12x12x32xf32> to vector<1x32xf32>
    %cst_27 = arith.constant 0.0069444445 : f32
    %98 = vector.broadcast %cst_27 : f32 to vector<1x32xf32>
    %99 = arith.mulf %97, %98 : vector<1x32xf32>
    %100 = vector.extract_strided_slice %87 {offsets = [0, 1, 0, 0], sizes = [1, 12, 12, 32], strides = [1, 1, 1, 1]} : vector<1x14x14x32xf32> to vector<1x12x12x32xf32>
    %cst_28 = arith.constant dense<0.000000e+00> : vector<1x32xf32>
    %101 = vector.multi_reduction <add>, %100, %cst_28 [1, 2] : vector<1x12x12x32xf32> to vector<1x32xf32>
    %cst_29 = arith.constant 0.0069444445 : f32
    %102 = vector.broadcast %cst_29 : f32 to vector<1x32xf32>
    %103 = arith.mulf %101, %102 : vector<1x32xf32>
    %104 = vector.extract_strided_slice %87 {offsets = [0, 1, 1, 0], sizes = [1, 12, 12, 32], strides = [1, 1, 1, 1]} : vector<1x14x14x32xf32> to vector<1x12x12x32xf32>
    %cst_30 = arith.constant dense<0.000000e+00> : vector<1x32xf32>
    %105 = vector.multi_reduction <add>, %104, %cst_30 [1, 2] : vector<1x12x12x32xf32> to vector<1x32xf32>
    %cst_31 = arith.constant 0.0069444445 : f32
    %106 = vector.broadcast %cst_31 : f32 to vector<1x32xf32>
    %107 = arith.mulf %105, %106 : vector<1x32xf32>
    %108 = vector.extract_strided_slice %87 {offsets = [0, 1, 2, 0], sizes = [1, 12, 12, 32], strides = [1, 1, 1, 1]} : vector<1x14x14x32xf32> to vector<1x12x12x32xf32>
    %cst_32 = arith.constant dense<0.000000e+00> : vector<1x32xf32>
    %109 = vector.multi_reduction <add>, %108, %cst_32 [1, 2] : vector<1x12x12x32xf32> to vector<1x32xf32>
    %cst_33 = arith.constant 0.0069444445 : f32
    %110 = vector.broadcast %cst_33 : f32 to vector<1x32xf32>
    %111 = arith.mulf %109, %110 : vector<1x32xf32>
    %112 = vector.extract_strided_slice %87 {offsets = [0, 2, 0, 0], sizes = [1, 12, 12, 32], strides = [1, 1, 1, 1]} : vector<1x14x14x32xf32> to vector<1x12x12x32xf32>
    %cst_34 = arith.constant dense<0.000000e+00> : vector<1x32xf32>
    %113 = vector.multi_reduction <add>, %112, %cst_34 [1, 2] : vector<1x12x12x32xf32> to vector<1x32xf32>
    %cst_35 = arith.constant 0.0069444445 : f32
    %114 = vector.broadcast %cst_35 : f32 to vector<1x32xf32>
    %115 = arith.mulf %113, %114 : vector<1x32xf32>
    %116 = vector.extract_strided_slice %87 {offsets = [0, 2, 1, 0], sizes = [1, 12, 12, 32], strides = [1, 1, 1, 1]} : vector<1x14x14x32xf32> to vector<1x12x12x32xf32>
    %cst_36 = arith.constant dense<0.000000e+00> : vector<1x32xf32>
    %117 = vector.multi_reduction <add>, %116, %cst_36 [1, 2] : vector<1x12x12x32xf32> to vector<1x32xf32>
    %cst_37 = arith.constant 0.0069444445 : f32
    %118 = vector.broadcast %cst_37 : f32 to vector<1x32xf32>
    %119 = arith.mulf %117, %118 : vector<1x32xf32>
    %120 = vector.extract_strided_slice %87 {offsets = [0, 2, 2, 0], sizes = [1, 12, 12, 32], strides = [1, 1, 1, 1]} : vector<1x14x14x32xf32> to vector<1x12x12x32xf32>
    %cst_38 = arith.constant dense<0.000000e+00> : vector<1x32xf32>
    %121 = vector.multi_reduction <add>, %120, %cst_38 [1, 2] : vector<1x12x12x32xf32> to vector<1x32xf32>
    %cst_39 = arith.constant 0.0069444445 : f32
    %122 = vector.broadcast %cst_39 : f32 to vector<1x32xf32>
    %123 = arith.mulf %121, %122 : vector<1x32xf32>
    %124 = tpu.concatenate %91, %95, %99, %103, %107, %111, %115, %119, %123 in 1 : vector<1x32xf32>, vector<1x32xf32>, vector<1x32xf32>, vector<1x32xf32>, vector<1x32xf32>, vector<1x32xf32>, vector<1x32xf32>, vector<1x32xf32>, vector<1x32xf32> -> vector<1x288xf32>
    %125 = arith.truncf %124 : vector<1x288xf32> to vector<1x288xbf16>
    %c0_40 = arith.constant 0 : index
    %c0_41 = arith.constant 0 : index
    %126 = vector.load %arg8[%c0_40, %c0_41] : memref<288x64xbf16, #tpu.memory_space<vmem>>, vector<288x64xbf16>
    %cst_42 = arith.constant dense<0.000000e+00> : vector<1x64xf32>
    %127 = tpu.matmul %125, %126, %cst_42 {dimension_numbers = #tpu.dot_dimension_numbers<[1], [0], [0], [1], [0, 0, 1, 1], [], []>} : vector<1x288xbf16>, vector<288x64xbf16>, vector<1x64xf32> -> vector<1x64xf32>
    %c0_43 = arith.constant 0 : index
    %c0_44 = arith.constant 0 : index
    %128 = vector.load %arg9[%c0_43, %c0_44] : memref<1x64xf32, #tpu.memory_space<vmem>>, vector<1x64xf32>
    %129 = arith.addf %127, %128 : vector<1x64xf32>
    %cst_45 = arith.constant dense<0.000000e+00> : vector<1xf32>
    %130 = vector.multi_reduction <add>, %129, %cst_45 [1] : vector<1x64xf32> to vector<1xf32>
    %131 = vector.shape_cast %130 : vector<1xf32> to vector<1x1xf32>
    %cst_46 = arith.constant 6.400000e+01 : f32
    %132 = vector.broadcast %cst_46 : f32 to vector<1x1xf32>
    %133 = arith.divf %131, %132 : vector<1x1xf32>
    %134 = vector.broadcast %133 : vector<1x1xf32> to vector<1x64xf32>
    %135 = arith.subf %129, %134 : vector<1x64xf32>
    %136 = arith.mulf %135, %135 : vector<1x64xf32>
    %cst_47 = arith.constant dense<0.000000e+00> : vector<1xf32>
    %137 = vector.multi_reduction <add>, %136, %cst_47 [1] : vector<1x64xf32> to vector<1xf32>
    %138 = vector.shape_cast %137 : vector<1xf32> to vector<1x1xf32>
    %cst_48 = arith.constant 6.400000e+01 : f32
    %139 = vector.broadcast %cst_48 : f32 to vector<1x1xf32>
    %140 = arith.divf %138, %139 : vector<1x1xf32>
    %141 = vector.broadcast %133 : vector<1x1xf32> to vector<1x64xf32>
    %142 = arith.subf %129, %141 : vector<1x64xf32>
    %cst_49 = arith.constant 9.99999974E-6 : f32
    %143 = vector.broadcast %cst_49 : f32 to vector<1x1xf32>
    %144 = arith.addf %140, %143 : vector<1x1xf32>
    %145 = math.rsqrt %144 : vector<1x1xf32>
    %146 = vector.broadcast %145 : vector<1x1xf32> to vector<1x64xf32>
    %147 = arith.mulf %142, %146 : vector<1x64xf32>
    %c0_50 = arith.constant 0 : index
    %c0_51 = arith.constant 0 : index
    %148 = vector.load %arg10[%c0_50, %c0_51] : memref<1x64xf32, #tpu.memory_space<vmem>>, vector<1x64xf32>
    %149 = arith.mulf %147, %148 : vector<1x64xf32>
    %c0_52 = arith.constant 0 : index
    %c0_53 = arith.constant 0 : index
    %150 = vector.load %arg11[%c0_52, %c0_53] : memref<1x64xf32, #tpu.memory_space<vmem>>, vector<1x64xf32>
    %151 = arith.addf %149, %150 : vector<1x64xf32>
    %152 = arith.truncf %151 : vector<1x64xf32> to vector<1x64xbf16>
    %c0_54 = arith.constant 0 : index
    %c0_55 = arith.constant 0 : index
    %153 = vector.load %arg12[%c0_54, %c0_55] : memref<64x64xbf16, #tpu.memory_space<vmem>>, vector<64x64xbf16>
    %cst_56 = arith.constant dense<0.000000e+00> : vector<1x64xf32>
    %154 = tpu.matmul %152, %153, %cst_56 {dimension_numbers = #tpu.dot_dimension_numbers<[1], [0], [0], [1], [0, 0, 1, 1], [], []>} : vector<1x64xbf16>, vector<64x64xbf16>, vector<1x64xf32> -> vector<1x64xf32>
    %c0_57 = arith.constant 0 : index
    %c0_58 = arith.constant 0 : index
    %155 = vector.load %arg13[%c0_57, %c0_58] : memref<1x64xf32, #tpu.memory_space<vmem>>, vector<1x64xf32>
    %156 = arith.addf %154, %155 : vector<1x64xf32>
    %cst_59 = arith.constant 0.000000e+00 : f32
    %157 = vector.broadcast %cst_59 : f32 to vector<1x64xf32>
    %158 = arith.maximumf %156, %157 : vector<1x64xf32>
    %159 = arith.truncf %158 : vector<1x64xf32> to vector<1x64xbf16>
    %c0_60 = arith.constant 0 : index
    %c0_61 = arith.constant 0 : index
    %160 = vector.load %arg14[%c0_60, %c0_61] : memref<64x1xbf16, #tpu.memory_space<vmem>>, vector<64x1xbf16>
    %cst_62 = arith.constant dense<0.000000e+00> : vector<1x1xf32>
    %161 = tpu.matmul %159, %160, %cst_62 {dimension_numbers = #tpu.dot_dimension_numbers<[1], [0], [0], [1], [0, 0, 1, 1], [], []>} : vector<1x64xbf16>, vector<64x1xbf16>, vector<1x1xf32> -> vector<1x1xf32>
    %c0_63 = arith.constant 0 : index
    %c0_64 = arith.constant 0 : index
    %162 = vector.load %arg15[%c0_63, %c0_64] : memref<1x1xf32, #tpu.memory_space<vmem>>, vector<1x1xf32>
    %163 = arith.addf %161, %162 : vector<1x1xf32>
    %164 = vector.shape_cast %163 : vector<1x1xf32> to vector<1x1x1xf32>
    %c0_65 = arith.constant 0 : index
    %c0_66 = arith.constant 0 : index
    %c0_67 = arith.constant 0 : index
    %165 = vector.load %arg16[%c0_65, %c0_66, %c0_67] : memref<1x1x1xf32, #tpu.memory_space<vmem>>, vector<1x1x1xf32>
    tpu.vector_store %arg16[%c0_65, %c0_66, %c0_67], %164 {strides = array<i32>} : memref<1x1x1xf32, #tpu.memory_space<vmem>>, vector<1x1x1xf32>,
    return
  }
  func.func @transform_0(%arg0: i32) -> (i32, i32, i32, i32) {
    %c0_i32 = arith.constant 0 : i32
    %c0_i32_0 = arith.constant 0 : i32
    %c0_i32_1 = arith.constant 0 : i32
    %c0_i32_2 = arith.constant 0 : i32
    return %arg0, %c0_i32, %c0_i32_0, %c0_i32_1 : i32, i32, i32, i32
  }
  func.func @transform_1(%arg0: i32) -> (i32, i32) {
    %c0_i32 = arith.constant 0 : i32
    %c0_i32_0 = arith.constant 0 : i32
    %c0_i32_1 = arith.constant 0 : i32
    return %c0_i32, %c0_i32_0 : i32, i32
  }
  func.func @transform_2(%arg0: i32) -> (i32, i32) {
    %c0_i32 = arith.constant 0 : i32
    %c0_i32_0 = arith.constant 0 : i32
    %c0_i32_1 = arith.constant 0 : i32
    return %c0_i32, %c0_i32_0 : i32, i32
  }
  func.func @transform_3(%arg0: i32) -> (i32, i32) {
    %c0_i32 = arith.constant 0 : i32
    %c0_i32_0 = arith.constant 0 : i32
    %c0_i32_1 = arith.constant 0 : i32
    return %c0_i32, %c0_i32_0 : i32, i32
  }
  func.func @transform_4(%arg0: i32) -> (i32, i32) {
    %c0_i32 = arith.constant 0 : i32
    %c0_i32_0 = arith.constant 0 : i32
    %c0_i32_1 = arith.constant 0 : i32
    return %c0_i32, %c0_i32_0 : i32, i32
  }
  func.func @transform_5(%arg0: i32) -> (i32, i32) {
    %c0_i32 = arith.constant 0 : i32
    %c0_i32_0 = arith.constant 0 : i32
    %c0_i32_1 = arith.constant 0 : i32
    return %c0_i32, %c0_i32_0 : i32, i32
  }
  func.func @transform_6(%arg0: i32) -> (i32, i32) {
    %c0_i32 = arith.constant 0 : i32
    %c0_i32_0 = arith.constant 0 : i32
    %c0_i32_1 = arith.constant 0 : i32
    return %c0_i32, %c0_i32_0 : i32, i32
  }
  func.func @transform_7(%arg0: i32) -> (i32, i32) {
    %c0_i32 = arith.constant 0 : i32
    %c0_i32_0 = arith.constant 0 : i32
    %c0_i32_1 = arith.constant 0 : i32
    return %c0_i32, %c0_i32_0 : i32, i32
  }
  func.func @transform_8(%arg0: i32) -> (i32, i32) {
    %c0_i32 = arith.constant 0 : i32
    %c0_i32_0 = arith.constant 0 : i32
    %c0_i32_1 = arith.constant 0 : i32
    return %c0_i32, %c0_i32_0 : i32, i32
  }
  func.func @transform_9(%arg0: i32) -> (i32, i32) {
    %c0_i32 = arith.constant 0 : i32
    %c0_i32_0 = arith.constant 0 : i32
    %c0_i32_1 = arith.constant 0 : i32
    return %c0_i32, %c0_i32_0 : i32, i32
  }
  func.func @transform_10(%arg0: i32) -> (i32, i32) {
    %c0_i32 = arith.constant 0 : i32
    %c0_i32_0 = arith.constant 0 : i32
    %c0_i32_1 = arith.constant 0 : i32
    return %c0_i32, %c0_i32_0 : i32, i32
  }
  func.func @transform_11(%arg0: i32) -> (i32, i32) {
    %c0_i32 = arith.constant 0 : i32
    %c0_i32_0 = arith.constant 0 : i32
    %c0_i32_1 = arith.constant 0 : i32
    return %c0_i32, %c0_i32_0 : i32, i32
  }
  func.func @transform_12(%arg0: i32) -> (i32, i32) {
    %c0_i32 = arith.constant 0 : i32
    %c0_i32_0 = arith.constant 0 : i32
    %c0_i32_1 = arith.constant 0 : i32
    return %c0_i32, %c0_i32_0 : i32, i32
  }
  func.func @transform_13(%arg0: i32) -> (i32, i32) {
    %c0_i32 = arith.constant 0 : i32
    %c0_i32_0 = arith.constant 0 : i32
    %c0_i32_1 = arith.constant 0 : i32
    return %c0_i32, %c0_i32_0 : i32, i32
  }
  func.func @transform_14(%arg0: i32) -> (i32, i32) {
    %c0_i32 = arith.constant 0 : i32
    %c0_i32_0 = arith.constant 0 : i32
    %c0_i32_1 = arith.constant 0 : i32
    return %c0_i32, %c0_i32_0 : i32, i32
  }
  func.func @transform_15(%arg0: i32) -> (i32, i32, i32) {
    %c0_i32 = arith.constant 0 : i32
    %c0_i32_0 = arith.constant 0 : i32
    %c0_i32_1 = arith.constant 0 : i32
    return %arg0, %c0_i32, %c0_i32_0 : i32, i32, i32
  }
}

</mosaic_0001>

<bundles_post_ra>
// kernel: tpu_custom_call.1
= control target key start
LH: loop header
LB: loop body
LE: loop exit
PB: predicated region body
PF: predicated region fallthrough
CT: control target
= control target key end

     0   :  { %s19517_s20 = smov 0   ;;  %s27411_s0 = inlined_call_operand.vmem [shape: bf16[2,18,18,8], index: 0, kind: input, shape index: {}]   ;;  %s27412_s1 = inlined_call_operand.vmem [shape: bf16[72,32], index: 1, kind: input, shape index: {}]   ;;  %s27413_s2 = inlined_call_operand.vmem [shape: f32[1,32], index: 2, kind: input, shape index: {}]   ;;  %s27414_s3 = inlined_call_operand.vmem [shape: bf16[288,32], index: 3, kind: input, shape index: {}]   ;;  %s27415_s4 = inlined_call_operand.vmem [shape: f32[1,32], index: 4, kind: input, shape index: {}]   ;;  %s27416_s5 = inlined_call_operand.vmem [shape: bf16[288,32], index: 5, kind: input, shape index: {}]   ;;  %s27417_s6 = inlined_call_operand.vmem [shape: f32[1,32], index: 6, kind: input, shape index: {}]   ;;  %s27418_s7 = inlined_call_operand.vmem [shape: bf16[288,64], index: 7, kind: input, shape index: {}]   ;;  %s27419_s8 = inlined_call_operand.vmem [shape: f32[1,64], index: 8, kind: input, shape index: {}]   ;;  %s27420_s9 = inlined_call_operand.vmem [shape: f32[1,64], index: 9, kind: input, shape index: {}]   ;;  %s27421_s10 = inlined_call_operand.vmem [shape: f32[1,64], index: 10, kind: input, shape index: {}]   ;;  %s27422_s11 = inlined_call_operand.vmem [shape: bf16[64,64], index: 11, kind: input, shape index: {}]   ;;  %s27423_s12 = inlined_call_operand.vmem [shape: f32[1,64], index: 12, kind: input, shape index: {}]   ;;  %s27424_s13 = inlined_call_operand.vmem [shape: bf16[64,1], index: 13, kind: input, shape index: {}]   ;;  %s27425_s14 = inlined_call_operand.<no memory space> [shape: f32[1,1], index: 14, kind: input, shape index: {}]   ;;  %s27426_s15 = inlined_call_operand.vmem [shape: f32[2,1,1], index: 15, kind: output, shape index: {}]  }
   0x1   :  { %v20_v0 = vstv %s27425_s14 }
   0x2   :  { %21 = vst [vmem:[#allocation2] sm:$0x1] %v20_v0 }
   0x3 LB: > { %s18319_s21 = sadd.s32 4294967295, %s19419_s20   ;;  %p18323_p0 = scmp.ge.s32.totalorder %s19419_s20, 1  ;;  %s19419_s20 = sphi %s19517_s20, %s27_s20  }
   0x4   : > { %p439_p1 = scmp.lt.s32.totalorder %s19419_s20, 3 }
   0x6   : > { %p440_p2 = pnand %p18323_p0, %p439_p1 }
   0x8   : > { %443 = sbr.rel (%p440_p2) target bundleno = 2862 (0xb2e), region = 80 }
   0xf   : > { %p485_p3 = scmp.lt.s32.totalorder %s18319_s21, 1  ;;  %vm983_vm0 = vcmask 1042432   ;;  %vm984_vm1 = vcmask 1046532   ;;  %vm548_vm2 = vsmask.f32 3328  ;;  %s19421_s25 = smov 24  }
  0x10   : > { %vm549_vm3 = vsmask.f32 7440  ;;  %vm19553_vm4 = vmor %vm983_vm0, %vm984_vm1  ;;  %s19422_s26 = smov 40   ;;  %v19331_v49 = vld [vmem:[%s27412_s1] sm:$0xff]   ;;  %s19423_s29 = smov 16   ;;  %vm1940_vm6 = vcmask 1043456  }
  0x11   : > { %s28248_s21 = smov (!%p485_p3, %s18319_s21), 1  ;;  %vm19594_vm5 = vmor %vm548_vm2, %vm549_vm3  ;;  %19097 = vmatprep.subr.bf16.mxu0 %v19331_v49  ;;  %s19424_s30 = smov 8   ;;  %vm1584_vm7 = vcmask 64512   ;;  %vm1633_vm8 = vcmask 130048   ;;  %vm1666_vm9 = vcmask 195584   ;;  %vm1699_vm10 = vcmask 261120  }
  0x12   : > { %s19284_s14 = smul.u32 216, %s28248_s21  ;;  %19098 = vmatpush3.bf16.msra.mxu0 %v19331_v49  ;;  %s19425_s23 = smov 32   ;;  %vm1732_vm11 = vcmask 326656   ;;  %vm1765_vm12 = vcmask 392192   ;;  %vm1798_vm13 = vcmask 457728   ;;  %vm1831_vm14 = vcmask 523264  }
  0x13   : > { %s19426_s27 = smov 48   ;;  %s19427_s28 = smov 56   ;;  %vm1907_vm15 = vcmask 588800   ;;  %vm2853_vm0 = vsmask.f32 256 }
  0x14   : > { %s19531_s24 = scalar_lea.vmem %s27411_s0, %s19284_s14  ;;  %s19428_s16 = smov 64   ;;  %vm2854_vm1 = vsmask.f32 1284  ;;  %vm2856_vm3 = vsmask.f32 2312 }
  0x15   : > { %v19534_v1 = vld [vmem:[%s19531_s24 + $0x18] sm:$0xf]  ;;  %v19537_v2 = vld [vmem:[%s19531_s24 + $0x1c] sm:$0xf]  ;;  %v497_v3 = vld [vmem:[%s19531_s24 + $0xc] sm:$0xf] }
  0x16   : > { %v613_v4 = vshrl.u32 %v19537_v2, 16  ;;  %v19543_v5 = vcombine.low %v19534_v1, %v19537_v2  ;;  %v600_v6 = vshrl.u32 %v19534_v1, 16  ;;  %v603_v7 = vshll.u32 %v19534_v1, 16  ;;  %v498_v8 = vld [vmem:[%s19531_s24 + $0x10] sm:$0xf]  ;;  %vm2855_vm2 = vmor %vm2853_vm0, %vm2854_vm1  ;;  %s19432_s14 = smov 96  }
  0x17   : > { %v585_v9 = vshll.u32 %v498_v8, 16  ;;  %v589_v10 = vshrl.u32 %v498_v8, 16  ;;  %v19548_v11 = vcombine.low %v497_v3, %v498_v8  ;;  %v576_v12 = vshrl.u32 %v497_v3, 16  ;;  %v499_v13 = vld [vmem:[%s19531_s24 + $0x14] sm:$0x1] }
  0x18   : > { %1379 = vrot.lane.b32.xlu1 %v19543_v5, %s19421_s25  ;;  %v579_v15 = vshll.u32 %v497_v3, 16  ;;  %v18326_v16 = vrot.slane %v497_v3, 9  ;;  %v995_v17 = vrot.slane %v498_v8, 5  ;;  %v998_v18 = vrot.slane %v499_v13, 5  ;;  %v19560_v19 = vld [vmem:[%s19531_s24] sm:$0xf] }
  0x19   : > { %v591_v20 = vrot.slane %v589_v10, 4  ;;  %1377 = vrot.lane.b32.xlu0 %v19548_v11, %s19421_s25  ;;  %v578_v21 = vrot.slane %v576_v12, 4  ;;  %v19565_v22 = vld [vmem:[%s19531_s24 + $0x4] sm:$0xf]  ;;  %v496_v23 = vld [vmem:[%s19531_s24 + $0x8] sm:$0x1] }
  0x1a   : > { %v581_v24 = vrot.slane %v579_v15, 5  ;;  %v996_v25 = vsel %vm19553_vm4, %v18326_v16, %v995_v17  ;;  %v997_v26 = vrot.slane %v995_v17, 4  ;;  %v18325_v27 = vrot.slane %v19560_v19, 9  ;;  %v19579_v36 = vld [vmem:[%s19531_s24 + $0x20] sm:$0x1] }
  0x1b   : > { %v988_v28 = vrot.slane %v19565_v22, 5  ;;  %v991_v29 = vrot.slane %v496_v23, 5  ;;  %v552_v30 = vshrl.u32 %v19560_v19, 16  ;;  %v555_v31 = vshll.u32 %v19560_v19, 16  ;;  %v19619_v15 = vld [vmem:[%s19531_s24 + $0x28] sm:$0xf] }
  0x1c   : > { %v999_v32 = vsel %vm19553_vm4, %v997_v26, %v998_v18  ;;  %v561_v33 = vshll.u32 %v19565_v22, 16  ;;  %v565_v34 = vshrl.u32 %v19565_v22, 16  ;;  %v571_v35 = vshll.u32 %v496_v23, 16 }
  0x1d   : > { %v18376_v37 = vcombine.low %v996_v25, %v999_v32  ;;  %v989_v38 = vsel %vm19553_vm4, %v18325_v27, %v988_v28  ;;  %v990_v39 = vrot.slane %v988_v28, 4  ;;  %v554_v40 = vrot.slane %v552_v30, 4  ;;  %v505_v28 = vld [vmem:[%s19531_s24 + $0x2c] sm:$0x1]  ;;  %v19333_v30 = vld [vmem:[%s27412_s1 + $0x10] sm:$0xff]  }
  0x1e   : > { %v557_v41 = vrot.slane %v555_v31, 5  ;;  %v563_v42 = vrot.slane %v561_v33, 5  ;;  %v567_v43 = vrot.slane %v565_v34, 4  ;;  %v573_v44 = vrot.slane %v571_v35, 5 }
  0x1f   : > { %1447 = vrot.lane.b32.xlu0 %v18376_v37, %s19422_s26  ;;  %v992_v45 = vsel %vm19553_vm4, %v990_v39, %v991_v29  ;;  %v18327_v46 = vrot.slane %v19534_v1, 9  ;;  %v1002_v47 = vrot.slane %v19537_v2, 5  ;;  %v1005_v48 = vrot.slane %v19579_v36, 5 }
  0x20   : > { %v18375_v50 = vcombine.low %v989_v38, %v992_v45  ;;  %v558_v51 = vor.u32 %v557_v41, %v554_v40  ;;  %v568_v52 = vor.u32 %v567_v43, %v563_v42  ;;  %v582_v53 = vor.u32 %v581_v24, %v578_v21  ;;  %v19335_v41 = vld [vmem:[%s27412_s1 + $0x18] sm:$0xff]  }
  0x21   : > { %v1003_v55 = vsel %vm19553_vm4, %v18327_v46, %v1002_v47  ;;  %v1004_v56 = vrot.slane %v1002_v47, 4  ;;  %v587_v57 = vrot.slane %v585_v9, 5  ;;  %v595_v58 = vshll.u32 %v499_v13, 16  ;;  %v19608_v9 = vld [vmem:[%s19531_s24 + $0x24] sm:$0xf] }
  0x22   : > { %1342 = vrot.lane.b32.xlu1 %v18375_v50, %s19423_s29  ;;  %v559_v59 = vrot.slane %v558_v51, 4  ;;  %v569_v60 = vrot.slane %v568_v52, 4  ;;  %v583_v61 = vrot.slane %v582_v53, 4  ;;  %v602_v62 = vrot.slane %v600_v6, 4  ;;  %v506_v52 = vld [vmem:[%s19531_s24 + $0x30] sm:$0xf] }
  0x23   : > { %v1006_v63 = vsel %vm19553_vm4, %v1004_v56, %v1005_v48  ;;  %v592_v0 = vor.u32 %v591_v20, %v587_v57  ;;  %v597_v3 = vrot.slane %v595_v58, 5  ;;  %v605_v8 = vrot.slane %v603_v7, 5  ;;  %v507_v53 = vld [vmem:[%s19531_s24 + $0x34] sm:$0xf] }
  0x24   : > { %v564_v10 = vsel %vm19594_vm5, %v559_v59, %v563_v42  ;;  %v574_v12 = vsel %vm19594_vm5, %v569_v60, %v573_v44  ;;  %v19614_v13 = vcombine.low %v1003_v55, %v1006_v63  ;;  %v588_v6 = vsel %vm19594_vm5, %v583_v61, %v587_v57 }
  0x25   : > { %v18359_v16 = vcombine.low %v564_v10, %v574_v12  ;;  %v593_v17 = vrot.slane %v592_v0, 4  ;;  %v606_v1 = vor.u32 %v605_v8, %v602_v62  ;;  %v609_v7 = vshll.u32 %v19537_v2, 16  ;;  %v19332_v2 = vld [vmem:[%s27412_s1 + $0x8] sm:$0xff]  }
  0x26   : > { %1344 = vrot.lane.b32.xlu1 %v18376_v37, %s19423_s29  ;;  %v615_v18 = vrot.slane %v613_v4, 4  ;;  %v619_v20 = vshll.u32 %v19579_v36, 16  ;;  %v624_v21 = vshrl.u32 %v19608_v9, 16  ;;  %v627_v23 = vshll.u32 %v19608_v9, 16  ;;  %19099 = vmatprep.subr.bf16.mxu0 %v19332_v2 }
  0x27   : > { %1262 = vrot.lane.b32.xlu0 %v18359_v16, %s19424_s30  ;;  %v598_v24 = vsel %vm19594_vm5, %v593_v17, %v597_v3  ;;  %v607_v25 = vrot.slane %v606_v1, 4  ;;  %v611_v26 = vrot.slane %v609_v7, 5  ;;  %v637_v27 = vshrl.u32 %v19619_v15, 16  ;;  %19100 = vmatpush3.bf16.msra.mxu0 %v19332_v2  ;;  %v508_v3 = vld [vmem:[%s19531_s24 + $0x38] sm:$0x1] }
  0x28   : > { %v18360_v4 = vcombine.low %v588_v6, %v598_v24  ;;  %v626_v29 = vrot.slane %v624_v21, 4  ;;  %v621_v32 = vrot.slane %v619_v20, 5  ;;  %v629_v33 = vrot.slane %v627_v23, 5  ;;  %19101 = vmatprep.subr.bf16.mxu0 %v19333_v30  ;;  %v509_v1 = vld [vmem:[%s19531_s24 + $0x3c] sm:$0xf] }
  0x29   : > { %v616_v31 = vor.u32 %v615_v18, %v611_v26  ;;  %v633_v34 = vshll.u32 %v19619_v15, 16  ;;  %v639_v35 = vrot.slane %v637_v27, 4  ;;  %v643_v36 = vshll.u32 %v505_v28, 16  ;;  %v510_v7 = vld [vmem:[%s19531_s24 + $0x40] sm:$0xf] }
  0x2a   : > { %1449 = vrot.lane.b32.xlu1 %v19614_v13, %s19422_s26  ;;  %v612_v37 = vsel %vm19594_vm5, %v607_v25, %v611_v26  ;;  %v630_v39 = vor.u32 %v629_v33, %v626_v29  ;;  %v1009_v48 = vrot.slane %v19619_v15, 5  ;;  %v19655_v49 = vcombine.low %v19608_v9, %v19619_v15 }
  0x2b   : > { %1264 = vrot.lane.b32.xlu0 %v18360_v4, %s19424_s30  ;;  %v617_v38 = vrot.slane %v616_v31, 4  ;;  %v635_v40 = vrot.slane %v633_v34, 5  ;;  %v645_v45 = vrot.slane %v643_v36, 5  ;;  %19102 = vmatpush3.bf16.msra.mxu0 %v19333_v30  ;;  %v18328_v55 = vrot.slane %v19608_v9, 9  ;;  %v511_v36 = vld [vmem:[%s19531_s24 + $0x44] sm:$0x1] }
  0x2c   : > { %v631_v43 = vrot.slane %v630_v39, 4  ;;  %19103 = vmatprep.subr.bf16.mxu0 %v19335_v41  ;;  %v1011_v56 = vrot.slane %v1009_v48, 4  ;;  %v1012_v57 = vrot.slane %v505_v28, 5  ;;  %v648_v59 = vshrl.u32 %v506_v52, 16 }
  0x2d   : > { %v622_v42 = vsel %vm19594_vm5, %v617_v38, %v621_v32  ;;  %v640_v44 = vor.u32 %v639_v35, %v635_v40  ;;  %v651_v60 = vshll.u32 %v506_v52, 16  ;;  %v661_v61 = vshrl.u32 %v507_v53, 16 }
  0x2e   : > { %v18361_v46 = vcombine.low %v612_v37, %v622_v42  ;;  %v636_v50 = vsel %vm19594_vm5, %v631_v43, %v635_v40  ;;  %v657_v62 = vshll.u32 %v507_v53, 16  ;;  %v1010_v63 = vsel %vm19553_vm4, %v18328_v55, %v1009_v48 }
  0x2f   : > { %1412 = vrot.lane.b32.xlu0 %v18360_v4, %s19425_s23  ;;  %v641_v47 = vrot.slane %v640_v44, 4  ;;  %19104 = vmatpush3.bf16.msra.mxu0 %v19335_v41  ;;  %v1013_v0 = vsel %vm19553_vm4, %v1011_v56, %v1012_v57  ;;  %v650_v8 = vrot.slane %v648_v59, 4  ;;  %v653_v9 = vrot.slane %v651_v60, 5  ;;  %v513_v57 = vld [vmem:[%s19531_s24 + $0x4c] sm:$0xf] }
  0x30   : > { %1414 = vrot.lane.b32.xlu1 %v18361_v46, %s19425_s23  ;;  %v659_v10 = vrot.slane %v657_v62, 5  ;;  %v663_v12 = vrot.slane %v661_v61, 4  ;;  %v18378_v6 = vcombine.low %v1010_v63, %v1013_v0  ;;  %v667_v15 = vshll.u32 %v508_v3, 16 }
  0x31   : > { %v646_v51 = vsel %vm19594_vm5, %v641_v47, %v645_v45  ;;  %v654_v16 = vor.u32 %v653_v9, %v650_v8  ;;  %v1016_v20 = vrot.slane %v507_v53, 5  ;;  %v672_v21 = vshrl.u32 %v509_v1, 16  ;;  %v514_v9 = vld [vmem:[%s19531_s24 + $0x50] sm:$0x1] }
  0x32   : > { %v18362_v58 = vcombine.low %v636_v50, %v646_v51  ;;  %v664_v17 = vor.u32 %v663_v12, %v659_v10  ;;  %v669_v18 = vrot.slane %v667_v15, 5  ;;  %v675_v23 = vshll.u32 %v509_v1, 16  ;;  %v19707_v50 = vld [vmem:[%s19531_s24 + $0x48] sm:$0xf] }
  0x33   : > { %1482 = vrot.lane.b32.xlu0 %v19543_v5, %s19426_s27  ;;  %v655_v24 = vrot.slane %v654_v16, 4  ;;  %v685_v26 = vshrl.u32 %v510_v7, 16  ;;  %v681_v27 = vshll.u32 %v510_v7, 16  ;;  %v19684_v28 = vcombine.low %v506_v52, %v507_v53 }
  0x34   : > { %1484 = vrot.lane.b32.xlu1 %v19655_v49, %s19426_s27  ;;  %v665_v25 = vrot.slane %v664_v17, 4  ;;  %v18329_v2 = vrot.slane %v506_v52, 9  ;;  %v1018_v4 = vrot.slane %v1016_v20, 4  ;;  %v1019_v29 = vrot.slane %v508_v3, 5  ;;  %v19336_v3 = vld [vmem:[%s27412_s1 + $0x20] ss:$0 sps:$4 sm:$0xff]  }
  0x35   : > { %v674_v30 = vrot.slane %v672_v21, 4  ;;  %v677_v31 = vrot.slane %v675_v23, 5  ;;  %v660_v32 = vsel %vm19594_vm5, %v655_v24, %v659_v10  ;;  %v683_v34 = vrot.slane %v681_v27, 5  ;;  %19283 = vmatprep.subr.msk.bf16.mxu0 %vm1940_vm6, %v19336_v3 }
  0x36   : > { %v670_v33 = vsel %vm19594_vm5, %v665_v25, %v669_v18  ;;  %v687_v35 = vrot.slane %v685_v26, 4  ;;  %v1017_v37 = vsel %vm19553_vm4, %v18329_v2, %v1016_v20  ;;  %v1020_v38 = vsel %vm19553_vm4, %v1018_v4, %v1019_v29  ;;  %v515_v18 = vld [vmem:[%s19531_s24 + $0x54] sm:$0xf]  ;;  %v516_v20 = vld [vmem:[%s19531_s24 + $0x58] sm:$0xf] }
  0x37   : > { %1517 = vrot.lane.b32.xlu0 %v18361_v46, %s19427_s28  ;;  %v678_v39 = vor.u32 %v677_v31, %v674_v30  ;;  %v691_v41 = vshll.u32 %v511_v36, 16  ;;  %v18379_v42 = vcombine.low %v1017_v37, %v1020_v38  ;;  %v19704_v47 = vcombine.low %v509_v1, %v510_v7  ;;  %v517_v38 = vld [vmem:[%s19531_s24 + $0x5c] sm:$0x1] }
  0x38   : > { %1519 = vrot.lane.b32.xlu1 %v18362_v58, %s19427_s28  ;;  %v688_v40 = vor.u32 %v687_v35, %v683_v34  ;;  %v18330_v48 = vrot.slane %v509_v1, 9  ;;  %v18343_v51 = vcombine.low %v19560_v19, %v19565_v22  ;;  %v1026_v56 = vrot.slane %v511_v36, 5 }
  0x39   : > { %v679_v43 = vrot.slane %v678_v39, 4  ;;  %v693_v45 = vrot.slane %v691_v41, 5  ;;  %v696_v60 = vshrl.u32 %v19707_v50, 16  ;;  %v699_v62 = vshll.u32 %v19707_v50, 16 }
  0x3a   : > { %v689_v44 = vrot.slane %v688_v40, 4  ;;  %v709_v63 = vshrl.u32 %v513_v57, 16  ;;  %v705_v0 = vshll.u32 %v513_v57, 16  ;;  %v1942_v16 = vsel %vm1940_vm6, %v19336_v3, 0 }
  0x3b   : > { %1552 = vrot.lane.b32.xlu0 %v19614_v13, %s19428_s16  ;;  %v684_v52 = vsel %vm19594_vm5, %v679_v43, %v683_v34  ;;  %v698_v10 = vrot.slane %v696_v60, 4  ;;  %v701_v12 = vrot.slane %v699_v62, 5  ;;  %v715_v17 = vshll.u32 %v514_v9, 16  ;;  %19106 = vmatpush3.bf16.msra.mxu0 %v1942_v16  ;;  %v518_v60 = vld [vmem:[%s19531_s24 + $0x60] sm:$0xf] }
  0x3c   : > { %1266 = vrot.lane.b32.xlu1 %v18361_v46, %s19424_s30  ;;  %v1023_v46 = vrot.slane %v510_v7, 5  ;;  %v694_v53 = vsel %vm19594_vm5, %v689_v44, %v693_v45  ;;  %v711_v15 = vrot.slane %v709_v63, 4  ;;  %v1030_v23 = vrot.slane %v513_v57, 5 }
  0x3d   : > { %v702_v1 = vor.u32 %v701_v12, %v698_v10  ;;  %v717_v21 = vrot.slane %v715_v17, 5  ;;  %v720_v24 = vshrl.u32 %v515_v18, 16  ;;  %v723_v25 = vshll.u32 %v515_v18, 16 }
  0x3e   : > { %v1025_v55 = vrot.slane %v1023_v46, 4  ;;  %v1024_v59 = vsel %vm19553_vm4, %v18330_v48, %v1023_v46  ;;  %v733_v2 = vshrl.u32 %v516_v20, 16  ;;  %v729_v4 = vshll.u32 %v516_v20, 16 }
  0x3f   : > { %1554 = vrot.lane.b32.xlu0 %v18378_v6, %s19428_s16  ;;  %v703_v26 = vrot.slane %v702_v1, 4  ;;  %v19740_v29 = vcombine.low %v19707_v50, %v513_v57  ;;  %v18331_v30 = vrot.slane %v19707_v50, 9  ;;  %v1032_v31 = vrot.slane %v1030_v23, 4 }
  0x40   : > { %1268 = vrot.lane.b32.xlu1 %v18362_v58, %s19424_s30  ;;  %v1027_v61 = vsel %vm19553_vm4, %v1025_v55, %v1026_v56  ;;  %v725_v34 = vrot.slane %v723_v25, 5  ;;  %v735_v37 = vrot.slane %v733_v2, 4  ;;  %v739_v44 = vshll.u32 %v517_v38, 16 }
  0x41   : > { %v18380_v8 = vcombine.low %v1024_v59, %v1027_v61  ;;  %v1031_v40 = vsel %vm19553_vm4, %v18331_v30, %v1030_v23  ;;  %v18332_v55 = vrot.slane %v515_v18, 9  ;;  %v1040_v59 = vrot.slane %v517_v38, 5  ;;  %v519_v61 = vld [vmem:[%s19531_s24 + $0x64] sm:$0xf]  ;;  %v522_v23 = vld [vmem:[%s19531_s24 + $0x70] sm:$0xf] }
  0x42   : > { %v741_v50 = vrot.slane %v739_v44, 5  ;;  %v744_v63 = vshrl.u32 %v518_v60, 16  ;;  %v753_v10 = vshll.u32 %v519_v61, 16  ;;  %v781_v30 = vshrl.u32 %v522_v23, 16 }
  0x43   : > { %1346 = vrot.lane.b32.xlu0 %v19614_v13, %s19423_s29  ;;  %v18363_v13 = vcombine.low %v660_v32, %v670_v33  ;;  %v1033_v32 = vrot.slane %v514_v9, 5  ;;  %v722_v33 = vrot.slane %v720_v24, 4  ;;  %v757_v9 = vshrl.u32 %v519_v61, 16 }
  0x44   : > { %1348 = vrot.lane.b32.xlu1 %v18378_v6, %s19423_s29  ;;  %v755_v17 = vrot.slane %v753_v10, 5  ;;  %vm2860_vm6 = vsmask.f32 4368  ;;  %vm2862_vm0 = vsmask.f32 5396 }
  0x45   : > { %v1034_v41 = vsel %vm19553_vm4, %v1032_v31, %v1033_v32  ;;  %v759_v1 = vrot.slane %v757_v9, 4  ;;  %v777_v31 = vshll.u32 %v522_v23, 16  ;;  %v18333_v32 = vrot.slane %v518_v60, 9  ;;  %v19830_v9 = vld [vmem:[%s19531_s24 + $0x7c] sm:$0xf] }
  0x46   : > { %v18381_v45 = vcombine.low %v1031_v40, %v1034_v41  ;;  %v783_v40 = vrot.slane %v781_v30, 4  ;;  %v523_v41 = vld [vmem:[%s19531_s24 + $0x74] sm:$0x1] }
  0x47   : > { %1381 = vrot.lane.b32.xlu0 %v19655_v49, %s19421_s25 }
  0x48   : > { %1383 = vrot.lane.b32.xlu1 %v19684_v28, %s19421_s25 }
  0x4b   : > { %1416 = vrot.lane.b32.xlu0 %v18362_v58, %s19425_s23  ;;  %v18364_v58 = vcombine.low %v684_v52, %v694_v53  ;;  %v1037_v52 = vrot.slane %v516_v20, 5  ;;  %v19761_v53 = vcombine.low %v515_v18, %v516_v20  ;;  %v19782_v18 = vld [vmem:[%s19531_s24 + $0x6c] sm:$0xf] }
  0x4c   : > { %1418 = vrot.lane.b32.xlu1 %v18363_v13, %s19425_s23 }
  0x4d   : > { %v1038_v3 = vsel %vm19553_vm4, %v18332_v55, %v1037_v52 }
  0x4f   : > { %1451 = vrot.lane.b32.xlu0 %v18378_v6, %s19422_s26  ;;  %v707_v6 = vrot.slane %v705_v0, 5  ;;  %v747_v0 = vshll.u32 %v518_v60, 16 }
  0x50   : > { %1453 = vrot.lane.b32.xlu1 %v18379_v42, %s19422_s26 }
  0x51   : > { %v712_v7 = vor.u32 %v711_v15, %v707_v6  ;;  %v708_v35 = vsel %vm19594_vm5, %v703_v26, %v707_v6  ;;  %v520_v6 = vld [vmem:[%s19531_s24 + $0x68] sm:$0x1]  ;;  %v746_v15 = vrot.slane %v744_v63, 4  ;;  %v749_v16 = vrot.slane %v747_v0, 5 }
  0x52   : > { %v1044_v26 = vrot.slane %v519_v61, 5 }
  0x53   : > { %1486 = vrot.lane.b32.xlu0 %v19684_v28, %s19426_s27  ;;  %v713_v27 = vrot.slane %v712_v7, 4  ;;  %v763_v7 = vshll.u32 %v520_v6, 16  ;;  %v750_v20 = vor.u32 %v749_v16, %v746_v15 }
  0x54   : > { %1488 = vrot.lane.b32.xlu1 %v19704_v47, %s19426_s27 }
  0x55   : > { %v718_v36 = vsel %vm19594_vm5, %v713_v27, %v717_v21  ;;  %v760_v21 = vor.u32 %v759_v1, %v755_v17  ;;  %v751_v24 = vrot.slane %v750_v20, 4  ;;  %v765_v25 = vrot.slane %v763_v7, 5 }
  0x56   : > { %v18365_v39 = vcombine.low %v708_v35, %v718_v36  ;;  %v768_v27 = vshrl.u32 %v19782_v18, 16  ;;  %v1046_v36 = vrot.slane %v1044_v26, 4  ;;  %v805_v7 = vshrl.u32 %v19830_v9, 16 }
  0x57   : > { %1521 = vrot.lane.b32.xlu0 %v18363_v13, %s19427_s28  ;;  %v761_v2 = vrot.slane %v760_v21, 4  ;;  %v756_v35 = vsel %vm19594_vm5, %v751_v24, %v755_v17 }
  0x58   : > { %1523 = vrot.lane.b32.xlu1 %v18364_v58, %s19427_s28 }
  0x5b   : > { %1556 = vrot.lane.b32.xlu0 %v18379_v42, %s19428_s16 }
  0x5c   : > { %1558 = vrot.lane.b32.xlu1 %v18380_v8, %s19428_s16 }
  0x5f   : > { %1270 = vrot.lane.b32.xlu0 %v18363_v13, %s19424_s30  ;;  %v731_v13 = vrot.slane %v729_v4, 5  ;;  %v771_v4 = vshll.u32 %v19782_v18, 16 }
  0x60   : > { %1272 = vrot.lane.b32.xlu1 %v18364_v58, %s19424_s30 }
  0x61   : > { %v736_v43 = vor.u32 %v735_v37, %v731_v13  ;;  %v766_v37 = vsel %vm19594_vm5, %v761_v2, %v765_v25  ;;  %v773_v38 = vrot.slane %v771_v4, 5  ;;  %v807_v2 = vrot.slane %v805_v7, 4 }
  0x63   : > { %1350 = vrot.lane.b32.xlu0 %v18379_v42, %s19423_s29  ;;  %v726_v42 = vor.u32 %v725_v34, %v722_v33  ;;  %v737_v48 = vrot.slane %v736_v43, 4  ;;  %v1047_v33 = vrot.slane %v520_v6, 5  ;;  %v19792_v34 = vcombine.low %v518_v60, %v519_v61 }
  0x64   : > { %1352 = vrot.lane.b32.xlu1 %v18380_v8, %s19423_s29  ;;  %v1045_v43 = vsel %vm19553_vm4, %v18333_v32, %v1044_v26  ;;  %v19819_v60 = vcombine.low %v19782_v18, %v522_v23  ;;  %v18334_v61 = vrot.slane %v19782_v18, 9  ;;  %v801_v18 = vshll.u32 %v19830_v9, 16  ;;  %v526_v26 = vld [vmem:[%s19531_s24 + $0x80] sm:$0x1] }
  0x65   : > { %v727_v46 = vrot.slane %v726_v42, 4  ;;  %v742_v57 = vsel %vm19594_vm5, %v737_v48, %v741_v50  ;;  %v18367_v42 = vcombine.low %v756_v35, %v766_v37  ;;  %v1048_v44 = vsel %vm19553_vm4, %v1046_v36, %v1047_v33  ;;  %v19861_v35 = vld [vmem:[%s19531_s24 + $0x84] sm:$0xf]  ;;  %v19864_v36 = vld [vmem:[%s19531_s24 + $0x88] sm:$0xf] }
  0x66   : > { %v787_v48 = vshll.u32 %v523_v41, 16  ;;  %v19809_v50 = vcombine.low %v1045_v43, %v1048_v44 }
  0x67   : > { %1385 = vrot.lane.b32.xlu0 %v19704_v47, %s19421_s25  ;;  %v732_v56 = vsel %vm19594_vm5, %v727_v46, %v731_v13  ;;  %v770_v13 = vrot.slane %v768_v27, 4  ;;  %v803_v27 = vrot.slane %v801_v18, 5 }
  0x68   : > { %1387 = vrot.lane.b32.xlu1 %v19740_v29, %s19421_s25  ;;  %v18366_v62 = vcombine.low %v732_v56, %v742_v57  ;;  %v789_v57 = vrot.slane %v787_v48, 5 }
  0x69   : > { %v808_v33 = vor.u32 %v807_v2, %v803_v27 }
  0x6b   : > { %1420 = vrot.lane.b32.xlu0 %v18364_v58, %s19425_s23  ;;  %v1039_v58 = vrot.slane %v1037_v52, 4  ;;  %v809_v44 = vrot.slane %v808_v33, 4 }
  0x6c   : > { %1422 = vrot.lane.b32.xlu1 %v18365_v39, %s19425_s23 }
  0x6f   : > { %1455 = vrot.lane.b32.xlu0 %v18380_v8, %s19422_s26  ;;  %v1041_v8 = vsel %vm19553_vm4, %v1039_v58, %v1040_v59  ;;  %v1051_v58 = vrot.slane %v522_v23, 5 }
  0x70   : > { %1457 = vrot.lane.b32.xlu1 %v18381_v45, %s19422_s26  ;;  %v18382_v12 = vcombine.low %v1038_v3, %v1041_v8  ;;  %v1054_v3 = vrot.slane %v523_v41, 5  ;;  %v19827_v8 = vld [vmem:[%s19531_s24 + $0x78] sm:$0xf] }
  0x71   : > { %v1053_v0 = vrot.slane %v1051_v58, 4  ;;  %v792_v15 = vshrl.u32 %v19827_v8, 16  ;;  %v795_v16 = vshll.u32 %v19827_v8, 16  ;;  %v1052_v17 = vsel %vm19553_vm4, %v18334_v61, %v1051_v58 }
  0x72   : > { %v19884_v19 = vcombine.low %v19827_v8, %v19830_v9  ;;  %v18335_v22 = vrot.slane %v19827_v8, 9  ;;  %v529_v8 = vld [vmem:[%s19531_s24 + $0x8c] sm:$0x1] }
  0x73   : > { %1490 = vrot.lane.b32.xlu0 %v19740_v29, %s19426_s27  ;;  %v1055_v1 = vsel %vm19553_vm4, %v1053_v0, %v1054_v3  ;;  %v794_v23 = vrot.slane %v792_v15, 4  ;;  %v797_v24 = vrot.slane %v795_v16, 5 }
  0x74   : > { %1492 = vrot.lane.b32.xlu1 %v19761_v53, %s19426_s27  ;;  %v19851_v21 = vcombine.low %v1052_v17, %v1055_v1 }
  0x75   : > { %v798_v30 = vor.u32 %v797_v24, %v794_v23 }
  0x77   : > { %1525 = vrot.lane.b32.xlu0 %v18365_v39, %s19427_s28  ;;  %v799_v37 = vrot.slane %v798_v30, 4 }
  0x78   : > { %1527 = vrot.lane.b32.xlu1 %v18366_v62, %s19427_s28 }
  0x7b   : > { %1560 = vrot.lane.b32.xlu0 %v18381_v45, %s19428_s16 }
  0x7c   : > { %1562 = vrot.lane.b32.xlu1 %v18382_v12, %s19428_s16 }
  0x7f   : > { %1274 = vrot.lane.b32.xlu0 %v18365_v39, %s19424_s30  ;;  %v779_v39 = vrot.slane %v777_v31, 5  ;;  %v811_v31 = vshll.u32 %v526_v26, 16 }
  0x80   : > { %1276 = vrot.lane.b32.xlu1 %v18366_v62, %s19424_s30 }
  0x81   : > { %v784_v46 = vor.u32 %v783_v40, %v779_v39  ;;  %v819_v40 = vshll.u32 %v19861_v35, 16 }
  0x83   : > { %1354 = vrot.lane.b32.xlu0 %v18381_v45, %s19423_s29  ;;  %v774_v45 = vor.u32 %v773_v38, %v770_v13  ;;  %v785_v56 = vrot.slane %v784_v46, 4  ;;  %v1058_v13 = vrot.slane %v19830_v9, 5  ;;  %v813_v38 = vrot.slane %v811_v31, 5 }
  0x84   : > { %1356 = vrot.lane.b32.xlu1 %v18382_v12, %s19423_s29  ;;  %v821_v61 = vrot.slane %v819_v40, 5  ;;  %v1068_v40 = vrot.slane %v529_v8, 5 }
  0x85   : > { %v775_v55 = vrot.slane %v774_v45, 4  ;;  %v790_v63 = vsel %vm19594_vm5, %v785_v56, %v789_v57  ;;  %v825_v45 = vshll.u32 %v19864_v36, 16  ;;  %v804_v56 = vsel %vm19594_vm5, %v799_v37, %v803_v27 }
  0x86   : > { %v1059_v16 = vsel %vm19553_vm4, %v18335_v22, %v1058_v13  ;;  %v1065_v27 = vrot.slane %v19864_v36, 5 }
  0x87   : > { %1389 = vrot.lane.b32.xlu0 %v19761_v53, %s19421_s25 }
  0x88   : > { %1391 = vrot.lane.b32.xlu1 %v19792_v34, %s19421_s25 }
  0x8a   : > { %v19813_v59 = vpop.permute.xlu1 %1379 }
  0x8b   : > { %1424 = vrot.lane.b32.xlu0 %v18366_v62, %s19425_s23  ;;  %v19811_v52 = vpop.permute.xlu0 %1377  ;;  %v780_v62 = vsel %vm19594_vm5, %v775_v55, %v779_v39  ;;  %v816_v39 = vshrl.u32 %v19861_v35, 16 }
  0x8c   : > { %1426 = vrot.lane.b32.xlu1 %v18367_v42, %s19425_s23  ;;  %v19838_v6 = vcombine.low %v780_v62, %v790_v63  ;;  %v827_v62 = vrot.slane %v825_v45, 5 }
  0x8d   : > { %v818_v57 = vrot.slane %v816_v39, 4  ;;  %v18336_v39 = vrot.slane %v19861_v35, 9 }
  0x8f   : > { %1459 = vrot.lane.b32.xlu0 %v18382_v12, %s19422_s26  ;;  %v822_v7 = vor.u32 %v821_v61, %v818_v57 }
  0x90   : > { %1461 = vrot.lane.b32.xlu1 %v19809_v50, %s19422_s26 }
  0x91   : > { %v19834_v10 = vpop.permute.xlu0 %1447 }
  0x93   : > { %1494 = vrot.lane.b32.xlu0 %v19792_v34, %s19426_s27 }
  0x94   : > { %1496 = vrot.lane.b32.xlu1 %v19819_v60, %s19426_s27  ;;  %v1343_v12 = vpop.permute.xlu1 %1342 }
  0x97   : > { %1529 = vrot.lane.b32.xlu0 %v18367_v42, %s19427_s28 }
  0x98   : > { %1531 = vrot.lane.b32.xlu1 %v19838_v6, %s19427_s28  ;;  %v1345_v20 = vpop.permute.xlu1 %1344 }
  0x99   : > { %v1263_v25 = vpop.permute.xlu0 %1262 }
  0x9a   : > { %v1587_v41 = vsel %vm1584_vm7, %v18343_v51, %v1263_v25  ;;  %v1061_v51 = vrot.slane %v526_v26, 5 }
  0x9b   : > { %1564 = vrot.lane.b32.xlu0 %v19809_v50, %s19428_s16  ;;  %v1635_v55 = vsel %vm1633_vm8, %v1587_v41, %v1343_v12 }
  0x9c   : > { %1566 = vrot.lane.b32.xlu1 %v19851_v21, %s19428_s16  ;;  %v19858_v4 = vpop.permute.xlu1 %1449  ;;  %v1668_v9 = vsel %vm1666_vm9, %v1635_v55, %v19811_v52  ;;  %v1066_v55 = vsel %vm19553_vm4, %v18336_v39, %v1065_v27 }
  0x9d   : > { %v1265_v32 = vpop.permute.xlu0 %1264 }
  0x9e   : > { %v1590_v48 = vsel %vm1584_vm7, %v19548_v11, %v1265_v32  ;;  %v1060_v11 = vrot.slane %v1058_v13, 4 }
  0x9f   : > { %1278 = vrot.lane.b32.xlu0 %v18367_v42, %s19424_s30  ;;  %v829_v42 = vshrl.u32 %v19864_v36, 16  ;;  %v1637_v0 = vsel %vm1633_vm8, %v1590_v48, %v1345_v20  ;;  %v835_v20 = vshll.u32 %v529_v8, 16 }
  0xa0   : > { %1280 = vrot.lane.b32.xlu1 %v19838_v6, %s19424_s30  ;;  %v1062_v17 = vsel %vm19553_vm4, %v1060_v11, %v1061_v51  ;;  %v1670_v52 = vsel %vm1666_vm9, %v1637_v0, %v19813_v59  ;;  %v532_v0 = vld [vmem:[%s19531_s24 + $0x98] sm:$0x1] }
  0xa1   : > { %v1413_v43 = vpop.permute.xlu0 %1412  ;;  %v831_v63 = vrot.slane %v829_v42, 4  ;;  %v19919_v59 = vcombine.low %v1059_v16, %v1062_v17  ;;  %v837_v32 = vrot.slane %v835_v20, 5  ;;  %v19945_v42 = vld [vmem:[%s19531_s24 + $0x90] sm:$0xf]  ;;  %v859_v16 = vshll.u32 %v532_v0, 16 }
  0xa2   : > { %v1415_v46 = vpop.permute.xlu1 %1414  ;;  %v1701_v12 = vsel %vm1699_vm10, %v1668_v9, %v1413_v43  ;;  %v840_v48 = vshrl.u32 %v19945_v42, 16  ;;  %v843_v22 = vshll.u32 %v19945_v42, 16 }
  0xa3   : > { %1358 = vrot.lane.b32.xlu0 %v19809_v50, %s19423_s29  ;;  %v814_v50 = vsel %vm19594_vm5, %v809_v44, %v813_v38  ;;  %v832_v18 = vor.u32 %v831_v63, %v827_v62  ;;  %v1734_v24 = vsel %vm1732_vm11, %v1701_v12, %v19834_v10  ;;  %v1703_v25 = vsel %vm1699_vm10, %v1670_v52, %v1415_v46  ;;  %v19951_v46 = vld [vmem:[%s19531_s24 + $0x94] sm:$0xf] }
  0xa4   : > { %1360 = vrot.lane.b32.xlu1 %v19851_v21, %s19423_s29  ;;  %v19903_v15 = vcombine.low %v804_v56, %v814_v50  ;;  %v823_v10 = vrot.slane %v822_v7, 4  ;;  %v1736_v13 = vsel %vm1732_vm11, %v1703_v25, %v19858_v4  ;;  %v19936_v38 = vcombine.low %v19861_v35, %v19864_v36 }
  0xa5   : > { %v1483_v58 = vpop.permute.xlu0 %1482  ;;  %v833_v31 = vrot.slane %v832_v18, 4  ;;  %v1067_v44 = vrot.slane %v1065_v27, 4  ;;  %v853_v11 = vshrl.u32 %v19951_v46, 16  ;;  %v849_v57 = vshll.u32 %v19951_v46, 16  ;;  %v19983_v18 = vld [vmem:[%s19531_s24 + $0xa0] sm:$0xf] }
  0xa6   : > { %v1485_v3 = vpop.permute.xlu1 %1484  ;;  %v1767_v26 = vsel %vm1765_vm12, %v1734_v24, %v1483_v58  ;;  %v842_v61 = vrot.slane %v840_v48, 4  ;;  %v1072_v20 = vrot.slane %v19951_v46, 5  ;;  %v861_v24 = vrot.slane %v859_v16, 5 }
  0xa7   : > { %1393 = vrot.lane.b32.xlu0 %v19819_v60, %s19421_s25  ;;  %v1769_v37 = vsel %vm1765_vm12, %v1736_v13, %v1485_v3  ;;  %v838_v43 = vsel %vm19594_vm5, %v833_v31, %v837_v32  ;;  %v1069_v56 = vsel %vm19553_vm4, %v1067_v44, %v1068_v40  ;;  %v851_v3 = vrot.slane %v849_v57, 5 }
  0xa8   : > { %1395 = vrot.lane.b32.xlu1 %v19884_v19, %s19421_s25  ;;  %v19972_v50 = vcombine.low %v1066_v55, %v1069_v56  ;;  %v855_v8 = vrot.slane %v853_v11, 4  ;;  %v1074_v32 = vrot.slane %v1072_v20, 4  ;;  %v20001_v13 = vcombine.low %v19945_v42, %v19951_v46 }
  0xa9   : > { %v1518_v1 = vpop.permute.xlu0 %1517 }
  0xaa   : > { %v1520_v23 = vpop.permute.xlu1 %1519  ;;  %v1800_v2 = vsel %vm1798_vm13, %v1767_v26, %v1518_v1  ;;  %v856_v52 = vor.u32 %v855_v8, %v851_v3  ;;  %v19980_v1 = vld [vmem:[%s19531_s24 + $0x9c] sm:$0xf] }
  0xab   : > { %1428 = vrot.lane.b32.xlu0 %v19838_v6, %s19425_s23  ;;  %v1802_v4 = vsel %vm1798_vm13, %v1769_v37, %v1520_v23  ;;  %v864_v25 = vshrl.u32 %v19980_v1, 16 }
  0xac   : > { %1430 = vrot.lane.b32.xlu1 %v19903_v15, %s19425_s23  ;;  %v857_v27 = vrot.slane %v856_v52, 4 }
  0xad   : > { %v1553_v30 = vpop.permute.xlu0 %1552  ;;  %v866_v39 = vrot.slane %v864_v25, 4  ;;  %v20056_v25 = vcombine.low %v19980_v1, %v19983_v18 }
  0xae   : > { %v19923_v6 = vpop.permute.xlu1 %1266  ;;  %v1833_v33 = vsel %vm1831_vm14, %v1800_v2, %v1553_v30  ;;  %v867_v2 = vshll.u32 %v19980_v1, 16  ;;  %v877_v30 = vshrl.u32 %v19983_v18, 16 }
  0xaf   : > { %1463 = vrot.lane.b32.xlu0 %v19851_v21, %s19422_s26  ;;  %19107 = vmatprep.mubr.msk.bf16.mxu0 %vm1907_vm15, %v1833_v33  ;;  %v828_v21 = vsel %vm19594_vm5, %v823_v10, %v827_v62  ;;  %v845_v62 = vrot.slane %v843_v22, 5  ;;  %v873_v10 = vshll.u32 %v19983_v18, 16  ;;  %v1075_v33 = vrot.slane %v532_v0, 5 }
  0xb0   : > { %1465 = vrot.lane.b32.xlu1 %v19919_v59, %s19422_s26  ;;  %v19958_v35 = vcombine.low %v828_v21, %v838_v43  ;;  %v879_v43 = vrot.slane %v877_v30, 4 }
  0xb1   : > { %v1555_v41 = vpop.permute.xlu0 %1554  ;;  %v846_v12 = vor.u32 %v845_v62, %v842_v61  ;;  %v875_v21 = vrot.slane %v873_v10, 5  ;;  %v1076_v46 = vsel %vm19553_vm4, %v1074_v32, %v1075_v33  ;;  %v537_v32 = vld [vmem:[%s19531_s24 + $0xac] sm:$0xf] }
  0xb2   : > { %v19947_v45 = vpop.permute.xlu1 %1268  ;;  %v1835_v36 = vsel %vm1831_vm14, %v1802_v4, %v1555_v41  ;;  %v862_v4 = vsel %vm19594_vm5, %v857_v27, %v861_v24  ;;  %v869_v41 = vrot.slane %v867_v2, 5 }
  0xb3   : > { %1498 = vrot.lane.b32.xlu0 %v19884_v19, %s19426_s27  ;;  %19108 = vmatmul.mubr.msk.bf16.vlgmr.msra.gmra.mrb[0].mxu0 %vm1907_vm15, %v1835_v36  ;;  %v847_v23 = vrot.slane %v846_v12, 4  ;;  %v1593_v36 = vsel %vm1584_vm7, %v19543_v5, %v19923_v6  ;;  %v1596_v48 = vsel %vm1584_vm7, %v19655_v49, %v19947_v45  ;;  %v880_v61 = vor.u32 %v879_v43, %v875_v21 }
  0xb4   : > { %1500 = vrot.lane.b32.xlu1 %v19936_v38, %s19426_s27  ;;  %v870_v57 = vor.u32 %v869_v41, %v866_v39 }
  0xb5   : > { %v1347_v51 = vpop.permute.xlu0 %1346  ;;  %v852_v37 = vsel %vm19594_vm5, %v847_v23, %v851_v3 }
  0xb6   : > { %v1349_v58 = vpop.permute.xlu1 %1348  ;;  %v1639_v22 = vsel %vm1633_vm8, %v1593_v36, %v1347_v51  ;;  %v20025_v55 = vcombine.low %v852_v37, %v862_v4  ;;  %v871_v52 = vrot.slane %v870_v57, 4  ;;  %v901_v4 = vshrl.u32 %v537_v32, 16  ;;  %v20096_v57 = vld [vmem:[%s19531_s24 + $0xb4] sm:$0xf] }
  0xb7   : > { %1533 = vrot.lane.b32.xlu0 %v19903_v15, %s19427_s28  ;;  %v1641_v6 = vsel %vm1633_vm8, %v1596_v48, %v1349_v58 }
  0xb8   : > { %1535 = vrot.lane.b32.xlu1 %v19958_v35, %s19427_s28  ;;  %v876_v2 = vsel %vm19594_vm5, %v871_v52, %v875_v21  ;;  %v903_v48 = vrot.slane %v901_v4, 4 }
  0xb9   : > { %v1382_v63 = vpop.permute.xlu0 %1381 }
  0xba   : > { %v1384_v9 = vpop.permute.xlu1 %1383  ;;  %v1672_v56 = vsel %vm1666_vm9, %v1639_v22, %v1382_v63 }
  0xbb   : > { %1568 = vrot.lane.b32.xlu0 %v19919_v59, %s19428_s16  ;;  %v1674_v62 = vsel %vm1666_vm9, %v1641_v6, %v1384_v9  ;;  %v1079_v9 = vrot.slane %v19983_v18, 5 }
  0xbc   : > { %1570 = vrot.lane.b32.xlu1 %v19972_v50, %s19428_s16 }
  0xbd   : > { %v1417_v17 = vpop.permute.xlu0 %1416  ;;  %v1081_v30 = vrot.slane %v1079_v9, 4 }
  0xbe   : > { %v1419_v7 = vpop.permute.xlu1 %1418  ;;  %v1705_v49 = vsel %vm1699_vm10, %v1672_v56, %v1417_v17 }
  0xbf   : > { %1282 = vrot.lane.b32.xlu0 %v19903_v15, %s19424_s30  ;;  %v18337_v15 = vrot.slane %v19945_v42, 9  ;;  %v1707_v51 = vsel %vm1699_vm10, %v1674_v62, %v1419_v7  ;;  %v881_v7 = vrot.slane %v880_v61, 4  ;;  %v20099_v62 = vld [vmem:[%s19531_s24 + $0xb8] sm:$0xf] }
  0xc0   : > { %1284 = vrot.lane.b32.xlu1 %v19958_v35, %s19424_s30 }
  0xc1   : > { %v1452_v26 = vpop.permute.xlu0 %1451  ;;  %v1073_v42 = vsel %vm19553_vm4, %v18337_v15, %v1072_v20 }
  0xc2   : > { %v1454_v31 = vpop.permute.xlu1 %1453  ;;  %v1738_v0 = vsel %vm1732_vm11, %v1705_v49, %v1452_v26  ;;  %v20036_v3 = vcombine.low %v1073_v42, %v1076_v46  ;;  %v18338_v26 = vrot.slane %v19980_v1, 9  ;;  %v538_v42 = vld [vmem:[%s19531_s24 + $0xb0] sm:$0x1]  ;;  %v1086_v49 = vrot.slane %v537_v32, 5 }
  0xc3   : > { %1362 = vrot.lane.b32.xlu0 %v19919_v59, %s19423_s29  ;;  %v20008_v59 = vld [vmem:[%s19531_s24 + $0xa4] sm:$0x1]  ;;  %v1740_v58 = vsel %vm1732_vm11, %v1707_v51, %v1454_v31  ;;  %v20067_v31 = vld [vmem:[%s19531_s24 + $0xa8] sm:$0xf]  ;;  %v907_v6 = vshll.u32 %v538_v42, 16  ;;  %v1089_v52 = vrot.slane %v538_v42, 5 }
  0xc4   : > { %1364 = vrot.lane.b32.xlu1 %v19972_v50, %s19423_s29  ;;  %v883_v5 = vshll.u32 %v20008_v59, 16  ;;  %v1082_v10 = vrot.slane %v20008_v59, 5  ;;  %v888_v18 = vshrl.u32 %v20067_v31, 16  ;;  %v891_v33 = vshll.u32 %v20067_v31, 16 }
  0xc5   : > { %v1487_v40 = vpop.permute.xlu0 %1486  ;;  %v1080_v39 = vsel %vm19553_vm4, %v18338_v26, %v1079_v9  ;;  %v897_v59 = vshll.u32 %v537_v32, 16  ;;  %v909_v51 = vrot.slane %v907_v6, 5  ;;  %v925_v9 = vshrl.u32 %v20099_v62, 16  ;;  %v20122_v26 = vld [vmem:[%s19531_s24 + $0xbc] sm:$0x1] }
  0xc6   : > { %v1489_v44 = vpop.permute.xlu1 %1488  ;;  %v1771_v63 = vsel %vm1765_vm12, %v1738_v0, %v1487_v40  ;;  %v885_v8 = vrot.slane %v883_v5, 5  ;;  %v1083_v40 = vsel %vm19553_vm4, %v1081_v30, %v1082_v10  ;;  %v890_v43 = vrot.slane %v888_v18, 4 }
  0xc7   : > { %1397 = vrot.lane.b32.xlu0 %v19936_v38, %s19421_s25  ;;  %v1773_v12 = vsel %vm1765_vm12, %v1740_v58, %v1489_v44  ;;  %v20088_v21 = vcombine.low %v1080_v39, %v1083_v40  ;;  %v893_v44 = vrot.slane %v891_v33, 5  ;;  %v899_v46 = vrot.slane %v897_v59, 5 }
  0xc8   : > { %1399 = vrot.lane.b32.xlu1 %v20001_v13, %s19421_s25  ;;  %v912_v0 = vshrl.u32 %v20096_v57, 16 }
  0xc9   : > { %v1522_v11 = vpop.permute.xlu0 %1521  ;;  %v894_v5 = vor.u32 %v893_v44, %v890_v43 }
  0xca   : > { %v1524_v45 = vpop.permute.xlu1 %1523  ;;  %v1804_v16 = vsel %vm1798_vm13, %v1771_v63, %v1522_v11  ;;  %v904_v11 = vor.u32 %v903_v48, %v899_v46 }
  0xcb   : > { %1432 = vrot.lane.b32.xlu0 %v19958_v35, %s19425_s23  ;;  %v1806_v35 = vsel %vm1798_vm13, %v1773_v12, %v1524_v45  ;;  %v895_v45 = vrot.slane %v894_v5, 4  ;;  %v921_v12 = vshll.u32 %v20099_v62, 16 }
  0xcc   : > { %1434 = vrot.lane.b32.xlu1 %v20025_v55, %s19425_s23  ;;  %v905_v63 = vrot.slane %v904_v11, 4 }
  0xcd   : > { %v1557_v17 = vpop.permute.xlu0 %1556 }
  0xce   : > { %v1559_v20 = vpop.permute.xlu1 %1558  ;;  %v1837_v23 = vsel %vm1831_vm14, %v1804_v16, %v1557_v17  ;;  %v1088_v17 = vrot.slane %v1086_v49, 4 }
  0xcf   : > { %v1839_v24 = vsel %vm1831_vm14, %v1806_v35, %v1559_v20  ;;  %1467 = vrot.lane.b32.xlu0 %v19972_v50, %s19422_s26  ;;  %19111 = vmatprep.mubr.msk.bf16.mxu0 %vm1907_vm15, %v1837_v23  ;;  %v886_v50 = vsel %vm19594_vm5, %v881_v7, %v885_v8  ;;  %v915_v8 = vshll.u32 %v20096_v57, 16  ;;  %v20115_v7 = vcombine.low %v20067_v31, %v537_v32 }
  0xd0   : > { %1469 = vrot.lane.b32.xlu1 %v20036_v3, %s19422_s26  ;;  %19112 = vmatmul.mubr.msk.bf16.gmra.mrb[4].mxu0 %vm1907_vm15, %v1839_v24  ;;  %v20076_v1 = vcombine.low %v876_v2, %v886_v50  ;;  %v900_v35 = vsel %vm19594_vm5, %v895_v45, %v899_v46  ;;  %v914_v20 = vrot.slane %v912_v0, 4  ;;  %v910_v24 = vsel %vm19594_vm5, %v905_v63, %v909_v51  ;;  %v20174_v63 = vld [vmem:[%s19531_s24 + $0xc0] sm:$0xf] }
  0xd1   : > { %v20059_v27 = vpop.permute.xlu0 %1270  ;;  %v923_v2 = vrot.slane %v921_v12, 5  ;;  %v927_v50 = vrot.slane %v925_v9, 4  ;;  %v1090_v32 = vsel %vm19553_vm4, %v1088_v17, %v1089_v52  ;;  %v20139_v39 = vcombine.low %v900_v35, %v910_v24 }
  0xd2   : > { %v20069_v15 = vpop.permute.xlu1 %1272  ;;  %v1599_v10 = vsel %vm1584_vm7, %v19684_v28, %v20059_v27  ;;  %v931_v28 = vshll.u32 %v20122_v26, 16  ;;  %v20170_v0 = vcombine.low %v20096_v57, %v20099_v62 }
  0xd3   : > { %1502 = vrot.lane.b32.xlu0 %v20001_v13, %s19426_s27  ;;  %v1602_v18 = vsel %vm1584_vm7, %v19704_v47, %v20069_v15  ;;  %v928_v43 = vor.u32 %v927_v50, %v923_v2 }
  0xd4   : > { %1504 = vrot.lane.b32.xlu1 %v20056_v25, %s19426_s27  ;;  %v933_v48 = vrot.slane %v931_v28, 5 }
  0xd5   : > { %v1351_v37 = vpop.permute.xlu0 %1350 }
  0xd6   : > { %v1353_v41 = vpop.permute.xlu1 %1352  ;;  %v1643_v33 = vsel %vm1633_vm8, %v1599_v10, %v1351_v37 }
  0xd7   : > { %1537 = vrot.lane.b32.xlu0 %v20025_v55, %s19427_s28  ;;  %v1645_v27 = vsel %vm1633_vm8, %v1602_v18, %v1353_v41  ;;  %v544_v18 = vld [vmem:[%s19531_s24 + $0xc8] sm:$0x1] }
  0xd8   : > { %1539 = vrot.lane.b32.xlu1 %v20076_v1, %s19427_s28 }
  0xd9   : > { %v1386_v36 = vpop.permute.xlu0 %1385 }
  0xda   : > { %v1388_v22 = vpop.permute.xlu1 %1387  ;;  %v1676_v40 = vsel %vm1666_vm9, %v1643_v33, %v1386_v36 }
  0xdb   : > { %1572 = vrot.lane.b32.xlu0 %v20036_v3, %s19428_s16  ;;  %v1678_v44 = vsel %vm1666_vm9, %v1645_v27, %v1388_v22  ;;  %v1093_v22 = vrot.slane %v20099_v62, 5  ;;  %v1102_v62 = vshll.u32 %v20174_v63, 16 }
  0xdc   : > { %1574 = vrot.lane.b32.xlu1 %v20088_v21, %s19428_s16 }
  0xdd   : > { %v1421_v56 = vpop.permute.xlu0 %1420  ;;  %v1095_v12 = vrot.slane %v1093_v22, 4  ;;  %v1104_v50 = vrot.slane %v1102_v62, 5 }
  0xde   : > { %v1423_v61 = vpop.permute.xlu1 %1422  ;;  %v1709_v47 = vsel %vm1699_vm10, %v1676_v40, %v1421_v56  ;;  %v1118_v40 = vshll.u32 %v544_v18, 16 }
  0xdf   : > { %1286 = vrot.lane.b32.xlu0 %v20025_v55, %s19424_s30  ;;  %v18339_v55 = vrot.slane %v20067_v31, 9  ;;  %v1711_v37 = vsel %vm1699_vm10, %v1678_v44, %v1423_v61  ;;  %v20217_v44 = vld [vmem:[%s19531_s24 + $0xd0] sm:$0xf] }
  0xe0   : > { %1288 = vrot.lane.b32.xlu1 %v20076_v1, %s19424_s30 }
  0xe1   : > { %v1456_v58 = vpop.permute.xlu0 %1455  ;;  %v1087_v31 = vsel %vm19553_vm4, %v18339_v55, %v1086_v49  ;;  %v20184_v55 = vld [vmem:[%s19531_s24 + $0xc4] sm:$0xf] }
  0xe2   : > { %v1458_v16 = vpop.permute.xlu1 %1457  ;;  %v1742_v42 = vsel %vm1732_vm11, %v1709_v47, %v1456_v58  ;;  %v20150_v46 = vcombine.low %v1087_v31, %v1090_v32  ;;  %v18340_v58 = vrot.slane %v20096_v57, 9  ;;  %v1099_v57 = vshrl.u32 %v20174_v63, 16 }
  0xe3   : > { %1366 = vrot.lane.b32.xlu0 %v20036_v3, %s19423_s29  ;;  %v917_v3 = vrot.slane %v915_v8, 5  ;;  %v1744_v41 = vsel %vm1732_vm11, %v1711_v37, %v1458_v16  ;;  %v1096_v16 = vrot.slane %v20122_v26, 5  ;;  %v1112_v35 = vshrl.u32 %v20184_v55, 16 }
  0xe4   : > { %1368 = vrot.lane.b32.xlu1 %v20088_v21, %s19423_s29  ;;  %v1094_v24 = vsel %vm19553_vm4, %v18340_v58, %v1093_v22  ;;  %v1146_v22 = vshrl.u32 %v20217_v44, 16 }
  0xe5   : > { %v1491_v23 = vpop.permute.xlu0 %1490  ;;  %v918_v59 = vor.u32 %v917_v3, %v914_v20  ;;  %v1108_v20 = vshll.u32 %v20184_v55, 16  ;;  %v1097_v26 = vsel %vm19553_vm4, %v1095_v12, %v1096_v16  ;;  %v1114_v31 = vrot.slane %v1112_v35, 4 }
  0xe6   : > { %v1493_v30 = vpop.permute.xlu1 %1492  ;;  %v1775_v36 = vsel %vm1765_vm12, %v1742_v42, %v1491_v23  ;;  %v1120_v42 = vrot.slane %v1118_v40, 5 }
  0xe7   : > { %1401 = vrot.lane.b32.xlu0 %v20056_v25, %s19421_s25  ;;  %v1777_v5 = vsel %vm1765_vm12, %v1744_v41, %v1493_v30  ;;  %v919_v11 = vrot.slane %v918_v59, 4  ;;  %v20206_v30 = vcombine.low %v1094_v24, %v1097_v26  ;;  %v1110_v10 = vrot.slane %v1108_v20, 5  ;;  %v20214_v59 = vld [vmem:[%s19531_s24 + $0xcc] sm:$0xf] }
  0xe8   : > { %1403 = vrot.lane.b32.xlu1 %v20115_v7, %s19421_s25  ;;  %v1133_v41 = vshrl.u32 %v20214_v59, 16 }
  0xe9   : > { %v1526_v4 = vpop.permute.xlu0 %1525  ;;  %v1115_v27 = vor.u32 %v1114_v31, %v1110_v10 }
  0xea   : > { %v1528_v15 = vpop.permute.xlu1 %1527  ;;  %v1808_v6 = vsel %vm1798_vm13, %v1775_v36, %v1526_v4  ;;  %v1136_v36 = vshll.u32 %v20214_v59, 16 }
  0xeb   : > { %1436 = vrot.lane.b32.xlu0 %v20076_v1, %s19425_s23  ;;  %v929_v1 = vrot.slane %v928_v43, 4  ;;  %v1810_v61 = vsel %vm1798_vm13, %v1777_v5, %v1528_v15  ;;  %v1127_v15 = vrot.slane %v20184_v55, 5  ;;  %v1116_v37 = vrot.slane %v1115_v27, 4 }
  0xec   : > { %1438 = vrot.lane.b32.xlu1 %v20139_v39, %s19425_s23  ;;  %v1142_v5 = vshll.u32 %v20217_v44, 16 }
  0xed   : > { %v1561_v56 = vpop.permute.xlu0 %1560  ;;  %v934_v9 = vsel %vm19594_vm5, %v929_v1, %v933_v48  ;;  %v1130_v1 = vrot.slane %v544_v18, 5 }
  0xee   : > { %v1563_v49 = vpop.permute.xlu1 %1562  ;;  %v1841_v45 = vsel %vm1831_vm14, %v1808_v6, %v1561_v56  ;;  %v18341_v56 = vrot.slane %v20174_v63, 9 }
  0xef   : > { %v1843_v51 = vsel %vm1831_vm14, %v1810_v61, %v1563_v49  ;;  %1471 = vrot.lane.b32.xlu0 %v20088_v21, %s19422_s26  ;;  %19115 = vmatprep.mubr.msk.bf16.mxu0 %vm1907_vm15, %v1841_v45  ;;  %v924_v21 = vsel %vm19594_vm5, %v919_v11, %v923_v2  ;;  %v1101_v2 = vrot.slane %v1099_v57, 4  ;;  %v1129_v11 = vrot.slane %v1127_v15, 4 }
  0xf0   : > { %1473 = vrot.lane.b32.xlu1 %v20150_v46, %s19422_s26  ;;  %19116 = vmatmul.mubr.msk.bf16.gmra.mrb[8].mxu0 %vm1907_vm15, %v1843_v51  ;;  %v20194_v52 = vcombine.low %v924_v21, %v934_v9  ;;  %v1121_v49 = vsel %vm19594_vm5, %v1116_v37, %v1120_v42  ;;  %v1135_v45 = vrot.slane %v1133_v41, 4  ;;  %v1138_v51 = vrot.slane %v1136_v36, 5 }
  0xf1   : > { %v20176_v8 = vpop.permute.xlu0 %1274  ;;  %v1105_v28 = vor.u32 %v1104_v50, %v1101_v2  ;;  %v1144_v21 = vrot.slane %v1142_v5, 5  ;;  %v1148_v9 = vrot.slane %v1146_v22, 4  ;;  %v1131_v57 = vsel %vm19553_vm4, %v1129_v11, %v1130_v1 }
  0xf2   : > { %v20186_v17 = vpop.permute.xlu1 %1276  ;;  %v1139_v20 = vor.u32 %v1138_v51, %v1135_v45  ;;  %v18394_v42 = vcombine.low %v20214_v59, %v20217_v44  ;;  %v18342_v22 = vrot.slane %v20214_v59, 9 }
  0xf3   : > { %1506 = vrot.lane.b32.xlu0 %v20115_v7, %s19426_s27  ;;  %v1106_v47 = vrot.slane %v1105_v28, 4  ;;  %v1608_v62 = vsel %vm1584_vm7, %v19761_v53, %v20186_v17  ;;  %v1149_v2 = vor.u32 %v1148_v9, %v1144_v21 }
  0xf4   : > { %1508 = vrot.lane.b32.xlu1 %v20170_v0, %s19426_s27 }
  0xf5   : > { %v1355_v23 = vpop.permute.xlu0 %1354  ;;  %v1111_v61 = vsel %vm19594_vm5, %v1106_v47, %v1110_v10 }
  0xf6   : > { %v1357_v3 = vpop.permute.xlu1 %1356  ;;  %v18392_v16 = vcombine.low %v1111_v61, %v1121_v49 }
  0xf7   : > { %1541 = vrot.lane.b32.xlu0 %v20139_v39, %s19427_s28 }
  0xf8   : > { %1543 = vrot.lane.b32.xlu1 %v20194_v52, %s19427_s28 }
  0xf9   : > { %v1390_v32 = vpop.permute.xlu0 %1389 }
  0xfa   : > { %v1392_v33 = vpop.permute.xlu1 %1391 }
  0xfb   : > { %1576 = vrot.lane.b32.xlu0 %v20150_v46, %s19428_s16 }
  0xfc   : > { %1578 = vrot.lane.b32.xlu1 %v20206_v30, %s19428_s16 }
  0xfd   : > { %v1425_v4 = vpop.permute.xlu0 %1424 }
  0xfe   : > { %v1427_v43 = vpop.permute.xlu1 %1426 }
  0xff   : > { %1290 = vrot.lane.b32.xlu0 %v20139_v39, %s19424_s30  ;;  %v18391_v39 = vcombine.low %v20174_v63, %v20184_v55  ;;  %v1605_v63 = vsel %vm1584_vm7, %v19740_v29, %v20176_v8  ;;  %v1128_v55 = vsel %vm19553_vm4, %v18341_v56, %v1127_v15  ;;  %v1649_v8 = vsel %vm1633_vm8, %v1608_v62, %v1357_v3 }
 0x100   : > { %1292 = vrot.lane.b32.xlu1 %v20194_v52, %s19424_s30  ;;  %v1647_v35 = vsel %vm1633_vm8, %v1605_v63, %v1355_v23  ;;  %v1682_v50 = vsel %vm1666_vm9, %v1649_v8, %v1392_v33  ;;  %v18393_v17 = vcombine.low %v1128_v55, %v1131_v57 }
 0x101   : > { %v1460_v48 = vpop.permute.xlu0 %1459  ;;  %v1680_v24 = vsel %vm1666_vm9, %v1647_v35, %v1390_v32  ;;  %v1715_v18 = vsel %vm1699_vm10, %v1682_v50, %v1427_v43  ;;  %v1140_v32 = vrot.slane %v1139_v20, 4  ;;  %v1161_v43 = vrot.slane %v20217_v44, 5 }
 0x102   : > { %v1462_v6 = vpop.permute.xlu1 %1461  ;;  %v1713_v10 = vsel %vm1699_vm10, %v1680_v24, %v1425_v4  ;;  %v1150_v4 = vrot.slane %v1149_v2, 4 }
 0x103   : > { %1370 = vrot.lane.b32.xlu0 %v20150_v46, %s19423_s29  ;;  %v547_v46 = vld [vmem:[%s19531_s24 + $0xd4] sm:$0x1]  ;;  %v1746_v53 = vsel %vm1732_vm11, %v1713_v10, %v1460_v48  ;;  %v1748_v23 = vsel %vm1732_vm11, %v1715_v18, %v1462_v6  ;;  %v1145_v41 = vsel %vm19594_vm5, %v1140_v32, %v1144_v21  ;;  %v1163_v5 = vrot.slane %v1161_v43, 4 }
 0x104   : > { %1372 = vrot.lane.b32.xlu1 %v20206_v30, %s19423_s29  ;;  %v1152_v29 = vshll.u32 %v547_v46, 16  ;;  %v1162_v44 = vsel %vm19553_vm4, %v18342_v22, %v1161_v43 }
 0x105   : > { %v1495_v58 = vpop.permute.xlu0 %1494 }
 0x106   : > { %v1497_v12 = vpop.permute.xlu1 %1496  ;;  %v1779_v3 = vsel %vm1765_vm12, %v1746_v53, %v1495_v58  ;;  %v1154_v28 = vrot.slane %v1152_v29, 5 }
 0x107   : > { %1405 = vrot.lane.b32.xlu0 %v20170_v0, %s19421_s25  ;;  %v1781_v33 = vsel %vm1765_vm12, %v1748_v23, %v1497_v12  ;;  %v27427_v23 = vmov 0.0  }
 0x108   : > { %1407 = vrot.lane.b32.xlu1 %v18391_v39, %s19421_s25  ;;  %v1155_v48 = vsel %vm19594_vm5, %v1150_v4, %v1154_v28  ;;  %19139 = vmatprep.subr.bf16.mxu0 %v27427_v23  ;;  %vm2858_vm5 = vsmask.f32 3340 }
 0x109   : > { %v1530_v26 = vpop.permute.xlu0 %1529  ;;  %v18395_v56 = vcombine.low %v1145_v41, %v1155_v48 }
 0x10a   : > { %v1532_v31 = vpop.permute.xlu1 %1531  ;;  %v1812_v27 = vsel %vm1798_vm13, %v1779_v3, %v1530_v26 }
 0x10b   : > { %1440 = vrot.lane.b32.xlu0 %v20194_v52, %s19425_s23  ;;  %v1814_v47 = vsel %vm1798_vm13, %v1781_v33, %v1532_v31 }
 0x10c   : > { %1442 = vrot.lane.b32.xlu1 %v18392_v16, %s19425_s23 }
 0x10d   : > { %v1565_v40 = vpop.permute.xlu0 %1564 }
 0x10e   : > { %v1567_v52 = vpop.permute.xlu1 %1566  ;;  %v1845_v15 = vsel %vm1831_vm14, %v1812_v27, %v1565_v40  ;;  %v19345_v27 = vld [vmem:[%s27414_s3 + $0x88] sm:$0xff]  }
 0x10f   : > { %v1847_v37 = vsel %vm1831_vm14, %v1814_v47, %v1567_v52  ;;  %1475 = vrot.lane.b32.xlu0 %v20206_v30, %s19422_s26  ;;  %19119 = vmatprep.mubr.msk.bf16.mxu0 %vm1907_vm15, %v1845_v15  ;;  %v1164_v30 = vrot.slane %v547_v46, 5 }
 0x110   : > { %1477 = vrot.lane.b32.xlu1 %v18393_v17, %s19422_s26  ;;  %19120 = vmatmul.mubr.msk.bf16.gmra.mrb[12].mxu0 %vm1907_vm15, %v1847_v37 }
 0x111   : > { %v1279_v36 = vpop.permute.xlu0 %1278  ;;  %v1165_v1 = vsel %vm19553_vm4, %v1163_v5, %v1164_v30  ;;  %vm20375_vm4 = vmor %vm2855_vm2, %vm2856_vm3  ;;  %vm7800_vm2 = vcmask 785408   ;;  %vm9604_vm3 = vcmask 1040384  }
 0x112   : > { %v1281_v6 = vpop.permute.xlu1 %1280  ;;  %v18396_v54 = vcombine.low %v1162_v44, %v1165_v1  ;;  %v1611_v14 = vsel %vm1584_vm7, %v19792_v34, %v1279_v36 }
 0x113   : > { %1510 = vrot.lane.b32.xlu0 %v18391_v39, %s19426_s27  ;;  %v1614_v9 = vsel %vm1584_vm7, %v19819_v60, %v1281_v6 }
 0x114   : > { %1512 = vrot.lane.b32.xlu1 %v18394_v42, %s19426_s27 }
 0x115   : > { %v1359_v11 = vpop.permute.xlu0 %1358 }
 0x116   : > { %v1361_v61 = vpop.permute.xlu1 %1360  ;;  %v1651_v12 = vsel %vm1633_vm8, %v1611_v14, %v1359_v11 }
 0x117   : > { %1545 = vrot.lane.b32.xlu0 %v18392_v16, %s19427_s28  ;;  %v1653_v63 = vsel %vm1633_vm8, %v1614_v9, %v1361_v61 }
 0x118   : > { %1547 = vrot.lane.b32.xlu1 %v18395_v56, %s19427_s28 }
 0x119   : > { %v1394_v59 = vpop.permute.xlu0 %1393 }
 0x11a   : > { %v1396_v49 = vpop.permute.xlu1 %1395  ;;  %v1684_v16 = vsel %vm1666_vm9, %v1651_v12, %v1394_v59 }
 0x11b   : > { %1580 = vrot.lane.b32.xlu0 %v18393_v17, %s19428_s16  ;;  %v1686_v57 = vsel %vm1666_vm9, %v1653_v63, %v1396_v49  ;;  %v19344_v17 = vld [vmem:[%s27414_s3 + $0x80] sm:$0xff]  }
 0x11c   : > { %1582 = vrot.lane.b32.xlu1 %v18396_v54, %s19428_s16  ;;  %19140 = vmatpush3.bf16.msra.mxu0 %v19344_v17 }
 0x11d   : > { %v1429_v39 = vpop.permute.xlu0 %1428  ;;  %19141 = vmatprep.subr.bf16.mxu0 %v27427_v23 }
 0x11e   : > { %v1431_v45 = vpop.permute.xlu1 %1430  ;;  %v1717_v62 = vsel %vm1699_vm10, %v1684_v16, %v1429_v39 }
 0x11f   : > { %v1719_v20 = vsel %vm1699_vm10, %v1686_v57, %v1431_v45 }
 0x120   : > { %19142 = vmatpush3.bf16.msra.mxu0 %v19345_v27 }
 0x121   : > { %v1464_v51 = vpop.permute.xlu0 %1463  ;;  %19195 = vmatprep.subr.bf16.mxu0 %v27427_v23 }
 0x122   : > { %v1466_v58 = vpop.permute.xlu1 %1465  ;;  %v1750_v29 = vsel %vm1732_vm11, %v1717_v62, %v1464_v51 }
 0x123   : > { %v1752_v34 = vsel %vm1732_vm11, %v1719_v20, %v1466_v58 }
 0x125   : > { %v1499_v46 = vpop.permute.xlu0 %1498 }
 0x126   : > { %v1501_v21 = vpop.permute.xlu1 %1500  ;;  %v1783_v60 = vsel %vm1765_vm12, %v1750_v29, %v1499_v46 }
 0x127   : > { %v1785_v8 = vsel %vm1765_vm12, %v1752_v34, %v1501_v21 }
 0x129   : > { %v1534_v55 = vpop.permute.xlu0 %1533 }
 0x12a   : > { %v1536_v35 = vpop.permute.xlu1 %1535  ;;  %v1816_v24 = vsel %vm1798_vm13, %v1783_v60, %v1534_v55 }
 0x12b   : > { %v1818_v2 = vsel %vm1798_vm13, %v1785_v8, %v1536_v35 }
 0x12d   : > { %v1569_v26 = vpop.permute.xlu0 %1568 }
 0x12e   : > { %v1571_v50 = vpop.permute.xlu1 %1570  ;;  %v1849_v10 = vsel %vm1831_vm14, %v1816_v24, %v1569_v26 }
 0x12f   : > { %v1851_v31 = vsel %vm1831_vm14, %v1818_v2, %v1571_v50  ;;  %19123 = vmatprep.mubr.msk.bf16.mxu0 %vm1907_vm15, %v1849_v10 }
 0x130   : > { %19124 = vmatmul.mubr.msk.bf16.gmra.mrb[16].mxu0 %vm1907_vm15, %v1851_v31 }
 0x131   : > { %v1283_v18 = vpop.permute.xlu0 %1282 }
 0x132   : > { %v1285_v53 = vpop.permute.xlu1 %1284  ;;  %v1617_v37 = vsel %vm1584_vm7, %v19884_v19, %v1283_v18 }
 0x133   : > { %v1620_v42 = vsel %vm1584_vm7, %v19936_v38, %v1285_v53 }
 0x135   : > { %v1363_v3 = vpop.permute.xlu0 %1362 }
 0x136   : > { %v1365_v32 = vpop.permute.xlu1 %1364  ;;  %v1655_v41 = vsel %vm1633_vm8, %v1617_v37, %v1363_v3 }
 0x137   : > { %v1657_v36 = vsel %vm1633_vm8, %v1620_v42, %v1365_v32  ;;  %v2171_v42 = vlaneseq }
 0x139   : > { %v1398_v28 = vpop.permute.xlu0 %1397 }
 0x13a   : > { %v1400_v33 = vpop.permute.xlu1 %1399  ;;  %v1688_v48 = vsel %vm1666_vm9, %v1655_v41, %v1398_v28 }
 0x13b   : > { %v1690_v5 = vsel %vm1666_vm9, %v1657_v36, %v1400_v33 }
 0x13d   : > { %v1433_v40 = vpop.permute.xlu0 %1432 }
 0x13e   : > { %v1435_v4 = vpop.permute.xlu1 %1434  ;;  %v1721_v30 = vsel %vm1699_vm10, %v1688_v48, %v1433_v40 }
 0x13f   : > { %v1723_v56 = vsel %vm1699_vm10, %v1690_v5, %v1435_v4  ;;  %v20367_v5 = vld [vmem:[%s27413_s2] ss:$0 sm:$0xff] }
 0x141   : > { %v1468_v43 = vpop.permute.xlu0 %1467 }
 0x142   : > { %v1470_v47 = vpop.permute.xlu1 %1469  ;;  %v1754_v11 = vsel %vm1732_vm11, %v1721_v30, %v1468_v43 }
 0x143   : > { %v1756_v19 = vsel %vm1732_vm11, %v1723_v56, %v1470_v47 }
 0x145   : > { %v1503_v52 = vpop.permute.xlu0 %1502 }
 0x146   : > { %v1505_v15 = vpop.permute.xlu1 %1504  ;;  %v1787_v38 = vsel %vm1765_vm12, %v1754_v11, %v1503_v52 }
 0x147   : > { %v1789_v44 = vsel %vm1765_vm12, %v1756_v19, %v1505_v15  ;;  %v19430_v15 = vmov 1966171168  }
 0x148   : > { %v2169_v37 = vunpack.c.l.s4 %v19430_v15 }
 0x149   : > { %v1538_v22 = vpop.permute.xlu0 %1537 }
 0x14a   : > { %v1540_v6 = vpop.permute.xlu1 %1539  ;;  %v1820_v1 = vsel %vm1798_vm13, %v1787_v38, %v1538_v22  ;;  %v2170_v48 = vunpack.c.0.s8 %v2169_v37  ;;  %v20362_v22 = vshrl.u32 %v2171_v42, 7 }
 0x14b   : > { %v1822_v54 = vsel %vm1798_vm13, %v1789_v44, %v1540_v6 }
 0x14c   : > { %27668 = vst [vmem:[#allocation3_spill] sm:$0xff] %v20362_v22  ;;  %v20373_v44 = vsub.s32 %v2170_v48, %v20362_v22  ;;  %v19348_v22 = vld [vmem:[%s27414_s3 + $0x48] sm:$0xff]  }
 0x14d   : > { %v1573_v61 = vpop.permute.xlu0 %1572 }
 0x14e   : > { %v1575_v59 = vpop.permute.xlu1 %1574  ;;  %v1853_v49 = vsel %vm1831_vm14, %v1820_v1, %v1573_v61 }
 0x14f   : > { %v1855_v39 = vsel %vm1831_vm14, %v1822_v54, %v1575_v59  ;;  %19127 = vmatprep.mubr.msk.bf16.mxu0 %vm1907_vm15, %v1853_v49 }
 0x150   : > { %19128 = vmatmul.mubr.msk.bf16.gmra.mrb[20].mxu0 %vm1907_vm15, %v1855_v39 }
 0x151   : > { %v1287_v45 = vpop.permute.xlu0 %1286 }
 0x152   : > { %v1289_v51 = vpop.permute.xlu1 %1288  ;;  %v1623_v62 = vsel %vm1584_vm7, %v20001_v13, %v1287_v45 }
 0x153   : > { %v1626_v35 = vsel %vm1584_vm7, %v20056_v25, %v1289_v51 }
 0x155   : > { %v1367_v58 = vpop.permute.xlu0 %1366 }
 0x156   : > { %v1369_v46 = vpop.permute.xlu1 %1368  ;;  %v1659_v20 = vsel %vm1633_vm8, %v1623_v62, %v1367_v58 }
 0x157   : > { %v1661_v29 = vsel %vm1633_vm8, %v1626_v35, %v1369_v46 }
 0x159   : > { %v1402_v21 = vpop.permute.xlu0 %1401 }
 0x15a   : > { %v1404_v14 = vpop.permute.xlu1 %1403  ;;  %v1692_v34 = vsel %vm1666_vm9, %v1659_v20, %v1402_v21 }
 0x15b   : > { %v1694_v8 = vsel %vm1666_vm9, %v1661_v29, %v1404_v14 }
 0x15d   : > { %v1437_v9 = vpop.permute.xlu0 %1436 }
 0x15e   : > { %v1439_v12 = vpop.permute.xlu1 %1438  ;;  %v1725_v24 = vsel %vm1699_vm10, %v1692_v34, %v1437_v9 }
 0x15f   : > { %v1727_v2 = vsel %vm1699_vm10, %v1694_v8, %v1439_v12 }
 0x161   : > { %v1472_v63 = vpop.permute.xlu0 %1471 }
 0x162   : > { %v1474_v16 = vpop.permute.xlu1 %1473  ;;  %v1758_v50 = vsel %vm1732_vm11, %v1725_v24, %v1472_v63 }
 0x163   : > { %v1760_v13 = vsel %vm1732_vm11, %v1727_v2, %v1474_v16 }
 0x165   : > { %v1507_v55 = vpop.permute.xlu0 %1506 }
 0x166   : > { %v1509_v57 = vpop.permute.xlu1 %1508  ;;  %v1791_v25 = vsel %vm1765_vm12, %v1758_v50, %v1507_v55 }
 0x167   : > { %v1793_v10 = vsel %vm1765_vm12, %v1760_v13, %v1509_v57 }
 0x169   : > { %v1542_v60 = vpop.permute.xlu0 %1541 }
 0x16a   : > { %v1544_v26 = vpop.permute.xlu1 %1543  ;;  %v1824_v31 = vsel %vm1798_vm13, %v1791_v25, %v1542_v60 }
 0x16b   : > { %v1826_v53 = vsel %vm1798_vm13, %v1793_v10, %v1544_v26 }
 0x16d   : > { %v1577_v18 = vpop.permute.xlu0 %1576 }
 0x16e   : > { %v1579_v17 = vpop.permute.xlu1 %1578  ;;  %v1857_v3 = vsel %vm1831_vm14, %v1824_v31, %v1577_v18 }
 0x16f   : > { %v1859_v32 = vsel %vm1831_vm14, %v1826_v53, %v1579_v17  ;;  %19131 = vmatprep.mubr.msk.bf16.mxu0 %vm1907_vm15, %v1857_v3 }
 0x170   : > { %19132 = vmatmul.mubr.msk.bf16.gmra.mrb[24].mxu0 %vm1907_vm15, %v1859_v32 }
 0x171   : > { %v1291_v28 = vpop.permute.xlu0 %1290 }
 0x172   : > { %v1293_v33 = vpop.permute.xlu1 %1292  ;;  %v1629_v11 = vsel %vm1584_vm7, %v20115_v7, %v1291_v28 }
 0x173   : > { %v1632_v61 = vsel %vm1584_vm7, %v20170_v0, %v1293_v33  ;;  %vm2859_vm7 = vmor %vm20375_vm4, %vm2858_vm5  ;;  %vm9694_vm4 = vcmask 1046528   ;;  %vm16841_vm5 = vcmask 257024  }
 0x175   : > { %v1371_v27 = vpop.permute.xlu0 %1370 }
 0x176   : > { %v1373_v40 = vpop.permute.xlu1 %1372  ;;  %v1663_v54 = vsel %vm1633_vm8, %v1629_v11, %v1371_v27 }
 0x177   : > { %v1665_v7 = vsel %vm1633_vm8, %v1632_v61, %v1373_v40  ;;  %vm2861_vm8 = vmor %vm2859_vm7, %vm2860_vm6  ;;  %vm18096_vm6 = vcmask 516096  }
 0x179   : > { %v1406_v4 = vpop.permute.xlu0 %1405 }
 0x17a   : > { %v1408_v43 = vpop.permute.xlu1 %1407  ;;  %v1696_v39 = vsel %vm1666_vm9, %v1663_v54, %v1406_v4 }
 0x17b   : > { %v1698_v46 = vsel %vm1666_vm9, %v1665_v7, %v1408_v43  ;;  %vm20409_vm9 = vmor %vm2861_vm8, %vm2862_vm0 }
 0x17d   : > { %v1441_v47 = vpop.permute.xlu0 %1440 }
 0x17e   : > { %v1443_v52 = vpop.permute.xlu1 %1442  ;;  %v1729_v21 = vsel %vm1699_vm10, %v1696_v39, %v1441_v47 }
 0x17f   : > { %v1731_v9 = vsel %vm1699_vm10, %v1698_v46, %v1443_v52 }
 0x181   : > { %v1476_v41 = vpop.permute.xlu0 %1475 }
 0x182   : > { %v1478_v36 = vpop.permute.xlu1 %1477  ;;  %v1762_v12 = vsel %vm1732_vm11, %v1729_v21, %v1476_v41 }
 0x183   : > { %v1764_v55 = vsel %vm1732_vm11, %v1731_v9, %v1478_v36  ;;  %vm2864_vm11 = vsmask.f32 6424 }
 0x185   : > { %v1511_v30 = vpop.permute.xlu0 %1510 }
 0x186   : > { %v1513_v6 = vpop.permute.xlu1 %1512  ;;  %v19109_v56 = vpop.f32.mrb[0].mxu0  ;;  %v1795_v57 = vsel %vm1765_vm12, %v1762_v12, %v1511_v30 }
 0x187   : > { %v1987_v19 = vadd.f32 %v19109_v56, %v20367_v5  ;;  %v1978_v38 = vpop.f32.mrb[1].mxu0  ;;  %v1797_v20 = vsel %vm1765_vm12, %v1764_v55, %v1513_v6  ;;  %vm2866_vm12 = vsmask.f32 7452 }
 0x188   : > { %v1979_v59 = vadd.f32 %v20367_v5, %v1978_v38  ;;  %v19110_v49 = vpop.f32.mrb[2].mxu0 }
 0x189   : > { %v1990_v45 = vadd.f32 %v19110_v49, %v20367_v5  ;;  %v1981_v51 = vpop.f32.mrb[3].mxu0  ;;  %v1546_v58 = vpop.permute.xlu0 %1545  ;;  %v2107_v63 = vmax.f32 %v1987_v19, 0.0 }
 0x18a   : > { %v1548_v0 = vpop.permute.xlu1 %1547  ;;  %v1982_v14 = vadd.f32 %v20367_v5, %v1981_v51  ;;  %v2105_v62 = vmax.f32 %v1979_v59, 0.0  ;;  %v1828_v60 = vsel %vm1798_vm13, %v1795_v57, %v1546_v58 }
 0x18b   : > { %v2108_v16 = vmax.f32 %v1990_v45, 0.0  ;;  %v1830_v24 = vsel %vm1798_vm13, %v1797_v20, %v1548_v0  ;;  %vm19431_vm13 = vmmov 0  }
 0x18c   : > { %v2106_v35 = vmax.f32 %v1982_v14, 0.0 }
 0x18d   : > { %v2138_v29 = vpack.c.bf16 %v2108_v16, %v2107_v63  ;;  %v18420_v34 = vpack.c.bf16 %v2108_v16, %v2108_v16  ;;  %v1581_v8 = vpop.permute.xlu0 %1580 }
 0x18e   : > { %v2137_v26 = vpack.c.bf16 %v2106_v35, %v2105_v62  ;;  %v18419_v2 = vpack.c.bf16 %v2106_v35, %v2106_v35  ;;  %v1583_v50 = vpop.permute.xlu1 %1582  ;;  %v1861_v13 = vsel %vm1831_vm14, %v1828_v60, %v1581_v8 }
 0x18f   : > { %v2222_v25 = vrot.slane %v2138_v29, %v20373_v44  ;;  %v2229_v10 = vrot.slane %v18420_v34, %v20373_v44  ;;  %v1863_v31 = vsel %vm1831_vm14, %v1830_v24, %v1583_v50  ;;  %19135 = vmatprep.mubr.msk.bf16.mxu0 %vm1907_vm15, %v1861_v13 }
 0x190   : > { %v2174_v18 = vrot.slane %v2137_v26, %v20373_v44  ;;  %v2181_v53 = vrot.slane %v18419_v2, %v20373_v44  ;;  %19136 = vmatmul.mubr.msk.bf16.gmra.mrb[28].mxu0 %vm1907_vm15, %v1863_v31  ;;  %vm2865_vm15 = vmor %vm20409_vm9, %vm2864_vm11 }
 0x191   : > { %v2230_v3 = vcombine.high %v2222_v25, %v2222_v25  ;;  %v2231_v32 = vcombine.high %v2229_v10, %v2229_v10  ;;  %v20414_v28 = vrot.slane %v2222_v25, %v20373_v44  ;;  %v20417_v33 = vrot.slane %v2229_v10, %v20373_v44  ;;  %19143 = vmatprep.mubr.msk.bf16.mxu0 %vm19431_vm13, %v27427_v23  ;;  %vm20462_vm1 = vmor %vm2865_vm15, %vm2866_vm12 }
 0x192   : > { %v2182_v27 = vcombine.high %v2174_v18, %v2174_v18  ;;  %v2183_v40 = vcombine.high %v2181_v53, %v2181_v53  ;;  %v20422_v4 = vrot.slane %v2174_v18, %v20373_v44  ;;  %v20425_v43 = vrot.slane %v2181_v53, %v20373_v44 }
 0x193   : > { %v20428_v47 = vrot.slane %v2230_v3, %v20373_v44  ;;  %v20431_v52 = vrot.slane %v2231_v32, %v20373_v44  ;;  %v20435_v15 = vcombine.high %v20414_v28, %v20414_v28  ;;  %v2926_v37 = vshrl.u32 %v20414_v28, 16 }
 0x194   : > { %v20442_v42 = vrot.slane %v2182_v27, %v20373_v44  ;;  %v20445_v41 = vrot.slane %v2183_v40, %v20373_v44  ;;  %v2212_v36 = vcombine.high %v20422_v4, %v20422_v4  ;;  %v20451_v48 = vcombine.high %v20425_v43, %v20425_v43 }
 0x195   : > { %v2869_v30 = vshrl.u32 %v20422_v4, 16  ;;  %v2898_v6 = vshll.u32 %v20425_v43, 16  ;;  %v2901_v56 = vshrl.u32 %v20425_v43, 16  ;;  %v2931_v11 = vshll.u32 %v20428_v47, 16 }
 0x196   : > { %v2882_v19 = vshll.u32 %v2212_v36, 16  ;;  %v2885_v38 = vshrl.u32 %v2212_v36, 16  ;;  %v2214_v1 = vcombine.high %v20442_v42, %v20442_v42  ;;  %v2839_v61 = vcombine.high %v20445_v41, %v20445_v41 }
 0x197   : > { %v5112_v59 = vcombine.low %v20442_v42, %v2212_v36  ;;  %v5114_v49 = vcombine.low %v20445_v41, %v20451_v48  ;;  %v2874_v7 = vshll.u32 %v20442_v42, 16  ;;  %v2877_v39 = vshrl.u32 %v20442_v42, 16 }
 0x198   : > { %v2922_v45 = vshll.u32 %v2839_v61, 16  ;;  %v5113_v51 = vcombine.low %v2214_v1, %v20425_v43  ;;  %v5115_v58 = vcombine.low %v2839_v61, %v20428_v47  ;;  %v2890_v46 = vshll.u32 %v2214_v1, 16 }
 0x199   : > { %v5122_v21 = vrot.slane %v5112_v59, %v20373_v44  ;;  %v5136_v0 = vrot.slane %v5114_v49, %v20373_v44  ;;  %v2876_v14 = vsel %vm20462_vm1, %v2869_v30, %v2874_v7  ;;  %v2884_v9 = vsel %vm20462_vm1, %v2877_v39, %v2882_v19 }
 0x19a   : > { %v5129_v12 = vrot.slane %v5113_v51, %v20373_v44  ;;  %v5143_v63 = vrot.slane %v5115_v58, %v20373_v44  ;;  %v2892_v16 = vsel %vm20462_vm1, %v2885_v38, %v2890_v46  ;;  %v2893_v55 = vshrl.u32 %v2214_v1, 16 }
 0x19b   : > { %v2906_v57 = vshll.u32 %v20445_v41, 16  ;;  %v2909_v62 = vshrl.u32 %v20445_v41, 16  ;;  %v2914_v35 = vshll.u32 %v20451_v48, 16  ;;  %v2917_v20 = vshrl.u32 %v20451_v48, 16 }
 0x19c   : > { %v5144_v29 = vcombine.low %v5122_v21, %v5129_v12  ;;  %v5145_v34 = vcombine.low %v5136_v0, %v5143_v63  ;;  %v2900_v60 = vsel %vm20462_vm1, %v2893_v55, %v2898_v6  ;;  %v20491_v8 = vsel %vm20462_vm1, %v2926_v37, %v2931_v11 }
 0x19d   : > { %v2908_v24 = vsel %vm20462_vm1, %v2901_v56, %v2906_v57  ;;  %v2916_v26 = vsel %vm20462_vm1, %v2909_v62, %v2914_v35  ;;  %v2924_v2 = vsel %vm20462_vm1, %v2917_v20, %v2922_v45  ;;  %v4483_v50 = vcombine.low %v2876_v14, %v2884_v9 }
 0x19e   : > { %v5152_v13 = vrot.slane %v5144_v29, %v20373_v44  ;;  %v5159_v25 = vrot.slane %v5145_v34, %v20373_v44  ;;  %v4484_v10 = vcombine.low %v2892_v16, %v2900_v60  ;;  %v4485_v31 = vcombine.low %v2908_v24, %v2916_v26 }
 0x19f   : > { %v4486_v18 = vcombine.low %v2924_v2, %v20491_v8  ;;  %v4493_v53 = vrot.slane %v4483_v50, %v20373_v44  ;;  %v18554_v17 = vcombine.high %v20414_v28, %v20428_v47  ;;  %v20508_v27 = vcombine.high %v20417_v33, %v20417_v33 }
 0x1a0   : > { %v5160_v3 = vcombine.low %v5152_v13, %v5159_v25  ;;  %v4500_v32 = vrot.slane %v4484_v10, %v20373_v44  ;;  %v5162_v40 = vcombine.low %v20417_v33, %v20431_v52  ;;  %v4507_v37 = vrot.slane %v4485_v31, %v20373_v44 }
 0x1a1   : > { %v4514_v36 = vrot.slane %v4486_v18, %v20373_v44  ;;  %v5741_v30 = vcombine.low %v20414_v28, %v20428_v47  ;;  %v20518_v6 = vcombine.high %v20428_v47, %v20428_v47  ;;  %v5171_v11 = vrot.slane %v18554_v17, %v20373_v44 }
 0x1a2   : > { %5715 = vrot.lane.b32.xlu1 %v5160_v3, %s19428_s16  ;;  %v4515_v56 = vcombine.low %v4493_v53, %v4500_v32  ;;  %v3929_v19 = vcombine.low %v20428_v47, %v20435_v15  ;;  %v20527_v59 = vcombine.high %v20431_v52, %v20431_v52  ;;  %v20534_v51 = vrot.slane %v5162_v40, %v20373_v44 }
 0x1a3   : > { %v19113_v38 = vpop.f32.mrb[4].mxu0  ;;  %v4516_v1 = vcombine.low %v4507_v37, %v4514_v36  ;;  %v5749_v61 = vrot.slane %v5741_v30, %v20373_v44  ;;  %v3930_v49 = vcombine.low %v20518_v6, %v20417_v33  ;;  %v3931_v58 = vcombine.low %v20431_v52, %v20508_v27 }
 0x1a4   : > { %v2003_v7 = vadd.f32 %v19113_v38, %v20367_v5  ;;  %v1994_v39 = vpop.f32.mrb[5].mxu0  ;;  %v4523_v45 = vrot.slane %v4515_v56, %v20373_v44  ;;  %v3939_v16 = vrot.slane %v3929_v19, %v20373_v44  ;;  %v18555_v55 = vcombine.high %v20417_v33, %v20431_v52 }
 0x1a5   : > { %v1995_v46 = vadd.f32 %v20367_v5, %v1994_v39  ;;  %v19114_v21 = vpop.f32.mrb[6].mxu0  ;;  %v4530_v0 = vrot.slane %v4516_v1, %v20373_v44  ;;  %v3946_v14 = vrot.slane %v3930_v49, %v20373_v44  ;;  %v5757_v63 = vcombine.low %v5749_v61, %v5171_v11 }
 0x1a6   : > { %v2006_v9 = vadd.f32 %v19114_v21, %v20367_v5  ;;  %v1997_v12 = vpop.f32.mrb[7].mxu0  ;;  %v2111_v57 = vmax.f32 %v2003_v7, 0.0  ;;  %v20548_v34 = vrot.slane %v3931_v58, %v20373_v44  ;;  %v5193_v24 = vcombine.low %v5171_v11, %v20534_v51 }
 0x1a7   : > { %v4531_v62 = vcombine.low %v4523_v45, %v4530_v0  ;;  %v1998_v35 = vadd.f32 %v20367_v5, %v1997_v12  ;;  %v3961_v60 = vcombine.low %v3939_v16, %v3946_v14  ;;  %v2109_v26 = vmax.f32 %v1995_v46, 0.0 }
 0x1a8   : > { %v2112_v29 = vmax.f32 %v2006_v9, 0.0  ;;  %27675 = vst [vmem:[#allocation4_spill] sm:$0xff] %v20548_v34  ;;  %v2934_v50 = vshrl.u32 %v20428_v47, 16  ;;  %v2939_v13 = vshll.u32 %v20435_v15, 16  ;;  %v20555_v31 = vrot.slane %v5757_v63, %v20373_v44 }
 0x1a9   : > { %5086 = vrot.lane.b32.xlu1 %v4531_v62, %s19425_s23  ;;  %v2110_v2 = vmax.f32 %v1998_v35, 0.0  ;;  %v5185_v18 = vrot.slane %v18555_v55, %v20373_v44  ;;  %v2942_v3 = vshrl.u32 %v20435_v15, 16  ;;  %v2947_v32 = vshll.u32 %v20518_v6, 16 }
 0x1aa   : > { %v2140_v25 = vpack.c.bf16 %v2112_v29, %v2111_v57  ;;  %v18422_v10 = vpack.c.bf16 %v2112_v29, %v2112_v29  ;;  %v20565_v47 = vrot.slane %v3961_v60, %v20373_v44  ;;  %v20568_v36 = vrot.slane %v5193_v24, %v20373_v44 }
 0x1ab   : > { %v2139_v53 = vpack.c.bf16 %v2110_v2, %v2109_v26  ;;  %v18421_v17 = vpack.c.bf16 %v2110_v2, %v2110_v2  ;;  %v20574_v15 = vsel %vm20462_vm1, %v2934_v50, %v2939_v13  ;;  %v2950_v11 = vshrl.u32 %v20518_v6, 16 }
 0x1ac   : > { %v2318_v40 = vrot.slane %v2140_v25, %v20373_v44  ;;  %v20562_v37 = vrot.slane %v18422_v10, %v20373_v44  ;;  %27676 = vst [vmem:[#allocation5_spill] sm:$0xff] %v20565_v47  ;;  %v20582_v1 = vsel %vm20462_vm1, %v2942_v3, %v2947_v32  ;;  %v2955_v61 = vshll.u32 %v20417_v33, 16 }
 0x1ad   : > { %v2270_v30 = vrot.slane %v2139_v53, %v20373_v44  ;;  %v2277_v56 = vrot.slane %v18421_v17, %v20373_v44  ;;  %v2958_v0 = vshrl.u32 %v20417_v33, 16 }
 0x1ae   : > { %v2326_v19 = vcombine.high %v2318_v40, %v2318_v40  ;;  %v20578_v38 = vrot.slane %v2318_v40, %v20373_v44  ;;  %v2327_v58 = vcombine.high %v20562_v37, %v20562_v37 }
 0x1af   : > { %v2278_v49 = vcombine.high %v2270_v30, %v2270_v30  ;;  %v2279_v7 = vcombine.high %v2277_v56, %v2277_v56  ;;  %v20586_v39 = vrot.slane %v2270_v30, %v20373_v44  ;;  %v20589_v45 = vrot.slane %v2277_v56, %v20373_v44 }
 0x1b0   : > { %v20594_v46 = vrot.slane %v2326_v19, %v20373_v44  ;;  %v20598_v21 = vcombine.high %v20578_v38, %v20578_v38  ;;  %v3040_v16 = vshrl.u32 %v20578_v38, 16 }
 0x1b1   : > { %v20602_v14 = vrot.slane %v2278_v49, %v20373_v44  ;;  %v20605_v9 = vrot.slane %v2279_v7, %v20373_v44  ;;  %v20609_v12 = vcombine.high %v20586_v39, %v20586_v39  ;;  %v20613_v63 = vcombine.high %v20589_v45, %v20589_v45 }
 0x1b2   : > { %v5742_v55 = vcombine.low %v20508_v27, %v20586_v39  ;;  %v5774_v57 = vcombine.low %v20578_v38, %v20594_v46  ;;  %v3981_v62 = vcombine.low %v20594_v46, %v20598_v21  ;;  %v20864_v33 = vcombine.high %v20594_v46, %v20594_v46 }
 0x1b3   : > { %v20624_v35 = vcombine.high %v20605_v9, %v20605_v9  ;;  %v5211_v29 = vcombine.low %v20605_v9, %v20613_v63  ;;  %v6717_v60 = vcombine.low %v20527_v59, %v20602_v14  ;;  %v5164_v24 = vcombine.low %v20602_v14, %v20609_v12 }
 0x1b4   : > { %v5756_v26 = vrot.slane %v5742_v55, %v20373_v44  ;;  %v20635_v2 = vcombine.high %v20602_v14, %v20602_v14  ;;  %v3932_v50 = vcombine.low %v20586_v39, %v20602_v14  ;;  %v18548_v13 = vcombine.high %v20586_v39, %v20602_v14 }
 0x1b5   : > { %v6724_v25 = vrot.slane %v6717_v60, %v20373_v44  ;;  %v5192_v10 = vrot.slane %v5164_v24, %v20373_v44  ;;  %v5212_v53 = vcombine.low %v20624_v35, %v20594_v46  ;;  %v5227_v17 = vrot.slane %v5211_v29, %v20373_v44 }
 0x1b6   : > { %v5758_v3 = vcombine.low %v20534_v51, %v5756_v26  ;;  %v5210_v32 = vcombine.low %v20635_v2, %v20589_v45  ;;  %v20650_v40 = vrot.slane %v3932_v50, %v20373_v44  ;;  %v3979_v30 = vcombine.low %v20589_v45, %v20605_v9 }
 0x1b7   : > { %v6725_v56 = vcombine.low %v20548_v34, %v6724_v25  ;;  %v5194_v19 = vcombine.low %v5185_v18, %v5192_v10  ;;  %v5234_v49 = vrot.slane %v5212_v53, %v20373_v44  ;;  %v3980_v7 = vcombine.low %v20613_v63, %v20578_v38 }
 0x1b8   : > { %27677 = vst [vmem:[#allocation6_spill] sm:$0xff] %v20650_v40  ;;  %v5772_v55 = vrot.slane %v5758_v3, %v20373_v44  ;;  %v5220_v51 = vrot.slane %v5210_v32, %v20373_v44  ;;  %v3988_v29 = vrot.slane %v18548_v13, %v20373_v44  ;;  %v3995_v60 = vrot.slane %v3979_v30, %v20373_v44 }
 0x1b9   : > { %v6732_v24 = vrot.slane %v6725_v56, %v20373_v44  ;;  %v5208_v26 = vrot.slane %v5194_v19, %v20373_v44  ;;  %v7572_v50 = vcombine.low %v5227_v17, %v5234_v49  ;;  %v20665_v18 = vrot.slane %v3980_v7, %v20373_v44 }
 0x1ba   : > { %v5773_v25 = vcombine.low %v20555_v31, %v5772_v55  ;;  %v5782_v53 = vcombine.low %v5192_v10, %v5220_v51  ;;  %v7002_v20 = vcombine.low %v20650_v40, %v3988_v29  ;;  %v5781_v3 = vrot.slane %v5774_v57, %v20373_v44 }
 0x1bb   : > { %27678 = vst [vmem:[#allocation7_spill] sm:$0xff] %v20665_v18  ;;  %v6733_v32 = vcombine.low %v20565_v47, %v6732_v24  ;;  %v5209_v13 = vcombine.low %v20568_v36, %v5208_v26  ;;  %v7579_v30 = vrot.slane %v7572_v50, %v20373_v44  ;;  %v7003_v56 = vcombine.low %v3995_v60, %v20665_v18 }
 0x1bc   : > { %6088 = vrot.lane.b32.xlu1 %v5773_v25, %s19432_s14  ;;  %v5790_v19 = vrot.slane %v5782_v53, %v20373_v44  ;;  %v7010_v31 = vrot.slane %v7002_v20, %v20373_v44  ;;  %v5783_v10 = vcombine.low %v5227_v17, %v5781_v3  ;;  %v20678_v7 = vrot.slane %v3981_v62, %v20373_v44 }
 0x1bd   : > { %6976 = vrot.lane.b32.xlu0 %v6733_v32, %s19425_s23  ;;  %v7017_v57 = vrot.slane %v7003_v56, %v20373_v44  ;;  %v4010_v36 = vcombine.low %v3988_v29, %v3995_v60  ;;  %v18568_v55 = vcombine.high %v20589_v45, %v20605_v9  ;;  %v18556_v24 = vcombine.high %v20578_v38, %v20594_v46 }
 0x1be   : > { %27679 = vst [vmem:[#allocation8_spill] sm:$0xff] %v20678_v7  ;;  %v7580_v26 = vcombine.low %v5790_v19, %v7579_v30  ;;  %v5797_v50 = vrot.slane %v5783_v10, %v20373_v44  ;;  %v5242_v25 = vcombine.low %v5220_v51, %v5227_v17  ;;  %v2988_v20 = vshll.u32 %v20602_v14, 16 }
 0x1bf   : > { %v2983_v62 = vshrl.u32 %v20586_v39, 16  ;;  %v7018_v53 = vcombine.low %v7010_v31, %v7017_v57  ;;  %v6741_v3 = vrot.slane %v18568_v55, %v20373_v44  ;;  %v20691_v32 = vrot.slane %v18556_v24, %v20373_v44 }
 0x1c0   : > { %5717 = vrot.lane.b32.xlu1 %v5209_v13, %s19428_s16  ;;  %19144 = vmatmul.mubr.msk.bf16.vlgmr.msra.gmra.mrb[32].mxu0 %vm1699_vm10, %v7580_v26  ;;  %v5798_v29 = vcombine.low %v5790_v19, %v5797_v50  ;;  %v20696_v60 = vrot.slane %v4010_v36, %v20373_v44  ;;  %v5250_v17 = vrot.slane %v5242_v25, %v20373_v44  ;;  %v2991_v51 = vshrl.u32 %v20602_v14, 16 }
 0x1c1   : > { %7253 = vrot.lane.b32.xlu0 %v7018_v53, %s19428_s16  ;;  %v6742_v39 = vcombine.low %v6741_v3, %v20678_v7  ;;  %v5243_v30 = vcombine.low %v5234_v49, %v20691_v32  ;;  %v20705_v56 = vsel %vm20462_vm1, %v2983_v62, %v2988_v20  ;;  %v2996_v13 = vshll.u32 %v20609_v12, 16  ;;  %19147 = vmatprep.mubr.msk.bf16.mxu0 %vm19431_vm13, %v27427_v23 }
 0x1c2   : > { %27680 = vst [vmem:[#allocation9_spill] sm:$0xff] %v20696_v60  ;;  %27681 = vst [vmem:[#allocation10_spill] sm:$0xff] %v20705_v56  ;;  %v2999_v19 = vshrl.u32 %v20609_v12, 16  ;;  %v3004_v31 = vshll.u32 %v20635_v2, 16  ;;  %v3007_v14 = vshrl.u32 %v20635_v2, 16  ;;  %v3012_v10 = vshll.u32 %v20589_v45, 16 }
 0x1c3   : > { %v19117_v57 = vpop.f32.mrb[8].mxu0  ;;  %v6749_v49 = vrot.slane %v6742_v39, %v20373_v44  ;;  %v5257_v36 = vrot.slane %v5243_v30, %v20373_v44  ;;  %v3015_v55 = vshrl.u32 %v20589_v45, 16  ;;  %v3020_v24 = vshll.u32 %v20605_v9, 16 }
 0x1c4   : > { %6090 = vrot.lane.b32.xlu1 %v5798_v29, %s19432_s14  ;;  %v2019_v26 = vadd.f32 %v19117_v57, %v20367_v5  ;;  %v2010_v12 = vpop.f32.mrb[9].mxu0  ;;  %v20722_v50 = vsel %vm20462_vm1, %v2991_v51, %v2996_v13  ;;  %v20726_v2 = vsel %vm20462_vm1, %v3007_v14, %v3012_v10  ;;  %v3023_v25 = vshrl.u32 %v20605_v9, 16 }
 0x1c5   : > { %27682 = vst [vmem:[#allocation11_spill] sm:$0xff] %v20722_v50  ;;  %27683 = vst [vmem:[#allocation12_spill] sm:$0xff] %v20726_v2  ;;  %v2011_v20 = vadd.f32 %v20367_v5, %v2010_v12  ;;  %v6750_v45 = vcombine.low %v20696_v60, %v6749_v49  ;;  %v19118_v62 = vpop.f32.mrb[10].mxu0  ;;  %v5258_v53 = vcombine.low %v5250_v17, %v5257_v36  ;;  %v3028_v9 = vshll.u32 %v20613_v63, 16 }
 0x1c6   : > { %v20733_v3 = vsel %vm20462_vm1, %v2999_v19, %v3004_v31  ;;  %v2115_v29 = vmax.f32 %v2019_v26, 0.0  ;;  %v2022_v51 = vadd.f32 %v19118_v62, %v20367_v5  ;;  %v2013_v39 = vpop.f32.mrb[11].mxu0  ;;  %v20738_v30 = vsel %vm20462_vm1, %v3015_v55, %v3020_v24 }
 0x1c7   : > { %27684 = vst [vmem:[#allocation13_spill] sm:$0xff] %v20733_v3  ;;  %27685 = vst [vmem:[#allocation14_spill] sm:$0xff] %v20738_v30  ;;  %6978 = vrot.lane.b32.xlu0 %v6750_v45, %s19425_s23  ;;  %v2014_v13 = vadd.f32 %v20367_v5, %v2013_v39  ;;  %v3031_v17 = vshrl.u32 %v20613_v63, 16  ;;  %v3036_v14 = vshll.u32 %v20624_v35, 16  ;;  %v3045_v19 = vshll.u32 %v20594_v46, 16 }
 0x1c8   : > { %v2116_v31 = vmax.f32 %v2022_v51, 0.0  ;;  %5719 = vrot.lane.b32.xlu1 %v5258_v53, %s19428_s16  ;;  %v20749_v10 = vsel %vm20462_vm1, %v3023_v25, %v3028_v9  ;;  %v4535_v57 = vcombine.low %v20705_v56, %v20722_v50  ;;  %v4581_v49 = vcombine.low %v20733_v3, %v20726_v2 }
 0x1c9   : > { %27686 = vst [vmem:[#allocation15_spill] sm:$0xff] %v20749_v10  ;;  %v2113_v36 = vmax.f32 %v2011_v20, 0.0  ;;  %v2114_v55 = vmax.f32 %v2014_v13, 0.0  ;;  %v20757_v63 = vsel %vm20462_vm1, %v3031_v17, %v3036_v14  ;;  %v20763_v35 = vsel %vm20462_vm1, %v3040_v16, %v3045_v19 }
 0x1ca   : > { %27687 = vst [vmem:[#allocation16_spill] sm:$0xff] %v20757_v63  ;;  %27688 = vst [vmem:[#allocation17_spill] sm:$0xff] %v20763_v35  ;;  %v2142_v24 = vpack.c.bf16 %v2116_v31, %v2115_v29  ;;  %v18424_v26 = vpack.c.bf16 %v2116_v31, %v2116_v31  ;;  %v4582_v12 = vcombine.low %v20738_v30, %v20749_v10  ;;  %v2963_v17 = vshll.u32 %v20431_v52, 16 }
 0x1cb   : > { %v4583_v25 = vcombine.low %v20757_v63, %v20763_v35  ;;  %v2141_v20 = vpack.c.bf16 %v2114_v55, %v2113_v36  ;;  %v18423_v45 = vpack.c.bf16 %v2114_v55, %v2114_v55  ;;  %v20770_v62 = vrot.slane %v4535_v57, %v20373_v44 }
 0x1cc   : > { %v20773_v53 = vrot.slane %v4581_v49, %v20373_v44  ;;  %v2414_v38 = vrot.slane %v2142_v24, %v20373_v44  ;;  %v2421_v16 = vrot.slane %v18424_v26, %v20373_v44  ;;  %v20786_v51 = vsel %vm20462_vm1, %v2950_v11, %v2955_v61  ;;  %v19346_v11 = vld [vmem:[%s27414_s3 + $0x40] sm:$0xff]  }
 0x1cd   : > { %v20778_v29 = vrot.slane %v4583_v25, %v20373_v44  ;;  %v2366_v39 = vrot.slane %v2141_v20, %v20373_v44  ;;  %v2373_v9 = vrot.slane %v18423_v45, %v20373_v44  ;;  %v19347_v61 = vld [vmem:[%s27414_s3] sm:$0xff]   ;;  %v20807_v57 = vrot.slane %v20562_v37, %v20373_v44  ;;  %18844 = vmatprep.subr.bf16.mxu1 %v19346_v11 }
 0x1ce   : > { %v7279_v13 = vcombine.low %v20770_v62, %v20773_v53  ;;  %v2422_v14 = vcombine.high %v2414_v38, %v2414_v38  ;;  %v2423_v19 = vcombine.high %v2421_v16, %v2421_v16  ;;  %v20794_v31 = vrot.slane %v2414_v38, %v20373_v44  ;;  %18845 = vmatpush3.bf16.msra.mxu1 %v19347_v61 }
 0x1cf   : > { %v20797_v6 = vrot.slane %v2421_v16, %v20373_v44  ;;  %v20813_v49 = vrot.slane %v2327_v58, %v20373_v44  ;;  %v2374_v36 = vcombine.high %v2366_v39, %v2366_v39  ;;  %v20816_v55 = vrot.slane %v2366_v39, %v20373_v44  ;;  %18846 = vmatprep.subr.bf16.mxu1 %v19348_v22 }
 0x1d0   : > { %v20819_v24 = vrot.slane %v2422_v14, %v20373_v44  ;;  %v2375_v26 = vcombine.high %v2373_v9, %v2373_v9  ;;  %v20822_v25 = vrot.slane %v2373_v9, %v20373_v44  ;;  %v20825_v20 = vrot.slane %v4582_v12, %v20373_v44 }
 0x1d1   : > { %v20828_v45 = vrot.slane %v2423_v19, %v20373_v44  ;;  %v20832_v37 = vcombine.high %v20794_v31, %v20794_v31  ;;  %v20836_v58 = vcombine.high %v20797_v6, %v20797_v6  ;;  %v20839_v38 = vrot.slane %v2374_v36, %v20373_v44 }
 0x1d2   : > { %v20843_v12 = vcombine.high %v20816_v55, %v20816_v55  ;;  %v7280_v16 = vcombine.low %v20825_v20, %v20778_v29  ;;  %v7287_v39 = vrot.slane %v7279_v13, %v20373_v44  ;;  %v20852_v9 = vsel %vm20462_vm1, %v2958_v0, %v2963_v17 }
 0x1d3   : > { %27689 = vst [vmem:[#allocation18_spill] sm:$0xff] %v20852_v9  ;;  %v2966_v14 = vshrl.u32 %v20431_v52, 16  ;;  %v2971_v19 = vshll.u32 %v20508_v27, 16  ;;  %v2974_v11 = vshrl.u32 %v20508_v27, 16  ;;  %v4532_v61 = vcombine.low %v20574_v15, %v20582_v1 }
 0x1d4   : > { %v7294_v36 = vrot.slane %v7280_v16, %v20373_v44  ;;  %v4533_v13 = vcombine.low %v20786_v51, %v20852_v9  ;;  %v3048_v0 = vshrl.u32 %v20594_v46, 16  ;;  %v27690_v27 = vshll.u32 %v20527_v59, 16  ;;  %v19349_v46 = vld [vmem:[%s27414_s3 + $0x8] sm:$0xff]  }
 0x1d5   : > { %v20869_v52 = vsel %vm20462_vm1, %v2966_v14, %v2971_v19  ;;  %v4542_v16 = vrot.slane %v4532_v61, %v20373_v44  ;;  %v3053_v23 = vshll.u32 %v20598_v21, 16  ;;  %v20886_v14 = vrot.slane %v2375_v26, %v20373_v44  ;;  %18847 = vmatpush3.bf16.msra.mxu1 %v19349_v46 }
 0x1d6   : > { %v20875_v17 = vsel %vm20462_vm1, %v2974_v11, %v27690_v27  ;;  %v7295_v59 = vcombine.low %v7287_v39, %v7294_v36  ;;  %v4549_v11 = vrot.slane %v4533_v13, %v20373_v44  ;;  %v3056_v27 = vshrl.u32 %v20598_v21, 16 }
 0x1d7   : > { %27691 = vst [vmem:[#allocation19_spill] sm:$0xff] %v20875_v17  ;;  %v4534_v19 = vcombine.low %v20869_v52, %v20875_v17  ;;  %v20893_v61 = vsel %vm20462_vm1, %v3048_v0, %v3053_v23  ;;  %v3061_v60 = vshll.u32 %v20864_v33, 16  ;;  %v20899_v18 = vcombine.high %v20807_v57, %v20807_v57 }
 0x1d8   : > { %27692 = vst [vmem:[#allocation20_spill] sm:$0xff] %v20893_v61  ;;  %7546 = vrot.lane.b32.xlu0 %v7295_v59, %s19432_s14  ;;  %v4564_v39 = vcombine.low %v4542_v16, %v4549_v11  ;;  %v5259_v36 = vcombine.low %v20807_v57, %v20813_v49  ;;  %v5261_v23 = vcombine.low %v20839_v38, %v20843_v12  ;;  %v3077_v17 = vshll.u32 %v20813_v49, 16 }
 0x1d9   : > { %v4556_v26 = vrot.slane %v4534_v19, %v20373_v44  ;;  %v20909_v21 = vsel %vm20462_vm1, %v3056_v27, %v3061_v60  ;;  %v4613_v13 = vcombine.low %v20773_v53, %v20825_v20  ;;  %v5799_v22 = vcombine.low %v20899_v18, %v20816_v55 }
 0x1da   : > { %27693 = vst [vmem:[#allocation21_spill] sm:$0xff] %v20909_v21  ;;  %v4027_v0 = vcombine.low %v20864_v33, %v20807_v57  ;;  %v4572_v59 = vrot.slane %v4564_v39, %v20373_v44  ;;  %v4584_v19 = vcombine.low %v20893_v61, %v20909_v21  ;;  %v5269_v60 = vrot.slane %v5259_v36, %v20373_v44 }
 0x1db   : > { %v4565_v16 = vcombine.low %v4556_v26, %v20770_v62  ;;  %v20923_v11 = vrot.slane %v5261_v23, %v20373_v44  ;;  %v5806_v53 = vrot.slane %v5799_v22, %v20373_v44  ;;  %v4028_v20 = vcombine.low %v20813_v49, %v20899_v18 }
 0x1dc   : > { %v4029_v46 = vcombine.low %v20816_v55, %v20839_v38  ;;  %v20932_v27 = vrot.slane %v4584_v19, %v20373_v44  ;;  %v5807_v26 = vcombine.low %v20691_v32, %v5269_v60  ;;  %v4037_v39 = vrot.slane %v4027_v0, %v20373_v44 }
 0x1dd   : > { %v4579_v62 = vrot.slane %v4565_v16, %v20373_v44  ;;  %v5808_v36 = vcombine.low %v5806_v53, %v20923_v11  ;;  %v4044_v23 = vrot.slane %v4028_v20, %v20373_v44  ;;  %v18557_v21 = vcombine.high %v20807_v57, %v20813_v49 }
 0x1de   : > { %v20939_v22 = vrot.slane %v4029_v46, %v20373_v44  ;;  %v4614_v16 = vcombine.low %v20778_v29, %v20932_v27  ;;  %v4621_v19 = vrot.slane %v4613_v13, %v20373_v44  ;;  %v7019_v32 = vcombine.low %v20678_v7, %v4037_v39 }
 0x1df   : > { %v4580_v47 = vcombine.low %v4572_v59, %v4579_v62  ;;  %v5815_v0 = vrot.slane %v5807_v26, %v20373_v44  ;;  %v5822_v53 = vrot.slane %v5808_v36, %v20373_v44  ;;  %v5276_v46 = vrot.slane %v18557_v21, %v20373_v44  ;;  %v19350_v62 = vld [vmem:[%s27414_s3 + $0x50] sm:$0xff]  }
 0x1e0   : > { %27694 = vst [vmem:[#allocation22_spill] sm:$0xff] %v20939_v22  ;;  %v7020_v20 = vcombine.low %v4044_v23, %v20939_v22  ;;  %v4628_v34 = vrot.slane %v4614_v16, %v20373_v44  ;;  %v20955_v59 = vcombine.high %v20813_v49, %v20813_v49  ;;  %v18549_v29 = vcombine.high %v20816_v55, %v20839_v38  ;;  %v19351_v21 = vld [vmem:[%s27414_s3 + $0x10] sm:$0xff]  }
 0x1e1   : > { %5088 = vrot.lane.b32.xlu1 %v4580_v47, %s19425_s23  ;;  %v4059_v13 = vcombine.low %v4037_v39, %v4044_v23  ;;  %v5823_v26 = vcombine.low %v5815_v0, %v5822_v53  ;;  %v7027_v47 = vrot.slane %v7019_v32, %v20373_v44  ;;  %v7581_v16 = vcombine.low %v5276_v46, %v20923_v11 }
 0x1e2   : > { %v7034_v36 = vrot.slane %v7020_v20, %v20373_v44  ;;  %v4629_v7 = vcombine.low %v4621_v19, %v4628_v34  ;;  %v20970_v39 = vrot.slane %v18549_v29, %v20373_v44  ;;  %v6751_v23 = vcombine.low %v20955_v59, %v20839_v38  ;;  %18848 = vmatprep.subr.bf16.mxu1 %v19350_v62 }
 0x1e3   : > { %v7588_v35 = vrot.slane %v7581_v16, %v20373_v44  ;;  %v20977_v32 = vcombine.high %v20839_v38, %v20839_v38  ;;  %v5291_v53 = vcombine.low %v5269_v60, %v5276_v46  ;;  %v19121_v20 = vpop.f32.mrb[12].mxu0  ;;  %18849 = vmatpush3.bf16.msra.mxu1 %v19351_v21  ;;  %v20984_v62 = vcombine.high %v20822_v25, %v20822_v25 }
 0x1e4   : > { %27695 = vst [vmem:[#allocation23_spill] sm:$0xff] %v20970_v39  ;;  %v7035_v40 = vcombine.low %v7027_v47, %v7034_v36  ;;  %v6758_v34 = vrot.slane %v6751_v23, %v20373_v44  ;;  %v2035_v19 = vadd.f32 %v19121_v20, %v20367_v5  ;;  %v2026_v29 = vpop.f32.mrb[13].mxu0  ;;  %v4076_v47 = vcombine.low %v20822_v25, %v20886_v14 }
 0x1e5   : > { %5090 = vrot.lane.b32.xlu1 %v4629_v7, %s19425_s23  ;;  %v7589_v60 = vcombine.low %v5815_v0, %v7588_v35  ;;  %v20991_v46 = vrot.slane %v4059_v13, %v20373_v44  ;;  %v5262_v7 = vcombine.low %v20977_v32, %v20822_v25  ;;  %v19122_v21 = vpop.f32.mrb[14].mxu0  ;;  %v5299_v23 = vrot.slane %v5291_v53, %v20373_v44 }
 0x1e6   : > { %7255 = vrot.lane.b32.xlu0 %v7035_v40, %s19428_s16  ;;  %v6759_v16 = vcombine.low %v6758_v34, %v20970_v39  ;;  %v4077_v20 = vcombine.low %v20984_v62, %v20794_v31  ;;  %v4078_v22 = vcombine.low %v20819_v24, %v20832_v37  ;;  %v2029_v36 = vpop.f32.mrb[15].mxu0  ;;  %v2027_v35 = vadd.f32 %v20367_v5, %v2026_v29 }
 0x1e7   : > { %27696 = vst [vmem:[#allocation24_spill] sm:$0xff] %v20991_v46  ;;  %19148 = vmatmul.mubr.msk.bf16.gmra.mrb[36].mxu0 %vm1699_vm10, %v7589_v60  ;;  %v5290_v40 = vrot.slane %v5262_v7, %v20373_v44  ;;  %v21005_v0 = vrot.slane %v4076_v47, %v20373_v44  ;;  %v5308_v13 = vcombine.low %v20886_v14, %v20984_v62  ;;  %v2119_v34 = vmax.f32 %v2035_v19, 0.0 }
 0x1e8   : > { %v6766_v53 = vrot.slane %v6759_v16, %v20373_v44  ;;  %v27698_v61 = vmov 0.0   ;;  %v21014_v60 = vrot.slane %v4077_v20, %v20373_v44  ;;  %v21017_v7 = vrot.slane %v4078_v22, %v20373_v44 }
 0x1e9   : > { %27697 = vst [vmem:[#allocation25_spill] sm:$0xff] %v21005_v0  ;;  %6092 = vrot.lane.b32.xlu1 %v5823_v26, %s19432_s14  ;;  %19151 = vmatprep.mubr.msk.bf16.mxu0 %vm19431_vm13, %v27698_v61  ;;  %v5292_v29 = vcombine.low %v20923_v11, %v5290_v40  ;;  %v7036_v47 = vcombine.low %v20970_v39, %v21005_v0  ;;  %v3085_v56 = vshll.u32 %v20899_v18, 16 }
 0x1ea   : > { %27699 = vst [vmem:[#allocation26_spill] sm:$0xff] %v21014_v60  ;;  %v18558_v26 = vcombine.high %v20794_v31, %v20819_v24  ;;  %v21025_v16 = vrot.slane %v5308_v13, %v20373_v44  ;;  %v6767_v19 = vcombine.low %v20991_v46, %v6766_v53  ;;  %v7037_v20 = vcombine.low %v21014_v60, %v21017_v7 }
 0x1eb   : > { %v5824_v22 = vcombine.low %v20794_v31, %v20819_v24  ;;  %v2038_v10 = vadd.f32 %v19122_v21, %v20367_v5  ;;  %v5306_v11 = vrot.slane %v5292_v29, %v20373_v44  ;;  %v7044_v39 = vrot.slane %v7036_v47, %v20373_v44 }
 0x1ec   : > { %v21036_v63 = vrot.slane %v18558_v26, %v20373_v44  ;;  %v5832_v13 = vcombine.low %v5290_v40, %v21025_v16  ;;  %6980 = vrot.lane.b32.xlu0 %v6767_v19, %s19425_s23  ;;  %v7051_v53 = vrot.slane %v7037_v20, %v20373_v44  ;;  %v21044_v2 = vcombine.high %v20886_v14, %v20886_v14 }
 0x1ed   : > { %v5831_v46 = vrot.slane %v5824_v22, %v20373_v44  ;;  %v2120_v60 = vmax.f32 %v2038_v10, 0.0  ;;  %v5307_v21 = vcombine.low %v5299_v23, %v5306_v11  ;;  %v2030_v47 = vadd.f32 %v20367_v5, %v2029_v36  ;;  %v19352_v10 = vld [vmem:[%s27414_s3 + $0x58] sm:$0xff]  }
 0x1ee   : > { %v5840_v29 = vrot.slane %v5832_v13, %v20373_v44  ;;  %v21050_v26 = vcombine.high %v20819_v24, %v20819_v24  ;;  %v7052_v40 = vcombine.low %v7044_v39, %v7051_v53  ;;  %v19353_v23 = vld [vmem:[%s27414_s3 + $0x18] sm:$0xff]   ;;  %v2117_v5 = vmax.f32 %v2027_v35, 0.0  ;;  %18850 = vmatprep.subr.bf16.mxu1 %v19352_v10 }
 0x1ef   : > { %v5833_v19 = vcombine.low %v5831_v46, %v21036_v63  ;;  %v2144_v20 = vpack.c.bf16 %v2120_v60, %v2119_v34  ;;  %v18426_v30 = vpack.c.bf16 %v2120_v60, %v2120_v60  ;;  %5721 = vrot.lane.b32.xlu1 %v5307_v21, %s19428_s16  ;;  %v5309_v36 = vcombine.low %v21044_v2, %v20819_v24 }
 0x1f0   : > { %v2118_v22 = vmax.f32 %v2030_v47, 0.0  ;;  %v4079_v39 = vcombine.low %v21050_v26, %v20797_v6  ;;  %7257 = vrot.lane.b32.xlu0 %v7052_v40, %s19428_s16  ;;  %v3064_v21 = vshrl.u32 %v20864_v33, 16  ;;  %v18569_v40 = vcombine.high %v20822_v25, %v20886_v14  ;;  %18851 = vmatpush3.bf16.msra.mxu1 %v19353_v23 }
 0x1f1   : > { %v5847_v34 = vrot.slane %v5833_v19, %v20373_v44  ;;  %v2510_v60 = vrot.slane %v2144_v20, %v20373_v44  ;;  %v2517_v11 = vrot.slane %v18426_v30, %v20373_v44  ;;  %v5325_v13 = vrot.slane %v5309_v36, %v20373_v44 }
 0x1f2   : > { %v2143_v35 = vpack.c.bf16 %v2118_v22, %v2117_v5  ;;  %v18425_v53 = vpack.c.bf16 %v2118_v22, %v2118_v22  ;;  %v21072_v3 = vrot.slane %v4079_v39, %v20373_v44 }
 0x1f3   : > { %v5848_v47 = vcombine.low %v5840_v29, %v5847_v34  ;;  %v2518_v50 = vcombine.high %v2510_v60, %v2510_v60  ;;  %v2519_v19 = vcombine.high %v2517_v11, %v2517_v11  ;;  %v7590_v20 = vcombine.low %v5325_v13, %v21036_v63 }
 0x1f4   : > { %v2462_v30 = vrot.slane %v2143_v35, %v20373_v44  ;;  %v2469_v5 = vrot.slane %v18425_v53, %v20373_v44  ;;  %v21081_v33 = vrot.slane %v2510_v60, %v20373_v44  ;;  %v21084_v10 = vrot.slane %v2517_v11, %v20373_v44 }
 0x1f5   : > { %6094 = vrot.lane.b32.xlu1 %v5848_v47, %s19432_s14  ;;  %v21087_v36 = vrot.slane %v2518_v50, %v20373_v44  ;;  %v7597_v22 = vrot.slane %v7590_v20, %v20373_v44  ;;  %v4109_v60 = vcombine.low %v21017_v7, %v21072_v3  ;;  %v6775_v11 = vrot.slane %v18569_v40, %v20373_v44 }
 0x1f6   : > { %v2470_v39 = vcombine.high %v2462_v30, %v2462_v30  ;;  %v2471_v34 = vcombine.high %v2469_v5, %v2469_v5  ;;  %v21092_v35 = vrot.slane %v2462_v30, %v20373_v44  ;;  %v21095_v53 = vrot.slane %v2469_v5, %v20373_v44 }
 0x1f7   : > { %v5311_v50 = vcombine.low %v20797_v6, %v20828_v45  ;;  %v21103_v47 = vrot.slane %v2519_v19, %v20373_v44  ;;  %v7598_v20 = vcombine.low %v5840_v29, %v7597_v22  ;;  %v21120_v40 = vrot.slane %v4109_v60, %v20373_v44 }
 0x1f8   : > { %v21106_v23 = vrot.slane %v2470_v39, %v20373_v44  ;;  %v21109_v30 = vrot.slane %v2471_v34, %v20373_v44  ;;  %v21113_v5 = vcombine.high %v21092_v35, %v21092_v35  ;;  %v21117_v7 = vcombine.high %v21095_v53, %v21095_v53 }
 0x1f9   : > { %27700 = vst [vmem:[#allocation27_spill] sm:$0xff] %v21120_v40  ;;  %v6776_v19 = vcombine.low %v21005_v0, %v6775_v11  ;;  %19152 = vmatmul.mubr.msk.bf16.gmra.mrb[40].mxu0 %vm1699_vm10, %v7598_v20  ;;  %v21125_v29 = vrot.slane %v5311_v50, %v20373_v44  ;;  %v5340_v22 = vcombine.low %v21025_v16, %v5325_v13  ;;  %v3069_v39 = vshll.u32 %v20807_v57, 16  ;;  %v19354_v11 = vld [vmem:[%s27414_s3 + $0x60] sm:$0xff]  }
 0x1fa   : > { %v3072_v34 = vshrl.u32 %v20807_v57, 16  ;;  %v3080_v60 = vshrl.u32 %v20813_v49, 16  ;;  %19155 = vmatprep.mubr.msk.bf16.mxu0 %vm19431_vm13, %v27698_v61  ;;  %v19355_v16 = vld [vmem:[%s27414_s3 + $0x20] sm:$0xff]   ;;  %v19356_v57 = vld [vmem:[%s27414_s3 + $0x68] sm:$0xff]   ;;  %v3088_v20 = vshrl.u32 %v20899_v18, 16  ;;  %18852 = vmatprep.subr.bf16.mxu1 %v19354_v11  ;;  %v19358_v11 = vld [vmem:[%s27414_s3 + $0x70] sm:$0xff]  }
 0x1fb   : > { %v6783_v46 = vrot.slane %v6776_v19, %v20373_v44  ;;  %v5341_v49 = vcombine.low %v21036_v63, %v21125_v29  ;;  %v5348_v13 = vrot.slane %v5340_v22, %v20373_v44  ;;  %v21150_v50 = vsel %vm20462_vm1, %v3064_v21, %v3069_v39  ;;  %18853 = vmatpush3.bf16.msra.mxu1 %v19355_v16 }
 0x1fc   : > { %v21156_v0 = vsel %vm20462_vm1, %v3072_v34, %v3077_v17  ;;  %v21160_v9 = vsel %vm20462_vm1, %v3080_v60, %v3085_v56  ;;  %v3102_v63 = vshll.u32 %v20839_v38, 16  ;;  %v27703_v21 = vshll.u32 %v20955_v59, 16  ;;  %v19357_v56 = vld [vmem:[%s27414_s3 + $0x28] sm:$0xff]   ;;  %18854 = vmatprep.subr.bf16.mxu1 %v19356_v57 }
 0x1fd   : > { %v6784_v19 = vcombine.low %v6783_v46, %v21120_v40  ;;  %27701 = vst [vmem:[#allocation28_spill] sm:$0xff] %v21156_v0  ;;  %27702 = vst [vmem:[#allocation29_spill] sm:$0xff] %v21160_v9  ;;  %v5355_v22 = vrot.slane %v5341_v49, %v20373_v44  ;;  %v3105_v46 = vshrl.u32 %v20839_v38, 16  ;;  %v3110_v17 = vshll.u32 %v20843_v12, 16 }
 0x1fe   : > { %v21168_v18 = vsel %vm20462_vm1, %v3088_v20, %v27703_v21  ;;  %v27705_v39 = vshrl.u32 %v20816_v55, 16  ;;  %v4630_v34 = vcombine.low %v21150_v50, %v21156_v0  ;;  %v3113_v60 = vshrl.u32 %v20843_v12, 16 }
 0x1ff   : > { %27704 = vst [vmem:[#allocation30_spill] sm:$0xff] %v21168_v18  ;;  %6982 = vrot.lane.b32.xlu0 %v6784_v19, %s19425_s23  ;;  %v4631_v38 = vcombine.low %v21160_v9, %v21168_v18  ;;  %v5356_v16 = vcombine.low %v5348_v13, %v5355_v22  ;;  %v21192_v55 = vsel %vm20462_vm1, %v3105_v46, %v3110_v17  ;;  %v3118_v49 = vshll.u32 %v20977_v32, 16  ;;  %v19359_v46 = vld [vmem:[%s27414_s3 + $0x30] sm:$0xff]  }
 0x200   : > { %v21180_v59 = vsel %vm20462_vm1, %v27705_v39, %v3102_v63  ;;  %27707 = vst [vmem:[#allocation32_spill] sm:$0xff] %v21192_v55  ;;  %v3121_v20 = vshrl.u32 %v20977_v32, 16  ;;  %v4640_v63 = vrot.slane %v4630_v34, %v20373_v44  ;;  %v3126_v57 = vshll.u32 %v20822_v25, 16  ;;  %18855 = vmatpush3.bf16.msra.mxu1 %v19357_v56 }
 0x201   : > { %27706 = vst [vmem:[#allocation31_spill] sm:$0xff] %v21180_v59  ;;  %v4632_v19 = vcombine.low %v21180_v59, %v21192_v55  ;;  %v4647_v12 = vrot.slane %v4631_v38, %v20373_v44  ;;  %5723 = vrot.lane.b32.xlu1 %v5356_v16, %s19428_s16  ;;  %v21204_v13 = vsel %vm20462_vm1, %v3113_v60, %v3118_v49  ;;  %v3129_v22 = vshrl.u32 %v20822_v25, 16  ;;  %v19360_v25 = vld [vmem:[%s27414_s3 + $0x78] sm:$0xff]  }
 0x202   : > { %27708 = vst [vmem:[#allocation33_spill] sm:$0xff] %v21204_v13  ;;  %v3134_v21 = vshll.u32 %v20886_v14, 16  ;;  %v3137_v32 = vshrl.u32 %v20886_v14, 16  ;;  %v7296_v39 = vcombine.low %v20932_v27, %v4640_v63  ;;  %v21216_v34 = vsel %vm20462_vm1, %v3121_v20, %v3126_v57  ;;  %18856 = vmatprep.subr.bf16.mxu1 %v19358_v11 }
 0x203   : > { %v4654_v17 = vrot.slane %v4632_v19, %v20373_v44  ;;  %27709 = vst [vmem:[#allocation34_spill] sm:$0xff] %v21216_v34  ;;  %v4662_v38 = vcombine.low %v4640_v63, %v4647_v12  ;;  %v4633_v14 = vcombine.low %v21204_v13, %v21216_v34  ;;  %v3142_v60 = vshll.u32 %v20984_v62, 16  ;;  %v21229_v16 = vpop.f32.mrb[16].mxu0 }
 0x204   : > { %v21225_v56 = vsel %vm20462_vm1, %v3129_v22, %v3134_v21  ;;  %v3145_v27 = vshrl.u32 %v20984_v62, 16  ;;  %v7304_v11 = vrot.slane %v7296_v39, %v20373_v44  ;;  %v3159_v19 = vshll.u32 %v20819_v24, 16  ;;  %v21234_v63 = vpop.f32.mrb[17].mxu0  ;;  %18857 = vmatpush3.bf16.msra.mxu1 %v19359_v46 }
 0x205   : > { %27710 = vst [vmem:[#allocation35_spill] sm:$0xff] %v21225_v56  ;;  %v7297_v49 = vcombine.low %v4647_v12, %v4654_v17  ;;  %v4670_v20 = vrot.slane %v4662_v38, %v20373_v44  ;;  %v4661_v57 = vrot.slane %v4633_v14, %v20373_v44  ;;  %v21239_v22 = vsel %vm20462_vm1, %v3137_v32, %v3142_v60  ;;  %v21248_v39 = vpop.f32.mrb[18].mxu0  ;;  %v19361_v38 = vld [vmem:[%s27414_s3 + $0x38] sm:$0xff]  }
 0x206   : > { %27711 = vst [vmem:[#allocation36_spill] sm:$0xff] %v21239_v22  ;;  %v27712_v21 = vshll.u32 %v21044_v2, 16  ;;  %v3162_v12 = vshrl.u32 %v20819_v24, 16  ;;  %v27714_v32 = vshrl.u32 %v20794_v31, 16  ;;  %v3167_v60 = vshll.u32 %v20832_v37, 16  ;;  %v21262_v24 = vpop.f32.mrb[19].mxu0  ;;  %18858 = vmatprep.subr.bf16.mxu1 %v19360_v25 }
 0x207   : > { %v7311_v14 = vrot.slane %v7297_v49, %v20373_v44  ;;  %v4663_v46 = vcombine.low %v4654_v17, %v4661_v57  ;;  %v3178_v40 = vshrl.u32 %v21050_v26, 16  ;;  %v3183_v49 = vshll.u32 %v20797_v6, 16 }
 0x208   : > { %v21245_v62 = vsel %vm20462_vm1, %v3145_v27, %v27712_v21  ;;  %v21258_v2 = vsel %vm20462_vm1, %v27714_v32, %v3159_v19  ;;  %v3170_v27 = vshrl.u32 %v20832_v37, 16  ;;  %v3175_v21 = vshll.u32 %v21050_v26, 16  ;;  %18859 = vmatpush3.bf16.msra.mxu1 %v19361_v38 }
 0x209   : > { %27713 = vst [vmem:[#allocation37_spill] sm:$0xff] %v21245_v62  ;;  %27715 = vst [vmem:[#allocation38_spill] sm:$0xff] %v21258_v2  ;;  %v7312_v34 = vcombine.low %v7304_v11, %v7311_v14  ;;  %v21269_v31 = vsel %vm20462_vm1, %v3162_v12, %v3167_v60  ;;  %v3186_v19 = vshrl.u32 %v20797_v6, 16  ;;  %v3191_v32 = vshll.u32 %v20828_v45, 16 }
 0x20a   : > { %27716 = vst [vmem:[#allocation39_spill] sm:$0xff] %v21269_v31  ;;  %v4677_v37 = vrot.slane %v4663_v46, %v20373_v44  ;;  %v21276_v17 = vsel %vm20462_vm1, %v3170_v27, %v3175_v21  ;;  %v21280_v26 = vsel %vm20462_vm1, %v3178_v40, %v3183_v49  ;;  %v4679_v25 = vcombine.low %v21225_v56, %v21239_v22 }
 0x20b   : > { %27717 = vst [vmem:[#allocation40_spill] sm:$0xff] %v21276_v17  ;;  %27718 = vst [vmem:[#allocation41_spill] sm:$0xff] %v21280_v26  ;;  %7548 = vrot.lane.b32.xlu0 %v7312_v34, %s19432_s14  ;;  %v21287_v11 = vsel %vm20462_vm1, %v3186_v19, %v3191_v32  ;;  %v4680_v12 = vcombine.low %v21245_v62, %v21258_v2  ;;  %v4681_v14 = vcombine.low %v21269_v31, %v21276_v17 }
 0x20c   : > { %27719 = vst [vmem:[#allocation42_spill] sm:$0xff] %v21287_v11  ;;  %v5360_v40 = vcombine.low %v21109_v30, %v21117_v7  ;;  %v4678_v60 = vcombine.low %v4670_v20, %v4677_v37  ;;  %v4682_v27 = vcombine.low %v21280_v26, %v21287_v11  ;;  %v4689_v38 = vrot.slane %v4679_v25, %v20373_v44 }
 0x20d   : > { %v18560_v34 = vcombine.high %v21081_v33, %v21087_v36  ;;  %v4696_v46 = vrot.slane %v4680_v12, %v20373_v44  ;;  %v4703_v21 = vrot.slane %v4681_v14, %v20373_v44  ;;  %v5408_v19 = vcombine.low %v21084_v10, %v21103_v47 }
 0x20e   : > { %v21303_v49 = vrot.slane %v5360_v40, %v20373_v44  ;;  %5092 = vrot.lane.b32.xlu1 %v4678_v60, %s19425_s23  ;;  %v21309_v20 = vrot.slane %v4682_v27, %v20373_v44  ;;  %v7313_v32 = vcombine.low %v4661_v57, %v4689_v38  ;;  %v5874_v25 = vcombine.low %v21081_v33, %v21087_v36 }
 0x20f   : > { %v21312_v37 = vrot.slane %v18560_v34, %v20373_v44  ;;  %v4711_v12 = vcombine.low %v4689_v38, %v4696_v46  ;;  %v7314_v14 = vcombine.low %v4696_v46, %v4703_v21  ;;  %v21317_v40 = vrot.slane %v5408_v19, %v20373_v44 }
 0x210   : > { %v4125_v11 = vcombine.low %v20828_v45, %v20836_v58  ;;  %v4712_v60 = vcombine.low %v4703_v21, %v21309_v20  ;;  %v7321_v27 = vrot.slane %v7313_v32, %v20373_v44  ;;  %v5881_v57 = vrot.slane %v5874_v25, %v20373_v44 }
 0x211   : > { %v4126_v34 = vcombine.low %v21092_v35, %v21106_v23  ;;  %v4719_v17 = vrot.slane %v4711_v12, %v20373_v44  ;;  %v7328_v38 = vrot.slane %v7314_v14, %v20373_v44  ;;  %v5883_v46 = vcombine.low %v21312_v37, %v21317_v40 }
 0x212   : > { %v18550_v19 = vcombine.high %v21092_v35, %v21106_v23  ;;  %v4726_v26 = vrot.slane %v4712_v60, %v20373_v44  ;;  %v5882_v21 = vcombine.low %v21303_v49, %v5881_v57  ;;  %v21335_v32 = vrot.slane %v4125_v11, %v20373_v44 }
 0x213   : > { %v21338_v25 = vrot.slane %v4126_v34, %v20373_v44  ;;  %v7329_v2 = vcombine.low %v7321_v27, %v7328_v38  ;;  %v21341_v12 = vrot.slane %v5883_v46, %v20373_v44  ;;  %v21346_v31 = vcombine.high %v21106_v23, %v21106_v23 }
 0x214   : > { %27720 = vst [vmem:[#allocation43_spill] sm:$0xff] %v21335_v32  ;;  %v4149_v14 = vrot.slane %v18550_v19, %v20373_v44  ;;  %v4727_v22 = vcombine.low %v4719_v17, %v4726_v26  ;;  %v5890_v60 = vrot.slane %v5882_v21, %v20373_v44  ;;  %v7053_v11 = vcombine.low %v21072_v3, %v21335_v32 }
 0x215   : > { %27721 = vst [vmem:[#allocation44_spill] sm:$0xff] %v21338_v25  ;;  %v18559_v57 = vcombine.high %v20797_v6, %v20828_v45  ;;  %7550 = vrot.lane.b32.xlu0 %v7329_v2, %s19432_s14  ;;  %v5358_v34 = vcombine.low %v21106_v23, %v21113_v5  ;;  %v5359_v38 = vcombine.low %v21346_v31, %v21095_v53 }
 0x216   : > { %v7054_v27 = vcombine.low %v21338_v25, %v4149_v14  ;;  %5094 = vrot.lane.b32.xlu1 %v4727_v22, %s19425_s23  ;;  %v5898_v17 = vcombine.low %v5890_v60, %v21341_v12  ;;  %v21364_v3 = vcombine.high %v20828_v45, %v20828_v45  ;;  %v4128_v6 = vcombine.low %v21095_v53, %v21109_v30 }
 0x217   : > { %v5367_v26 = vrot.slane %v18559_v57, %v20373_v44  ;;  %v7061_v2 = vrot.slane %v7053_v11, %v20373_v44  ;;  %v5374_v19 = vrot.slane %v5358_v34, %v20373_v44  ;;  %v5381_v21 = vrot.slane %v5359_v38, %v20373_v44  ;;  %v21385_v34 = vld [vmem:[%s27413_s2] ss:$0 sm:$0xff] }
 0x218   : > { %v7068_v46 = vrot.slane %v7054_v27, %v20373_v44  ;;  %v4156_v60 = vrot.slane %v4128_v6, %v20373_v44  ;;  %v6785_v57 = vcombine.low %v21364_v3, %v21106_v23  ;;  %v5849_v25 = vcombine.low %v20836_v58, %v21092_v35 }
 0x219   : > { %v7599_v22 = vcombine.low %v21125_v29, %v5367_v26  ;;  %v21380_v62 = vcombine.high %v21081_v33, %v21081_v33  ;;  %v5858_v27 = vcombine.low %v5374_v19, %v5381_v21  ;;  %v2051_v38 = vadd.f32 %v21385_v34, %v21229_v16 }
 0x21a   : > { %v7069_v11 = vcombine.low %v7061_v2, %v7068_v46  ;;  %6098 = vrot.lane.b32.xlu1 %v5898_v17, %s19432_s14  ;;  %v4158_v6 = vcombine.low %v4149_v14, %v4156_v60  ;;  %v6792_v56 = vrot.slane %v6785_v57, %v20373_v44  ;;  %v5856_v55 = vrot.slane %v5849_v25, %v20373_v44 }
 0x21b   : > { %v2043_v13 = vadd.f32 %v21385_v34, %v21234_v63  ;;  %v5872_v2 = vrot.slane %v5858_v27, %v20373_v44  ;;  %v7606_v46 = vrot.slane %v7599_v22, %v20373_v44  ;;  %v2123_v18 = vmax.f32 %v2051_v38, 0.0 }
 0x21c   : > { %7259 = vrot.lane.b32.xlu0 %v7069_v11, %s19428_s16  ;;  %v21399_v16 = vcombine.high %v21087_v36, %v21087_v36  ;;  %v21402_v14 = vrot.slane %v4158_v6, %v20373_v44  ;;  %v6793_v17 = vcombine.low %v21335_v32, %v6792_v56  ;;  %v5857_v25 = vcombine.low %v21125_v29, %v5856_v55 }
 0x21d   : > { %v4174_v63 = vcombine.low %v21117_v7, %v21081_v33  ;;  %v7607_v57 = vcombine.low %v7606_v46, %v5872_v2  ;;  %v4175_v11 = vcombine.low %v21087_v36, %v21380_v62  ;;  %v5389_v27 = vcombine.low %v5367_v26, %v5374_v19 }
 0x21e   : > { %27722 = vst [vmem:[#allocation45_spill] sm:$0xff] %v21402_v14  ;;  %v4176_v22 = vcombine.low %v21399_v16, %v21084_v10  ;;  %v6800_v38 = vrot.slane %v6793_v17, %v20373_v44  ;;  %v5865_v6 = vrot.slane %v5857_v25, %v20373_v44  ;;  %v5390_v29 = vcombine.low %v5381_v21, %v21303_v49 }
 0x21f   : > { %v21415_v59 = vrot.slane %v4174_v63, %v20373_v44  ;;  %19156 = vmatmul.mubr.msk.bf16.gmra.mrb[44].mxu0 %vm1699_vm10, %v7607_v57  ;;  %v21420_v55 = vrot.slane %v4175_v11, %v20373_v44  ;;  %v5397_v46 = vrot.slane %v5389_v27, %v20373_v44  ;;  %v2054_v26 = vadd.f32 %v21385_v34, %v21248_v39 }
 0x220   : > { %v4198_v56 = vrot.slane %v4176_v22, %v20373_v44  ;;  %v6801_v19 = vcombine.low %v6800_v38, %v21402_v14  ;;  %v5873_v17 = vcombine.low %v5865_v6, %v5872_v2  ;;  %v5404_v63 = vrot.slane %v5390_v29, %v20373_v44  ;;  %19159 = vmatprep.mubr.msk.bf16.mxu0 %vm19431_vm13, %v27698_v61 }
 0x221   : > { %27723 = vst [vmem:[#allocation46_spill] sm:$0xff] %v21415_v59  ;;  %27724 = vst [vmem:[#allocation47_spill] sm:$0xff] %v21420_v55  ;;  %v7070_v25 = vcombine.low %v4156_v60, %v21415_v59  ;;  %v2124_v57 = vmax.f32 %v2054_v26, 0.0  ;;  %v2046_v11 = vadd.f32 %v21385_v34, %v21262_v24  ;;  %v21436_v22 = vcombine.high %v21109_v30, %v21109_v30 }
 0x222   : > { %v7071_v21 = vcombine.low %v21420_v55, %v4198_v56  ;;  %6984 = vrot.lane.b32.xlu0 %v6801_v19, %s19425_s23  ;;  %6096 = vrot.lane.b32.xlu1 %v5873_v17, %s19432_s14  ;;  %v2121_v39 = vmax.f32 %v2043_v13, 0.0  ;;  %v5405_v2 = vcombine.low %v5397_v46, %v5404_v63  ;;  %v21443_v27 = vcombine.high %v21084_v10, %v21084_v10 }
 0x223   : > { %v7078_v60 = vrot.slane %v7070_v25, %v20373_v44  ;;  %v2146_v6 = vpack.c.bf16 %v2124_v57, %v2123_v18  ;;  %v18428_v24 = vpack.c.bf16 %v2124_v57, %v2124_v57  ;;  %v2122_v29 = vmax.f32 %v2046_v11, 0.0  ;;  %v21452_v17 = vpop.f32.mrb[20].mxu0 }
 0x224   : > { %v7085_v38 = vrot.slane %v7071_v21, %v20373_v44  ;;  %v5406_v26 = vcombine.low %v21436_v22, %v21087_v36  ;;  %v4177_v19 = vcombine.low %v21103_v47, %v21443_v27  ;;  %v18570_v13 = vcombine.high %v21095_v53, %v21109_v30  ;;  %v21457_v21 = vpop.f32.mrb[21].mxu0 }
 0x225   : > { %v21455_v25 = vrot.slane %v2146_v6, %v20373_v44  ;;  %v2145_v63 = vpack.c.bf16 %v2122_v29, %v2121_v39  ;;  %v21461_v18 = vrot.slane %v18428_v24, %v20373_v44  ;;  %v18427_v57 = vpack.c.bf16 %v2122_v29, %v2122_v29  ;;  %v21467_v14 = vpop.f32.mrb[22].mxu0 }
 0x226   : > { %v7086_v46 = vcombine.low %v7078_v60, %v7085_v38  ;;  %5725 = vrot.lane.b32.xlu1 %v5405_v2, %s19428_s16  ;;  %v5416_v11 = vrot.slane %v5406_v26, %v20373_v44  ;;  %v21465_v59 = vrot.slane %v4177_v19, %v20373_v44  ;;  %v3211_v38 = vshrl.u32 %v21092_v35, 16  ;;  %v21473_v2 = vpop.f32.mrb[23].mxu0 }
 0x227   : > { %v6809_v39 = vrot.slane %v18570_v13, %v20373_v44  ;;  %v2558_v6 = vrot.slane %v2145_v63, %v20373_v44  ;;  %v2565_v24 = vrot.slane %v18427_v57, %v20373_v44  ;;  %v3207_v19 = vshll.u32 %v21364_v3, 16 }
 0x228   : > { %7261 = vrot.lane.b32.xlu0 %v7086_v46, %s19428_s16  ;;  %v7608_v29 = vcombine.low %v21303_v49, %v5416_v11  ;;  %v4207_v26 = vcombine.low %v4198_v56, %v21465_v59  ;;  %v3264_v35 = vshll.u32 %v21436_v22, 16  ;;  %v3194_v46 = vshrl.u32 %v20828_v45, 16 }
 0x229   : > { %v21488_v63 = vrot.slane %v21455_v25, %v20373_v44  ;;  %v2566_v57 = vcombine.high %v2558_v6, %v2558_v6  ;;  %v2567_v49 = vcombine.high %v2565_v24, %v2565_v24  ;;  %v21492_v56 = vrot.slane %v21461_v18, %v20373_v44 }
 0x22a   : > { %v7615_v3 = vrot.slane %v7608_v29, %v20373_v44  ;;  %v21496_v60 = vrot.slane %v4207_v26, %v20373_v44  ;;  %v6810_v45 = vcombine.low %v6809_v39, %v21420_v55  ;;  %v21500_v22 = vrot.slane %v2558_v6, %v20373_v44 }
 0x22b   : > { %v21503_v13 = vrot.slane %v2565_v24, %v20373_v44  ;;  %v21506_v32 = vrot.slane %v2566_v57, %v20373_v44  ;;  %v21509_v0 = vrot.slane %v2567_v49, %v20373_v44  ;;  %v18561_v26 = vcombine.high %v21084_v10, %v21103_v47 }
 0x22c   : > { %27725 = vst [vmem:[#allocation48_spill] sm:$0xff] %v21496_v60  ;;  %v7616_v9 = vcombine.low %v7615_v3, %v21341_v12  ;;  %v6817_v29 = vrot.slane %v6810_v45, %v20373_v44  ;;  %v5438_v39 = vcombine.low %v5416_v11, %v21312_v37  ;;  %v3199_v6 = vshll.u32 %v20836_v58, 16 }
 0x22d   : > { %v3202_v24 = vshrl.u32 %v20836_v58, 16  ;;  %v3216_v55 = vshll.u32 %v21106_v23, 16  ;;  %v3219_v57 = vshrl.u32 %v21106_v23, 16  ;;  %v21523_v12 = vrot.slane %v18561_v26, %v20373_v44 }
 0x22e   : > { %19160 = vmatmul.mubr.msk.bf16.gmra.mrb[48].mxu0 %vm1699_vm10, %v7616_v9  ;;  %v6818_v49 = vcombine.low %v6817_v29, %v21496_v60  ;;  %v5446_v3 = vrot.slane %v5438_v39, %v20373_v44  ;;  %v3224_v45 = vshll.u32 %v21113_v5, 16  ;;  %v21529_v37 = vsel %vm20462_vm1, %v3194_v46, %v3199_v6 }
 0x22f   : > { %27726 = vst [vmem:[#allocation49_spill] sm:$0xff] %v21529_v37  ;;  %v21533_v58 = vsel %vm20462_vm1, %v3202_v24, %v3207_v19  ;;  %v21537_v9 = vsel %vm20462_vm1, %v3211_v38, %v3216_v55  ;;  %v3227_v23 = vshrl.u32 %v21113_v5, 16  ;;  %19163 = vmatprep.mubr.msk.bf16.mxu0 %vm19431_vm13, %v27698_v61  ;;  %v5439_v11 = vcombine.low %v21317_v40, %v21523_v12 }
 0x230   : > { %6986 = vrot.lane.b32.xlu0 %v6818_v49, %s19425_s23  ;;  %v21547_v46 = vsel %vm20462_vm1, %v3219_v57, %v3224_v45  ;;  %v3232_v19 = vshll.u32 %v21346_v31, 16  ;;  %v3235_v29 = vshrl.u32 %v21346_v31, 16  ;;  %v3240_v55 = vshll.u32 %v21095_v53, 16 }
 0x231   : > { %27727 = vst [vmem:[#allocation50_spill] sm:$0xff] %v21547_v46  ;;  %v4728_v5 = vcombine.low %v21529_v37, %v21533_v58  ;;  %v4729_v38 = vcombine.low %v21537_v9, %v21547_v46  ;;  %v3243_v26 = vshrl.u32 %v21095_v53, 16  ;;  %v5453_v40 = vrot.slane %v5439_v11, %v20373_v44 }
 0x232   : > { %v21560_v39 = vsel %vm20462_vm1, %v3227_v23, %v3232_v19  ;;  %v3248_v6 = vshll.u32 %v21109_v30, 16  ;;  %v3251_v31 = vshrl.u32 %v21109_v30, 16  ;;  %v21566_v24 = vsel %vm20462_vm1, %v3235_v29, %v3240_v55 }
 0x233   : > { %27728 = vst [vmem:[#allocation51_spill] sm:$0xff] %v21560_v39  ;;  %27729 = vst [vmem:[#allocation52_spill] sm:$0xff] %v21566_v24  ;;  %v4738_v57 = vrot.slane %v4728_v5, %v20373_v44  ;;  %v4745_v49 = vrot.slane %v4729_v38, %v20373_v44  ;;  %v3256_v53 = vshll.u32 %v21117_v7, 16  ;;  %v5454_v45 = vcombine.low %v5446_v3, %v5453_v40 }
 0x234   : > { %v4730_v11 = vcombine.low %v21560_v39, %v21566_v24  ;;  %v21575_v23 = vsel %vm20462_vm1, %v3243_v26, %v3248_v6  ;;  %v3259_v30 = vshrl.u32 %v21117_v7, 16  ;;  %v3273_v5 = vshll.u32 %v21087_v36, 16 }
 0x235   : > { %27730 = vst [vmem:[#allocation53_spill] sm:$0xff] %v21575_v23  ;;  %v7330_v19 = vcombine.low %v21309_v20, %v4738_v57  ;;  %v21581_v29 = vsel %vm20462_vm1, %v3251_v31, %v3256_v53  ;;  %v4760_v55 = vcombine.low %v4738_v57, %v4745_v49  ;;  %5727 = vrot.lane.b32.xlu1 %v5454_v45, %s19428_s16  ;;  %v3276_v7 = vshrl.u32 %v21087_v36, 16 }
 0x236   : > { %27731 = vst [vmem:[#allocation54_spill] sm:$0xff] %v21581_v29  ;;  %v4752_v3 = vrot.slane %v4730_v11, %v20373_v44  ;;  %v4731_v38 = vcombine.low %v21575_v23, %v21581_v29  ;;  %v21590_v26 = vsel %vm20462_vm1, %v3259_v30, %v3264_v35  ;;  %v27733_v6 = vshrl.u32 %v21081_v33, 16 }
 0x237   : > { %27732 = vst [vmem:[#allocation55_spill] sm:$0xff] %v21590_v26  ;;  %v7338_v20 = vrot.slane %v7330_v19, %v20373_v44  ;;  %v4768_v40 = vrot.slane %v4760_v55, %v20373_v44  ;;  %v3281_v57 = vshll.u32 %v21380_v62, 16  ;;  %v3284_v35 = vshrl.u32 %v21380_v62, 16 }
 0x238   : > { %v21599_v31 = vsel %vm20462_vm1, %v27733_v6, %v3273_v5  ;;  %v7331_v53 = vcombine.low %v4745_v49, %v4752_v3  ;;  %v4759_v45 = vrot.slane %v4731_v38, %v20373_v44  ;;  %v3289_v11 = vshll.u32 %v21399_v16, 16 }
 0x239   : > { %27734 = vst [vmem:[#allocation56_spill] sm:$0xff] %v21599_v31  ;;  %v21607_v36 = vsel %vm20462_vm1, %v3276_v7, %v3281_v57  ;;  %v3292_v30 = vshrl.u32 %v21399_v16, 16  ;;  %v3297_v33 = vshll.u32 %v21084_v10, 16  ;;  %v3300_v19 = vshrl.u32 %v21084_v10, 16 }
 0x23a   : > { %27735 = vst [vmem:[#allocation57_spill] sm:$0xff] %v21607_v36  ;;  %v7345_v55 = vrot.slane %v7331_v53, %v20373_v44  ;;  %v4761_v5 = vcombine.low %v4752_v3, %v4759_v45  ;;  %v21615_v49 = vsel %vm20462_vm1, %v3284_v35, %v3289_v11  ;;  %v3305_v62 = vshll.u32 %v21103_v47, 16 }
 0x23b   : > { %27736 = vst [vmem:[#allocation58_spill] sm:$0xff] %v21615_v49  ;;  %v21620_v38 = vsel %vm20462_vm1, %v3292_v30, %v3297_v33  ;;  %v4777_v16 = vcombine.low %v21590_v26, %v21599_v31  ;;  %v4778_v7 = vcombine.low %v21607_v36, %v21615_v49  ;;  %v21628_v10 = vcombine.high %v21103_v47, %v21103_v47 }
 0x23c   : > { %27737 = vst [vmem:[#allocation59_spill] sm:$0xff] %v21620_v38  ;;  %v7346_v3 = vcombine.low %v7338_v20, %v7345_v55  ;;  %v4775_v6 = vrot.slane %v4761_v5, %v20373_v44  ;;  %v21633_v57 = vsel %vm20462_vm1, %v3300_v19, %v3305_v62  ;;  %v3308_v53 = vshrl.u32 %v21103_v47, 16 }
 0x23d   : > { %27738 = vst [vmem:[#allocation60_spill] sm:$0xff] %v21633_v57  ;;  %v4779_v35 = vcombine.low %v21620_v38, %v21633_v57  ;;  %v4787_v11 = vrot.slane %v4777_v16, %v20373_v44  ;;  %v4794_v30 = vrot.slane %v4778_v7, %v20373_v44  ;;  %v3313_v33 = vshll.u32 %v21443_v27, 16 }
 0x23e   : > { %7552 = vrot.lane.b32.xlu0 %v7346_v3, %s19432_s14  ;;  %v4776_v20 = vcombine.low %v4768_v40, %v4775_v6  ;;  %v3316_v55 = vshrl.u32 %v21443_v27, 16  ;;  %v3321_v5 = vshll.u32 %v21628_v10, 16  ;;  %v3880_v19 = vcombine.low %v20422_v4, %v20442_v42 }
 0x23f   : > { %v4801_v47 = vrot.slane %v4779_v35, %v20373_v44  ;;  %v7347_v62 = vcombine.low %v4759_v45, %v4787_v11  ;;  %v21649_v16 = vsel %vm20462_vm1, %v3308_v53, %v3313_v33  ;;  %v4809_v7 = vcombine.low %v4787_v11, %v4794_v30 }
 0x240   : > { %27739 = vst [vmem:[#allocation61_spill] sm:$0xff] %v21649_v16  ;;  %5096 = vrot.lane.b32.xlu1 %v4776_v20, %s19425_s23  ;;  %v21654_v40 = vsel %vm20462_vm1, %v3316_v55, %v3321_v5  ;;  %v18547_v3 = vcombine.high %v20422_v4, %v20442_v42  ;;  %v3882_v6 = vcombine.low %v20425_v43, %v20445_v41 }
 0x241   : > { %27740 = vst [vmem:[#allocation62_spill] sm:$0xff] %v21654_v40  ;;  %v3883_v45 = vcombine.low %v20451_v48, %v20414_v28  ;;  %v27741_v53 = vcombine.high %v21455_v25, %v21455_v25  ;;  %v7348_v11 = vcombine.low %v4794_v30, %v4801_v47  ;;  %v7355_v33 = vrot.slane %v7347_v62, %v20373_v44 }
 0x242   : > { %v4780_v20 = vcombine.low %v21649_v16, %v21654_v40  ;;  %v21673_v4 = vcombine.high %v21500_v22, %v21500_v22  ;;  %v4817_v43 = vrot.slane %v4809_v7, %v20373_v44  ;;  %v3890_v28 = vrot.slane %v3880_v19, %v20373_v44 }
 0x243   : > { %v21666_v35 = vrot.slane %v27741_v53, %v20373_v44  ;;  %v3897_v42 = vrot.slane %v18547_v3, %v20373_v44  ;;  %v7362_v41 = vrot.slane %v7348_v11, %v20373_v44  ;;  %v4223_v25 = vcombine.low %v21500_v22, %v21506_v32  ;;  %v21686_v55 = vpop.f32.mrb[24].mxu0 }
 0x244   : > { %v21680_v48 = vrot.slane %v4780_v20, %v20373_v44  ;;  %v18551_v30 = vcombine.high %v21500_v22, %v21506_v32  ;;  %v3904_v5 = vrot.slane %v3882_v6, %v20373_v44  ;;  %v3911_v62 = vrot.slane %v3883_v45, %v20373_v44  ;;  %v21696_v3 = vpop.f32.mrb[25].mxu0 }
 0x245   : > { %v4225_v19 = vcombine.low %v21503_v13, %v21509_v0  ;;  %v21694_v7 = vcombine.high %v21503_v13, %v21503_v13  ;;  %v7363_v53 = vcombine.low %v7355_v33, %v7362_v41  ;;  %v21700_v20 = vrot.slane %v4223_v25, %v20373_v44  ;;  %v21705_v6 = vpop.f32.mrb[26].mxu0 }
 0x246   : > { %v4810_v11 = vcombine.low %v4801_v47, %v21680_v48  ;;  %v21703_v60 = vrot.slane %v18551_v30, %v20373_v44  ;;  %v27744_v45 = vcombine.high %v21461_v18, %v21461_v18  ;;  %v21715_v57 = vcombine.high %v21488_v63, %v21488_v63  ;;  %v21724_v41 = vpop.f32.mrb[27].mxu0 }
 0x247   : > { %27742 = vst [vmem:[#allocation63_spill] sm:$0xff] %v21700_v20  ;;  %v21718_v47 = vrot.slane %v4225_v19, %v20373_v44  ;;  %v21722_v33 = vcombine.high %v21506_v32, %v21506_v32  ;;  %7554 = vrot.lane.b32.xlu0 %v7363_v53, %s19432_s14  ;;  %v7087_v18 = vcombine.low %v21465_v59, %v21700_v20 }
 0x248   : > { %27743 = vst [vmem:[#allocation64_spill] sm:$0xff] %v21703_v60  ;;  %v21711_v40 = vrot.slane %v27744_v45, %v20373_v44  ;;  %v4824_v25 = vrot.slane %v4810_v11, %v20373_v44  ;;  %v5455_v30 = vcombine.low %v21506_v32, %v21673_v4  ;;  %v5457_v19 = vcombine.low %v21509_v0, %v21694_v7 }
 0x249   : > { %27745 = vst [vmem:[#allocation65_spill] sm:$0xff] %v21718_v47  ;;  %v3912_v45 = vcombine.low %v3890_v28, %v3897_v42  ;;  %v7088_v16 = vcombine.low %v21703_v60, %v21718_v47  ;;  %v5456_v49 = vcombine.low %v21722_v33, %v21503_v13  ;;  %v5899_v53 = vcombine.low %v21443_v27, %v21500_v22 }
 0x24a   : > { %v4825_v11 = vcombine.low %v4817_v43, %v4824_v25  ;;  %v3913_v38 = vcombine.low %v3904_v5, %v3911_v62  ;;  %v7095_v59 = vrot.slane %v7087_v18, %v20373_v44  ;;  %v5465_v20 = vrot.slane %v5455_v30, %v20373_v44 }
 0x24b   : > { %v7102_v31 = vrot.slane %v7088_v16, %v20373_v44  ;;  %v5472_v36 = vrot.slane %v5456_v49, %v20373_v44  ;;  %v5479_v28 = vrot.slane %v5457_v19, %v20373_v44  ;;  %v5906_v42 = vrot.slane %v5899_v53, %v20373_v44 }
 0x24c   : > { %5098 = vrot.lane.b32.xlu1 %v4825_v11, %s19425_s23  ;;  %v7617_v29 = vcombine.low %v21523_v12, %v5465_v20  ;;  %v6819_v27 = vcombine.low %v21628_v10, %v21506_v32  ;;  %v18571_v43 = vcombine.high %v21503_v13, %v21509_v0  ;;  %v21754_v5 = vcombine.high %v21509_v0, %v21509_v0 }
 0x24d   : > { %v7103_v16 = vcombine.low %v7095_v59, %v7102_v31  ;;  %v5907_v49 = vcombine.low %v5906_v42, %v5465_v20  ;;  %v5908_v62 = vcombine.low %v5472_v36, %v5479_v28  ;;  %v5487_v25 = vcombine.low %v5465_v20, %v5472_v36 }
 0x24e   : > { %v21758_v18 = vcombine.high %v21492_v56, %v21492_v56  ;;  %v21761_v12 = vrot.slane %v3912_v45, %v20373_v44  ;;  %v6827_v10 = vrot.slane %v6819_v27, %v20373_v44  ;;  %v6834_v30 = vrot.slane %v18571_v43, %v20373_v44 }
 0x24f   : > { %7263 = vrot.lane.b32.xlu0 %v7103_v16, %s19428_s16  ;;  %v5915_v19 = vrot.slane %v5907_v49, %v20373_v44  ;;  %v5922_v31 = vrot.slane %v5908_v62, %v20373_v44  ;;  %v7624_v53 = vrot.slane %v7617_v29, %v20373_v44  ;;  %v5458_v36 = vcombine.low %v21754_v5, %v21666_v35 }
 0x250   : > { %v3927_v20 = vrot.slane %v3913_v38, %v20373_v44  ;;  %v6835_v45 = vcombine.low %v6827_v10, %v21703_v60  ;;  %v6836_v11 = vcombine.low %v21718_v47, %v6834_v30  ;;  %v5495_v59 = vrot.slane %v5487_v25, %v20373_v44 }
 0x251   : > { %v5923_v42 = vcombine.low %v5915_v19, %v5922_v31  ;;  %v7625_v27 = vcombine.low %v7624_v53, %v5922_v31  ;;  %v21776_v43 = vrot.slane %v5458_v36, %v20373_v44  ;;  %v21780_v16 = vcombine.high %v21666_v35, %v21666_v35  ;;  %v21795_v19 = vpop.permute.xlu1 %5715 }
 0x252   : > { %v6843_v29 = vrot.slane %v6835_v45, %v20373_v44  ;;  %v6850_v49 = vrot.slane %v6836_v11, %v20373_v44  ;;  %v2067_v38 = vadd.f32 %v21385_v34, %v21452_v17  ;;  %v2059_v62 = vadd.f32 %v21385_v34, %v21457_v21 }
 0x253   : > { %6100 = vrot.lane.b32.xlu1 %v5923_v42, %s19432_s14  ;;  %19164 = vmatmul.mubr.msk.bf16.gmra.mrb[52].mxu0 %vm1699_vm10, %v7625_v27  ;;  %v5488_v25 = vcombine.low %v5479_v28, %v21776_v43  ;;  %v4226_v10 = vcombine.low %v21694_v7, %v21488_v63  ;;  %v4272_v30 = vcombine.low %v21666_v35, %v21715_v57 }
 0x254   : > { %v6851_v31 = vcombine.low %v6843_v29, %v6850_v49  ;;  %v4273_v17 = vcombine.low %v21780_v16, %v21492_v56  ;;  %v4274_v21 = vcombine.low %v21711_v40, %v21758_v18  ;;  %v2070_v53 = vadd.f32 %v21385_v34, %v21467_v14  ;;  %19167 = vmatprep.mubr.msk.bf16.mxu0 %vm19431_vm13, %v27698_v61 }
 0x255   : > { %v5502_v28 = vrot.slane %v5488_v25, %v20373_v44  ;;  %v21807_v36 = vrot.slane %v4226_v10, %v20373_v44  ;;  %v21810_v45 = vrot.slane %v4272_v30, %v20373_v44  ;;  %v2062_v11 = vadd.f32 %v21385_v34, %v21473_v2 }
 0x256   : > { %6988 = vrot.lane.b32.xlu0 %v6851_v31, %s19425_s23  ;;  %v2127_v42 = vmax.f32 %v2067_v38, 0.0  ;;  %v21816_v27 = vrot.slane %v4273_v17, %v20373_v44  ;;  %v21819_v14 = vrot.slane %v4274_v21, %v20373_v44  ;;  %v2128_v29 = vmax.f32 %v2070_v53, 0.0 }
 0x257   : > { %27746 = vst [vmem:[#allocation66_spill] sm:$0xff] %v21807_v36  ;;  %v5503_v49 = vcombine.low %v5495_v59, %v5502_v28  ;;  %v2125_v25 = vmax.f32 %v2059_v62, 0.0  ;;  %v7104_v10 = vcombine.low %v21807_v36, %v21810_v45  ;;  %v2126_v30 = vmax.f32 %v2062_v11, 0.0  ;;  %v5087_v62 = vpop.permute.xlu1 %5086 }
 0x258   : > { %27747 = vst [vmem:[#allocation67_spill] sm:$0xff] %v21819_v14  ;;  %v7105_v47 = vcombine.low %v21816_v27, %v21819_v14  ;;  %v2148_v2 = vpack.c.bf16 %v2128_v29, %v2127_v42  ;;  %v18430_v60 = vpack.c.bf16 %v2128_v29, %v2128_v29  ;;  %v3330_v38 = vshll.u32 %v21506_v32, 16 }
 0x259   : > { %5729 = vrot.lane.b32.xlu1 %v5503_v49, %s19428_s16  ;;  %v7112_v31 = vrot.slane %v7104_v10, %v20373_v44  ;;  %v2147_v17 = vpack.c.bf16 %v2126_v30, %v2125_v25  ;;  %v18429_v21 = vpack.c.bf16 %v2126_v30, %v2126_v30  ;;  %v3333_v59 = vshrl.u32 %v21506_v32, 16 }
 0x25a   : > { %v7119_v53 = vrot.slane %v7105_v47, %v20373_v44  ;;  %v2702_v28 = vrot.slane %v2148_v2, %v20373_v44  ;;  %v2709_v11 = vrot.slane %v18430_v60, %v20373_v44  ;;  %v3338_v42 = vshll.u32 %v21673_v4, 16 }
 0x25b   : > { %v3325_v29 = vshrl.u32 %v21500_v22, 16  ;;  %v3928_v36 = vcombine.low %v21761_v12, %v3927_v20  ;;  %v21836_v49 = vrot.slane %v2147_v17, %v20373_v44  ;;  %v21839_v25 = vrot.slane %v18429_v21, %v20373_v44 }
 0x25c   : > { %v7120_v32 = vcombine.low %v7112_v31, %v7119_v53  ;;  %v2710_v10 = vcombine.high %v2702_v28, %v2702_v28  ;;  %v2711_v30 = vcombine.high %v2709_v11, %v2709_v11  ;;  %v3346_v47 = vshll.u32 %v21722_v33, 16 }
 0x25d   : > { %v3382_v2 = vshrl.u32 %v21488_v63, 16  ;;  %v21844_v60 = vsel %vm1699_vm10, %v3928_v36, %v5087_v62  ;;  %v3378_v22 = vshll.u32 %v21754_v5, 16  ;;  %v21849_v12 = vsel %vm20462_vm1, %v3325_v29, %v3330_v38 }
 0x25e   : > { %27748 = vst [vmem:[#allocation68_spill] sm:$0xff] %v21849_v12  ;;  %7265 = vrot.lane.b32.xlu0 %v7120_v32, %s19428_s16  ;;  %v21853_v20 = vrot.slane %v2702_v28, %v20373_v44  ;;  %v21857_v31 = vsel %vm20462_vm1, %v3333_v59, %v3338_v42  ;;  %v3341_v17 = vshrl.u32 %v21673_v4, 16  ;;  %v3349_v36 = vshrl.u32 %v21722_v33, 16 }
 0x25f   : > { %27749 = vst [vmem:[#allocation69_spill] sm:$0xff] %v21857_v31  ;;  %v21862_v21 = vrot.slane %v2709_v11, %v20373_v44  ;;  %v21870_v62 = vrot.slane %v21836_v49, %v20373_v44  ;;  %v21873_v59 = vrot.slane %v2710_v10, %v20373_v44  ;;  %v21876_v4 = vrot.slane %v2711_v30, %v20373_v44 }
 0x260   : > { %v21880_v33 = vsel %vm20462_vm1, %v3341_v17, %v3346_v47  ;;  %v3354_v53 = vshll.u32 %v21503_v13, 16  ;;  %v3357_v28 = vshrl.u32 %v21503_v13, 16  ;;  %v3362_v11 = vshll.u32 %v21509_v0, 16 }
 0x261   : > { %27750 = vst [vmem:[#allocation70_spill] sm:$0xff] %v21880_v33  ;;  %v3365_v42 = vshrl.u32 %v21509_v0, 16  ;;  %v3370_v29 = vshll.u32 %v21694_v7, 16  ;;  %v3373_v10 = vshrl.u32 %v21694_v7, 16  ;;  %v3387_v30 = vshll.u32 %v21666_v35, 16 }
 0x262   : > { %v21889_v32 = vsel %vm20462_vm1, %v3349_v36, %v3354_v53  ;;  %v4826_v47 = vcombine.low %v21849_v12, %v21857_v31  ;;  %v21897_v13 = vsel %vm20462_vm1, %v3357_v28, %v3362_v11  ;;  %v18562_v36 = vcombine.high %v21488_v63, %v21666_v35  ;;  %v21955_v12 = vpop.permute.xlu0 %6976 }
 0x263   : > { %27751 = vst [vmem:[#allocation71_spill] sm:$0xff] %v21889_v32  ;;  %27752 = vst [vmem:[#allocation72_spill] sm:$0xff] %v21897_v13  ;;  %v21901_v0 = vsel %vm20462_vm1, %v3365_v42, %v3370_v29  ;;  %v4827_v17 = vcombine.low %v21880_v33, %v21889_v32  ;;  %v21909_v7 = vsel %vm20462_vm1, %v3373_v10, %v3378_v22  ;;  %v21918_v42 = vpop.f32.mrb[28].mxu0  ;;  %v3390_v33 = vshrl.u32 %v21666_v35, 16 }
 0x264   : > { %27753 = vst [vmem:[#allocation73_spill] sm:$0xff] %v21901_v0  ;;  %27754 = vst [vmem:[#allocation74_spill] sm:$0xff] %v21909_v7  ;;  %v21913_v53 = vsel %vm20462_vm1, %v3382_v2, %v3387_v30  ;;  %v4828_v28 = vcombine.low %v21897_v13, %v21901_v0  ;;  %v4836_v11 = vrot.slane %v4826_v47, %v20373_v44  ;;  %v21927_v2 = vpop.f32.mrb[29].mxu0 }
 0x265   : > { %27755 = vst [vmem:[#allocation75_spill] sm:$0xff] %v21913_v53  ;;  %v4829_v29 = vcombine.low %v21909_v7, %v21913_v53  ;;  %v4843_v38 = vrot.slane %v4827_v17, %v20373_v44  ;;  %v5505_v22 = vcombine.low %v21492_v56, %v21711_v40  ;;  %v18563_v10 = vcombine.high %v21492_v56, %v21711_v40  ;;  %v21938_v17 = vpop.f32.mrb[30].mxu0 }
 0x266   : > { %v4850_v30 = vrot.slane %v4828_v28, %v20373_v44  ;;  %v21931_v5 = vrot.slane %v18562_v36, %v20373_v44  ;;  %v7364_v47 = vcombine.low %v21680_v48, %v4836_v11  ;;  %v21936_v53 = vcombine.high %v21711_v40, %v21711_v40  ;;  %v21949_v36 = vpop.f32.mrb[31].mxu0 }
 0x267   : > { %v21941_v0 = vrot.slane %v4829_v29, %v20373_v44  ;;  %v4858_v7 = vcombine.low %v4836_v11, %v4843_v38  ;;  %v21944_v32 = vrot.slane %v5505_v22, %v20373_v44  ;;  %v21947_v28 = vrot.slane %v18563_v10, %v20373_v44 }
 0x268   : > { %v7626_v48 = vcombine.low %v21776_v43, %v21931_v5  ;;  %v7365_v13 = vcombine.low %v4843_v38, %v4850_v30  ;;  %v7372_v31 = vrot.slane %v7364_v47, %v20373_v44  ;;  %v3395_v10 = vshll.u32 %v21715_v57, 16 }
 0x269   : > { %v4859_v11 = vcombine.low %v4850_v30, %v21941_v0  ;;  %v4866_v29 = vrot.slane %v4858_v7, %v20373_v44  ;;  %v7627_v22 = vcombine.low %v21944_v32, %v21947_v28  ;;  %v3398_v38 = vshrl.u32 %v21715_v57, 16 }
 0x26a   : > { %v7634_v26 = vrot.slane %v7626_v48, %v20373_v44  ;;  %v7379_v43 = vrot.slane %v7365_v13, %v20373_v44  ;;  %v3403_v47 = vshll.u32 %v21780_v16, 16  ;;  %v21970_v7 = vsel %vm20462_vm1, %v3390_v33, %v3395_v10 }
 0x26b   : > { %v4873_v37 = vrot.slane %v4859_v11, %v20373_v44  ;;  %v7641_v24 = vrot.slane %v7627_v22, %v20373_v44  ;;  %v3406_v30 = vshrl.u32 %v21780_v16, 16  ;;  %v3411_v13 = vshll.u32 %v21492_v56, 16 }
 0x26c   : > { %v7380_v23 = vcombine.low %v7372_v31, %v7379_v43  ;;  %v21975_v48 = vsel %vm20462_vm1, %v3398_v38, %v3403_v47  ;;  %v3414_v57 = vshrl.u32 %v21492_v56, 16  ;;  %v3419_v11 = vshll.u32 %v21711_v40, 16  ;;  %v7254_v43 = vpop.permute.xlu0 %7253  ;;  %v27762_v38 = vld [vmem:[#allocation10_spill] sm:$0xff]  ;;  %v27763_v47 = vld [vmem:[#allocation19_spill] sm:$0xff] }
 0x26d   : > { %27756 = vst [vmem:[#allocation76_spill] sm:$0xff] %v21975_v48  ;;  %v4874_v46 = vcombine.low %v4866_v29, %v4873_v37  ;;  %v7642_v39 = vcombine.low %v7634_v26, %v7641_v24  ;;  %v3422_v22 = vshrl.u32 %v21711_v40, 16  ;;  %v21984_v16 = vsel %vm20462_vm1, %v3406_v30, %v3411_v13  ;;  %v27761_v40 = vld [vmem:[#allocation18_spill] sm:$0xff] }
 0x26e   : > { %7556 = vrot.lane.b32.xlu0 %v7380_v23, %s19432_s14  ;;  %27757 = vst [vmem:[#allocation77_spill] sm:$0xff] %v21984_v16  ;;  %v3427_v31 = vshll.u32 %v21758_v18, 16  ;;  %v3430_v33 = vshrl.u32 %v21758_v18, 16  ;;  %v3435_v10 = vshll.u32 %v21936_v53, 16  ;;  %v21993_v56 = vsel %vm20462_vm1, %v3414_v57, %v3419_v11  ;;  %v27764_v57 = vld [vmem:[#allocation13_spill] sm:$0xff]  ;;  %v27765_v11 = vld [vmem:[#allocation11_spill] sm:$0xff] }
 0x26f   : > { %5100 = vrot.lane.b32.xlu1 %v4874_v46, %s19425_s23  ;;  %19168 = vmatmul.mubr.msk.bf16.gmra.mrb[56].mxu0 %vm1699_vm10, %v7642_v39  ;;  %27758 = vst [vmem:[#allocation78_spill] sm:$0xff] %v21993_v56  ;;  %v4875_v37 = vcombine.low %v21970_v7, %v21975_v48  ;;  %v6114_v24 = vcombine.low %v20491_v8, %v20574_v15 }
 0x270   : > { %v22001_v23 = vsel %vm20462_vm1, %v3422_v22, %v3427_v31  ;;  %v22005_v26 = vsel %vm20462_vm1, %v3430_v33, %v3435_v10  ;;  %v4876_v46 = vcombine.low %v21984_v16, %v21993_v56  ;;  %v6115_v39 = vcombine.low %v20582_v1, %v20786_v51  ;;  %19171 = vmatprep.mubr.msk.bf16.mxu0 %vm19431_vm13, %v27698_v61 }
 0x271   : > { %27759 = vst [vmem:[#allocation79_spill] sm:$0xff] %v22001_v23  ;;  %27760 = vst [vmem:[#allocation80_spill] sm:$0xff] %v22005_v26  ;;  %v4877_v8 = vcombine.low %v22001_v23, %v22005_v26  ;;  %v22016_v15 = vrot.slane %v4875_v37, %v20373_v44  ;;  %v6116_v29 = vcombine.low %v27761_v40, %v20869_v52  ;;  %v27767_v40 = vld [vmem:[#allocation12_spill] sm:$0xff] }
 0x272   : > { %v6117_v30 = vcombine.low %v27763_v47, %v27762_v38  ;;  %v22023_v13 = vrot.slane %v4876_v46, %v20373_v44  ;;  %v6124_v1 = vrot.slane %v6114_v24, %v20373_v44  ;;  %v6131_v51 = vrot.slane %v6115_v39, %v20373_v44  ;;  %v6089_v24 = vpop.permute.xlu1 %6088  ;;  %v27766_v39 = vld [vmem:[#allocation14_spill] sm:$0xff]  ;;  %v27768_v47 = vld [vmem:[#allocation16_spill] sm:$0xff] }
 0x273   : > { %v6163_v22 = vcombine.low %v27765_v11, %v27764_v57  ;;  %v22030_v31 = vrot.slane %v4877_v8, %v20373_v44  ;;  %v7381_v33 = vcombine.low %v21941_v0, %v22016_v15  ;;  %v6138_v52 = vrot.slane %v6116_v29, %v20373_v44  ;;  %v27769_v57 = vld [vmem:[#allocation15_spill] sm:$0xff]  ;;  %v22044_v11 = vpop.permute.xlu0 %6978 }
 0x274   : > { %v6145_v10 = vrot.slane %v6117_v30, %v20373_v44  ;;  %v22038_v37 = vcombine.high %v21853_v20, %v21853_v20  ;;  %v6146_v46 = vcombine.low %v6124_v1, %v6131_v51  ;;  %v6164_v38 = vcombine.low %v27767_v40, %v27766_v39  ;;  %v27771_v39 = vld [vmem:[#allocation20_spill] sm:$0xff]  ;;  %v27772_v40 = vld [vmem:[#allocation17_spill] sm:$0xff] }
 0x275   : > { %v6165_v8 = vcombine.low %v27769_v57, %v27768_v47  ;;  %v27770_v0 = vcombine.high %v21836_v49, %v21836_v49  ;;  %v7382_v30 = vcombine.low %v22023_v13, %v22030_v31  ;;  %v7389_v26 = vrot.slane %v7381_v33, %v20373_v44 }
 0x276   : > { %v6147_v1 = vcombine.low %v6138_v52, %v6145_v10  ;;  %v6154_v51 = vrot.slane %v6146_v46, %v20373_v44  ;;  %v6166_v56 = vcombine.low %v27772_v40, %v27771_v39  ;;  %v6173_v47 = vrot.slane %v6163_v22, %v20373_v44  ;;  %v22085_v39 = vpop.permute.xlu1 %5717 }
 0x277   : > { %v22050_v29 = vrot.slane %v27770_v0, %v20373_v44  ;;  %v6180_v57 = vrot.slane %v6164_v38, %v20373_v44  ;;  %v7396_v23 = vrot.slane %v7382_v30, %v20373_v44  ;;  %v5924_v0 = vcombine.low %v21488_v63, %v21666_v35 }
 0x278   : > { %v6161_v49 = vrot.slane %v6147_v1, %v20373_v44  ;;  %v5925_v33 = vcombine.low %v21758_v18, %v21870_v62  ;;  %v22068_v52 = vrot.slane %v21839_v25, %v20373_v44  ;;  %v27773_v22 = vcombine.high %v21839_v25, %v21839_v25 }
 0x279   : > { %v6187_v46 = vrot.slane %v6165_v8, %v20373_v44  ;;  %v4304_v38 = vcombine.low %v21810_v45, %v21816_v27  ;;  %v7397_v30 = vcombine.low %v7389_v26, %v7396_v23  ;;  %v5932_v35 = vrot.slane %v5924_v0, %v20373_v44 }
 0x27a   : > { %v22074_v10 = vrot.slane %v27773_v22, %v20373_v44  ;;  %v6162_v63 = vcombine.low %v6154_v51, %v6161_v49  ;;  %v5939_v18 = vrot.slane %v5925_v33, %v20373_v44  ;;  %v22083_v1 = vcombine.high %v21870_v62, %v21870_v62  ;;  %v7547_v22 = vpop.permute.xlu0 %7546  ;;  %v27774_v33 = vld [vmem:[#allocation6_spill] sm:$0xff] }
 0x27b   : > { %v6194_v25 = vrot.slane %v6166_v56, %v20373_v44  ;;  %v6195_v40 = vcombine.low %v6173_v47, %v6180_v57  ;;  %7558 = vrot.lane.b32.xlu0 %v7397_v30, %s19432_s14  ;;  %v5940_v27 = vcombine.low %v5932_v35, %v21931_v5  ;;  %v6852_v26 = vcombine.low %v21936_v53, %v22050_v29  ;;  %v27775_v30 = vld [vmem:[#allocation4_spill] sm:$0xff] }
 0x27c   : > { %v7842_v45 = vsel %vm1699_vm10, %v6162_v63, %v21955_v12  ;;  %v5941_v23 = vcombine.low %v21944_v32, %v5939_v18  ;;  %v22097_v8 = vcombine.high %v22068_v52, %v22068_v52  ;;  %v7775_v47 = vsel %vm1831_vm14, %v21844_v60, %v21795_v19 }
 0x27d   : > { %v7880_v56 = vsel %vm1831_vm14, %v7842_v45, %v7254_v43  ;;  %v6196_v51 = vcombine.low %v6187_v46, %v6194_v25  ;;  %v5948_v12 = vrot.slane %v5940_v27, %v20373_v44  ;;  %v6859_v49 = vrot.slane %v6852_v26, %v20373_v44  ;;  %v22120_v25 = vpop.permute.xlu1 %6090 }
 0x27e   : > { %v5955_v57 = vrot.slane %v5941_v23, %v20373_v44  ;;  %v7906_v0 = vsel %vm7800_vm2, %v7880_v56, %v7547_v22  ;;  %v6203_v53 = vrot.slane %v6195_v40, %v20373_v44  ;;  %v3962_v63 = vcombine.low %v27775_v30, %v27774_v33 }
 0x27f   : > { %8166 = vmatprep.mubr.bf16.mxu1 %v7906_v0  ;;  %v7802_v43 = vsel %vm7800_vm2, %v7775_v47, %v6089_v24  ;;  %v5507_v46 = vcombine.low %v22050_v29, %v22083_v1  ;;  %v6860_v60 = vcombine.low %v21819_v14, %v6859_v49  ;;  %v5536_v35 = vcombine.low %v21931_v5, %v21944_v32  ;;  %v27800_v14 = vld [vmem:[#allocation28_spill] sm:$0xff] }
 0x280   : > { %v5956_v19 = vcombine.low %v5948_v12, %v5955_v57  ;;  %8167 = vmatmul.mubr.bf16.vlgmr.msra.gmra.mrb[0].mxu1 %v7802_v43  ;;  %v22118_v18 = vcombine.high %v22050_v29, %v22050_v29  ;;  %v6210_v40 = vrot.slane %v6196_v51, %v20373_v44  ;;  %v22126_v22 = vcombine.high %v22074_v10, %v22074_v10 }
 0x281   : > { %v5535_v24 = vrot.slane %v5507_v46, %v20373_v44  ;;  %v5554_v45 = vcombine.low %v22074_v10, %v22097_v8  ;;  %v22132_v5 = vrot.slane %v4304_v38, %v20373_v44  ;;  %v6867_v32 = vrot.slane %v6860_v60, %v20373_v44  ;;  %v22171_v60 = vpop.permute.xlu1 %5719 }
 0x282   : > { %6102 = vrot.lane.b32.xlu1 %v5956_v19, %s19432_s14  ;;  %v5553_v27 = vcombine.low %v22118_v18, %v22068_v52  ;;  %v4275_v23 = vcombine.low %v21870_v62, %v22050_v29  ;;  %v22140_v26 = vrot.slane %v3962_v63, %v20373_v44  ;;  %v5544_v51 = vrot.slane %v5536_v35, %v20373_v44 }
 0x283   : > { %27776 = vst [vmem:[#allocation18_spill] sm:$0xff] %v22132_v5  ;;  %v5537_v56 = vcombine.low %v21947_v28, %v5535_v24  ;;  %v5555_v47 = vcombine.low %v22126_v22, %v21873_v59  ;;  %v6868_v38 = vcombine.low %v22132_v5, %v6867_v32  ;;  %v22151_v57 = vrot.slane %v5554_v45, %v20373_v44 }
 0x284   : > { %v22148_v12 = vrot.slane %v5553_v27, %v20373_v44  ;;  %v22154_v49 = vrot.slane %v4275_v23, %v20373_v44  ;;  %v18552_v33 = vcombine.high %v21870_v62, %v22050_v29  ;;  %v4322_v30 = vcombine.low %v22068_v52, %v22074_v10 }
 0x285   : > { %v5551_v0 = vrot.slane %v5537_v56, %v20373_v44  ;;  %v22158_v28 = vrot.slane %v5555_v47, %v20373_v44  ;;  %6990 = vrot.lane.b32.xlu0 %v6868_v38, %s19425_s23  ;;  %v4323_v46 = vcombine.low %v22097_v8, %v21853_v20  ;;  %v5957_v19 = vcombine.low %v21853_v20, %v21873_v59  ;;  %v27779_v38 = vld [vmem:[#allocation5_spill] sm:$0xff] }
 0x286   : > { %27777 = vst [vmem:[#allocation10_spill] sm:$0xff] %v22154_v49  ;;  %v5965_v43 = vcombine.low %v5535_v24, %v22148_v12  ;;  %v4331_v32 = vrot.slane %v18552_v33, %v20373_v44  ;;  %v4338_v27 = vrot.slane %v4322_v30, %v20373_v44  ;;  %v6211_v23 = vcombine.low %v6203_v53, %v6210_v40 }
 0x287   : > { %v5552_v35 = vcombine.low %v5544_v51, %v5551_v0  ;;  %v7643_v45 = vcombine.low %v22151_v57, %v22158_v28  ;;  %v22179_v24 = vrot.slane %v4323_v46, %v20373_v44  ;;  %v5964_v47 = vrot.slane %v5957_v19, %v20373_v44 }
 0x288   : > { %v5973_v56 = vrot.slane %v5965_v43, %v20373_v44  ;;  %v3977_v63 = vcombine.low %v27779_v38, %v22140_v26  ;;  %v7121_v0 = vcombine.low %v22154_v49, %v4331_v32  ;;  %v2083_v33 = vadd.f32 %v21385_v34, %v21686_v55  ;;  %v27781_v55 = vld [vmem:[#allocation7_spill] sm:$0xff] }
 0x289   : > { %27778 = vst [vmem:[#allocation19_spill] sm:$0xff] %v22179_v24  ;;  %5731 = vrot.lane.b32.xlu1 %v5552_v35, %s19428_s16  ;;  %v7650_v51 = vrot.slane %v7643_v45, %v20373_v44  ;;  %v7122_v53 = vcombine.low %v4338_v27, %v22179_v24  ;;  %v5966_v40 = vcombine.low %v22151_v57, %v5964_v47  ;;  %v27780_v45 = vld [vmem:[#allocation8_spill] sm:$0xff]  ;;  %v27801_v49 = vld [vmem:[#allocation31_spill] sm:$0xff] }
 0x28a   : > { %v4324_v30 = vcombine.low %v21873_v59, %v22038_v37  ;;  %v4353_v43 = vcombine.low %v4331_v32, %v4338_v27  ;;  %v22195_v26 = vsel %vm1699_vm10, %v6211_v23, %v22044_v11  ;;  %v7129_v19 = vrot.slane %v7121_v0, %v20373_v44  ;;  %v5089_v32 = vpop.permute.xlu1 %5088 }
 0x28b   : > { %v7651_v46 = vcombine.low %v5973_v56, %v7650_v51  ;;  %v2075_v35 = vadd.f32 %v21385_v34, %v21696_v3  ;;  %v4011_v38 = vcombine.low %v27781_v55, %v27780_v45  ;;  %v7136_v24 = vrot.slane %v7122_v53, %v20373_v44 }
 0x28c   : > { %v5980_v47 = vrot.slane %v5966_v40, %v20373_v44  ;;  %v22205_v5 = vrot.slane %v4324_v30, %v20373_v44  ;;  %v18572_v11 = vcombine.high %v22068_v52, %v22074_v10  ;;  %v2086_v27 = vadd.f32 %v21385_v34, %v21705_v6 }
 0x28d   : > { %19172 = vmatmul.mubr.msk.bf16.gmra.mrb[60].mxu0 %vm1699_vm10, %v7651_v46  ;;  %v2078_v3 = vadd.f32 %v21385_v34, %v21724_v41  ;;  %v18564_v23 = vcombine.high %v21853_v20, %v21873_v59  ;;  %v7137_v51 = vcombine.low %v7129_v19, %v7136_v24  ;;  %v2131_v53 = vmax.f32 %v2083_v33, 0.0 }
 0x28e   : > { %27782 = vst [vmem:[#allocation13_spill] sm:$0xff] %v22205_v5  ;;  %v5981_v0 = vcombine.low %v5973_v56, %v5980_v47  ;;  %v5585_v40 = vcombine.low %v22148_v12, %v22151_v57  ;;  %19175 = vmatprep.mubr.msk.bf16.mxu0 %vm19431_vm13, %v27698_v61  ;;  %v2129_v30 = vmax.f32 %v2075_v35, 0.0  ;;  %v6876_v46 = vrot.slane %v18572_v11, %v20373_v44  ;;  %v5091_v47 = vpop.permute.xlu1 %5090 }
 0x28f   : > { %v2132_v45 = vmax.f32 %v2086_v27, 0.0  ;;  %v2130_v6 = vmax.f32 %v2078_v3, 0.0  ;;  %v3439_v55 = vshrl.u32 %v21870_v62, 16  ;;  %v4025_v34 = vrot.slane %v4011_v38, %v20373_v44  ;;  %7267 = vrot.lane.b32.xlu0 %v7137_v51, %s19428_s16 }
 0x290   : > { %6104 = vrot.lane.b32.xlu1 %v5981_v0, %s19432_s14  ;;  %v22226_v41 = vrot.slane %v4353_v43, %v20373_v44  ;;  %v22229_v12 = vrot.slane %v18564_v23, %v20373_v44  ;;  %v6877_v57 = vcombine.low %v6876_v46, %v22205_v5  ;;  %v3444_v35 = vshll.u32 %v22050_v29, 16  ;;  %v27784_v23 = vld [vmem:[#allocation9_spill] sm:$0xff] }
 0x291   : > { %v2150_v56 = vpack.c.bf16 %v2132_v45, %v2131_v53  ;;  %v18432_v24 = vpack.c.bf16 %v2132_v45, %v2132_v45  ;;  %v2149_v33 = vpack.c.bf16 %v2130_v6, %v2129_v30  ;;  %v18431_v19 = vpack.c.bf16 %v2130_v6, %v2130_v6 }
 0x292   : > { %27783 = vst [vmem:[#allocation11_spill] sm:$0xff] %v22226_v41  ;;  %v5586_v62 = vcombine.low %v22158_v28, %v22229_v12  ;;  %v3447_v38 = vshrl.u32 %v22050_v29, 16  ;;  %v6884_v43 = vrot.slane %v6877_v57, %v20373_v44  ;;  %v3452_v3 = vshll.u32 %v22083_v1, 16 }
 0x293   : > { %v2798_v11 = vrot.slane %v2150_v56, %v20373_v44  ;;  %v2805_v27 = vrot.slane %v18432_v24, %v20373_v44  ;;  %v4026_v51 = vcombine.low %v27784_v23, %v4025_v34  ;;  %v22242_v0 = vrot.slane %v2149_v33, %v20373_v44 }
 0x294   : > { %v22245_v28 = vrot.slane %v18431_v19, %v20373_v44  ;;  %v5593_v53 = vrot.slane %v5585_v40, %v20373_v44  ;;  %v6885_v29 = vcombine.low %v22226_v41, %v6884_v43  ;;  %v5600_v46 = vrot.slane %v5586_v62, %v20373_v44  ;;  %v27799_v41 = vld [vmem:[#allocation29_spill] sm:$0xff] }
 0x295   : > { %v2806_v30 = vcombine.high %v2798_v11, %v2798_v11  ;;  %v3460_v45 = vshll.u32 %v22118_v18, 16  ;;  %v22252_v6 = vsel %vm1699_vm10, %v3977_v63, %v5089_v32  ;;  %v3492_v34 = vshll.u32 %v22126_v22, 16 }
 0x296   : > { %v22256_v57 = vsel %vm1699_vm10, %v4026_v51, %v5091_v47  ;;  %v22260_v56 = vsel %vm20462_vm1, %v3439_v55, %v3444_v35  ;;  %6992 = vrot.lane.b32.xlu0 %v6885_v29, %s19425_s23  ;;  %v2807_v40 = vcombine.high %v2805_v27, %v2805_v27  ;;  %v22265_v24 = vsel %vm20462_vm1, %v3447_v38, %v3452_v3 }
 0x297   : > { %27785 = vst [vmem:[#allocation14_spill] sm:$0xff] %v22260_v56  ;;  %27786 = vst [vmem:[#allocation12_spill] sm:$0xff] %v22265_v24  ;;  %v3455_v33 = vshrl.u32 %v22083_v1, 16  ;;  %v3463_v63 = vshrl.u32 %v22118_v18, 16  ;;  %v22270_v22 = vrot.slane %v2798_v11, %v20373_v44  ;;  %v22273_v32 = vrot.slane %v2805_v27, %v20373_v44 }
 0x298   : > { %v2758_v55 = vcombine.high %v22242_v0, %v22242_v0  ;;  %v22280_v62 = vrot.slane %v2806_v30, %v20373_v44  ;;  %v22284_v1 = vrot.slane %v22242_v0, %v20373_v44  ;;  %v5601_v18 = vcombine.low %v5593_v53, %v5600_v46  ;;  %v22300_v0 = vpop.permute.xlu0 %7255 }
 0x299   : > { %v22288_v35 = vsel %vm20462_vm1, %v3455_v33, %v3460_v45  ;;  %v3468_v38 = vshll.u32 %v22068_v52, 16  ;;  %v3471_v47 = vshrl.u32 %v22068_v52, 16  ;;  %v3476_v43 = vshll.u32 %v22074_v10, 16 }
 0x29a   : > { %27787 = vst [vmem:[#allocation16_spill] sm:$0xff] %v22288_v35  ;;  %v3479_v11 = vshrl.u32 %v22074_v10, 16  ;;  %5733 = vrot.lane.b32.xlu1 %v5601_v18, %s19428_s16  ;;  %v3484_v27 = vshll.u32 %v22097_v8, 16  ;;  %v3487_v3 = vshrl.u32 %v22097_v8, 16  ;;  %v3501_v23 = vshll.u32 %v21873_v59, 16 }
 0x29b   : > { %v4878_v51 = vcombine.low %v22260_v56, %v22265_v24  ;;  %v22304_v52 = vsel %vm20462_vm1, %v3463_v63, %v3468_v38  ;;  %v22308_v10 = vsel %vm20462_vm1, %v3471_v47, %v3476_v43  ;;  %v4907_v53 = vcombine.low %v22016_v15, %v22023_v13  ;;  %v22331_v13 = vpop.f32.mrb[32].mxu0 }
 0x29c   : > { %27788 = vst [vmem:[#allocation15_spill] sm:$0xff] %v22304_v52  ;;  %27789 = vst [vmem:[#allocation20_spill] sm:$0xff] %v22308_v10  ;;  %v22314_v8 = vcombine.high %v21873_v59, %v21873_v59  ;;  %v22318_v29 = vsel %vm20462_vm1, %v3479_v11, %v3484_v27  ;;  %v22322_v30 = vsel %vm20462_vm1, %v3487_v3, %v3492_v34  ;;  %v27792_v46 = vshrl.u32 %v21853_v20, 16  ;;  %v19145_v18 = vpop.f32.mrb[33].mxu0 }
 0x29d   : > { %27790 = vst [vmem:[#allocation17_spill] sm:$0xff] %v22318_v29  ;;  %27791 = vst [vmem:[#allocation6_spill] sm:$0xff] %v22322_v30  ;;  %v4906_v15 = vrot.slane %v4878_v51, %v20373_v44  ;;  %v22334_v33 = vrot.slane %v2807_v40, %v20373_v44  ;;  %v4924_v63 = vcombine.low %v22288_v35, %v22304_v52  ;;  %v3504_v47 = vshrl.u32 %v21873_v59, 16  ;;  %v22346_v40 = vpop.f32.mrb[34].mxu0 }
 0x29e   : > { %v22328_v45 = vsel %vm20462_vm1, %v27792_v46, %v3501_v23  ;;  %27794 = vst [vmem:[#allocation5_spill] sm:$0xff] %v22331_v13  ;;  %v4925_v34 = vcombine.low %v22308_v10, %v22318_v29  ;;  %v3509_v43 = vshll.u32 %v22038_v37, 16  ;;  %v3512_v11 = vshrl.u32 %v22038_v37, 16  ;;  %27795 = vst [vmem:[#allocation8_spill] sm:$0xff] %v22346_v40  ;;  %v19146_v46 = vpop.f32.mrb[35].mxu0  ;;  %v27796_v37 = vld [vmem:[#allocation21_spill] sm:$0xff]  ;;  %v22360_v40 = vpop.permute.xlu0 %6980 }
 0x29f   : > { %27793 = vst [vmem:[#allocation4_spill] sm:$0xff] %v22328_v45  ;;  %v4926_v20 = vcombine.low %v22322_v30, %v22328_v45  ;;  %v4908_v38 = vcombine.low %v22030_v31, %v4906_v15  ;;  %v4934_v27 = vrot.slane %v4924_v63, %v20373_v44  ;;  %v3517_v51 = vshll.u32 %v22314_v8, 16  ;;  %v27802_v45 = vld [vmem:[#allocation30_spill] sm:$0xff]  ;;  %v27804_v29 = vld [vmem:[#allocation32_spill] sm:$0xff] }
 0x2a0   : > { %v4941_v3 = vrot.slane %v4925_v34, %v20373_v44  ;;  %v22354_v31 = vcombine.high %v22270_v22, %v22270_v22  ;;  %v4915_v59 = vrot.slane %v4907_v53, %v20373_v44  ;;  %v6212_v19 = vcombine.low %v27796_v37, %v21150_v50 }
 0x2a1   : > { %v4948_v23 = vrot.slane %v4926_v20, %v20373_v44  ;;  %v4922_v18 = vrot.slane %v4908_v38, %v20373_v44  ;;  %v7398_v63 = vcombine.low %v4906_v15, %v4934_v27  ;;  %v22364_v20 = vsel %vm20462_vm1, %v3504_v47, %v3509_v43  ;;  %v27803_v43 = vld [vmem:[#allocation33_spill] sm:$0xff] }
 0x2a2   : > { %27797 = vst [vmem:[#allocation7_spill] sm:$0xff] %v22364_v20  ;;  %v22368_v46 = vsel %vm20462_vm1, %v3512_v11, %v3517_v51  ;;  %v4956_v38 = vcombine.low %v4934_v27, %v4941_v3  ;;  %v6213_v50 = vcombine.low %v27800_v14, %v27799_v41  ;;  %v6214_v47 = vcombine.low %v27802_v45, %v27801_v49  ;;  %v27805_v45 = vld [vmem:[#allocation35_spill] sm:$0xff] }
 0x2a3   : > { %v7399_v34 = vcombine.low %v4941_v3, %v4948_v23  ;;  %27798 = vst [vmem:[#allocation9_spill] sm:$0xff] %v22368_v46  ;;  %v4923_v13 = vcombine.low %v4915_v59, %v4922_v18  ;;  %v4927_v53 = vcombine.low %v22364_v20, %v22368_v46  ;;  %v7406_v37 = vrot.slane %v7398_v63, %v20373_v44  ;;  %v27806_v3 = vld [vmem:[#allocation34_spill] sm:$0xff]  ;;  %v27807_v59 = vld [vmem:[#allocation37_spill] sm:$0xff] }
 0x2a4   : > { %v6215_v30 = vcombine.low %v27804_v29, %v27803_v43  ;;  %v22381_v11 = vrot.slane %v2758_v55, %v20373_v44  ;;  %v22385_v51 = vcombine.high %v22284_v1, %v22284_v1  ;;  %v6222_v41 = vrot.slane %v6212_v19, %v20373_v44  ;;  %v27808_v55 = vld [vmem:[#allocation36_spill] sm:$0xff]  ;;  %v22399_v43 = vpop.permute.xlu0 %7257  ;;  %v27811_v20 = vld [vmem:[#allocation41_spill] sm:$0xff] }
 0x2a5   : > { %v7413_v15 = vrot.slane %v7399_v34, %v20373_v44  ;;  %5102 = vrot.lane.b32.xlu1 %v4923_v13, %s19425_s23  ;;  %v22389_v14 = vrot.slane %v4927_v53, %v20373_v44  ;;  %v6261_v29 = vcombine.low %v27806_v3, %v27805_v45  ;;  %v6262_v18 = vcombine.low %v27808_v55, %v27807_v59  ;;  %v27809_v13 = vld [vmem:[#allocation39_spill] sm:$0xff]  ;;  %v27810_v53 = vld [vmem:[#allocation38_spill] sm:$0xff]  ;;  %v27812_v19 = vld [vmem:[#allocation40_spill] sm:$0xff]  ;;  %v22414_v3 = vpop.permute.xlu1 %6092 }
 0x2a6   : > { %v6243_v49 = vrot.slane %v6215_v30, %v20373_v44  ;;  %v4964_v34 = vrot.slane %v4956_v38, %v20373_v44  ;;  %v6263_v46 = vcombine.low %v27810_v53, %v27809_v13  ;;  %v6229_v30 = vrot.slane %v6213_v50, %v20373_v44 }
 0x2a7   : > { %v7414_v27 = vcombine.low %v7406_v37, %v7413_v15  ;;  %v4957_v63 = vcombine.low %v4948_v23, %v22389_v14  ;;  %v6264_v37 = vcombine.low %v27812_v19, %v27811_v20  ;;  %v6236_v15 = vrot.slane %v6214_v47, %v20373_v44 }
 0x2a8   : > { %v6271_v45 = vrot.slane %v6261_v29, %v20373_v44  ;;  %v6278_v23 = vrot.slane %v6262_v18, %v20373_v44  ;;  %v22412_v38 = vcombine.high %v22273_v32, %v22273_v32  ;;  %v6244_v50 = vcombine.low %v6222_v41, %v6229_v30 }
 0x2a9   : > { %7560 = vrot.lane.b32.xlu0 %v7414_v27, %s19432_s14  ;;  %v4971_v59 = vrot.slane %v4957_v63, %v20373_v44  ;;  %v6292_v20 = vrot.slane %v6264_v37, %v20373_v44  ;;  %v22420_v27 = vcombine.high %v21862_v21, %v21862_v21  ;;  %v6245_v47 = vcombine.low %v6236_v15, %v6243_v49 }
 0x2aa   : > { %v5602_v29 = vcombine.low %v21862_v21, %v21876_v4  ;;  %v5604_v55 = vcombine.low %v22381_v11, %v22385_v51  ;;  %v6285_v13 = vrot.slane %v6263_v46, %v20373_v44  ;;  %v4370_v53 = vcombine.low %v22314_v8, %v21862_v21 }
 0x2ab   : > { %v4972_v18 = vcombine.low %v4964_v34, %v4971_v59  ;;  %v5982_v63 = vcombine.low %v22420_v27, %v22284_v1  ;;  %v22433_v19 = vrot.slane %v22245_v28, %v20373_v44  ;;  %v6293_v41 = vcombine.low %v6271_v45, %v6278_v23  ;;  %v6983_v34 = vpop.permute.xlu0 %6982 }
 0x2ac   : > { %v22436_v49 = vrot.slane %v5602_v29, %v20373_v44  ;;  %v22439_v37 = vrot.slane %v5604_v55, %v20373_v44  ;;  %v6294_v46 = vcombine.low %v6285_v13, %v6292_v20  ;;  %v4371_v15 = vcombine.low %v21876_v4, %v22420_v27  ;;  %v22461_v13 = vpop.permute.xlu1 %5721 }
 0x2ad   : > { %5104 = vrot.lane.b32.xlu1 %v4972_v18, %s19425_s23  ;;  %v5989_v30 = vrot.slane %v5982_v63, %v20373_v44  ;;  %v4372_v59 = vcombine.low %v22284_v1, %v22381_v11  ;;  %v27813_v45 = vcombine.high %v22245_v28, %v22245_v28  ;;  %v4380_v20 = vrot.slane %v4370_v53, %v20373_v44 }
 0x2ae   : > { %v5990_v29 = vcombine.low %v22229_v12, %v22436_v49  ;;  %v18565_v55 = vcombine.high %v21862_v21, %v21876_v4  ;;  %v7882_v18 = vsel %vm1831_vm14, %v22195_v26, %v22300_v0  ;;  %v6252_v63 = vrot.slane %v6244_v50, %v20373_v44 }
 0x2af   : > { %v22451_v23 = vrot.slane %v27813_v45, %v20373_v44  ;;  %v6259_v28 = vrot.slane %v6245_v47, %v20373_v44  ;;  %v5991_v45 = vcombine.low %v5989_v30, %v22439_v37  ;;  %v4387_v52 = vrot.slane %v4371_v15, %v20373_v44 }
 0x2b0   : > { %v22468_v12 = vrot.slane %v4372_v59, %v20373_v44  ;;  %v7138_v53 = vcombine.low %v22205_v5, %v4380_v20  ;;  %v5619_v10 = vrot.slane %v18565_v55, %v20373_v44  ;;  %v6301_v24 = vrot.slane %v6293_v41, %v20373_v44  ;;  %v22494_v16 = vpop.permute.xlu1 %6094 }
 0x2b1   : > { %v6308_v26 = vrot.slane %v6294_v46, %v20373_v44  ;;  %v5998_v0 = vrot.slane %v5990_v29, %v20373_v44  ;;  %v6005_v50 = vrot.slane %v5991_v45, %v20373_v44  ;;  %v22480_v15 = vcombine.high %v21876_v4, %v21876_v4  ;;  %v7549_v46 = vpop.permute.xlu0 %7548 }
 0x2b2   : > { %27814 = vst [vmem:[#allocation21_spill] sm:$0xff] %v22468_v12  ;;  %v7139_v47 = vcombine.low %v4387_v52, %v22468_v12  ;;  %v7652_v30 = vcombine.low %v5619_v10, %v22439_v37  ;;  %v18553_v59 = vcombine.high %v22284_v1, %v22381_v11  ;;  %v6260_v55 = vcombine.low %v6252_v63, %v6259_v28  ;;  %v27816_v28 = vld [vmem:[#allocation23_spill] sm:$0xff] }
 0x2b3   : > { %v6006_v5 = vcombine.low %v5998_v0, %v6005_v50  ;;  %v7146_v41 = vrot.slane %v7138_v53, %v20373_v44  ;;  %v4402_v35 = vcombine.low %v4380_v20, %v4387_v52  ;;  %v6886_v56 = vcombine.low %v22480_v15, %v22381_v11  ;;  %v27817_v52 = vld [vmem:[#allocation22_spill] sm:$0xff] }
 0x2b4   : > { %v7153_v29 = vrot.slane %v7139_v47, %v20373_v44  ;;  %v7659_v45 = vrot.slane %v7652_v30, %v20373_v44  ;;  %v22488_v12 = vrot.slane %v18553_v59, %v20373_v44  ;;  %v7848_v48 = vsel %vm1699_vm10, %v6260_v55, %v22360_v40 }
 0x2b5   : > { %v6309_v63 = vcombine.low %v6301_v24, %v6308_v26  ;;  %6106 = vrot.lane.b32.xlu1 %v6006_v5, %s19432_s14  ;;  %v4060_v20 = vcombine.low %v27817_v52, %v27816_v28  ;;  %v22501_v53 = vcombine.high %v22381_v11, %v22381_v11  ;;  %v6893_v30 = vrot.slane %v6886_v56, %v20373_v44 }
 0x2b6   : > { %27815 = vst [vmem:[#allocation29_spill] sm:$0xff] %v22488_v12  ;;  %v7154_v50 = vcombine.low %v7146_v41, %v7153_v29  ;;  %v7660_v47 = vcombine.low %v5998_v0, %v7659_v45  ;;  %v7909_v59 = vsel %vm7800_vm2, %v7882_v18, %v7549_v46  ;;  %v7884_v40 = vsel %vm1831_vm14, %v7848_v48, %v22399_v43  ;;  %v22543_v41 = vpop.permute.xlu1 %5723  ;;  %v27819_v45 = vld [vmem:[#allocation26_spill] sm:$0xff] }
 0x2b7   : > { %v5605_v24 = vcombine.low %v22501_v53, %v22433_v19  ;;  %v5634_v5 = vcombine.low %v22436_v49, %v5619_v10  ;;  %8174 = vmatprep.mubr.bf16.mxu1 %v7909_v59  ;;  %v7777_v26 = vsel %vm1831_vm14, %v22252_v6, %v22085_v39  ;;  %v22515_v0 = vsel %vm1699_vm10, %v6309_v63, %v6983_v34  ;;  %v27820_v63 = vld [vmem:[#allocation25_spill] sm:$0xff]  ;;  %v7551_v59 = vpop.permute.xlu0 %7550 }
 0x2b8   : > { %7269 = vrot.lane.b32.xlu0 %v7154_v50, %s19428_s16  ;;  %19176 = vmatmul.mubr.msk.bf16.gmra.mrb[64].mxu0 %vm1699_vm10, %v7660_v47  ;;  %v6894_v48 = vcombine.low %v6893_v30, %v22488_v12  ;;  %v7805_v56 = vsel %vm7800_vm2, %v7777_v26, %v22120_v25  ;;  %v22524_v43 = vrot.slane %v4060_v20, %v20373_v44  ;;  %v19409_v25 = vld [vmem:[%s27413_s2] ss:$0 sm:$0xff] }
 0x2b9   : > { %v22527_v39 = vrot.slane %v4402_v35, %v20373_v44  ;;  %v5633_v6 = vrot.slane %v5605_v24, %v20373_v44  ;;  %8175 = vmatmul.mubr.bf16.gmra.mrb[4].mxu1 %v7805_v56  ;;  %19179 = vmatprep.mubr.msk.bf16.mxu0 %vm19431_vm13, %v27698_v61  ;;  %v2099_v34 = vadd.f32 %v19409_v25, %v21918_v42 }
 0x2ba   : > { %v6901_v49 = vrot.slane %v6894_v48, %v20373_v44  ;;  %v22539_v18 = vcombine.high %v22433_v19, %v22433_v19  ;;  %v4419_v35 = vcombine.low %v22433_v19, %v22451_v23  ;;  %v5642_v29 = vrot.slane %v5634_v5, %v20373_v44  ;;  %v22558_v30 = vpop.f32.mrb[36].mxu0 }
 0x2bb   : > { %27818 = vst [vmem:[#allocation28_spill] sm:$0xff] %v22527_v39  ;;  %v5635_v46 = vcombine.low %v22439_v37, %v5633_v6  ;;  %v4108_v28 = vcombine.low %v27820_v63, %v27819_v45  ;;  %v4421_v52 = vcombine.low %v22280_v62, %v22354_v31  ;;  %v2091_v20 = vadd.f32 %v19409_v25, %v21927_v2  ;;  %v19149_v26 = vpop.f32.mrb[37].mxu0 }
 0x2bc   : > { %v6902_v42 = vcombine.low %v22527_v39, %v6901_v49  ;;  %v4420_v50 = vcombine.low %v22539_v18, %v22270_v22  ;;  %v22556_v47 = vrot.slane %v4419_v35, %v20373_v44  ;;  %27822 = vst [vmem:[#allocation30_spill] sm:$0xff] %v22558_v30  ;;  %v5651_v5 = vcombine.low %v22451_v23, %v22539_v18 }
 0x2bd   : > { %v5649_v37 = vrot.slane %v5635_v46, %v20373_v44  ;;  %v22562_v24 = vrot.slane %v4421_v52, %v20373_v44  ;;  %v18566_v2 = vcombine.high %v22270_v22, %v22280_v62  ;;  %v2135_v48 = vmax.f32 %v2099_v34, 0.0  ;;  %v22576_v46 = vpop.f32.mrb[38].mxu0 }
 0x2be   : > { %27821 = vst [vmem:[#allocation31_spill] sm:$0xff] %v22556_v47  ;;  %6994 = vrot.lane.b32.xlu0 %v6902_v42, %s19425_s23  ;;  %v22570_v56 = vrot.slane %v4420_v50, %v20373_v44  ;;  %v7155_v49 = vcombine.low %v22488_v12, %v22556_v47  ;;  %v6007_v35 = vcombine.low %v22270_v22, %v22280_v62  ;;  %27824 = vst [vmem:[#allocation32_spill] sm:$0xff] %v22576_v46  ;;  %v19150_v42 = vpop.f32.mrb[39].mxu0  ;;  %v5093_v46 = vpop.permute.xlu1 %5092  ;;  %v27843_v12 = vld [vmem:[#allocation52_spill] sm:$0xff] }
 0x2bf   : > { %v5650_v45 = vcombine.low %v5642_v29, %v5649_v37  ;;  %v22579_v63 = vrot.slane %v5651_v5, %v20373_v44  ;;  %v22582_v52 = vrot.slane %v18566_v2, %v20373_v44  ;;  %v2102_v34 = vadd.f32 %v19409_v25, %v21938_v17 }
 0x2c0   : > { %27823 = vst [vmem:[#allocation33_spill] sm:$0xff] %v22570_v56  ;;  %v7156_v50 = vcombine.low %v22570_v56, %v22562_v24  ;;  %v7163_v26 = vrot.slane %v7155_v49, %v20373_v44  ;;  %v6014_v55 = vrot.slane %v6007_v35, %v20373_v44  ;;  %v7912_v10 = vsel %vm7800_vm2, %v7884_v40, %v7551_v59  ;;  %v27826_v56 = vld [vmem:[#allocation27_spill] sm:$0xff] }
 0x2c1   : > { %5735 = vrot.lane.b32.xlu1 %v5650_v45, %s19428_s16  ;;  %v6015_v29 = vcombine.low %v5633_v6, %v22579_v63  ;;  %v2136_v37 = vmax.f32 %v2102_v34, 0.0  ;;  %8182 = vmatprep.mubr.bf16.mxu1 %v7912_v10  ;;  %v22594_v17 = vcombine.high %v22451_v23, %v22451_v23  ;;  %v2094_v5 = vadd.f32 %v19409_v25, %v21949_v36 }
 0x2c2   : > { %v4116_v2 = vrot.slane %v4108_v28, %v20373_v44  ;;  %v7170_v49 = vrot.slane %v7156_v50, %v20373_v44  ;;  %v6016_v35 = vcombine.low %v6014_v55, %v22582_v52  ;;  %v22602_v40 = vcombine.high %v22280_v62, %v22280_v62 }
 0x2c3   : > { %v2133_v59 = vmax.f32 %v2091_v20, 0.0  ;;  %v6023_v6 = vrot.slane %v6015_v29, %v20373_v44  ;;  %v2152_v10 = vpack.c.bf16 %v2136_v37, %v2135_v48  ;;  %v18539_v45 = vpack.c.bf16 %v2136_v37, %v2136_v37 }
 0x2c4   : > { %v7171_v34 = vcombine.low %v7163_v26, %v7170_v49  ;;  %v6030_v42 = vrot.slane %v6016_v35, %v20373_v44  ;;  %v5652_v36 = vcombine.low %v22594_v17, %v22280_v62  ;;  %v2134_v25 = vmax.f32 %v2094_v5, 0.0  ;;  %v27825_v5 = vld [vmem:[#allocation24_spill] sm:$0xff]  ;;  %v5095_v35 = vpop.permute.xlu1 %5094 }
 0x2c5   : > { %v3781_v28 = vrot.slane %v2152_v10, %v20373_v44  ;;  %v3788_v55 = vrot.slane %v18539_v45, %v20373_v44  ;;  %v4422_v50 = vcombine.low %v22602_v40, %v22273_v32  ;;  %v18573_v20 = vcombine.high %v22433_v19, %v22451_v23 }
 0x2c6   : > { %v3549_v48 = vshll.u32 %v22480_v15, 16  ;;  %7271 = vrot.lane.b32.xlu0 %v7171_v34, %s19428_s16  ;;  %v6031_v26 = vcombine.low %v6023_v6, %v6030_v42  ;;  %v22617_v29 = vrot.slane %v5652_v36, %v20373_v44  ;;  %v2151_v37 = vpack.c.bf16 %v2134_v25, %v2133_v59 }
 0x2c7   : > { %v4075_v49 = vcombine.low %v27825_v5, %v22524_v43  ;;  %v3789_v10 = vcombine.high %v3781_v28, %v3781_v28  ;;  %v3790_v45 = vcombine.high %v3788_v55, %v3788_v55  ;;  %v18531_v30 = vpack.c.bf16 %v2134_v25, %v2134_v25 }
 0x2c8   : > { %v4124_v39 = vcombine.low %v4116_v2, %v27826_v56  ;;  %6108 = vrot.lane.b32.xlu1 %v6031_v26, %s19432_s14  ;;  %v22624_v15 = vrot.slane %v3781_v28, %v20373_v44  ;;  %v7661_v34 = vcombine.low %v22617_v29, %v22582_v52  ;;  %v22629_v42 = vrot.slane %v2151_v37, %v20373_v44 }
 0x2c9   : > { %v22632_v59 = vsel %vm1699_vm10, %v4075_v49, %v5093_v46  ;;  %v22635_v43 = vrot.slane %v4422_v50, %v20373_v44  ;;  %v6910_v36 = vrot.slane %v18573_v20, %v20373_v44  ;;  %v3520_v56 = vshrl.u32 %v22314_v8, 16 }
 0x2ca   : > { %v22640_v2 = vsel %vm1699_vm10, %v4124_v39, %v5095_v35  ;;  %v7668_v28 = vrot.slane %v7661_v34, %v20373_v44  ;;  %v3525_v26 = vshll.u32 %v21862_v21, 16  ;;  %v22646_v37 = vrot.slane %v3788_v55, %v20373_v44 }
 0x2cb   : > { %v22649_v46 = vrot.slane %v3789_v10, %v20373_v44  ;;  %v22652_v50 = vrot.slane %v3790_v45, %v20373_v44  ;;  %v22655_v8 = vrot.slane %v18531_v30, %v20373_v44  ;;  %v22659_v39 = vcombine.high %v22624_v15, %v22624_v15 }
 0x2cc   : > { %v7669_v5 = vcombine.low %v6023_v6, %v7668_v28  ;;  %v4452_v49 = vcombine.low %v22562_v24, %v22635_v43  ;;  %v6911_v35 = vcombine.low %v22556_v47, %v6910_v36  ;;  %v22669_v10 = vsel %vm20462_vm1, %v3520_v56, %v3525_v26  ;;  %v22677_v20 = vpop.f32.mrb[40].mxu0  ;;  %v27842_v47 = vld [vmem:[#allocation53_spill] sm:$0xff] }
 0x2cd   : > { %v3528_v30 = vshrl.u32 %v21862_v21, 16  ;;  %v3533_v45 = vshll.u32 %v21876_v4, 16  ;;  %v3536_v6 = vshrl.u32 %v21876_v4, 16  ;;  %v3541_v34 = vshll.u32 %v22420_v27, 16  ;;  %27827 = vst [vmem:[#allocation35_spill] sm:$0xff] %v22677_v20  ;;  %v19153_v26 = vpop.f32.mrb[41].mxu0 }
 0x2ce   : > { %19180 = vmatmul.mubr.msk.bf16.gmra.mrb[68].mxu0 %vm1699_vm10, %v7669_v5  ;;  %v3544_v28 = vshrl.u32 %v22420_v27, 16  ;;  %v22680_v24 = vrot.slane %v4452_v49, %v20373_v44  ;;  %v6918_v36 = vrot.slane %v6911_v35, %v20373_v44  ;;  %v3558_v56 = vshll.u32 %v22381_v11, 16  ;;  %v22700_v35 = vpop.f32.mrb[42].mxu0 }
 0x2cf   : > { %v3561_v21 = vshrl.u32 %v22381_v11, 16  ;;  %19183 = vmatprep.mubr.msk.bf16.mxu0 %vm19431_vm13, %v27698_v61  ;;  %v22689_v4 = vsel %vm20462_vm1, %v3528_v30, %v3533_v45  ;;  %v22693_v27 = vsel %vm20462_vm1, %v3536_v6, %v3541_v34  ;;  %v3566_v49 = vshll.u32 %v22385_v51, 16  ;;  %27829 = vst [vmem:[#allocation37_spill] sm:$0xff] %v22700_v35  ;;  %v19154_v34 = vpop.f32.mrb[43].mxu0 }
 0x2d0   : > { %27828 = vst [vmem:[#allocation34_spill] sm:$0xff] %v22680_v24  ;;  %v22697_v5 = vsel %vm20462_vm1, %v3544_v28, %v3549_v48  ;;  %v6919_v11 = vcombine.low %v6918_v36, %v22680_v24  ;;  %v27830_v26 = vshrl.u32 %v22284_v1, 16  ;;  %v3569_v45 = vshrl.u32 %v22385_v51, 16  ;;  %v27841_v24 = vld [vmem:[#allocation50_spill] sm:$0xff] }
 0x2d1   : > { %v3574_v6 = vshll.u32 %v22501_v53, 16  ;;  %v22713_v48 = vsel %vm20462_vm1, %v3561_v21, %v3566_v49  ;;  %v3577_v28 = vshrl.u32 %v22501_v53, 16  ;;  %v3582_v55 = vshll.u32 %v22433_v19, 16 }
 0x2d2   : > { %v22707_v30 = vsel %vm20462_vm1, %v27830_v26, %v3558_v56  ;;  %v4973_v1 = vcombine.low %v22669_v10, %v22689_v4  ;;  %6996 = vrot.lane.b32.xlu0 %v6919_v11, %s19425_s23  ;;  %v4974_v51 = vcombine.low %v22693_v27, %v22697_v5  ;;  %v7779_v53 = vsel %vm1831_vm14, %v22256_v57, %v22171_v60  ;;  %v22744_v57 = vpop.permute.xlu0 %7259 }
 0x2d3   : > { %v22722_v36 = vsel %vm20462_vm1, %v3569_v45, %v3574_v6  ;;  %v4975_v56 = vcombine.low %v22707_v30, %v22713_v48  ;;  %v22733_v21 = vsel %vm20462_vm1, %v3577_v28, %v3582_v55  ;;  %v7808_v11 = vsel %vm7800_vm2, %v7779_v53, %v22414_v3 }
 0x2d4   : > { %27831 = vst [vmem:[#allocation36_spill] sm:$0xff] %v22733_v21  ;;  %v4983_v49 = vrot.slane %v4973_v1, %v20373_v44  ;;  %v3585_v26 = vshrl.u32 %v22433_v19, 16  ;;  %v4976_v45 = vcombine.low %v22722_v36, %v22733_v21  ;;  %v4990_v6 = vrot.slane %v4974_v51, %v20373_v44  ;;  %8183 = vmatmul.mubr.bf16.gmra.mrb[8].mxu1 %v7808_v11 }
 0x2d5   : > { %v4997_v34 = vrot.slane %v4975_v56, %v20373_v44  ;;  %v3590_v60 = vshll.u32 %v22451_v23, 16  ;;  %v3593_v28 = vshrl.u32 %v22451_v23, 16  ;;  %v3598_v3 = vshll.u32 %v22539_v18, 16 }
 0x2d6   : > { %v7415_v55 = vcombine.low %v22389_v14, %v4983_v49  ;;  %v3601_v19 = vshrl.u32 %v22539_v18, 16  ;;  %v5004_v1 = vrot.slane %v4976_v45, %v20373_v44  ;;  %v5005_v53 = vcombine.low %v4983_v49, %v4990_v6 }
 0x2d7   : > { %v7416_v25 = vcombine.low %v4990_v6, %v4997_v34  ;;  %v22753_v51 = vsel %vm20462_vm1, %v3585_v26, %v3590_v60  ;;  %v22758_v11 = vsel %vm20462_vm1, %v3593_v28, %v3598_v3  ;;  %v27833_v14 = vshll.u32 %v22594_v17, 16 }
 0x2d8   : > { %v7423_v56 = vrot.slane %v7415_v55, %v20373_v44  ;;  %27832 = vst [vmem:[#allocation39_spill] sm:$0xff] %v22758_v11  ;;  %v3615_v18 = vshll.u32 %v22280_v62, 16  ;;  %v5006_v49 = vcombine.low %v4997_v34, %v5004_v1  ;;  %v5013_v45 = vrot.slane %v5005_v53, %v20373_v44 }
 0x2d9   : > { %v22764_v23 = vsel %vm20462_vm1, %v3601_v19, %v27833_v14  ;;  %v7430_v26 = vrot.slane %v7416_v25, %v20373_v44  ;;  %v3618_v6 = vshrl.u32 %v22280_v62, 16  ;;  %v27835_v60 = vshrl.u32 %v22270_v22, 16  ;;  %v22782_v62 = vpop.permute.xlu0 %6984 }
 0x2da   : > { %27834 = vst [vmem:[#allocation38_spill] sm:$0xff] %v22764_v23  ;;  %v3623_v17 = vshll.u32 %v22354_v31, 16  ;;  %v3626_v28 = vshrl.u32 %v22354_v31, 16  ;;  %v3631_v3 = vshll.u32 %v22602_v40, 16  ;;  %v5020_v34 = vrot.slane %v5006_v49, %v20373_v44 }
 0x2db   : > { %v22774_v55 = vsel %vm20462_vm1, %v27835_v60, %v3615_v18  ;;  %v7431_v19 = vcombine.low %v7423_v56, %v7430_v26  ;;  %v3634_v53 = vshrl.u32 %v22602_v40, 16  ;;  %v3639_v25 = vshll.u32 %v22273_v32, 16 }
 0x2dc   : > { %27836 = vst [vmem:[#allocation41_spill] sm:$0xff] %v22774_v55  ;;  %v22786_v22 = vsel %vm20462_vm1, %v3618_v6, %v3623_v17  ;;  %v22790_v14 = vsel %vm20462_vm1, %v3626_v28, %v3631_v3  ;;  %v3642_v31 = vshrl.u32 %v22273_v32, 16  ;;  %v3647_v18 = vshll.u32 %v22334_v33, 16 }
 0x2dd   : > { %27837 = vst [vmem:[#allocation40_spill] sm:$0xff] %v22786_v22  ;;  %27838 = vst [vmem:[#allocation23_spill] sm:$0xff] %v22790_v14  ;;  %v5021_v49 = vcombine.low %v5013_v45, %v5020_v34  ;;  %7562 = vrot.lane.b32.xlu0 %v7431_v19, %s19432_s14  ;;  %v22797_v40 = vsel %vm20462_vm1, %v3634_v53, %v3639_v25  ;;  %v5022_v56 = vcombine.low %v22753_v51, %v22758_v11 }
 0x2de   : > { %27839 = vst [vmem:[#allocation22_spill] sm:$0xff] %v22797_v40  ;;  %v5023_v26 = vcombine.low %v22764_v23, %v22774_v55  ;;  %v3683_v6 = vcombine.high %v22655_v8, %v22655_v8  ;;  %v22807_v60 = vsel %vm20462_vm1, %v3642_v31, %v3647_v18  ;;  %v5024_v45 = vcombine.low %v22786_v22, %v22790_v14  ;;  %v27877_v23 = vld [vmem:[#allocation73_spill] sm:$0xff] }
 0x2df   : > { %v5654_v17 = vcombine.low %v22273_v32, %v22334_v33  ;;  %5106 = vrot.lane.b32.xlu1 %v5021_v49, %s19425_s23  ;;  %v5025_v28 = vcombine.low %v22797_v40, %v22807_v60  ;;  %v5032_v3 = vrot.slane %v5022_v56, %v20373_v44  ;;  %v5683_v19 = vcombine.low %v22579_v63, %v22617_v29  ;;  %v22834_v63 = vpop.permute.xlu0 %7261 }
 0x2e0   : > { %v5039_v34 = vrot.slane %v5023_v26, %v20373_v44  ;;  %v22822_v53 = vrot.slane %v22629_v42, %v20373_v44  ;;  %v5046_v25 = vrot.slane %v5024_v45, %v20373_v44  ;;  %v6311_v18 = vcombine.low %v21533_v58, %v21537_v9  ;;  %v27840_v45 = vld [vmem:[#allocation51_spill] sm:$0xff] }
 0x2e1   : > { %v22826_v31 = vrot.slane %v5654_v17, %v20373_v44  ;;  %v22831_v49 = vrot.slane %v5025_v28, %v20373_v44  ;;  %v7432_v26 = vcombine.low %v5004_v1, %v5032_v3  ;;  %v5691_v35 = vrot.slane %v5683_v19, %v20373_v44  ;;  %v27844_v28 = vld [vmem:[#allocation49_spill] sm:$0xff] }
 0x2e2   : > { %v5054_v56 = vcombine.low %v5032_v3, %v5039_v34  ;;  %v7433_v29 = vcombine.low %v5039_v34, %v5046_v25  ;;  %v6312_v17 = vcombine.low %v27841_v24, %v27840_v45  ;;  %v6313_v14 = vcombine.low %v27843_v12, %v27842_v47  ;;  %v27845_v3 = vld [vmem:[#allocation42_spill] sm:$0xff]  ;;  %v27857_v45 = vld [vmem:[#allocation43_spill] sm:$0xff] }
 0x2e3   : > { %v5684_v20 = vcombine.low %v22582_v52, %v22826_v31  ;;  %v5055_v58 = vcombine.low %v5046_v25, %v22831_v49  ;;  %v7440_v1 = vrot.slane %v7432_v26, %v20373_v44  ;;  %v6310_v19 = vcombine.low %v27845_v3, %v27844_v28  ;;  %v27847_v3 = vld [vmem:[#allocation55_spill] sm:$0xff]  ;;  %v22866_v22 = vpop.permute.xlu0 %6986 }
 0x2e4   : > { %v5062_v9 = vrot.slane %v5054_v56, %v20373_v44  ;;  %v7447_v40 = vrot.slane %v7433_v29, %v20373_v44  ;;  %v6334_v24 = vrot.slane %v6312_v17, %v20373_v44  ;;  %v27846_v12 = vcombine.high %v22629_v42, %v22629_v42 }
 0x2e5   : > { %v5698_v52 = vrot.slane %v5684_v20, %v20373_v44  ;;  %v5069_v25 = vrot.slane %v5055_v58, %v20373_v44  ;;  %v6327_v56 = vrot.slane %v6311_v18, %v20373_v44  ;;  %v6341_v26 = vrot.slane %v6313_v14, %v20373_v44  ;;  %v27848_v20 = vld [vmem:[#allocation54_spill] sm:$0xff]  ;;  %v27849_v14 = vld [vmem:[#allocation57_spill] sm:$0xff]  ;;  %v27851_v58 = vld [vmem:[#allocation59_spill] sm:$0xff] }
 0x2e6   : > { %v22855_v47 = vrot.slane %v27846_v12, %v20373_v44  ;;  %v7448_v28 = vcombine.low %v7440_v1, %v7447_v40  ;;  %v6359_v34 = vcombine.low %v27848_v20, %v27847_v3  ;;  %v6320_v42 = vrot.slane %v6310_v19, %v20373_v44  ;;  %v27852_v1 = vld [vmem:[#allocation58_spill] sm:$0xff]  ;;  %v27854_v3 = vld [vmem:[#allocation60_spill] sm:$0xff] }
 0x2e7   : > { %v5699_v29 = vcombine.low %v5691_v35, %v5698_v52  ;;  %v5070_v55 = vcombine.low %v5062_v9, %v5069_v25  ;;  %v6343_v12 = vcombine.low %v6334_v24, %v6341_v26  ;;  %v22870_v18 = vrot.slane %v22655_v8, %v20373_v44  ;;  %v27850_v35 = vld [vmem:[#allocation56_spill] sm:$0xff] }
 0x2e8   : > { %7564 = vrot.lane.b32.xlu0 %v7448_v28, %s19432_s14  ;;  %v6360_v40 = vcombine.low %v27850_v35, %v27849_v14  ;;  %v6361_v52 = vcombine.low %v27852_v1, %v27851_v58  ;;  %v4468_v9 = vcombine.low %v22334_v33, %v22412_v38  ;;  %v22881_v19 = vcombine.high %v22822_v53, %v22822_v53  ;;  %v27853_v28 = vld [vmem:[#allocation61_spill] sm:$0xff] }
 0x2e9   : > { %5108 = vrot.lane.b32.xlu1 %v5070_v55, %s19425_s23  ;;  %v6342_v24 = vcombine.low %v6320_v42, %v6327_v56  ;;  %v18574_v8 = vcombine.high %v22822_v53, %v22855_v47  ;;  %v7172_v25 = vcombine.low %v22822_v53, %v22855_v47  ;;  %v22889_v26 = vrot.slane %v3683_v6, %v20373_v44 }
 0x2ea   : > { %v6362_v20 = vcombine.low %v27854_v3, %v27853_v28  ;;  %v6369_v14 = vrot.slane %v6359_v34, %v20373_v44  ;;  %v22895_v35 = vrot.slane %v4468_v9, %v20373_v44  ;;  %v6357_v55 = vrot.slane %v6343_v12, %v20373_v44  ;;  %v27856_v3 = vld [vmem:[#allocation44_spill] sm:$0xff] }
 0x2eb   : > { %v6936_v56 = vrot.slane %v18574_v8, %v20373_v44  ;;  %v7179_v42 = vrot.slane %v7172_v25, %v20373_v44  ;;  %v22902_v58 = vcombine.high %v22855_v47, %v22855_v47  ;;  %v6376_v6 = vrot.slane %v6360_v40, %v20373_v44 }
 0x2ec   : > { %27855 = vst [vmem:[#allocation26_spill] sm:$0xff] %v22895_v35  ;;  %v22906_v1 = vrot.slane %v6361_v52, %v20373_v44  ;;  %v7180_v34 = vcombine.low %v22635_v43, %v22895_v35  ;;  %v18567_v9 = vcombine.high %v22273_v32, %v22334_v33  ;;  %v7886_v12 = vsel %vm1831_vm14, %v22515_v0, %v22744_v57  ;;  %v7553_v52 = vpop.permute.xlu0 %7552 }
 0x2ed   : > { %5737 = vrot.lane.b32.xlu1 %v5699_v29, %s19428_s16  ;;  %v6350_v8 = vrot.slane %v6342_v24, %v20373_v44  ;;  %v7181_v25 = vcombine.low %v7179_v42, %v6936_v56  ;;  %v6033_v40 = vcombine.low %v22855_v47, %v22881_v19  ;;  %v22920_v28 = vrot.slane %v6362_v20, %v20373_v44 }
 0x2ee   : > { %v6391_v43 = vcombine.low %v6369_v14, %v6376_v6  ;;  %v4157_v32 = vcombine.low %v27857_v45, %v27856_v3  ;;  %v22925_v17 = vrot.slane %v18567_v9, %v20373_v44  ;;  %v7188_v57 = vrot.slane %v7180_v34, %v20373_v44 }
 0x2ef   : > { %v6358_v0 = vcombine.low %v6350_v8, %v6357_v55  ;;  %v7195_v29 = vrot.slane %v7181_v25, %v20373_v44  ;;  %v6034_v24 = vcombine.low %v22902_v58, %v22870_v18  ;;  %v6048_v20 = vrot.slane %v6033_v40, %v20373_v44 }
 0x2f0   : > { %v6032_v14 = vcombine.low %v22412_v38, %v22822_v53  ;;  %v2852_v45 = vcombine.high %v22334_v33, %v22334_v33  ;;  %v7670_v34 = vcombine.low %v22826_v31, %v22925_v17  ;;  %v6922_v9 = vcombine.low %v22870_v18, %v22889_v26  ;;  %v7555_v42 = vpop.permute.xlu0 %7554 }
 0x2f1   : > { %v7196_v6 = vcombine.low %v7188_v57, %v7195_v29  ;;  %v6055_v55 = vrot.slane %v6034_v24, %v20373_v44  ;;  %v22944_v8 = vrot.slane %v6391_v43, %v20373_v44  ;;  %v7915_v3 = vsel %vm7800_vm2, %v7886_v12, %v7553_v52 }
 0x2f2   : > { %v6041_v25 = vrot.slane %v6032_v14, %v20373_v44  ;;  %v6920_v40 = vcombine.low %v2852_v45, %v22855_v47  ;;  %v22951_v29 = vrot.slane %v6922_v9, %v20373_v44  ;;  %8190 = vmatprep.mubr.bf16.mxu1 %v7915_v3  ;;  %v7781_v24 = vsel %vm1831_vm14, %v22632_v59, %v22461_v13  ;;  %v22957_v11 = vpop.f32.mrb[44].mxu0 }
 0x2f3   : > { %7273 = vrot.lane.b32.xlu0 %v7196_v6, %s19428_s16  ;;  %v6057_v57 = vcombine.low %v6048_v20, %v6055_v55  ;;  %v3650_v43 = vshrl.u32 %v22334_v33, 16  ;;  %27858 = vst [vmem:[#allocation25_spill] sm:$0xff] %v22957_v11  ;;  %v22960_v14 = vrot.slane %v4157_v32, %v20373_v44  ;;  %v7811_v20 = vsel %vm7800_vm2, %v7781_v24, %v22494_v16  ;;  %v19157_v6 = vpop.f32.mrb[45].mxu0  ;;  %v22966_v55 = vpop.permute.xlu1 %6098 }
 0x2f4   : > { %v6056_v12 = vcombine.low %v22826_v31, %v6041_v25  ;;  %v6929_v52 = vrot.slane %v6920_v40, %v20373_v44  ;;  %v7677_v33 = vrot.slane %v7670_v34, %v20373_v44  ;;  %v6945_v59 = vcombine.low %v6936_v56, %v22951_v29  ;;  %8191 = vmatmul.mubr.bf16.gmra.mrb[12].mxu1 %v7811_v20  ;;  %v22972_v9 = vpop.f32.mrb[46].mxu0  ;;  %v22984_v20 = vpop.permute.xlu0 %7263 }
 0x2f5   : > { %v6071_v13 = vrot.slane %v6057_v57, %v20373_v44  ;;  %v3655_v32 = vshll.u32 %v22412_v38, 16  ;;  %27859 = vst [vmem:[#allocation24_spill] sm:$0xff] %v22972_v9  ;;  %v3658_v16 = vshrl.u32 %v22412_v38, 16  ;;  %v3663_v40 = vshll.u32 %v2852_v45, 16  ;;  %v19158_v3 = vpop.f32.mrb[47].mxu0 }
 0x2f6   : > { %v6064_v31 = vrot.slane %v6056_v12, %v20373_v44  ;;  %v6944_v25 = vcombine.low %v22895_v35, %v6929_v52  ;;  %v7854_v57 = vsel %vm1699_vm10, %v6358_v0, %v22782_v62  ;;  %v6959_v34 = vrot.slane %v6945_v59, %v20373_v44 }
 0x2f7   : > { %v7678_v24 = vcombine.low %v7677_v33, %v6071_v13  ;;  %v22982_v56 = vsel %vm20462_vm1, %v3650_v43, %v3655_v32  ;;  %v22989_v38 = vsel %vm20462_vm1, %v3658_v16, %v3663_v40  ;;  %v3717_v45 = vshrl.u32 %v22822_v53, 16  ;;  %v6097_v32 = vpop.permute.xlu1 %6096 }
 0x2f8   : > { %v6072_v6 = vcombine.low %v6064_v31, %v6071_v13  ;;  %v6952_v12 = vrot.slane %v6944_v25, %v20373_v44  ;;  %v3722_v62 = vshll.u32 %v22855_v47, 16  ;;  %v5071_v0 = vcombine.low %v22982_v56, %v22989_v38 }
 0x2f9   : > { %19184 = vmatmul.mubr.msk.bf16.gmra.mrb[72].mxu0 %vm1699_vm10, %v7678_v24  ;;  %v3725_v52 = vshrl.u32 %v22855_v47, 16  ;;  %v7888_v13 = vsel %vm1831_vm14, %v7854_v57, %v22834_v63  ;;  %v3730_v53 = vshll.u32 %v22881_v19, 16  ;;  %v3733_v59 = vshrl.u32 %v22881_v19, 16 }
 0x2fa   : > { %6110 = vrot.lane.b32.xlu1 %v6072_v6, %s19432_s14  ;;  %v6960_v33 = vcombine.low %v6952_v12, %v6959_v34  ;;  %19187 = vmatprep.mubr.msk.bf16.mxu0 %vm19431_vm13, %v27698_v61  ;;  %v23008_v31 = vsel %vm20462_vm1, %v3717_v45, %v3722_v62  ;;  %v5078_v47 = vrot.slane %v5071_v0, %v20373_v44  ;;  %v3738_v25 = vshll.u32 %v22902_v58, 16  ;;  %v23030_v6 = vpop.permute.xlu0 %6988 }
 0x2fb   : > { %v3741_v63 = vshrl.u32 %v22902_v58, 16  ;;  %v23018_v19 = vsel %vm20462_vm1, %v3725_v52, %v3730_v53  ;;  %v3746_v40 = vshll.u32 %v22870_v18, 16  ;;  %v7918_v3 = vsel %vm7800_vm2, %v7888_v13, %v7555_v42 }
 0x2fc   : > { %6998 = vrot.lane.b32.xlu0 %v6960_v33, %s19425_s23  ;;  %v5085_v57 = vrot.slane %v5078_v47, %v20373_v44  ;;  %v23025_v24 = vsel %vm20462_vm1, %v3733_v59, %v3738_v25  ;;  %v7449_v58 = vcombine.low %v23008_v31, %v23018_v19  ;;  %v7465_v34 = vcombine.low %v22831_v49, %v5078_v47 }
 0x2fd   : > { %8198 = vmatprep.mubr.bf16.mxu1 %v7918_v3  ;;  %v23034_v12 = vsel %vm20462_vm1, %v3741_v63, %v3746_v40  ;;  %v23038_v42 = vcombine.high %v22870_v18, %v22870_v18  ;;  %v3715_v45 = vcombine.high %v22889_v26, %v22889_v26  ;;  %v7681_v62 = vcombine.low %v22646_v37, %v22652_v50  ;;  %v23057_v63 = vpop.permute.xlu1 %5725 }
 0x2fe   : > { %5110 = vrot.lane.b32.xlu1 %v5085_v57, %s19425_s23  ;;  %v7450_v49 = vcombine.low %v23025_v24, %v23034_v12  ;;  %v7457_v0 = vrot.slane %v7449_v58, %v20373_v44  ;;  %v7473_v52 = vrot.slane %v7465_v34, %v20373_v44  ;;  %v27860_v13 = vcombine.high %v22624_v15, %v22649_v46  ;;  %v23076_v9 = vpop.permute.xlu0 %7265 }
 0x2ff   : > { %v3770_v53 = vshll.u32 %v3715_v45, 16  ;;  %v6073_v59 = vcombine.low %v22889_v26, %v23038_v42  ;;  %v7679_v47 = vcombine.low %v3715_v45, %v22649_v46  ;;  %v7702_v25 = vrot.slane %v7681_v62, %v20373_v44 }
 0x300   : > { %v7695_v33 = vrot.slane %v27860_v13, %v20373_v44  ;;  %v7464_v40 = vrot.slane %v7450_v49, %v20373_v44  ;;  %v5714_v3 = vrot.slane %v22925_v17, %v20373_v44  ;;  %v3821_v57 = vcombine.high %v22649_v46, %v22649_v46 }
 0x301   : > { %v7197_v58 = vcombine.low %v23038_v42, %v22624_v15  ;;  %v6080_v34 = vrot.slane %v6073_v59, %v20373_v44  ;;  %v7688_v13 = vrot.slane %v7679_v47, %v20373_v44  ;;  %v7198_v62 = vcombine.low %v22649_v46, %v22659_v39  ;;  %v23078_v59 = vpop.f32.mrb[48].mxu0 }
 0x302   : > { %v7704_v45 = vcombine.low %v7695_v33, %v7702_v25  ;;  %v7466_v16 = vcombine.low %v7457_v0, %v7464_v40  ;;  %5739 = vrot.lane.b32.xlu1 %v5714_v3, %s19428_s16  ;;  %v7199_v49 = vcombine.low %v3821_v57, %v22646_v37  ;;  %v7783_v43 = vsel %vm1831_vm14, %v22640_v2, %v22543_v41  ;;  %v19161_v40 = vpop.f32.mrb[49].mxu0 }
 0x303   : > { %v7206_v17 = vrot.slane %v7197_v58, %v20373_v44  ;;  %27861 = vst [vmem:[#allocation27_spill] sm:$0xff] %v23078_v59  ;;  %v7703_v47 = vcombine.low %v6080_v34, %v7688_v13  ;;  %v7213_v25 = vrot.slane %v7198_v62, %v20373_v44  ;;  %v7814_v0 = vsel %vm7800_vm2, %v7783_v43, %v6097_v32  ;;  %v23087_v2 = vpop.f32.mrb[50].mxu0  ;;  %v23093_v40 = vpop.permute.xlu1 %5727  ;;  %v27873_v59 = vld [vmem:[#allocation69_spill] sm:$0xff] }
 0x304   : > { %v7718_v33 = vrot.slane %v7704_v45, %v20373_v44  ;;  %v7480_v3 = vrot.slane %v7466_v16, %v20373_v44  ;;  %v7220_v58 = vrot.slane %v7199_v49, %v20373_v44  ;;  %8199 = vmatmul.mubr.bf16.gmra.mrb[16].mxu1 %v7814_v0  ;;  %v6087_v41 = vrot.slane %v6080_v34, %v20373_v44  ;;  %v19162_v32 = vpop.f32.mrb[51].mxu0 }
 0x305   : > { %v7221_v11 = vcombine.low %v22951_v29, %v7206_v17  ;;  %27862 = vst [vmem:[#allocation51_spill] sm:$0xff] %v23087_v2  ;;  %v7711_v13 = vrot.slane %v7703_v47, %v20373_v44  ;;  %v3749_v45 = vshrl.u32 %v22870_v18, 16  ;;  %v3754_v62 = vshll.u32 %v22889_v26, 16 }
 0x306   : > { %v3757_v43 = vshrl.u32 %v22889_v26, 16  ;;  %v7481_v16 = vcombine.low %v7473_v52, %v7480_v3  ;;  %v7222_v49 = vcombine.low %v7213_v25, %v7220_v58  ;;  %6112 = vrot.lane.b32.xlu1 %v6087_v41, %s19432_s14  ;;  %v3762_v34 = vshll.u32 %v23038_v42, 16 }
 0x307   : > { %v7229_v29 = vrot.slane %v7221_v11, %v20373_v44  ;;  %v7719_v17 = vcombine.low %v7711_v13, %v7718_v33  ;;  %v23100_v47 = vsel %vm20462_vm1, %v3749_v45, %v3754_v62  ;;  %v3765_v0 = vshrl.u32 %v23038_v42, 16  ;;  %v23111_v33 = vpop.permute.xlu0 %7556 }
 0x308   : > { %v3829_v2 = vshll.u32 %v22649_v46, 16  ;;  %7566 = vrot.lane.b32.xlu0 %v7481_v16, %s19432_s14  ;;  %v7236_v52 = vrot.slane %v7222_v49, %v20373_v44  ;;  %v23108_v11 = vsel %vm20462_vm1, %v3757_v43, %v3762_v34  ;;  %v3832_v25 = vshrl.u32 %v22649_v46, 16  ;;  %v27867_v34 = vld [vmem:[#allocation45_spill] sm:$0xff] }
 0x309   : > { %v3845_v3 = vshll.u32 %v3821_v57, 16  ;;  %19188 = vmatmul.mubr.msk.bf16.gmra.mrb[76].mxu0 %vm1699_vm10, %v7719_v17  ;;  %v23116_v42 = vsel %vm20462_vm1, %v3765_v0, %v3770_v53  ;;  %v27863_v58 = vshrl.u32 %v22624_v15, 16  ;;  %v3848_v13 = vshrl.u32 %v3821_v57, 16  ;;  %v5097_v0 = vpop.permute.xlu1 %5096 }
 0x30a   : > { %v3853_v45 = vshll.u32 %v22646_v37, 16  ;;  %v7237_v62 = vcombine.low %v7229_v29, %v7236_v52  ;;  %v27864_v46 = vshll.u32 %v22659_v39, 16  ;;  %v27865_v32 = vshrl.u32 %v22659_v39, 16  ;;  %19191 = vmatprep.mubr.msk.bf16.mxu0 %vm19431_vm13, %v27698_v61 }
 0x30b   : > { %v3831_v41 = vsel %vm20462_vm1, %v27863_v58, %v3829_v2  ;;  %v3856_v16 = vshrl.u32 %v22646_v37, 16  ;;  %v3861_v57 = vshll.u32 %v22652_v50, 16  ;;  %v7482_v2 = vcombine.low %v23100_v47, %v23108_v11 }
 0x30c   : > { %v3839_v43 = vsel %vm20462_vm1, %v3832_v25, %v27864_v46  ;;  %v3847_v53 = vsel %vm20462_vm1, %v27865_v32, %v3845_v3  ;;  %v3855_v15 = vsel %vm20462_vm1, %v3848_v13, %v3853_v45  ;;  %v7483_v49 = vcombine.low %v23116_v42, %v3831_v41  ;;  %7275 = vrot.lane.b32.xlu0 %v7237_v62, %s19428_s16  ;;  %v27868_v13 = vld [vmem:[#allocation68_spill] sm:$0xff]  ;;  %v27870_v45 = vld [vmem:[#allocation47_spill] sm:$0xff]  ;;  %v27871_v46 = vld [vmem:[#allocation46_spill] sm:$0xff] }
 0x30d   : > { %v27866_v39 = vcombine.low %v22906_v1, %v22920_v28  ;;  %v4173_v17 = vcombine.low %v22960_v14, %v27867_v34  ;;  %v7484_v52 = vcombine.low %v3839_v43, %v3847_v53  ;;  %v18577_v25 = vcombine.high %v22646_v37, %v22652_v50  ;;  %v27869_v1 = vld [vmem:[#allocation62_spill] sm:$0xff]  ;;  %v7559_v53 = vpop.permute.xlu0 %7558 }
 0x30e   : > { %v3863_v3 = vsel %vm20462_vm1, %v3856_v16, %v3861_v57  ;;  %v7492_v58 = vrot.slane %v7482_v2, %v20373_v44  ;;  %v7499_v41 = vrot.slane %v7483_v49, %v20373_v44  ;;  %v6408_v28 = vcombine.low %v27869_v1, %v27868_v13  ;;  %v27872_v34 = vld [vmem:[#allocation70_spill] sm:$0xff]  ;;  %v27874_v57 = vld [vmem:[#allocation72_spill] sm:$0xff]  ;;  %v27875_v2 = vld [vmem:[#allocation71_spill] sm:$0xff] }
 0x30f   : > { %v6406_v29 = vrot.slane %v27866_v39, %v20373_v44  ;;  %v4206_v14 = vcombine.low %v27871_v46, %v27870_v45  ;;  %v7485_v32 = vcombine.low %v3855_v15, %v3863_v3  ;;  %v7506_v62 = vrot.slane %v7484_v52, %v20373_v44  ;;  %v27876_v49 = vld [vmem:[#allocation74_spill] sm:$0xff] }
 0x310   : > { %v7727_v43 = vrot.slane %v18577_v25, %v20373_v44  ;;  %v7514_v39 = vcombine.low %v7492_v58, %v7499_v41  ;;  %v6409_v16 = vcombine.low %v27873_v59, %v27872_v34  ;;  %v6410_v35 = vcombine.low %v27875_v2, %v27874_v57  ;;  %v27878_v2 = vld [vmem:[#allocation48_spill] sm:$0xff] }
 0x311   : > { %v6411_v21 = vcombine.low %v27877_v23, %v27876_v49  ;;  %v6407_v13 = vcombine.low %v22944_v8, %v6406_v29  ;;  %v7513_v1 = vrot.slane %v7485_v32, %v20373_v44  ;;  %v18575_v52 = vcombine.high %v22870_v18, %v22889_v26  ;;  %v5099_v23 = vpop.permute.xlu1 %5098  ;;  %v23179_v18 = vpop.permute.xlu0 %6990 }
 0x312   : > { %v7734_v15 = vrot.slane %v7727_v43, %v20373_v44  ;;  %v6418_v25 = vrot.slane %v6408_v28, %v20373_v44  ;;  %v6425_v3 = vrot.slane %v6409_v16, %v20373_v44  ;;  %v6432_v59 = vrot.slane %v6410_v35, %v20373_v44 }
 0x313   : > { %v6439_v58 = vrot.slane %v6411_v21, %v20373_v44  ;;  %v7752_v41 = vsel %vm1699_vm10, %v4173_v17, %v5097_v0  ;;  %v7515_v45 = vcombine.low %v7506_v62, %v7513_v1  ;;  %v7522_v8 = vrot.slane %v7514_v39, %v20373_v44 }
 0x314   : > { %19192 = vmatmul.mubr.msk.bf16.gmra.mrb[80].mxu0 %vm1699_vm10, %v7734_v15  ;;  %v3820_v29 = vcombine.high %v22646_v37, %v22646_v37  ;;  %v4214_v26 = vrot.slane %v4206_v14, %v20373_v44  ;;  %v6440_v28 = vcombine.low %v6418_v25, %v6425_v3  ;;  %v3822_v21 = vcombine.high %v22652_v50, %v22652_v50  ;;  %v27880_v25 = vld [vmem:[#allocation63_spill] sm:$0xff] }
 0x315   : > { %v6441_v46 = vcombine.low %v6432_v59, %v6439_v58  ;;  %19199 = vmatprep.mubr.msk.bf16.mxu0 %vm19431_vm13, %v27698_v61  ;;  %v7857_v35 = vsel %vm1699_vm10, %v6407_v13, %v22866_v22  ;;  %v7529_v17 = vrot.slane %v7515_v45, %v20373_v44  ;;  %v6968_v0 = vrot.slane %v18575_v52, %v20373_v44  ;;  %v6101_v16 = vpop.permute.xlu1 %6100  ;;  %v27879_v52 = vld [vmem:[#allocation64_spill] sm:$0xff]  ;;  %v7268_v59 = vpop.permute.xlu0 %7267 }
 0x316   : > { %v3864_v37 = vshrl.u32 %v22652_v50, 16  ;;  %v6448_v32 = vrot.slane %v6440_v28, %v20373_v44  ;;  %v7238_v62 = vcombine.low %v22652_v50, %v3820_v29  ;;  %v3869_v43 = vshll.u32 %v3820_v29, 16  ;;  %v27882_v28 = vld [vmem:[#allocation77_spill] sm:$0xff] }
 0x317   : > { %v6455_v14 = vrot.slane %v6441_v46, %v20373_v44  ;;  %v7530_v39 = vcombine.low %v7522_v8, %v7529_v17  ;;  %v7890_v34 = vsel %vm1831_vm14, %v7857_v35, %v22984_v20  ;;  %v3872_v57 = vshrl.u32 %v3820_v29, 16  ;;  %v27881_v29 = vld [vmem:[#allocation75_spill] sm:$0xff]  ;;  %v27883_v46 = vld [vmem:[#allocation76_spill] sm:$0xff]  ;;  %v27885_v35 = vld [vmem:[#allocation65_spill] sm:$0xff] }
 0x318   : > { %v3877_v22 = vshll.u32 %v3822_v21, 16  ;;  %v4222_v49 = vcombine.low %v4214_v26, %v27878_v2  ;;  %v7921_v1 = vsel %vm7800_vm2, %v7890_v34, %v23111_v33  ;;  %v7785_v15 = vsel %vm1831_vm14, %v7752_v41, %v23057_v63 }
 0x319   : > { %v6456_v13 = vcombine.low %v6448_v32, %v6455_v14  ;;  %7568 = vrot.lane.b32.xlu0 %v7530_v39, %s19432_s14  ;;  %v6975_v50 = vrot.slane %v6968_v0, %v20373_v44  ;;  %v4255_v3 = vcombine.low %v27880_v25, %v27879_v52  ;;  %8206 = vmatprep.mubr.bf16.mxu1 %v7921_v1  ;;  %v27887_v32 = vld [vmem:[#allocation78_spill] sm:$0xff]  ;;  %v23235_v1 = vpop.permute.xlu0 %6992 }
 0x31a   : > { %v3879_v20 = vsel %vm20462_vm1, %v3872_v57, %v3877_v22  ;;  %v7245_v33 = vrot.slane %v7238_v62, %v20373_v44  ;;  %v3871_v63 = vsel %vm20462_vm1, %v3864_v37, %v3869_v43  ;;  %v7817_v41 = vsel %vm7800_vm2, %v7785_v15, %v22966_v55  ;;  %v27886_v37 = vld [vmem:[#allocation79_spill] sm:$0xff]  ;;  %v27888_v55 = vld [vmem:[#allocation14_spill] sm:$0xff]  ;;  %v27889_v62 = vld [vmem:[#allocation80_spill] sm:$0xff] }
 0x31b   : > { %v7860_v58 = vsel %vm1699_vm10, %v6456_v13, %v23030_v6  ;;  %v7531_v8 = vcombine.low %v3871_v63, %v3879_v20  ;;  %8207 = vmatmul.mubr.bf16.gmra.mrb[20].mxu1 %v7817_v41  ;;  %v6457_v26 = vcombine.low %v27881_v29, %v21970_v7  ;;  %v6458_v21 = vcombine.low %v27883_v46, %v27882_v28  ;;  %v27884_v6 = vld [vmem:[#allocation66_spill] sm:$0xff] }
 0x31c   : > { %v7892_v45 = vsel %vm1831_vm14, %v7860_v58, %v23076_v9  ;;  %v4256_v17 = vcombine.low %v27885_v35, %v27884_v6  ;;  %v6459_v14 = vcombine.low %v27887_v32, %v27886_v37  ;;  %v6460_v43 = vcombine.low %v27889_v62, %v27888_v55  ;;  %v5730_v9 = vpop.permute.xlu1 %5729 }
 0x31d   : > { %v7924_v0 = vsel %vm7800_vm2, %v7892_v45, %v7559_v53  ;;  %7000 = vrot.lane.b32.xlu0 %v6975_v50, %s19425_s23  ;;  %v6467_v7 = vrot.slane %v6457_v26, %v20373_v44  ;;  %v6474_v39 = vrot.slane %v6458_v21, %v20373_v44  ;;  %v7755_v34 = vsel %vm1699_vm10, %v4222_v49, %v5099_v23  ;;  %v7561_v41 = vpop.permute.xlu0 %7560 }
 0x31e   : > { %8214 = vmatprep.mubr.bf16.mxu1 %v7924_v0  ;;  %v6481_v57 = vrot.slane %v6459_v14, %v20373_v44  ;;  %v6488_v53 = vrot.slane %v6460_v43, %v20373_v44  ;;  %v7252_v22 = vrot.slane %v7245_v33, %v20373_v44  ;;  %v7538_v2 = vrot.slane %v7531_v8, %v20373_v44  ;;  %v27892_v43 = vld [vmem:[#allocation16_spill] sm:$0xff] }
 0x31f   : > { %v6489_v13 = vcombine.low %v6467_v7, %v6474_v39  ;;  %v4263_v15 = vrot.slane %v4255_v3, %v20373_v44  ;;  %v4270_v50 = vrot.slane %v4256_v17, %v20373_v44  ;;  %v7787_v23 = vsel %vm1831_vm14, %v7755_v34, %v23093_v40  ;;  %v27894_v39 = vld [vmem:[#allocation20_spill] sm:$0xff]  ;;  %v27895_v34 = vld [vmem:[#allocation15_spill] sm:$0xff] }
 0x320   : > { %v6490_v52 = vcombine.low %v6481_v57, %v6488_v53  ;;  %v7820_v49 = vsel %vm7800_vm2, %v7787_v23, %v6101_v16  ;;  %v5101_v58 = vpop.permute.xlu1 %5100  ;;  %v7545_v33 = vrot.slane %v7538_v2, %v20373_v44  ;;  %v27890_v17 = vcombine.low %v22807_v60, %v22982_v56  ;;  %v27896_v53 = vld [vmem:[#allocation6_spill] sm:$0xff] }
 0x321   : > { %7277 = vrot.lane.b32.xlu0 %v7252_v22, %s19428_s16  ;;  %v6497_v25 = vrot.slane %v6489_v13, %v20373_v44  ;;  %v4271_v63 = vcombine.low %v4263_v15, %v4270_v50  ;;  %v27891_v37 = vcombine.low %v22989_v38, %v23008_v31  ;;  %v6507_v57 = vcombine.low %v27895_v34, %v27894_v39  ;;  %v27897_v22 = vld [vmem:[#allocation17_spill] sm:$0xff]  ;;  %v27898_v15 = vld [vmem:[#allocation7_spill] sm:$0xff]  ;;  %v27899_v50 = vld [vmem:[#allocation4_spill] sm:$0xff] }
 0x322   : > { %v6504_v20 = vrot.slane %v6490_v52, %v20373_v44  ;;  %v6663_v0 = vrot.slane %v27890_v17, %v20373_v44  ;;  %v6508_v2 = vcombine.low %v27897_v22, %v27896_v53  ;;  %v6509_v52 = vcombine.low %v27899_v50, %v27898_v15  ;;  %v27902_v17 = vld [vmem:[#allocation18_spill] sm:$0xff] }
 0x323   : > { %8215 = vmatmul.mubr.bf16.gmra.mrb[24].mxu1 %v7820_v49  ;;  %v7758_v45 = vsel %vm1699_vm10, %v4271_v63, %v5101_v58  ;;  %v6670_v32 = vrot.slane %v27891_v37, %v20373_v44  ;;  %v6523_v49 = vrot.slane %v6507_v57, %v20373_v44  ;;  %v27901_v58 = vld [vmem:[#allocation67_spill] sm:$0xff]  ;;  %v27903_v37 = vld [vmem:[#allocation9_spill] sm:$0xff]  ;;  %v9605_v34 = vrot.slane %v27698_v61, 7 }
 0x324   : > { %v6505_v3 = vcombine.low %v6497_v25, %v6504_v20  ;;  %v6103_v8 = vpop.permute.xlu1 %6102  ;;  %v7789_v46 = vsel %vm1831_vm14, %v7758_v45, %v5730_v9  ;;  %v27893_v9 = vld [vmem:[#allocation12_spill] sm:$0xff]  ;;  %v6530_v25 = vrot.slane %v6508_v2, %v20373_v44  ;;  %v27900_v20 = vld [vmem:[#allocation10_spill] sm:$0xff]  ;;  %v6537_v63 = vrot.slane %v6509_v52, %v20373_v44 }
 0x325   : > { %7570 = vrot.lane.b32.xlu0 %v7545_v33, %s19432_s14  ;;  %v7823_v6 = vsel %vm7800_vm2, %v7789_v46, %v6103_v8  ;;  %v6506_v7 = vcombine.low %v27893_v9, %v27892_v43  ;;  %v4305_v33 = vcombine.low %v27901_v58, %v27900_v20  ;;  %v27904_v43 = vld [vmem:[#allocation13_spill] sm:$0xff]  ;;  %v27905_v9 = vld [vmem:[#allocation19_spill] sm:$0xff]  ;;  %v19433_v22 = vmov 1983009808  }
 0x326   : > { %v7863_v40 = vsel %vm1699_vm10, %v6505_v3, %v23179_v18  ;;  %v23251_v29 = vpop.f32.mrb[52].mxu0  ;;  %v6655_v18 = vcombine.low %v23018_v19, %v23025_v24  ;;  %v6702_v19 = vcombine.low %v23108_v11, %v23116_v42  ;;  %v6685_v24 = vcombine.low %v6663_v0, %v6670_v32  ;;  %v27906_v58 = vld [vmem:[#allocation11_spill] sm:$0xff] }
 0x327   : > { %v7894_v16 = vsel %vm1831_vm14, %v7863_v40, %v7268_v59  ;;  %v19165_v28 = vpop.f32.mrb[53].mxu0  ;;  %v6656_v59 = vcombine.low %v23034_v12, %v23100_v47  ;;  %v6516_v23 = vrot.slane %v6506_v7, %v20373_v44  ;;  %v6539_v8 = vcombine.low %v6530_v25, %v6537_v63  ;;  %v23342_v63 = vld [vmem:[%s27415_s4] ss:$0 sm:$0xff] }
 0x328   : > { %v7927_v26 = vsel %vm7800_vm2, %v7894_v16, %v7561_v41  ;;  %v23255_v21 = vpop.f32.mrb[54].mxu0  ;;  %v6677_v14 = vrot.slane %v6655_v18, %v20373_v44  ;;  %v23275_v12 = vrot.slane %v6685_v24, %v20373_v44  ;;  %v5732_v56 = vpop.permute.xlu1 %5731  ;;  %v6555_v32 = vcombine.low %v27903_v37, %v22669_v10 }
 0x329   : > { %8222 = vmatprep.mubr.bf16.mxu1 %v7927_v26  ;;  %v19166_v35 = vpop.f32.mrb[55].mxu0  ;;  %v6684_v55 = vrot.slane %v6656_v59, %v20373_v44  ;;  %v6538_v40 = vcombine.low %v6516_v23, %v6523_v49  ;;  %v4319_v26 = vrot.slane %v4305_v33, %v20373_v44  ;;  %v6553_v18 = vrot.slane %v6539_v8, %v20373_v44 }
 0x32a   : > { %v7270_v31 = vpop.permute.xlu0 %7269  ;;  %v4354_v7 = vcombine.low %v27905_v9, %v27904_v43  ;;  %v6565_v39 = vrot.slane %v6555_v32, %v20373_v44  ;;  %v8433_v2 = vunpack.c.l.s4 %v19433_v22  ;;  %v9695_v23 = vsel %vm9694_vm4, %v9605_v34, 0.0 }
 0x32b   : > { %8223 = vmatmul.mubr.bf16.gmra.mrb[28].mxu1 %v7823_v6  ;;  %v6686_v62 = vcombine.low %v6677_v14, %v6684_v55  ;;  %v6558_v6 = vcombine.low %v22713_v48, %v22722_v36  ;;  %v6546_v35 = vrot.slane %v6538_v40, %v20373_v44  ;;  %v4320_v0 = vcombine.low %v27902_v17, %v4319_v26 }
 0x32c   : > { %v6105_v47 = vpop.permute.xlu1 %6104  ;;  %v6557_v14 = vcombine.low %v22697_v5, %v22707_v30  ;;  %v6556_v48 = vcombine.low %v22689_v4, %v22693_v27  ;;  %v4368_v15 = vrot.slane %v4354_v7, %v20373_v44  ;;  %v8434_v20 = vunpack.c.0.s8 %v8433_v2  ;;  %v27912_v2 = vld [vmem:[#allocation38_spill] sm:$0xff] }
 0x32d   : > { %v23278_v60 = vrot.slane %v6686_v62, %v20373_v44  ;;  %v6586_v36 = vrot.slane %v6558_v6, %v20373_v44  ;;  %v6554_v62 = vcombine.low %v6546_v35, %v6553_v18 }
 0x32e   : > { %v6579_v10 = vrot.slane %v6557_v14, %v20373_v44  ;;  %v6572_v27 = vrot.slane %v6556_v48, %v20373_v44  ;;  %v4369_v33 = vcombine.low %v27906_v58, %v4368_v15  ;;  %v27913_v15 = vld [vmem:[#allocation39_spill] sm:$0xff] }
 0x32f   : > { %v6701_v38 = vcombine.low %v23275_v12, %v23278_v60  ;;  %v7866_v5 = vsel %vm1699_vm10, %v6554_v62, %v23235_v1  ;;  %v18610_v62 = vpack.c.bf16 %v9695_v23, %v9695_v23 }
 0x330   : > { %v23288_v13 = vpop.permute.xlu0 %6994  ;;  %v23298_v3 = vpop.permute.xlu1 %5733  ;;  %v7896_v4 = vsel %vm1831_vm14, %v7866_v5, %v7270_v31  ;;  %v6588_v57 = vcombine.low %v6579_v10, %v6586_v36  ;;  %v6587_v52 = vcombine.low %v6565_v39, %v6572_v27  ;;  %v27910_v5 = vld [vmem:[#allocation8_spill] sm:$0xff] }
 0x332   : > { %v6602_v49 = vrot.slane %v6588_v57, %v20373_v44 }
 0x334   : > { %v5103_v59 = vpop.permute.xlu1 %5102 }
 0x335   : > { %v7761_v24 = vsel %vm1699_vm10, %v4320_v0, %v5103_v59  ;;  %v27907_v59 = vld [vmem:[#allocation3_spill] sm:$0xff] }
 0x336   : > { %v7791_v30 = vsel %vm1831_vm14, %v7761_v24, %v5732_v56  ;;  %v9679_v56 = vsel %vm9604_vm3, 0.0, %v9605_v34  ;;  %v23348_v17 = vsub.s32 %v8434_v20, %v27907_v59  ;;  %v27909_v24 = vld [vmem:[#allocation5_spill] sm:$0xff] }
 0x337   : > { %v7826_v1 = vsel %vm7800_vm2, %v7791_v30, %v6105_v47  ;;  %v9710_v8 = vpack.c.bf16 %v9695_v23, %v9679_v56  ;;  %v6595_v47 = vrot.slane %v6587_v52, %v20373_v44  ;;  %v27916_v20 = vld [vmem:[#allocation41_spill] sm:$0xff] }
 0x338   : > { %v23300_v41 = vpop.permute.xlu0 %7271  ;;  %v5105_v31 = vpop.permute.xlu1 %5104  ;;  %27908 = vst [vmem:[#allocation50_spill] sm:$0xff] %v23348_v17 }
 0x339   : > { %v6603_v35 = vcombine.low %v6595_v47, %v6602_v49  ;;  %v9746_v37 = vrot.slane %v9710_v8, %v20373_v44 }
 0x33b   : > { %v7869_v14 = vsel %vm1699_vm10, %v6603_v35, %v23288_v13 }
 0x33c   : > { %v6107_v32 = vpop.permute.xlu1 %6106  ;;  %v7898_v43 = vsel %vm1831_vm14, %v7869_v14, %v23300_v41 }
 0x340   : > { %v23385_v59 = vpop.permute.xlu1 %5735 }
 0x342   : > { %v23302_v45 = vpop.f32.mrb[56].mxu0 }
 0x343   : > { %v19169_v16 = vpop.f32.mrb[57].mxu0 }
 0x344   : > { %v23305_v28 = vpop.f32.mrb[58].mxu0  ;;  %v23316_v55 = vpop.permute.xlu0 %6996 }
 0x345   : > { %v19170_v46 = vpop.f32.mrb[59].mxu0 }
 0x346   : > { %v7764_v46 = vsel %vm1699_vm10, %v4369_v33, %v5105_v31  ;;  %v27917_v33 = vld [vmem:[#allocation22_spill] sm:$0xff] }
 0x347   : > { %v7793_v7 = vsel %vm1831_vm14, %v7764_v46, %v23298_v3  ;;  %v27911_v3 = vld [vmem:[#allocation36_spill] sm:$0xff] }
 0x348   : > { %v7829_v13 = vsel %vm7800_vm2, %v7793_v7, %v6107_v32  ;;  %v6604_v22 = vcombine.low %v27911_v3, %v22753_v51 }
 0x34f   : > { %v7563_v53 = vpop.permute.xlu0 %7562 }
 0x350   : > { %v7930_v50 = vsel %vm7800_vm2, %v7896_v4, %v7563_v53  ;;  %v9754_v4 = vcombine.high %v9746_v37, %v9746_v37  ;;  %v9753_v53 = vrot.slane %v18610_v62, %v20373_v44  ;;  %v6614_v62 = vrot.slane %v6604_v22, %v20373_v44 }
 0x351   : > { %8230 = vmatprep.mubr.bf16.mxu1 %v7930_v50  ;;  %v6605_v50 = vcombine.low %v27913_v15, %v27912_v2 }
 0x352   : > { %8231 = vmatmul.mubr.bf16.gmra.mrb[32].mxu1 %v7826_v1  ;;  %v23371_v1 = vrot.slane %v9746_v37, %v20373_v44  ;;  %v27920_v37 = vld [vmem:[#allocation21_spill] sm:$0xff] }
 0x353   : > { %v18860_v25 = vpop.f32.mrb[0].mxu1 }
 0x354   : > { %v18861_v40 = vpop.f32.mrb[1].mxu1  ;;  %27914 = vst [vmem:[#allocation53_spill] sm:$0xff] %v23371_v1  ;;  %v10426_v22 = vshrl.u32 %v23371_v1, 16 }
 0x355   : > { %v18862_v16 = vadd.f32 %v18861_v40, %v18860_v25  ;;  %v18863_v26 = vpop.f32.mrb[2].mxu1  ;;  %v27915_v25 = vld [vmem:[#allocation40_spill] sm:$0xff]  ;;  %v27918_v40 = vld [vmem:[#allocation23_spill] sm:$0xff] }
 0x356   : > { %v18864_v6 = vpop.f32.mrb[3].mxu1  ;;  %v6606_v58 = vcombine.low %v27916_v20, %v27915_v25  ;;  %v6607_v51 = vcombine.low %v27918_v40, %v27917_v33 }
 0x357   : > { %v8169_v18 = vadd.f32 %v18862_v16, %v23342_v63  ;;  %v18865_v0 = vadd.f32 %v18864_v6, %v18863_v26  ;;  %v23383_v16 = vrot.slane %v9754_v4, %v20373_v44 }
 0x359   : > { %v8305_v48 = vadd.f32 %v27909_v24, %v8169_v18  ;;  %v8172_v36 = vadd.f32 %v18865_v0, %v23342_v63  ;;  %v9755_v18 = vcombine.high %v9753_v53, %v9753_v53  ;;  %v27919_v0 = vld [vmem:[#allocation29_spill] sm:$0xff]  ;;  %v10431_v2 = vshll.u32 %v23383_v16, 16 }
 0x35a   : > { %v7565_v9 = vpop.permute.xlu0 %7564  ;;  %v4403_v32 = vcombine.low %v27920_v37, %v27919_v0 }
 0x35b   : > { %v7933_v39 = vsel %vm7800_vm2, %v7898_v43, %v7565_v9  ;;  %v8431_v10 = vcombine.high %v8305_v48, %v8305_v48  ;;  %v8438_v34 = vrot.slane %v8305_v48, %v23348_v17  ;;  %v8308_v30 = vadd.f32 %v27910_v5, %v8172_v36 }
 0x35c   : > { %8238 = vmatprep.mubr.bf16.mxu1 %v7933_v39  ;;  %v6621_v43 = vrot.slane %v6605_v50, %v20373_v44  ;;  %v9784_v39 = vcombine.high %v23371_v1, %v23371_v1  ;;  %v10434_v50 = vshrl.u32 %v23383_v16, 16 }
 0x35d   : > { %8239 = vmatmul.mubr.bf16.gmra.mrb[36].mxu1 %v7829_v13  ;;  %v8445_v27 = vrot.slane %v8431_v10, %v23348_v17  ;;  %v8446_v57 = vcombine.high %v8438_v34, %v8438_v34  ;;  %v8448_v41 = vcombine.high %v8308_v30, %v8308_v30  ;;  %v8455_v52 = vrot.slane %v8308_v30, %v23348_v17 }
 0x35e   : > { %v8945_v23 = vmax.f32 %v8438_v34, 0.0  ;;  %v6628_v10 = vrot.slane %v6606_v58, %v20373_v44  ;;  %v6635_v34 = vrot.slane %v6607_v51, %v20373_v44  ;;  %v9786_v30 = vcombine.high %v23383_v16, %v23383_v16 }
 0x35f   : > { %v8447_v56 = vcombine.high %v8445_v27, %v8445_v27  ;;  %v8946_v31 = vmax.f32 %v8446_v57, 0.0  ;;  %v23374_v49 = vrot.slane %v8448_v41, %v23348_v17  ;;  %v8463_v47 = vcombine.high %v8455_v52, %v8455_v52 }
 0x360   : > { %v23380_v8 = vpop.f32.mrb[60].mxu0  ;;  %v8947_v26 = vmax.f32 %v8445_v27, 0.0  ;;  %v8949_v14 = vmax.f32 %v8455_v52, 0.0  ;;  %v23403_v27 = vrot.slane %v9753_v53, %v20373_v44  ;;  %v23406_v57 = vrot.slane %v9755_v18, %v20373_v44 }
 0x361   : > { %v8948_v46 = vmax.f32 %v8447_v56, 0.0  ;;  %v9141_v6 = vcombine.low %v8945_v23, %v8946_v31  ;;  %v19173_v35 = vpop.f32.mrb[61].mxu0  ;;  %v8950_v24 = vmax.f32 %v8463_v47, 0.0  ;;  %v8951_v48 = vmax.f32 %v23374_v49, 0.0  ;;  %v23413_v23 = vpop.permute.xlu1 %6108 }
 0x362   : > { %v23390_v36 = vpop.f32.mrb[62].mxu0  ;;  %27921 = vst [vmem:[#allocation52_spill] sm:$0xff] %v23403_v27  ;;  %27922 = vst [vmem:[#allocation49_spill] sm:$0xff] %v23406_v57  ;;  %v10439_v52 = vshll.u32 %v9784_v39, 16  ;;  %v10442_v56 = vshrl.u32 %v9784_v39, 16  ;;  %v10447_v31 = vshll.u32 %v9786_v30, 16  ;;  %v4417_v58 = vrot.slane %v4403_v32, %v20373_v44 }
 0x363   : > { %v9142_v9 = vcombine.low %v8947_v26, %v8948_v46  ;;  %v19174_v7 = vpop.f32.mrb[63].mxu0  ;;  %v9158_v5 = vcombine.low %v8949_v14, %v8950_v24  ;;  %v9149_v13 = vrot.slane %v9141_v6, %v23348_v17  ;;  %v9172_v3 = vrot.slane %v8951_v48, %v23348_v17 }
 0x364   : > { %v10450_v25 = vshrl.u32 %v9786_v30, 16  ;;  %v10455_v20 = vshll.u32 %v23403_v27, 16  ;;  %v6636_v40 = vcombine.low %v6614_v62, %v6621_v43  ;;  %v6637_v51 = vcombine.low %v6628_v10, %v6635_v34 }
 0x365   : > { %v9156_v4 = vrot.slane %v9142_v9, %v23348_v17  ;;  %v9165_v41 = vrot.slane %v9158_v5, %v23348_v17  ;;  %v23419_v26 = vcombine.high %v23403_v27, %v23403_v27  ;;  %v10411_v6 = vcombine.high %v23406_v57, %v23406_v57  ;;  %v5107_v9 = vpop.permute.xlu1 %5106 }
 0x366   : > { %v12562_v35 = vcombine.low %v23383_v16, %v9784_v39  ;;  %v23427_v18 = vsel %vm20462_vm1, %v10426_v22, %v10431_v2  ;;  %v23432_v37 = vsel %vm20462_vm1, %v10434_v50, %v10439_v52  ;;  %v23436_v32 = vsel %vm20462_vm1, %v10442_v56, %v10447_v31 }
 0x367   : > { %v9157_v15 = vcombine.low %v9149_v13, %v9156_v4  ;;  %v9173_v53 = vcombine.low %v9165_v41, %v9172_v3  ;;  %27923 = vst [vmem:[#allocation42_spill] sm:$0xff] %v23427_v18  ;;  %27924 = vst [vmem:[#allocation55_spill] sm:$0xff] %v23432_v37  ;;  %v23440_v14 = vsel %vm20462_vm1, %v10450_v25, %v10455_v20  ;;  %v10458_v62 = vshrl.u32 %v23403_v27, 16  ;;  %v7274_v4 = vpop.permute.xlu0 %7273 }
 0x368   : > { %27925 = vst [vmem:[#allocation54_spill] sm:$0xff] %v23436_v32  ;;  %27926 = vst [vmem:[#allocation57_spill] sm:$0xff] %v23440_v14  ;;  %v12563_v48 = vcombine.low %v9786_v30, %v23403_v27  ;;  %v10463_v43 = vshll.u32 %v23406_v57, 16  ;;  %v10466_v10 = vshrl.u32 %v23406_v57, 16  ;;  %v10471_v34 = vshll.u32 %v23419_v26, 16 }
 0x369   : > { %v9607_v33 = vrot.slane %v9157_v15, 7  ;;  %v9608_v47 = vrot.slane %v9173_v53, 7  ;;  %v6644_v5 = vrot.slane %v6636_v40, %v20373_v44  ;;  %v6651_v13 = vrot.slane %v6637_v51, %v20373_v44  ;;  %v27929_v40 = vld [vmem:[#allocation28_spill] sm:$0xff] }
 0x36a   : > { %v11933_v41 = vcombine.low %v23427_v18, %v23432_v37  ;;  %v11934_v30 = vcombine.low %v23436_v32, %v23440_v14  ;;  %v10479_v2 = vshll.u32 %v10411_v6, 16  ;;  %v12564_v15 = vcombine.low %v23406_v57, %v23419_v26 }
 0x36b   : > { %v9680_v46 = vsel %vm9604_vm3, 0.0, %v9607_v33  ;;  %v9609_v0 = vsel %vm9604_vm3, %v9607_v33, %v9608_v47  ;;  %v12572_v50 = vrot.slane %v12562_v35, %v20373_v44  ;;  %v12579_v52 = vrot.slane %v12563_v48, %v20373_v44 }
 0x36c   : > { %v9696_v24 = vsel %vm9694_vm4, %v9609_v0, 0.0  ;;  %v23462_v56 = vsel %vm20462_vm1, %v10458_v62, %v10463_v43  ;;  %v10474_v53 = vshrl.u32 %v23419_v26, 16  ;;  %v23470_v33 = vsel %vm20462_vm1, %v10466_v10, %v10471_v34  ;;  %v23475_v0 = vpop.permute.xlu1 %5108 }
 0x36d   : > { %v9711_v7 = vpack.c.bf16 %v9696_v24, %v9680_v46  ;;  %v18611_v39 = vpack.c.bf16 %v9696_v24, %v9696_v24  ;;  %27927 = vst [vmem:[#allocation56_spill] sm:$0xff] %v23462_v56  ;;  %27928 = vst [vmem:[#allocation59_spill] sm:$0xff] %v23470_v33  ;;  %v4418_v51 = vcombine.low %v27929_v40, %v4417_v58 }
 0x36e   : > { %v11943_v47 = vrot.slane %v11933_v41, %v20373_v44  ;;  %v11950_v46 = vrot.slane %v11934_v30, %v20373_v44  ;;  %v6652_v35 = vcombine.low %v6644_v5, %v6651_v13  ;;  %v23484_v62 = vrot.slane %v12564_v15, %v20373_v44  ;;  %v6999_v43 = vpop.permute.xlu0 %6998 }
 0x36f   : > { %v9794_v3 = vrot.slane %v9711_v7, %v20373_v44  ;;  %v9801_v22 = vrot.slane %v18611_v39, %v20373_v44  ;;  %v12594_v58 = vcombine.low %v12572_v50, %v12579_v52  ;;  %v23491_v39 = vsel %vm20462_vm1, %v10474_v53, %v10479_v2 }
 0x370   : > { %27930 = vst [vmem:[#allocation58_spill] sm:$0xff] %v23484_v62  ;;  %27931 = vst [vmem:[#allocation61_spill] sm:$0xff] %v23491_v39  ;;  %v11935_v10 = vcombine.low %v23462_v56, %v23470_v33  ;;  %v7767_v34 = vsel %vm1699_vm10, %v4418_v51, %v5107_v9  ;;  %v7872_v30 = vsel %vm1699_vm10, %v6652_v35, %v23316_v55  ;;  %v19362_v9 = vld [vmem:[%s27416_s5 + $0x80] sm:$0xff]   ;;  %v5738_v40 = vpop.permute.xlu1 %5737  ;;  %v19363_v35 = vld [vmem:[%s27416_s5 + $0x88] sm:$0xff]  }
 0x371   : > { %v9802_v31 = vcombine.high %v9794_v3, %v9794_v3  ;;  %v9803_v25 = vcombine.high %v9801_v22, %v9801_v22  ;;  %v23466_v20 = vrot.slane %v9794_v3, %v20373_v44  ;;  %v23487_v7 = vrot.slane %v9801_v22, %v20373_v44  ;;  %19196 = vmatpush3.bf16.msra.mxu0 %v19362_v9 }
 0x372   : > { %v11965_v3 = vcombine.low %v11943_v47, %v11950_v46  ;;  %v7795_v52 = vsel %vm1831_vm14, %v7767_v34, %v23385_v59  ;;  %v23524_v53 = vrot.slane %v12594_v58, %v20373_v44  ;;  %19197 = vmatprep.subr.bf16.mxu0 %v27698_v61  ;;  %v7900_v58 = vsel %vm1831_vm14, %v7872_v30, %v7274_v4 }
 0x373   : > { %v23478_v24 = vrot.slane %v9802_v31, %v20373_v44  ;;  %v23481_v48 = vrot.slane %v9803_v25, %v20373_v44  ;;  %v10483_v13 = vshrl.u32 %v23466_v20, 16  ;;  %v23515_v55 = vcombine.high %v23466_v20, %v23466_v20 }
 0x374   : > { %27933 = vst [vmem:[#allocation44_spill] sm:$0xff] %v23524_v53  ;;  %v11957_v25 = vrot.slane %v11935_v10, %v20373_v44  ;;  %v6111_v30 = vpop.permute.xlu1 %6110 }
 0x375   : > { %v12565_v5 = vcombine.low %v10411_v6, %v23478_v24  ;;  %v10488_v41 = vshll.u32 %v23478_v24, 16  ;;  %v18737_v22 = vcombine.high %v23466_v20, %v23478_v24  ;;  %v12612_v2 = vcombine.low %v23487_v7, %v23481_v48  ;;  %19198 = vmatpush3.bf16.msra.mxu0 %v19363_v35 }
 0x376   : > { %v23519_v50 = vcombine.high %v23478_v24, %v23478_v24  ;;  %v11379_v59 = vcombine.low %v23478_v24, %v23515_v55 }
 0x377   : > { %v12593_v6 = vrot.slane %v12565_v5, %v20373_v44  ;;  %v23511_v15 = vsel %vm20462_vm1, %v10483_v13, %v10488_v41  ;;  %v23531_v47 = vrot.slane %v18737_v22, %v20373_v44  ;;  %v23534_v46 = vrot.slane %v12612_v2, %v20373_v44 }
 0x378   : > { %27932 = vst [vmem:[#allocation60_spill] sm:$0xff] %v23511_v15  ;;  %v11936_v31 = vcombine.low %v23491_v39, %v23511_v15  ;;  %v11380_v5 = vcombine.low %v23519_v50, %v23487_v7  ;;  %v11973_v22 = vrot.slane %v11965_v3, %v20373_v44  ;;  %v7832_v2 = vsel %vm7800_vm2, %v7795_v52, %v23413_v23  ;;  %v27934_v52 = vld [vmem:[#allocation33_spill] sm:$0xff] }
 0x379   : > { %v12595_v51 = vcombine.low %v23484_v62, %v12593_v6  ;;  %v23552_v6 = vrot.slane %v11379_v59, %v20373_v44 }
 0x37a   : > { %v7567_v10 = vpop.permute.xlu0 %7566  ;;  %v11964_v34 = vrot.slane %v11936_v31, %v20373_v44  ;;  %v23555_v4 = vrot.slane %v11380_v5, %v20373_v44  ;;  %v5111_v5 = vpop.permute.xlu1 %5110 }
 0x37b   : > { %v7936_v13 = vsel %vm7800_vm2, %v7900_v58, %v7567_v10  ;;  %v12609_v41 = vrot.slane %v12595_v51, %v20373_v44  ;;  %v10507_v10 = vshrl.u32 %v23519_v50, 16 }
 0x37c   : > { %8246 = vmatprep.mubr.bf16.mxu1 %v7936_v13  ;;  %v11966_v9 = vcombine.low %v11957_v25, %v11964_v34  ;;  %v27935_v25 = vld [vmem:[#allocation31_spill] sm:$0xff]  ;;  %v10512_v34 = vshll.u32 %v23487_v7, 16 }
 0x37d   : > { %8247 = vmatmul.mubr.bf16.gmra.mrb[40].mxu1 %v7832_v2  ;;  %v12610_v31 = vcombine.low %v23524_v53, %v12609_v41  ;;  %v4451_v59 = vcombine.low %v27935_v25, %v27934_v52  ;;  %v27937_v2 = vld [vmem:[#allocation34_spill] sm:$0xff] }
 0x37e   : > { %v11980_v3 = vrot.slane %v11966_v9, %v20373_v44  ;;  %v23571_v35 = vsel %vm20462_vm1, %v10507_v10, %v10512_v34  ;;  %v7276_v41 = vpop.permute.xlu0 %7275 }
 0x37f   : > { %13165 = vrot.lane.b32.xlu1 %v12610_v31, %s19428_s16  ;;  %27936 = vst [vmem:[#allocation43_spill] sm:$0xff] %v23571_v35  ;;  %v4459_v13 = vrot.slane %v4451_v59, %v20373_v44  ;;  %v5740_v31 = vpop.permute.xlu1 %5739 }
 0x380   : > { %v11981_v58 = vcombine.low %v11973_v22, %v11980_v3  ;;  %v7875_v22 = vsel %vm1699_vm10, %v6701_v38, %v6999_v43 }
 0x381   : > { %v4467_v9 = vcombine.low %v4459_v13, %v27937_v2  ;;  %v7902_v52 = vsel %vm1831_vm14, %v7875_v22, %v7276_v41  ;;  %v6709_v41 = vrot.slane %v6702_v19, %v20373_v44 }
 0x383   : > { %12536 = vrot.lane.b32.xlu1 %v11981_v58, %s19425_s23  ;;  %v7770_v3 = vsel %vm1699_vm10, %v4467_v9, %v23475_v0  ;;  %v6716_v11 = vrot.slane %v6709_v41, %v20373_v44 }
 0x384   : > { %v7797_v10 = vsel %vm1831_vm14, %v7770_v3, %v5738_v40 }
 0x385   : > { %v7835_v12 = vsel %vm7800_vm2, %v7797_v10, %v6111_v30  ;;  %v6113_v10 = vpop.permute.xlu1 %6112 }
 0x38b   : > { %v7569_v25 = vpop.permute.xlu0 %7568  ;;  %v23582_v58 = vpop.f32.mrb[64].mxu0 }
 0x38c   : > { %27938 = vst [vmem:[#allocation45_spill] sm:$0xff] %v23582_v58  ;;  %v7939_v59 = vsel %vm7800_vm2, %v7902_v52, %v7569_v25  ;;  %v19177_v34 = vpop.f32.mrb[65].mxu0  ;;  %v18866_v13 = vpop.f32.mrb[4].mxu1  ;;  %v27940_v52 = vld [vmem:[#allocation26_spill] sm:$0xff]  ;;  %v8464_v25 = vcombine.high %v23374_v49, %v23374_v49 }
 0x38d   : > { %8254 = vmatprep.mubr.bf16.mxu1 %v7939_v59  ;;  %v23587_v60 = vpop.f32.mrb[66].mxu0  ;;  %v18867_v38 = vpop.f32.mrb[5].mxu1  ;;  %v4482_v30 = vrot.slane %v27940_v52, %v20373_v44  ;;  %v27941_v59 = vld [vmem:[#allocation30_spill] sm:$0xff] }
 0x38e   : > { %27939 = vst [vmem:[#allocation68_spill] sm:$0xff] %v23587_v60  ;;  %8255 = vmatmul.mubr.bf16.gmra.mrb[44].mxu1 %v7835_v12  ;;  %v19178_v43 = vpop.f32.mrb[67].mxu0  ;;  %v18868_v0 = vadd.f32 %v18867_v38, %v18866_v13  ;;  %v18869_v2 = vpop.f32.mrb[6].mxu1  ;;  %v8952_v49 = vmax.f32 %v8464_v25, 0.0 }
 0x38f   : > { %v7001_v40 = vpop.permute.xlu0 %7000  ;;  %v18870_v9 = vpop.f32.mrb[7].mxu1  ;;  %v7773_v12 = vsel %vm1699_vm10, %v4482_v30, %v5111_v5 }
 0x390   : > { %v8177_v22 = vadd.f32 %v18868_v0, %v23342_v63  ;;  %v18871_v3 = vadd.f32 %v18870_v9, %v18869_v2  ;;  %v7799_v19 = vsel %vm1831_vm14, %v7773_v12, %v5740_v31  ;;  %v27942_v0 = vld [vmem:[#allocation32_spill] sm:$0xff]  ;;  %v7878_v5 = vsel %vm1699_vm10, %v6716_v11, %v7001_v40 }
 0x391   : > { %v7838_v9 = vsel %vm7800_vm2, %v7799_v19, %v6113_v10  ;;  %v10504_v10 = vshll.u32 %v23519_v50, 16  ;;  %v10496_v11 = vshll.u32 %v23515_v55, 16  ;;  %v23620_v50 = vcombine.high %v23481_v48, %v23481_v48 }
 0x392   : > { %v8313_v34 = vadd.f32 %v27941_v59, %v8177_v22  ;;  %v8180_v13 = vadd.f32 %v18871_v3, %v23342_v63  ;;  %v13191_v22 = vcombine.low %v23466_v20, %v23478_v24  ;;  %v10491_v3 = vshrl.u32 %v23478_v24, 16 }
 0x393   : > { %v7278_v42 = vpop.permute.xlu0 %7277 }
 0x394   : > { %v8465_v38 = vcombine.high %v8313_v34, %v8313_v34  ;;  %v8472_v43 = vrot.slane %v8313_v34, %v23348_v17  ;;  %v8316_v2 = vadd.f32 %v27942_v0, %v8180_v13  ;;  %v7904_v31 = vsel %vm1831_vm14, %v7878_v5, %v7278_v42 }
 0x396   : > { %v8479_v41 = vrot.slane %v8465_v38, %v23348_v17  ;;  %v8480_v52 = vcombine.high %v8472_v43, %v8472_v43  ;;  %v8953_v30 = vmax.f32 %v8472_v43, 0.0  ;;  %v8482_v34 = vcombine.high %v8316_v2, %v8316_v2 }
 0x397   : > { %v7571_v59 = vpop.permute.xlu0 %7570  ;;  %v8489_v13 = vrot.slane %v8316_v2, %v23348_v17  ;;  %v10499_v38 = vshrl.u32 %v23515_v55, 16  ;;  %v10520_v2 = vshll.u32 %v23481_v48, 16 }
 0x398   : > { %v7942_v25 = vsel %vm7800_vm2, %v7904_v31, %v7571_v59  ;;  %v8481_v12 = vcombine.high %v8479_v41, %v8479_v41  ;;  %v8954_v19 = vmax.f32 %v8480_v52, 0.0  ;;  %v8955_v0 = vmax.f32 %v8479_v41, 0.0 }
 0x399   : > { %8262 = vmatprep.mubr.bf16.mxu1 %v7942_v25  ;;  %v9174_v24 = vcombine.low %v8952_v49, %v8953_v30  ;;  %v8497_v40 = vcombine.high %v8489_v13, %v8489_v13  ;;  %v8957_v5 = vmax.f32 %v8489_v13, 0.0  ;;  %v23624_v41 = vsel %vm20462_vm1, %v10499_v38, %v10504_v10 }
 0x39a   : > { %8263 = vmatmul.mubr.bf16.gmra.mrb[48].mxu1 %v7838_v9  ;;  %v8956_v42 = vmax.f32 %v8481_v12, 0.0  ;;  %v9175_v43 = vcombine.low %v8954_v19, %v8955_v0  ;;  %27943 = vst [vmem:[#allocation62_spill] sm:$0xff] %v23624_v41  ;;  %v10515_v49 = vshrl.u32 %v23487_v7, 16  ;;  %v8496_v9 = vrot.slane %v8482_v34, %v23348_v17 }
 0x39b   : > { %v8958_v23 = vmax.f32 %v8497_v40, 0.0  ;;  %v9182_v52 = vrot.slane %v9174_v24, %v23348_v17  ;;  %v23632_v31 = vcombine.high %v23487_v7, %v23487_v7  ;;  %v23636_v59 = vsel %vm20462_vm1, %v10491_v3, %v10496_v11 }
 0x39c   : > { %v9189_v55 = vrot.slane %v9175_v43, %v23348_v17  ;;  %v9191_v30 = vcombine.low %v8956_v42, %v8957_v5  ;;  %27944 = vst [vmem:[#allocation47_spill] sm:$0xff] %v23636_v59  ;;  %v23642_v12 = vsel %vm20462_vm1, %v10515_v49, %v10520_v2  ;;  %v11982_v34 = vcombine.low %v23636_v59, %v23624_v41 }
 0x39d   : > { %v9205_v25 = vrot.slane %v8958_v23, %v23348_v17  ;;  %27945 = vst [vmem:[#allocation46_spill] sm:$0xff] %v23642_v12  ;;  %v11983_v19 = vcombine.low %v23571_v35, %v23642_v12  ;;  %v8498_v0 = vcombine.high %v8496_v9, %v8496_v9  ;;  %v13199_v3 = vrot.slane %v13191_v22, %v20373_v44 }
 0x39e   : > { %v9190_v13 = vcombine.low %v9182_v52, %v9189_v55  ;;  %v9198_v10 = vrot.slane %v9191_v30, %v23348_v17  ;;  %v10536_v40 = vshll.u32 %v23620_v50, 16  ;;  %v10523_v43 = vshrl.u32 %v23481_v48, 16 }
 0x39f   : > { %v10528_v5 = vshll.u32 %v23632_v31, 16  ;;  %v10531_v2 = vshrl.u32 %v23632_v31, 16  ;;  %v11992_v52 = vrot.slane %v11982_v34, %v20373_v44  ;;  %v11999_v55 = vrot.slane %v11983_v19, %v20373_v44 }
 0x3a0   : > { %v9206_v24 = vcombine.low %v9198_v10, %v9205_v25  ;;  %v9610_v11 = vrot.slane %v9190_v13, 7  ;;  %v8960_v22 = vmax.f32 %v8498_v0, 0.0  ;;  %v13207_v10 = vcombine.low %v13199_v3, %v23531_v47 }
 0x3a1   : > { %v23650_v38 = vpop.f32.mrb[68].mxu0  ;;  %v23663_v25 = vsel %vm20462_vm1, %v10531_v2, %v10536_v40  ;;  %v11381_v51 = vcombine.low %v23481_v48, %v23632_v31  ;;  %v18738_v34 = vcombine.high %v23487_v7, %v23481_v48  ;;  %v8959_v19 = vmax.f32 %v8496_v9, 0.0 }
 0x3a2   : > { %27946 = vst [vmem:[#allocation70_spill] sm:$0xff] %v23650_v38  ;;  %v9611_v23 = vrot.slane %v9206_v24, 7  ;;  %v19181_v42 = vpop.f32.mrb[69].mxu0  ;;  %27948 = vst [vmem:[#allocation72_spill] sm:$0xff] %v23663_v25  ;;  %v9681_v24 = vsel %vm9604_vm3, 0.0, %v9610_v11  ;;  %v23673_v3 = vsel %vm20462_vm1, %v10523_v43, %v10528_v5  ;;  %v12014_v2 = vcombine.low %v11992_v52, %v11999_v55 }
 0x3a3   : > { %v23655_v49 = vpop.f32.mrb[70].mxu0  ;;  %27949 = vst [vmem:[#allocation71_spill] sm:$0xff] %v23673_v3  ;;  %v11984_v40 = vcombine.low %v23673_v3, %v23663_v25  ;;  %v13215_v48 = vrot.slane %v13207_v10, %v20373_v44  ;;  %v23683_v7 = vrot.slane %v11381_v51, %v20373_v44  ;;  %v12635_v9 = vrot.slane %v18738_v34, %v20373_v44 }
 0x3a4   : > { %27947 = vst [vmem:[#allocation69_spill] sm:$0xff] %v23655_v49  ;;  %v9612_v30 = vsel %vm9604_vm3, %v9610_v11, %v9611_v23  ;;  %v19182_v13 = vpop.f32.mrb[71].mxu0  ;;  %v23677_v11 = vcombine.low %v8959_v19, %v8960_v22  ;;  %v27951_v55 = vcombine.low %v23531_v47, %v23534_v46  ;;  %v27952_v51 = vcombine.low %v23552_v6, %v23555_v4 }
 0x3a5   : > { %v9697_v42 = vsel %vm9694_vm4, %v9612_v30, 0.0  ;;  %27950 = vst [vmem:[#allocation74_spill] sm:$0xff] %v23683_v7  ;;  %v23702_v34 = vrot.slane %v11984_v40, %v20373_v44 }
 0x3a6   : > { %v9712_v0 = vpack.c.bf16 %v9697_v42, %v9681_v24  ;;  %v18612_v23 = vpack.c.bf16 %v9697_v42, %v9697_v42  ;;  %v23693_v22 = vrot.slane %v27951_v55, %v20373_v44  ;;  %v23699_v10 = vrot.slane %v27952_v51, %v20373_v44 }
 0x3a7   : > { %v18872_v62 = vpop.f32.mrb[8].mxu1 }
 0x3a8   : > { %v9842_v30 = vrot.slane %v9712_v0, %v20373_v44  ;;  %v9849_v13 = vrot.slane %v18612_v23, %v20373_v44  ;;  %v18873_v33 = vpop.f32.mrb[9].mxu1  ;;  %27953 = vst [vmem:[#allocation73_spill] sm:$0xff] %v23699_v10  ;;  %v23705_v0 = vrot.slane %v12014_v2, %v20373_v44  ;;  %v9215_v23 = vrot.slane %v23677_v11, %v23348_v17 }
 0x3a9   : > { %v18875_v52 = vpop.f32.mrb[10].mxu1  ;;  %v18874_v42 = vadd.f32 %v18873_v33, %v18872_v62 }
 0x3aa   : > { %v9850_v43 = vcombine.high %v9842_v30, %v9842_v30  ;;  %v9851_v5 = vcombine.high %v9849_v13, %v9849_v13  ;;  %v23687_v24 = vrot.slane %v9842_v30, %v20373_v44  ;;  %v18876_v19 = vpop.f32.mrb[11].mxu1  ;;  %v23715_v6 = vrot.slane %v9849_v13, %v20373_v44  ;;  %v27954_v13 = vld [vmem:[#allocation35_spill] sm:$0xff] }
 0x3ab   : > { %v18877_v33 = vadd.f32 %v18876_v19, %v18875_v52  ;;  %v8185_v40 = vadd.f32 %v18874_v42, %v23342_v63  ;;  %v27955_v19 = vld [vmem:[#allocation37_spill] sm:$0xff] }
 0x3ac   : > { %v23710_v47 = vrot.slane %v9850_v43, %v20373_v44  ;;  %v13192_v62 = vcombine.low %v23632_v31, %v23687_v24  ;;  %v23718_v4 = vrot.slane %v9851_v5, %v20373_v44  ;;  %v23723_v2 = vcombine.high %v23687_v24, %v23687_v24 }
 0x3ad   : > { %v8188_v11 = vadd.f32 %v18877_v33, %v23342_v63  ;;  %v8321_v5 = vadd.f32 %v27954_v13, %v8185_v40  ;;  %v10540_v55 = vshrl.u32 %v23687_v24, 16  ;;  %v23747_v13 = vcombine.high %v23715_v6, %v23715_v6 }
 0x3ae   : > { %v13206_v30 = vrot.slane %v13192_v62, %v20373_v44  ;;  %v14167_v43 = vcombine.low %v23620_v50, %v23710_v47  ;;  %v23731_v31 = vcombine.high %v23710_v47, %v23710_v47  ;;  %v12614_v52 = vcombine.low %v23710_v47, %v23723_v2 }
 0x3af   : > { %v10545_v42 = vshll.u32 %v23710_v47, 16  ;;  %v8324_v51 = vadd.f32 %v27955_v19, %v8188_v11  ;;  %v8499_v39 = vcombine.high %v8321_v5, %v8321_v5  ;;  %v8506_v18 = vrot.slane %v8321_v5, %v23348_v17 }
 0x3b0   : > { %v13208_v33 = vcombine.low %v23534_v46, %v13206_v30  ;;  %v14174_v62 = vrot.slane %v14167_v43, %v20373_v44  ;;  %v12660_v50 = vcombine.low %v23731_v31, %v23715_v6  ;;  %v12642_v40 = vrot.slane %v12614_v52, %v20373_v44 }
 0x3b1   : > { %v8516_v14 = vcombine.high %v8324_v51, %v8324_v51  ;;  %v8523_v56 = vrot.slane %v8324_v51, %v23348_v17  ;;  %v8513_v30 = vrot.slane %v8499_v39, %v23348_v17  ;;  %v8514_v43 = vcombine.high %v8506_v18, %v8506_v18 }
 0x3b2   : > { %v13222_v11 = vrot.slane %v13208_v33, %v20373_v44  ;;  %v14175_v46 = vcombine.low %v23683_v7, %v14174_v62  ;;  %v12644_v19 = vcombine.low %v12635_v9, %v12642_v40  ;;  %v10548_v37 = vshrl.u32 %v23710_v47, 16 }
 0x3b3   : > { %v8530_v5 = vrot.slane %v8516_v14, %v23348_v17  ;;  %v8531_v52 = vcombine.high %v8523_v56, %v8523_v56  ;;  %v23757_v53 = vsel %vm20462_vm1, %v10540_v55, %v10545_v42  ;;  %v8515_v25 = vcombine.high %v8513_v30, %v8513_v30 }
 0x3b4   : > { %v13223_v32 = vcombine.low %v13215_v48, %v13222_v11  ;;  %27956 = vst [vmem:[#allocation48_spill] sm:$0xff] %v23757_v53  ;;  %v8961_v51 = vmax.f32 %v8506_v18, 0.0  ;;  %v8962_v12 = vmax.f32 %v8514_v43, 0.0  ;;  %v14182_v33 = vrot.slane %v14175_v46, %v20373_v44 }
 0x3b5   : > { %v8963_v62 = vmax.f32 %v8513_v30, 0.0  ;;  %v8965_v7 = vmax.f32 %v8523_v56, 0.0  ;;  %v8966_v39 = vmax.f32 %v8531_v52, 0.0  ;;  %v8967_v3 = vmax.f32 %v8530_v5, 0.0 }
 0x3b6   : > { %13538 = vrot.lane.b32.xlu1 %v13223_v32, %s19432_s14  ;;  %v8964_v9 = vmax.f32 %v8515_v25, 0.0  ;;  %v9208_v41 = vcombine.low %v8961_v51, %v8962_v12  ;;  %v14183_v14 = vcombine.low %v23699_v10, %v14182_v33  ;;  %v12658_v48 = vrot.slane %v12644_v19, %v20373_v44 }
 0x3b7   : > { %v8532_v11 = vcombine.high %v8530_v5, %v8530_v5  ;;  %v23763_v55 = vcombine.low %v8966_v39, %v8967_v3  ;;  %v12670_v18 = vrot.slane %v12660_v50, %v20373_v44  ;;  %v10553_v42 = vshll.u32 %v23723_v2, 16 }
 0x3b8   : > { %v9222_v46 = vrot.slane %v9208_v41, %v23348_v17  ;;  %v9224_v56 = vcombine.low %v8963_v62, %v8964_v9  ;;  %14426 = vrot.lane.b32.xlu0 %v14183_v14, %s19425_s23  ;;  %v12659_v32 = vcombine.low %v23693_v22, %v12658_v48  ;;  %v11382_v12 = vcombine.low %v23687_v24, %v23710_v47 }
 0x3b9   : > { %v9238_v25 = vrot.slane %v8965_v7, %v23348_v17  ;;  %v13232_v30 = vcombine.low %v12642_v40, %v12670_v18  ;;  %v23775_v3 = vsel %vm20462_vm1, %v10548_v37, %v10553_v42  ;;  %v18731_v50 = vcombine.high %v23687_v24, %v23710_v47 }
 0x3ba   : > { %27957 = vst [vmem:[#allocation64_spill] sm:$0xff] %v23775_v3  ;;  %v9223_v43 = vcombine.low %v9215_v23, %v9222_v46  ;;  %v9231_v41 = vrot.slane %v9224_v56, %v23348_v17  ;;  %13167 = vrot.lane.b32.xlu1 %v12659_v32, %s19428_s16  ;;  %v11985_v22 = vcombine.low %v23757_v53, %v23775_v3  ;;  %v23786_v7 = vmax.f32 %v8532_v11, 0.0 }
 0x3bb   : > { %v23784_v19 = vrot.slane %v11382_v12, %v20373_v44  ;;  %v11429_v40 = vcombine.low %v23715_v6, %v23718_v4  ;;  %v11438_v24 = vrot.slane %v18731_v50, %v20373_v44  ;;  %v12661_v52 = vcombine.low %v23718_v4, %v23747_v13 }
 0x3bc   : > { %v9613_v23 = vrot.slane %v9223_v43, 7  ;;  %v9239_v47 = vcombine.low %v9231_v41, %v9238_v25  ;;  %v23794_v5 = vrot.slane %v11985_v22, %v20373_v44  ;;  %v23799_v51 = vrot.slane %v13232_v30, %v20373_v44 }
 0x3bd   : > { %27958 = vst [vmem:[#allocation63_spill] sm:$0xff] %v23784_v19  ;;  %v23802_v33 = vrot.slane %v11429_v40, %v20373_v44  ;;  %v14452_v62 = vcombine.low %v23784_v19, %v11438_v24  ;;  %v18751_v39 = vcombine.high %v23715_v6, %v23718_v4  ;;  %v23811_v48 = vcombine.high %v23718_v4, %v23718_v4  ;;  %v27969_v19 = vld [vmem:[#allocation25_spill] sm:$0xff] }
 0x3be   : > { %v9614_v9 = vrot.slane %v9239_v47, 7  ;;  %v12015_v14 = vcombine.low %v23702_v34, %v23794_v5  ;;  %v23814_v11 = vrot.slane %v12661_v52, %v20373_v44  ;;  %v9682_v42 = vsel %vm9604_vm3, 0.0, %v9613_v23 }
 0x3bf   : > { %v11460_v46 = vcombine.low %v11438_v24, %v23802_v33  ;;  %v10556_v56 = vshrl.u32 %v23723_v2, 16  ;;  %v10561_v32 = vshll.u32 %v23731_v31, 16  ;;  %v10564_v30 = vshrl.u32 %v23731_v31, 16 }
 0x3c0   : > { %v9615_v12 = vsel %vm9604_vm3, %v9613_v23, %v9614_v9  ;;  %v12029_v25 = vrot.slane %v12015_v14, %v20373_v44  ;;  %v12692_v34 = vcombine.low %v12670_v18, %v23814_v11  ;;  %v23826_v43 = vrot.slane %v14452_v62, %v20373_v44 }
 0x3c1   : > { %v9698_v50 = vsel %vm9694_vm4, %v9615_v12, 0.0  ;;  %v23829_v41 = vrot.slane %v18751_v39, %v20373_v44  ;;  %v10569_v2 = vshll.u32 %v23715_v6, 16  ;;  %v23835_v23 = vsel %vm20462_vm1, %v10556_v56, %v10561_v32 }
 0x3c2   : > { %v9713_v22 = vpack.c.bf16 %v9698_v50, %v9682_v42  ;;  %v18613_v40 = vpack.c.bf16 %v9698_v50, %v9698_v50  ;;  %v12030_v24 = vcombine.low %v23705_v0, %v12029_v25  ;;  %27959 = vst [vmem:[#allocation75_spill] sm:$0xff] %v23835_v23  ;;  %v23838_v31 = vrot.slane %v11460_v46, %v20373_v44 }
 0x3c3   : > { %v23842_v18 = vsel %vm20462_vm1, %v10564_v30, %v10569_v2  ;;  %v10577_v47 = vshll.u32 %v23718_v4, 16  ;;  %v10580_v52 = vshrl.u32 %v23718_v4, 16  ;;  %v10572_v0 = vshrl.u32 %v23715_v6, 16 }
 0x3c4   : > { %27960 = vst [vmem:[#allocation77_spill] sm:$0xff] %v23838_v31  ;;  %27961 = vst [vmem:[#allocation76_spill] sm:$0xff] %v23842_v18  ;;  %v9890_v62 = vrot.slane %v9713_v22, %v20373_v44  ;;  %v23848_v39 = vrot.slane %v18613_v40, %v20373_v44  ;;  %12538 = vrot.lane.b32.xlu1 %v12030_v24, %s19425_s23  ;;  %v10585_v9 = vshll.u32 %v23747_v13, 16  ;;  %v10588_v42 = vshrl.u32 %v23747_v13, 16 }
 0x3c5   : > { %v23854_v14 = vrot.slane %v12692_v34, %v20373_v44  ;;  %v10593_v46 = vshll.u32 %v23811_v48, 16  ;;  %v12031_v4 = vcombine.low %v23835_v23, %v23842_v18  ;;  %v23863_v12 = vsel %vm20462_vm1, %v10572_v0, %v10577_v47 }
 0x3c6   : > { %v9898_v56 = vcombine.high %v9890_v62, %v9890_v62  ;;  %v9906_v32 = vrot.slane %v9890_v62, %v20373_v44  ;;  %27962 = vst [vmem:[#allocation66_spill] sm:$0xff] %v23863_v12  ;;  %v23871_v34 = vrot.slane %v23848_v39, %v20373_v44  ;;  %v23875_v50 = vsel %vm20462_vm1, %v10580_v52, %v10585_v9 }
 0x3c7   : > { %v18878_v30 = vpop.f32.mrb[12].mxu1  ;;  %27963 = vst [vmem:[#allocation65_spill] sm:$0xff] %v23875_v50  ;;  %v23878_v2 = vrot.slane %v12031_v4, %v20373_v44  ;;  %v23888_v62 = vsel %vm20462_vm1, %v10588_v42, %v10593_v46 }
 0x3c8   : > { %v23881_v22 = vrot.slane %v9898_v56, %v20373_v44  ;;  %v18879_v40 = vpop.f32.mrb[13].mxu1  ;;  %v11430_v24 = vcombine.low %v23747_v13, %v9906_v32  ;;  %v23884_v47 = vcombine.high %v9906_v32, %v9906_v32  ;;  %27964 = vst [vmem:[#allocation79_spill] sm:$0xff] %v23888_v62  ;;  %v10597_v25 = vshrl.u32 %v9906_v32, 16 }
 0x3c9   : > { %v18880_v0 = vadd.f32 %v18879_v40, %v18878_v30  ;;  %v18881_v6 = vpop.f32.mrb[14].mxu1 }
 0x3ca   : > { %v18882_v4 = vpop.f32.mrb[15].mxu1  ;;  %v23895_v56 = vrot.slane %v11430_v24, %v20373_v44  ;;  %v12662_v13 = vcombine.low %v23811_v48, %v23881_v22  ;;  %v13224_v37 = vcombine.low %v9906_v32, %v23881_v22  ;;  %v11431_v42 = vcombine.low %v23881_v22, %v23884_v47 }
 0x3cb   : > { %v8193_v30 = vadd.f32 %v18880_v0, %v23342_v63  ;;  %v18883_v40 = vadd.f32 %v18882_v4, %v18881_v6  ;;  %v18739_v52 = vcombine.high %v9906_v32, %v23881_v22  ;;  %v10602_v9 = vshll.u32 %v23881_v22, 16 }
 0x3cc   : > { %27965 = vst [vmem:[#allocation78_spill] sm:$0xff] %v23895_v56  ;;  %v23902_v46 = vpop.f32.mrb[72].mxu0  ;;  %v14453_v24 = vcombine.low %v23802_v33, %v23895_v56  ;;  %v12684_v48 = vrot.slane %v12662_v13, %v20373_v44  ;;  %v13231_v10 = vrot.slane %v13224_v37, %v20373_v44  ;;  %v23912_v3 = vrot.slane %v11431_v42, %v20373_v44 }
 0x3cd   : > { %27966 = vst [vmem:[#allocation14_spill] sm:$0xff] %v23902_v46  ;;  %v19185_v18 = vpop.f32.mrb[73].mxu0  ;;  %v8329_v0 = vadd.f32 %v27969_v19, %v8193_v30  ;;  %v8196_v6 = vadd.f32 %v18883_v40, %v23342_v63  ;;  %v23919_v32 = vrot.slane %v18739_v52, %v20373_v44  ;;  %v27971_v30 = vld [vmem:[#allocation24_spill] sm:$0xff] }
 0x3ce   : > { %27967 = vst [vmem:[#allocation80_spill] sm:$0xff] %v23912_v3  ;;  %v23914_v23 = vpop.f32.mrb[74].mxu0  ;;  %v23923_v18 = vsel %vm20462_vm1, %v10597_v25, %v10602_v9  ;;  %v14467_v4 = vrot.slane %v14453_v24, %v20373_v44  ;;  %v14990_v37 = vcombine.low %v23814_v11, %v12684_v48  ;;  %v13233_v13 = vcombine.low %v23814_v11, %v13231_v10 }
 0x3cf   : > { %27968 = vst [vmem:[#allocation16_spill] sm:$0xff] %v23914_v23  ;;  %27970 = vst [vmem:[#allocation12_spill] sm:$0xff] %v23923_v18  ;;  %v19186_v33 = vpop.f32.mrb[75].mxu0  ;;  %v14192_v42 = vcombine.low %v23829_v41, %v23912_v3  ;;  %v8533_v19 = vcombine.high %v8329_v0, %v8329_v0  ;;  %v8540_v63 = vrot.slane %v8329_v0, %v23348_v17 }
 0x3d0   : > { %v8332_v52 = vadd.f32 %v27971_v30, %v8196_v6  ;;  %v12693_v40 = vcombine.low %v12684_v48, %v23919_v32  ;;  %v14468_v25 = vcombine.low %v23826_v43, %v14467_v4  ;;  %v14997_v9 = vrot.slane %v14990_v37, %v20373_v44 }
 0x3d1   : > { %v13247_v24 = vrot.slane %v13233_v13, %v20373_v44  ;;  %v14199_v33 = vrot.slane %v14192_v42, %v20373_v44  ;;  %v8547_v10 = vrot.slane %v8533_v19, %v23348_v17  ;;  %v8548_v11 = vcombine.high %v8540_v63, %v8540_v63 }
 0x3d2   : > { %v8969_v56 = vmax.f32 %v8540_v63, 0.0  ;;  %v8550_v41 = vcombine.high %v8332_v52, %v8332_v52  ;;  %v8557_v53 = vrot.slane %v8332_v52, %v23348_v17  ;;  %14671 = vrot.lane.b32.xlu0 %v14468_v25, %s19428_s16  ;;  %v14998_v0 = vcombine.low %v23799_v51, %v14997_v9 }
 0x3d3   : > { %v13248_v48 = vcombine.low %v23799_v51, %v13247_v24  ;;  %v14200_v43 = vcombine.low %v23838_v31, %v14199_v33  ;;  %v8549_v6 = vcombine.high %v8547_v10, %v8547_v10  ;;  %v8970_v4 = vmax.f32 %v8548_v11, 0.0 }
 0x3d4   : > { %v8971_v37 = vmax.f32 %v8547_v10, 0.0  ;;  %v9241_v13 = vcombine.low %v23786_v7, %v8969_v56  ;;  %v8564_v42 = vrot.slane %v8550_v41, %v23348_v17  ;;  %v8565_v19 = vcombine.high %v8557_v53, %v8557_v53  ;;  %19200 = vmatmul.mubr.msk.bf16.vlgmr.msra.gmra.mrb[84].mxu0 %vm1699_vm10, %v14998_v0 }
 0x3d5   : > { %13540 = vrot.lane.b32.xlu1 %v13248_v48, %s19432_s14  ;;  %v12707_v63 = vrot.slane %v12693_v40, %v20373_v44  ;;  %v8972_v30 = vmax.f32 %v8549_v6, 0.0  ;;  %v12033_v25 = vcombine.low %v23888_v62, %v23923_v18  ;;  %19203 = vmatprep.mubr.msk.bf16.mxu0 %vm19431_vm13, %v27698_v61  ;;  %v8973_v56 = vmax.f32 %v8557_v53, 0.0 }
 0x3d6   : > { %v9255_v52 = vrot.slane %v9241_v13, %v23348_v17  ;;  %v9257_v51 = vcombine.low %v8970_v4, %v8971_v37  ;;  %v8566_v7 = vcombine.high %v8564_v42, %v8564_v42  ;;  %v8974_v9 = vmax.f32 %v8565_v19, 0.0  ;;  %14428 = vrot.lane.b32.xlu0 %v14200_v43, %s19425_s23 }
 0x3d7   : > { %v12708_v24 = vcombine.low %v23854_v14, %v12707_v63  ;;  %v27972_v40 = vrot.slane %v23763_v55, %v23348_v17  ;;  %v9271_v11 = vrot.slane %v8972_v30, %v23348_v17  ;;  %v8975_v41 = vmax.f32 %v8564_v42, 0.0  ;;  %v18884_v0 = vpop.f32.mrb[16].mxu1 }
 0x3d8   : > { %v9264_v10 = vrot.slane %v9257_v51, %v23348_v17  ;;  %v8976_v48 = vmax.f32 %v8566_v7, 0.0  ;;  %v9273_v6 = vcombine.low %v8973_v56, %v8974_v9  ;;  %v18885_v4 = vpop.f32.mrb[17].mxu1  ;;  %v27973_v53 = vcombine.low %v23863_v12, %v23875_v50 }
 0x3d9   : > { %v9256_v33 = vcombine.low %v27972_v40, %v9255_v52  ;;  %13169 = vrot.lane.b32.xlu1 %v12708_v24, %s19428_s16  ;;  %v23968_v55 = vrot.slane %v12033_v25, %v20373_v44  ;;  %v18886_v13 = vadd.f32 %v18885_v4, %v18884_v0  ;;  %v18887_v19 = vpop.f32.mrb[18].mxu1  ;;  %v27974_v51 = vcombine.low %v23794_v5, %v23878_v2  ;;  %v23986_v24 = vld [vmem:[%s27415_s4] ss:$0 sm:$0xff]  ;;  %v27976_v4 = vld [vmem:[#allocation27_spill] sm:$0xff] }
 0x3da   : > { %v23965_v14 = vrot.slane %v27973_v53, %v20373_v44  ;;  %v9272_v43 = vcombine.low %v9264_v10, %v9271_v11  ;;  %v9274_v63 = vcombine.low %v8975_v41, %v8976_v48  ;;  %v18888_v30 = vpop.f32.mrb[19].mxu1  ;;  %v23980_v25 = vcombine.high %v23881_v22, %v23881_v22 }
 0x3db   : > { %v9616_v37 = vrot.slane %v9256_v33, 7  ;;  %v14705_v7 = vrot.slane %v27974_v51, %v20373_v44  ;;  %v9281_v9 = vrot.slane %v9273_v6, %v23348_v17  ;;  %v8201_v40 = vadd.f32 %v23986_v24, %v18886_v13 }
 0x3dc   : > { %v14698_v52 = vcombine.low %v23965_v14, %v23968_v55  ;;  %v9617_v56 = vrot.slane %v9272_v43, 7  ;;  %v18889_v33 = vadd.f32 %v18888_v30, %v18887_v19  ;;  %v9288_v5 = vrot.slane %v9274_v63, %v23348_v17  ;;  %v23991_v11 = vpop.f32.mrb[76].mxu0 }
 0x3dd   : > { %v9683_v10 = vsel %vm9604_vm3, 0.0, %v9616_v37  ;;  %27975 = vst [vmem:[#allocation20_spill] sm:$0xff] %v23991_v11  ;;  %v10605_v0 = vshrl.u32 %v23881_v22, 16  ;;  %v19189_v6 = vpop.f32.mrb[77].mxu0  ;;  %v8337_v53 = vadd.f32 %v27976_v4, %v8201_v40  ;;  %v10610_v13 = vshll.u32 %v23884_v47, 16 }
 0x3de   : > { %v14712_v41 = vrot.slane %v14698_v52, %v20373_v44  ;;  %v9618_v48 = vsel %vm9604_vm3, %v9616_v37, %v9617_v56  ;;  %v8204_v43 = vadd.f32 %v23986_v24, %v18889_v33  ;;  %v24000_v30 = vcombine.low %v9281_v9, %v9288_v5  ;;  %v24002_v63 = vpop.f32.mrb[78].mxu0  ;;  %v27979_v5 = vld [vmem:[#allocation51_spill] sm:$0xff] }
 0x3df   : > { %v9699_v19 = vsel %vm9694_vm4, %v9618_v48, 0.0  ;;  %27977 = vst [vmem:[#allocation15_spill] sm:$0xff] %v24002_v63  ;;  %v10618_v52 = vshll.u32 %v23980_v25, 16  ;;  %v19190_v31 = vpop.f32.mrb[79].mxu0  ;;  %v8567_v37 = vcombine.high %v8337_v53, %v8337_v53  ;;  %v8574_v56 = vrot.slane %v8337_v53, %v23348_v17 }
 0x3e0   : > { %v14713_v51 = vcombine.low %v14705_v7, %v14712_v41  ;;  %v9714_v42 = vpack.c.bf16 %v9699_v19, %v9683_v10  ;;  %v18614_v22 = vpack.c.bf16 %v9699_v19, %v9699_v19  ;;  %v27978_v40 = vcombine.high %v23848_v39, %v23848_v39 }
 0x3e1   : > { %v9619_v9 = vrot.slane %v24000_v30, 7  ;;  %v8340_v48 = vadd.f32 %v27979_v5, %v8204_v43  ;;  %v10613_v7 = vshrl.u32 %v23884_v47, 16  ;;  %v8581_v41 = vrot.slane %v8567_v37, %v23348_v17 }
 0x3e2   : > { %v24010_v33 = vrot.slane %v27978_v40, %v20373_v44  ;;  %14964 = vrot.lane.b32.xlu0 %v14713_v51, %s19432_s14  ;;  %v9938_v10 = vrot.slane %v9714_v42, %v20373_v44  ;;  %v24018_v31 = vrot.slane %v18614_v22, %v20373_v44  ;;  %v8582_v6 = vcombine.high %v8574_v56, %v8574_v56 }
 0x3e3   : > { %v8584_v4 = vcombine.high %v8340_v48, %v8340_v48  ;;  %v8591_v39 = vrot.slane %v8340_v48, %v23348_v17  ;;  %v24024_v53 = vsel %vm20462_vm1, %v10605_v0, %v10610_v13  ;;  %v24028_v43 = vsel %vm20462_vm1, %v10613_v7, %v10618_v52 }
 0x3e4   : > { %27980 = vst [vmem:[#allocation6_spill] sm:$0xff] %v24024_v53  ;;  %27981 = vst [vmem:[#allocation17_spill] sm:$0xff] %v24028_v43  ;;  %v9946_v47 = vcombine.high %v9938_v10, %v9938_v10  ;;  %v24031_v42 = vrot.slane %v9938_v10, %v20373_v44  ;;  %v8977_v19 = vmax.f32 %v8574_v56, 0.0  ;;  %v12063_v30 = vcombine.low %v23878_v2, %v23965_v14 }
 0x3e5   : > { %v8583_v51 = vcombine.high %v8581_v41, %v8581_v41  ;;  %v8978_v22 = vmax.f32 %v8582_v6, 0.0  ;;  %v8979_v37 = vmax.f32 %v8581_v41, 0.0  ;;  %v24036_v40 = vrot.slane %v8584_v4, %v23348_v17 }
 0x3e6   : > { %v24042_v13 = vrot.slane %v24018_v31, %v20373_v44  ;;  %v9684_v52 = vsel %vm9604_vm3, 0.0, %v9619_v9  ;;  %v8599_v5 = vcombine.high %v8591_v39, %v8591_v39  ;;  %v24048_v2 = vrot.slane %v9946_v47, %v20373_v44 }
 0x3e7   : > { %v24045_v56 = vpop.f32.mrb[80].mxu0  ;;  %v8980_v14 = vmax.f32 %v8583_v51, 0.0  ;;  %v9290_v48 = vcombine.low %v8977_v19, %v8978_v22  ;;  %v8981_v7 = vmax.f32 %v8591_v39, 0.0  ;;  %v9304_v41 = vrot.slane %v8979_v37, %v23348_v17 }
 0x3e8   : > { %27982 = vst [vmem:[#allocation7_spill] sm:$0xff] %v24045_v56  ;;  %v19193_v10 = vpop.f32.mrb[81].mxu0  ;;  %v8982_v6 = vmax.f32 %v8599_v5, 0.0  ;;  %v8983_v4 = vmax.f32 %v24036_v40, 0.0  ;;  %v12034_v18 = vcombine.low %v24024_v53, %v24028_v43  ;;  %v8600_v56 = vcombine.high %v24036_v40, %v24036_v40 }
 0x3e9   : > { %v8403_v0 = vpop.f32.mrb[82].mxu0  ;;  %v9297_v50 = vrot.slane %v9290_v48, %v23348_v17  ;;  %v9306_v47 = vcombine.low %v8980_v14, %v8981_v7  ;;  %v24059_v39 = vcombine.high %v24031_v42, %v24031_v42  ;;  %v12709_v22 = vcombine.low %v23871_v34, %v24010_v33 }
 0x3ea   : > { %v19194_v62 = vpop.f32.mrb[83].mxu0  ;;  %v9307_v19 = vcombine.low %v8982_v6, %v8983_v4  ;;  %v24062_v51 = vrot.slane %v12034_v18, %v20373_v44  ;;  %v18740_v37 = vcombine.high %v23871_v34, %v24010_v33  ;;  %v24073_v40 = vcombine.high %v23871_v34, %v23871_v34 }
 0x3eb   : > { %v9305_v0 = vcombine.low %v9297_v50, %v9304_v41  ;;  %v9314_v5 = vrot.slane %v9306_v47, %v23348_v17  ;;  %v12711_v62 = vcombine.low %v24048_v2, %v24059_v39  ;;  %v24079_v48 = vrot.slane %v12709_v22, %v20373_v44 }
 0x3ec   : > { %v9321_v14 = vrot.slane %v9307_v19, %v23348_v17  ;;  %v12064_v18 = vcombine.low %v23968_v55, %v24062_v51  ;;  %v24082_v7 = vrot.slane %v18740_v37, %v20373_v44  ;;  %v13249_v41 = vcombine.low %v24073_v40, %v24031_v42 }
 0x3ed   : > { %v9620_v50 = vrot.slane %v9305_v0, 7  ;;  %v24085_v10 = vrot.slane %v12711_v62, %v20373_v44  ;;  %v11477_v6 = vcombine.low %v23980_v25, %v23871_v34  ;;  %v12071_v55 = vrot.slane %v12063_v30, %v20373_v44 }
 0x3ee   : > { %v24091_v4 = vcombine.low %v9314_v5, %v9321_v14  ;;  %v18890_v47 = vpop.f32.mrb[20].mxu1  ;;  %v12078_v19 = vrot.slane %v12064_v18, %v20373_v44  ;;  %v13257_v22 = vcombine.low %v23919_v32, %v24079_v48  ;;  %v13256_v43 = vrot.slane %v13249_v41, %v20373_v44 }
 0x3ef   : > { %v9621_v37 = vsel %vm9604_vm3, %v9619_v9, %v9620_v50  ;;  %v18891_v0 = vpop.f32.mrb[21].mxu1  ;;  %v14999_v62 = vcombine.low %v24082_v7, %v24085_v10  ;;  %v11478_v5 = vcombine.low %v24010_v33, %v24073_v40 }
 0x3f0   : > { %v9700_v14 = vsel %vm9694_vm4, %v9621_v37, 0.0  ;;  %v27566_v30 = vrot.slane %v24091_v4, 7  ;;  %v18892_v53 = vadd.f32 %v18891_v0, %v18890_v47  ;;  %v12079_v18 = vcombine.low %v12071_v55, %v12078_v19  ;;  %v18893_v12 = vpop.f32.mrb[22].mxu1 }
 0x3f1   : > { %v9715_v63 = vpack.c.bf16 %v9700_v14, %v9684_v52  ;;  %v18615_v32 = vpack.c.bf16 %v9700_v14, %v9700_v14  ;;  %v18894_v11 = vpop.f32.mrb[23].mxu1  ;;  %v13265_v9 = vrot.slane %v13257_v22, %v20373_v44  ;;  %v15006_v50 = vrot.slane %v14999_v62, %v20373_v44 }
 0x3f2   : > { %v8209_v35 = vadd.f32 %v23986_v24, %v18892_v53  ;;  %12540 = vrot.lane.b32.xlu1 %v12079_v18, %s19425_s23  ;;  %v18895_v41 = vadd.f32 %v18894_v11, %v18893_v12  ;;  %v13258_v15 = vcombine.low %v13256_v43, %v24085_v10  ;;  %v11479_v37 = vcombine.low %v24031_v42, %v24048_v2 }
 0x3f3   : > { %v24113_v47 = vrot.slane %v9715_v63, %v20373_v44  ;;  %v24116_v52 = vrot.slane %v18615_v32, %v20373_v44  ;;  %v15007_v55 = vcombine.low %v13265_v9, %v15006_v50  ;;  %v24119_v19 = vrot.slane %v11477_v6, %v20373_v44 }
 0x3f4   : > { %v27983_v53 = vcombine.high %v24018_v31, %v24018_v31  ;;  %v8345_v11 = vadd.f32 %v23251_v29, %v8209_v35  ;;  %v8212_v43 = vadd.f32 %v23986_v24, %v18895_v41  ;;  %v13272_v63 = vrot.slane %v13258_v15, %v20373_v44 }
 0x3f5   : > { %v8984_v0 = vmax.f32 %v8600_v56, 0.0  ;;  %v24135_v6 = vsel %vm9604_vm3, 0.0, %v27566_v30  ;;  %19204 = vmatmul.mubr.msk.bf16.gmra.mrb[88].mxu0 %vm1699_vm10, %v15007_v55  ;;  %v24139_v31 = vrot.slane %v11478_v5, %v20373_v44  ;;  %v24149_v18 = vrot.slane %v24113_v47, %v20373_v44 }
 0x3f6   : > { %v24125_v12 = vrot.slane %v27983_v53, %v20373_v44  ;;  %v8601_v62 = vcombine.high %v8345_v11, %v8345_v11  ;;  %v8608_v29 = vrot.slane %v8345_v11, %v23348_v17  ;;  %v8348_v35 = vadd.f32 %v23255_v21, %v8212_v43  ;;  %v18896_v15 = vpop.f32.mrb[24].mxu1  ;;  %19207 = vmatprep.mubr.msk.bf16.mxu0 %vm19431_vm13, %v27698_v61 }
 0x3f7   : > { %v13273_v14 = vcombine.low %v13265_v9, %v13272_v63  ;;  %v18897_v32 = vpop.f32.mrb[25].mxu1  ;;  %v24152_v5 = vrot.slane %v11479_v37, %v20373_v44  ;;  %v14469_v50 = vcombine.low %v23912_v3, %v24119_v19 }
 0x3f8   : > { %v8615_v21 = vrot.slane %v8601_v62, %v23348_v17  ;;  %v8616_v9 = vcombine.high %v8608_v29, %v8608_v29  ;;  %v8985_v41 = vmax.f32 %v8608_v29, 0.0  ;;  %v8618_v55 = vcombine.high %v8348_v35, %v8348_v35  ;;  %v18899_v53 = vpop.f32.mrb[26].mxu1 }
 0x3f9   : > { %27984 = vst [vmem:[#allocation4_spill] sm:$0xff] %v24152_v5  ;;  %13542 = vrot.lane.b32.xlu1 %v13273_v14, %s19432_s14  ;;  %v8625_v11 = vrot.slane %v8348_v35, %v23348_v17  ;;  %v18898_v43 = vadd.f32 %v18897_v32, %v18896_v15  ;;  %v18900_v63 = vpop.f32.mrb[27].mxu1  ;;  %v14470_v56 = vcombine.low %v24139_v31, %v24152_v5 }
 0x3fa   : > { %v14477_v37 = vrot.slane %v14469_v50, %v20373_v44  ;;  %v8617_v22 = vcombine.high %v8615_v21, %v8615_v21  ;;  %v8986_v30 = vmax.f32 %v8616_v9, 0.0  ;;  %v8987_v3 = vmax.f32 %v8615_v21, 0.0 }
 0x3fb   : > { %v9323_v59 = vcombine.low %v8984_v0, %v8985_v41  ;;  %v8632_v62 = vrot.slane %v8618_v55, %v23348_v17  ;;  %v8633_v29 = vcombine.high %v8625_v11, %v8625_v11  ;;  %v8989_v23 = vmax.f32 %v8625_v11, 0.0 }
 0x3fc   : > { %v8217_v46 = vadd.f32 %v23986_v24, %v18898_v43  ;;  %v8988_v14 = vmax.f32 %v8617_v22, 0.0  ;;  %v9337_v15 = vrot.slane %v8986_v30, %v23348_v17  ;;  %v18901_v32 = vadd.f32 %v18900_v63, %v18899_v53 }
 0x3fd   : > { %v9330_v35 = vrot.slane %v9323_v59, %v23348_v17  ;;  %v8634_v49 = vcombine.high %v8632_v62, %v8632_v62  ;;  %v8990_v5 = vmax.f32 %v8633_v29, 0.0  ;;  %v8991_v38 = vmax.f32 %v8632_v62, 0.0 }
 0x3fe   : > { %v8353_v50 = vadd.f32 %v23302_v45, %v8217_v46  ;;  %v9339_v21 = vcombine.low %v8987_v3, %v8988_v14  ;;  %v8220_v0 = vadd.f32 %v23986_v24, %v18901_v32  ;;  %v14484_v41 = vrot.slane %v14470_v56, %v20373_v44  ;;  %v24169_v55 = vpop.f32.mrb[28].mxu1 }
 0x3ff   : > { %v9338_v9 = vcombine.low %v9330_v35, %v9337_v15  ;;  %v8992_v11 = vmax.f32 %v8634_v49, 0.0  ;;  %v9340_v22 = vcombine.low %v8989_v23, %v8990_v5  ;;  %v24172_v30 = vpop.f32.mrb[29].mxu1  ;;  %v27985_v5 = vrot.slane %v24091_v4, 7 }
 0x400   : > { %v8635_v43 = vcombine.high %v8353_v50, %v8353_v50  ;;  %v8642_v59 = vrot.slane %v8353_v50, %v23348_v17  ;;  %v9347_v53 = vrot.slane %v9339_v21, %v23348_v17  ;;  %v8356_v45 = vadd.f32 %v23305_v28, %v8220_v0  ;;  %v24176_v3 = vpop.f32.mrb[30].mxu1 }
 0x401   : > { %v9623_v63 = vrot.slane %v9338_v9, 7  ;;  %v14485_v46 = vcombine.low %v14477_v37, %v14484_v41  ;;  %v9354_v62 = vrot.slane %v9340_v22, %v23348_v17  ;;  %v9356_v56 = vcombine.low %v8991_v38, %v8992_v11  ;;  %v24180_v23 = vpop.f32.mrb[31].mxu1 }
 0x402   : > { %v8649_v29 = vrot.slane %v8635_v43, %v23348_v17  ;;  %v8650_v49 = vcombine.high %v8642_v59, %v8642_v59  ;;  %v8993_v35 = vmax.f32 %v8642_v59, 0.0  ;;  %v8652_v15 = vcombine.high %v8356_v45, %v8356_v45 }
 0x403   : > { %v9624_v14 = vsel %vm9604_vm3, %v27985_v5, %v9623_v63  ;;  %v8659_v32 = vrot.slane %v8356_v45, %v23348_v17  ;;  %14673 = vrot.lane.b32.xlu0 %v14485_v46, %s19428_s16  ;;  %v9355_v37 = vcombine.low %v9347_v53, %v9354_v62  ;;  %v9363_v41 = vrot.slane %v9356_v56, %v23348_v17 }
 0x404   : > { %v9701_v28 = vsel %vm9694_vm4, %v9624_v14, 0.0  ;;  %v8651_v50 = vcombine.high %v8649_v29, %v8649_v29  ;;  %v8994_v38 = vmax.f32 %v8650_v49, 0.0  ;;  %v8995_v0 = vmax.f32 %v8649_v29, 0.0 }
 0x405   : > { %v9716_v9 = vpack.c.bf16 %v9701_v28, %v24135_v6  ;;  %v18616_v21 = vpack.c.bf16 %v9701_v28, %v9701_v28  ;;  %v9625_v4 = vrot.slane %v9355_v37, 7  ;;  %v9370_v22 = vrot.slane %v8993_v35, %v23348_v17 }
 0x406   : > { %v8996_v11 = vmax.f32 %v8651_v50, 0.0  ;;  %v8666_v43 = vrot.slane %v8652_v15, %v23348_v17  ;;  %v9372_v45 = vcombine.low %v8994_v38, %v8995_v0  ;;  %v8667_v53 = vcombine.high %v8659_v32, %v8659_v32 }
 0x407   : > { %v10034_v59 = vrot.slane %v9716_v9, %v20373_v44  ;;  %v10041_v63 = vrot.slane %v18616_v21, %v20373_v44  ;;  %v24196_v46 = vrot.slane %v24116_v52, %v20373_v44  ;;  %v27986_v6 = vcombine.high %v24113_v47, %v24113_v47 }
 0x408   : > { %v9371_v56 = vcombine.low %v9363_v41, %v9370_v22  ;;  %v8668_v29 = vcombine.high %v8666_v43, %v8666_v43  ;;  %v27987_v49 = vcombine.high %v24116_v52, %v24116_v52  ;;  %v9686_v35 = vsel %vm9604_vm3, 0.0, %v9625_v4 }
 0x409   : > { %v24202_v62 = vrot.slane %v27986_v6, %v20373_v44  ;;  %v10042_v14 = vcombine.high %v10034_v59, %v10034_v59  ;;  %v8997_v15 = vmax.f32 %v8659_v32, 0.0  ;;  %v10043_v28 = vcombine.high %v10041_v63, %v10041_v63 }
 0x40a   : > { %v24208_v5 = vrot.slane %v27987_v49, %v20373_v44  ;;  %v9626_v37 = vrot.slane %v9371_v56, 7  ;;  %v8998_v50 = vmax.f32 %v8667_v53, 0.0  ;;  %v8999_v38 = vmax.f32 %v8666_v43, 0.0 }
 0x40b   : > { %v24212_v47 = vrot.slane %v10034_v59, %v20373_v44  ;;  %v9380_v9 = vrot.slane %v9372_v45, %v23348_v17  ;;  %v9000_v21 = vmax.f32 %v8668_v29, 0.0  ;;  %v9373_v0 = vcombine.low %v8996_v11, %v8997_v15 }
 0x40c   : > { %v9627_v41 = vsel %vm9604_vm3, %v9625_v4, %v9626_v37  ;;  %v9389_v52 = vcombine.low %v8998_v50, %v8999_v38  ;;  %v10414_v22 = vcombine.high %v24010_v33, %v24010_v33  ;;  %v18732_v32 = vcombine.high %v24031_v42, %v24048_v2 }
 0x40d   : > { %v9702_v6 = vsel %vm9694_vm4, %v9627_v41, 0.0  ;;  %v9387_v43 = vrot.slane %v9373_v0, %v23348_v17  ;;  %v9403_v59 = vrot.slane %v9000_v21, %v23348_v17  ;;  %v11509_v45 = vcombine.low %v24119_v19, %v24139_v31 }
 0x40e   : > { %v24226_v11 = vrot.slane %v10041_v63, %v20373_v44  ;;  %v9717_v4 = vpack.c.bf16 %v9702_v6, %v9686_v35  ;;  %v18617_v53 = vpack.c.bf16 %v9702_v6, %v9702_v6  ;;  %v9396_v56 = vrot.slane %v9389_v52, %v23348_v17 }
 0x40f   : > { %v24230_v29 = vrot.slane %v10042_v14, %v20373_v44  ;;  %v9388_v49 = vcombine.low %v9380_v9, %v9387_v43  ;;  %v24233_v15 = vrot.slane %v18732_v32, %v20373_v44  ;;  %v14201_v37 = vcombine.low %v10414_v22, %v24048_v2 }
 0x410   : > { %v10082_v50 = vrot.slane %v9717_v4, %v20373_v44  ;;  %v10089_v19 = vrot.slane %v18617_v53, %v20373_v44  ;;  %v9404_v31 = vcombine.low %v9396_v56, %v9403_v59  ;;  %v24240_v63 = vcombine.high %v24048_v2, %v24048_v2 }
 0x411   : > { %27988 = vst [vmem:[#allocation10_spill] sm:$0xff] %v24233_v15  ;;  %v24243_v35 = vrot.slane %v10043_v28, %v20373_v44  ;;  %v9628_v14 = vrot.slane %v9388_v49, 7  ;;  %v10650_v38 = vshll.u32 %v10414_v22, 16  ;;  %v14208_v9 = vrot.slane %v14201_v37, %v20373_v44 }
 0x412   : > { %v10090_v21 = vcombine.high %v10082_v50, %v10082_v50  ;;  %v24247_v0 = vrot.slane %v11509_v45, %v20373_v44  ;;  %v12741_v41 = vcombine.low %v24079_v48, %v24082_v7  ;;  %v10621_v52 = vshrl.u32 %v23980_v25, 16 }
 0x413   : > { %v10091_v32 = vcombine.high %v10089_v19, %v10089_v19  ;;  %v9629_v6 = vrot.slane %v9404_v31, 7  ;;  %v14209_v43 = vcombine.low %v14208_v9, %v24233_v15  ;;  %v12712_v28 = vcombine.low %v24240_v63, %v24042_v13 }
 0x414   : > { %27989 = vst [vmem:[#allocation67_spill] sm:$0xff] %v24247_v0  ;;  %v24256_v22 = vrot.slane %v10082_v50, %v20373_v44  ;;  %v24259_v59 = vrot.slane %v10089_v19, %v20373_v44  ;;  %v9687_v45 = vsel %vm9604_vm3, 0.0, %v9628_v14  ;;  %v10626_v4 = vshll.u32 %v23871_v34, 16 }
 0x415   : > { %v24264_v48 = vrot.slane %v10090_v21, %v20373_v44  ;;  %v9630_v25 = vsel %vm9604_vm3, %v9628_v14, %v9629_v6  ;;  %v14216_v7 = vrot.slane %v14209_v43, %v20373_v44  ;;  %v24269_v53 = vrot.slane %v12712_v28, %v20373_v44 }
 0x416   : > { %v9703_v56 = vsel %vm9694_vm4, %v9630_v25, 0.0  ;;  %v24274_v49 = vsel %vm20462_vm1, %v10621_v52, %v10626_v4  ;;  %v10634_v37 = vshll.u32 %v24010_v33, 16  ;;  %v10637_v50 = vshrl.u32 %v24010_v33, 16 }
 0x417   : > { %27990 = vst [vmem:[#allocation18_spill] sm:$0xff] %v24274_v49  ;;  %v9718_v19 = vpack.c.bf16 %v9703_v56, %v9687_v45  ;;  %v18618_v31 = vpack.c.bf16 %v9703_v56, %v9703_v56  ;;  %v14217_v9 = vcombine.low %v24247_v0, %v14216_v7  ;;  %v12742_v14 = vcombine.low %v24085_v10, %v24269_v53 }
 0x418   : > { %v12749_v21 = vrot.slane %v12741_v41, %v20373_v44  ;;  %v10629_v6 = vshrl.u32 %v23871_v34, 16  ;;  %v10642_v43 = vshll.u32 %v24073_v40, 16  ;;  %v10645_v52 = vshrl.u32 %v24073_v40, 16 }
 0x419   : > { %v24286_v28 = vrot.slane %v9718_v19, %v20373_v44  ;;  %v24289_v33 = vrot.slane %v18618_v31, %v20373_v44  ;;  %14430 = vrot.lane.b32.xlu0 %v14217_v9, %s19425_s23  ;;  %v12756_v45 = vrot.slane %v12742_v14, %v20373_v44  ;;  %v10659_v10 = vshll.u32 %v24048_v2, 16 }
 0x41a   : > { %v24296_v41 = vsel %vm20462_vm1, %v10645_v52, %v10650_v38  ;;  %v10654_v34 = vshrl.u32 %v24031_v42, 16  ;;  %v10662_v40 = vshrl.u32 %v24048_v2, 16  ;;  %v10667_v4 = vshll.u32 %v24059_v39, 16 }
 0x41b   : > { %27991 = vst [vmem:[#allocation9_spill] sm:$0xff] %v24296_v41  ;;  %v24302_v25 = vrot.slane %v10091_v32, %v20373_v44  ;;  %v24308_v56 = vsel %vm20462_vm1, %v10629_v6, %v10634_v37  ;;  %v24312_v38 = vsel %vm20462_vm1, %v10637_v50, %v10642_v43  ;;  %v12757_v19 = vcombine.low %v12749_v21, %v12756_v45 }
 0x41c   : > { %27992 = vst [vmem:[#allocation13_spill] sm:$0xff] %v24308_v56  ;;  %27993 = vst [vmem:[#allocation19_spill] sm:$0xff] %v24312_v38  ;;  %v24316_v42 = vsel %vm20462_vm1, %v10654_v34, %v10659_v10  ;;  %v24320_v2 = vsel %vm20462_vm1, %v10662_v40, %v10667_v4  ;;  %v12080_v32 = vcombine.low %v24274_v49, %v24308_v56  ;;  %v10670_v21 = vshrl.u32 %v24059_v39, 16 }
 0x41d   : > { %27994 = vst [vmem:[#allocation11_spill] sm:$0xff] %v24316_v42  ;;  %27995 = vst [vmem:[#allocation3_spill] sm:$0xff] %v24320_v2  ;;  %v24328_v31 = vrot.slane %v24286_v28, %v20373_v44  ;;  %v12081_v50 = vcombine.low %v24312_v38, %v24296_v41  ;;  %v12082_v9 = vcombine.low %v24316_v42, %v24320_v2  ;;  %13171 = vrot.lane.b32.xlu1 %v12757_v19, %s19428_s16 }
 0x41e   : > { %v12090_v14 = vrot.slane %v12080_v32, %v20373_v44  ;;  %v10675_v6 = vshll.u32 %v24240_v63, 16  ;;  %v10678_v43 = vshrl.u32 %v24240_v63, 16  ;;  %v10683_v10 = vshll.u32 %v24042_v13, 16 }
 0x41f   : > { %v12097_v52 = vrot.slane %v12081_v50, %v20373_v44  ;;  %v12104_v45 = vrot.slane %v12082_v9, %v20373_v44  ;;  %v24344_v34 = vcombine.high %v24042_v13, %v24042_v13  ;;  %v24353_v39 = vcombine.high %v24125_v12, %v24125_v12 }
 0x420   : > { %v14714_v40 = vcombine.low %v24062_v51, %v12090_v14  ;;  %v24349_v4 = vsel %vm20462_vm1, %v10670_v21, %v10675_v6  ;;  %v18741_v63 = vcombine.high %v24149_v18, %v24202_v62  ;;  %v24359_v32 = vsel %vm20462_vm1, %v10678_v43, %v10683_v10 }
 0x421   : > { %27996 = vst [vmem:[#allocation5_spill] sm:$0xff] %v24349_v4  ;;  %v14715_v19 = vcombine.low %v12097_v52, %v12104_v45  ;;  %27997 = vst [vmem:[#allocation8_spill] sm:$0xff] %v24359_v32  ;;  %v12112_v50 = vcombine.low %v12090_v14, %v12097_v52  ;;  %v12758_v51 = vcombine.low %v24125_v12, %v24344_v34 }
 0x422   : > { %v14722_v9 = vrot.slane %v14714_v40, %v20373_v44  ;;  %v12083_v21 = vcombine.low %v24349_v4, %v24359_v32  ;;  %v12759_v37 = vcombine.low %v24353_v39, %v24202_v62  ;;  %v12782_v14 = vrot.slane %v18741_v63, %v20373_v44 }
 0x423   : > { %v14729_v7 = vrot.slane %v14715_v19, %v20373_v44  ;;  %v12120_v0 = vrot.slane %v12112_v50, %v20373_v44  ;;  %v12768_v43 = vrot.slane %v12758_v51, %v20373_v44  ;;  %v13274_v40 = vcombine.low %v24149_v18, %v24202_v62 }
 0x424   : > { %v24374_v52 = vrot.slane %v12083_v21, %v20373_v44  ;;  %v12775_v10 = vrot.slane %v12759_v37, %v20373_v44  ;;  %v24381_v6 = vcombine.high %v24149_v18, %v24149_v18  ;;  %v11526_v50 = vcombine.low %v24042_v13, %v24125_v12 }
 0x425   : > { %v14730_v32 = vcombine.low %v14722_v9, %v14729_v7  ;;  %v13282_v19 = vcombine.low %v24269_v53, %v12768_v43  ;;  %v11527_v63 = vcombine.low %v24344_v34, %v24149_v18  ;;  %v13281_v37 = vrot.slane %v13274_v40, %v20373_v44  ;;  %v24392_v4 = vpop.f32.mrb[32].mxu1 }
 0x426   : > { %v12113_v51 = vcombine.low %v12104_v45, %v24374_v52  ;;  %v15008_v21 = vcombine.low %v12775_v10, %v12782_v14  ;;  %v11528_v2 = vcombine.low %v24202_v62, %v24381_v6  ;;  %v24397_v7 = vrot.slane %v11526_v50, %v20373_v44  ;;  %v24404_v41 = vpop.f32.mrb[33].mxu1 }
 0x427   : > { %14966 = vrot.lane.b32.xlu0 %v14730_v32, %s19432_s14  ;;  %v13290_v53 = vrot.slane %v13282_v19, %v20373_v44  ;;  %v24400_v9 = vrot.slane %v11527_v63, %v20373_v44  ;;  %v12761_v45 = vcombine.low %v24196_v46, %v24208_v5  ;;  %v13283_v56 = vcombine.low %v13281_v37, %v12782_v14  ;;  %v24409_v38 = vpop.f32.mrb[34].mxu1 }
 0x428   : > { %27998 = vst [vmem:[#allocation36_spill] sm:$0xff] %v24397_v7  ;;  %v12127_v40 = vrot.slane %v12113_v51, %v20373_v44  ;;  %v15015_v42 = vrot.slane %v15008_v21, %v20373_v44  ;;  %v11550_v32 = vrot.slane %v11528_v2, %v20373_v44  ;;  %v14486_v19 = vcombine.low %v24233_v15, %v24397_v7  ;;  %v24420_v60 = vpop.f32.mrb[35].mxu1 }
 0x429   : > { %27999 = vst [vmem:[#allocation38_spill] sm:$0xff] %v24400_v9  ;;  %v24414_v50 = vrot.slane %v12761_v45, %v20373_v44  ;;  %v12790_v63 = vcombine.low %v12768_v43, %v12775_v10  ;;  %v24418_v49 = vcombine.high %v24202_v62, %v24202_v62  ;;  %v13297_v37 = vrot.slane %v13283_v56, %v20373_v44 }
 0x42a   : > { %v12128_v51 = vcombine.low %v12120_v0, %v12127_v40  ;;  %v15016_v21 = vcombine.low %v13290_v53, %v15015_v42  ;;  %v14487_v2 = vcombine.low %v24400_v9, %v11550_v32  ;;  %v14494_v58 = vrot.slane %v14486_v19, %v20373_v44 }
 0x42b   : > { %v12791_v15 = vcombine.low %v12782_v14, %v24414_v50  ;;  %v12798_v45 = vrot.slane %v12790_v63, %v20373_v44  ;;  %v11529_v43 = vcombine.low %v24418_v49, %v24196_v46  ;;  %v13298_v10 = vcombine.low %v13290_v53, %v13297_v37 }
 0x42c   : > { %12542 = vrot.lane.b32.xlu1 %v12128_v51, %s19425_s23  ;;  %19208 = vmatmul.mubr.msk.bf16.gmra.mrb[92].mxu0 %vm1699_vm10, %v15016_v21  ;;  %v14501_v0 = vrot.slane %v14487_v2, %v20373_v44  ;;  %v18752_v56 = vcombine.high %v24042_v13, %v24125_v12  ;;  %v10686_v42 = vshrl.u32 %v24042_v13, 16  ;;  %v18904_v19 = vadd.f32 %v24172_v30, %v24169_v55 }
 0x42d   : > { %v12805_v40 = vrot.slane %v12791_v15, %v20373_v44  ;;  %v24437_v14 = vrot.slane %v11529_v43, %v20373_v44  ;;  %v10691_v63 = vshll.u32 %v24125_v12, 16  ;;  %19211 = vmatprep.mubr.msk.bf16.mxu0 %vm19431_vm13, %v27698_v61  ;;  %v10694_v21 = vshrl.u32 %v24125_v12, 16 }
 0x42e   : > { %v14502_v53 = vcombine.low %v14494_v58, %v14501_v0  ;;  %v14225_v51 = vrot.slane %v18752_v56, %v20373_v44  ;;  %v10699_v13 = vshll.u32 %v24344_v34, 16  ;;  %v8225_v2 = vadd.f32 %v23986_v24, %v18904_v19 }
 0x42f   : > { %v12806_v37 = vcombine.low %v12798_v45, %v12805_v40  ;;  %v11559_v15 = vcombine.low %v11550_v32, %v24437_v14  ;;  %v24451_v55 = vsel %vm20462_vm1, %v10686_v42, %v10691_v63  ;;  %v10702_v30 = vshrl.u32 %v24344_v34, 16 }
 0x430   : > { %28000 = vst [vmem:[#allocation39_spill] sm:$0xff] %v24451_v55  ;;  %13544 = vrot.lane.b32.xlu1 %v13298_v10, %s19432_s14  ;;  %14675 = vrot.lane.b32.xlu0 %v14502_v53, %s19428_s16  ;;  %v14226_v58 = vcombine.low %v24397_v7, %v14225_v51  ;;  %v24458_v12 = vsel %vm20462_vm1, %v10694_v21, %v10699_v13  ;;  %v10711_v32 = vshrl.u32 %v24149_v18, 16  ;;  %v10716_v0 = vshll.u32 %v24202_v62, 16  ;;  %v24468_v56 = vpop.f32.mrb[36].mxu1 }
 0x431   : > { %28001 = vst [vmem:[#allocation40_spill] sm:$0xff] %v24458_v12  ;;  %v24463_v45 = vrot.slane %v11559_v15, %v20373_v44  ;;  %v8361_v43 = vadd.f32 %v23380_v8, %v8225_v2  ;;  %v10719_v10 = vshrl.u32 %v24202_v62, 16  ;;  %v28003_v40 = vshll.u32 %v24353_v39, 16  ;;  %v24479_v63 = vpop.f32.mrb[37].mxu1 }
 0x432   : > { %v14233_v42 = vrot.slane %v14226_v58, %v20373_v44  ;;  %v10724_v18 = vshll.u32 %v24381_v6, 16  ;;  %v10727_v19 = vshrl.u32 %v24381_v6, 16  ;;  %v24484_v62 = vsel %vm20462_vm1, %v10711_v32, %v10716_v0  ;;  %v24487_v39 = vpop.f32.mrb[38].mxu1 }
 0x433   : > { %28002 = vst [vmem:[#allocation41_spill] sm:$0xff] %v24463_v45  ;;  %v24475_v34 = vsel %vm20462_vm1, %v10702_v30, %v28003_v40  ;;  %v8669_v8 = vcombine.high %v8361_v43, %v8361_v43  ;;  %v8676_v53 = vrot.slane %v8361_v43, %v23348_v17  ;;  %28005 = vst [vmem:[#allocation23_spill] sm:$0xff] %v24484_v62  ;;  %v10732_v51 = vshll.u32 %v24418_v49, 16  ;;  %v24499_v2 = vpop.f32.mrb[39].mxu1 }
 0x434   : > { %28004 = vst [vmem:[#allocation22_spill] sm:$0xff] %v24475_v34  ;;  %v24491_v21 = vrot.slane %v24289_v33, %v20373_v44  ;;  %13173 = vrot.lane.b32.xlu1 %v12806_v37, %s19428_s16  ;;  %v14234_v6 = vcombine.low %v14233_v42, %v24463_v45  ;;  %v12129_v13 = vcombine.low %v24451_v55, %v24458_v12  ;;  %v10735_v40 = vshrl.u32 %v24418_v49, 16 }
 0x435   : > { %v12130_v15 = vcombine.low %v24475_v34, %v24484_v62  ;;  %v8683_v58 = vrot.slane %v8669_v8, %v23348_v17  ;;  %v8684_v30 = vcombine.high %v8676_v53, %v8676_v53  ;;  %v24504_v32 = vsel %vm20462_vm1, %v10719_v10, %v10724_v18 }
 0x436   : > { %28006 = vst [vmem:[#allocation29_spill] sm:$0xff] %v24504_v32  ;;  %v24508_v37 = vsel %vm20462_vm1, %v10727_v19, %v10732_v51  ;;  %14432 = vrot.lane.b32.xlu0 %v14234_v6, %s19425_s23  ;;  %v12139_v0 = vrot.slane %v12129_v13, %v20373_v44  ;;  %v9001_v45 = vmax.f32 %v8676_v53, 0.0  ;;  %v10740_v10 = vshll.u32 %v24196_v46, 16 }
 0x437   : > { %28007 = vst [vmem:[#allocation21_spill] sm:$0xff] %v24508_v37  ;;  %v12131_v43 = vcombine.low %v24504_v32, %v24508_v37  ;;  %v12146_v42 = vrot.slane %v12130_v15, %v20373_v44  ;;  %v8685_v8 = vcombine.high %v8683_v58, %v8683_v58  ;;  %v9002_v7 = vmax.f32 %v8684_v30, 0.0 }
 0x438   : > { %v14731_v19 = vcombine.low %v24374_v52, %v12139_v0  ;;  %v10743_v51 = vshrl.u32 %v24196_v46, 16  ;;  %v10748_v6 = vshll.u32 %v24208_v5, 16  ;;  %v9003_v9 = vmax.f32 %v8683_v58, 0.0 }
 0x439   : > { %v12153_v18 = vrot.slane %v12131_v43, %v20373_v44  ;;  %v9004_v37 = vmax.f32 %v8685_v8, 0.0  ;;  %v9405_v13 = vcombine.low %v9001_v45, %v9002_v7  ;;  %v24523_v15 = vsel %vm20462_vm1, %v10735_v40, %v10740_v10  ;;  %v19364_v43 = vld [vmem:[%s27416_s5 + $0x40] sm:$0xff]   ;;  %v19366_v45 = vld [vmem:[%s27416_s5 + $0x48] sm:$0xff]  }
 0x43a   : > { %28008 = vst [vmem:[#allocation28_spill] sm:$0xff] %v24523_v15  ;;  %v24527_v53 = vsel %vm20462_vm1, %v10743_v51, %v10748_v6  ;;  %v12161_v30 = vcombine.low %v12139_v0, %v12146_v42  ;;  %v18907_v52 = vadd.f32 %v24180_v23, %v24176_v3  ;;  %v19365_v7 = vld [vmem:[%s27416_s5] sm:$0xff]   ;;  %v14739_v0 = vrot.slane %v14731_v19, %v20373_v44 }
 0x43b   : > { %v14732_v49 = vcombine.low %v12146_v42, %v12153_v18  ;;  %28009 = vst [vmem:[#allocation33_spill] sm:$0xff] %v24527_v53  ;;  %v9406_v58 = vcombine.low %v9003_v9, %v9004_v37  ;;  %v9413_v40 = vrot.slane %v9405_v13, %v23348_v17  ;;  %v12132_v3 = vcombine.low %v24523_v15, %v24527_v53 }
 0x43c   : > { %v8228_v42 = vadd.f32 %v23986_v24, %v18907_v52  ;;  %v24548_v8 = vcombine.high %v24196_v46, %v24196_v46  ;;  %v11576_v10 = vcombine.low %v24212_v47, %v24230_v29  ;;  %18953 = vmatprep.subr.bf16.mxu1 %v19364_v43  ;;  %v18733_v19 = vcombine.high %v24212_v47, %v24230_v29  ;;  %v19367_v24 = vld [vmem:[%s27416_s5 + $0x8] sm:$0xff]   ;;  %v19368_v43 = vld [vmem:[%s27416_s5 + $0x50] sm:$0xff]  }
 0x43d   : > { %v14746_v23 = vrot.slane %v14732_v49, %v20373_v44  ;;  %v9420_v9 = vrot.slane %v9406_v58, %v23348_v17  ;;  %v24554_v37 = vrot.slane %v12132_v3, %v20373_v44  ;;  %v24560_v51 = vcombine.high %v24212_v47, %v24212_v47  ;;  %18954 = vmatpush3.bf16.msra.mxu1 %v19365_v7 }
 0x43e   : > { %v8364_v13 = vadd.f32 %v23390_v36, %v8228_v42  ;;  %v11575_v49 = vcombine.low %v24208_v5, %v24548_v8  ;;  %v24569_v52 = vrot.slane %v11576_v10, %v20373_v44  ;;  %18955 = vmatprep.subr.bf16.mxu1 %v19366_v45  ;;  %v24578_v3 = vrot.slane %v18733_v19, %v20373_v44 }
 0x43f   : > { %v14747_v6 = vcombine.low %v14739_v0, %v14746_v23  ;;  %v24574_v58 = vcombine.low %v9413_v40, %v9420_v9  ;;  %v12162_v7 = vcombine.low %v12153_v18, %v24554_v37  ;;  %v24582_v36 = vcombine.high %v24230_v29, %v24230_v29 }
 0x440   : > { %28010 = vst [vmem:[#allocation31_spill] sm:$0xff] %v24569_v52  ;;  %v12169_v0 = vrot.slane %v12161_v30, %v20373_v44  ;;  %v8686_v45 = vcombine.high %v8364_v13, %v8364_v13  ;;  %v8693_v23 = vrot.slane %v8364_v13, %v23348_v17  ;;  %v24588_v42 = vrot.slane %v11575_v49, %v20373_v44  ;;  %v19369_v49 = vld [vmem:[%s27416_s5 + $0x10] sm:$0xff]  }
 0x441   : > { %14968 = vrot.lane.b32.xlu0 %v14747_v6, %s19432_s14  ;;  %v12176_v40 = vrot.slane %v12162_v7, %v20373_v44  ;;  %v14504_v18 = vcombine.low %v24569_v52, %v24578_v3  ;;  %v18742_v10 = vcombine.high %v24196_v46, %v24208_v5  ;;  %v12808_v9 = vcombine.low %v24230_v29, %v24560_v51 }
 0x442   : > { %28011 = vst [vmem:[#allocation34_spill] sm:$0xff] %v24588_v42  ;;  %18956 = vmatpush3.bf16.msra.mxu1 %v19367_v24  ;;  %v9631_v30 = vrot.slane %v24574_v58, 7  ;;  %v24599_v19 = vrot.slane %v8686_v45, %v23348_v17  ;;  %v8701_v6 = vcombine.high %v8693_v23, %v8693_v23  ;;  %v14503_v13 = vcombine.low %v24437_v14, %v24588_v42 }
 0x443   : > { %18957 = vmatprep.subr.bf16.mxu1 %v19368_v43  ;;  %v28012_v46 = vcombine.high %v24286_v28, %v24286_v28  ;;  %v12177_v24 = vcombine.low %v12169_v0, %v12176_v40  ;;  %v14518_v58 = vrot.slane %v14504_v18, %v20373_v44  ;;  %v12809_v45 = vcombine.low %v24582_v36, %v24226_v11 }
 0x444   : > { %v9005_v52 = vmax.f32 %v8693_v23, 0.0  ;;  %v9006_v53 = vmax.f32 %v8701_v6, 0.0  ;;  %v9007_v14 = vmax.f32 %v24599_v19, 0.0  ;;  %v14511_v43 = vrot.slane %v14503_v13, %v20373_v44 }
 0x445   : > { %v24610_v7 = vrot.slane %v28012_v46, %v20373_v44  ;;  %12544 = vrot.lane.b32.xlu1 %v12177_v24, %s19425_s23  ;;  %v12817_v15 = vrot.slane %v18742_v10, %v20373_v44  ;;  %v12824_v28 = vrot.slane %v12808_v9, %v20373_v44  ;;  %v12831_v46 = vrot.slane %v12809_v45, %v20373_v44 }
 0x446   : > { %v13299_v0 = vcombine.low %v24548_v8, %v24212_v47  ;;  %v9688_v40 = vsel %vm9604_vm3, 0.0, %v9631_v30  ;;  %v9422_v18 = vcombine.low %v9005_v52, %v9006_v53  ;;  %v9436_v23 = vrot.slane %v9007_v14, %v23348_v17  ;;  %18958 = vmatpush3.bf16.msra.mxu1 %v19369_v49 }
 0x447   : > { %v14519_v6 = vcombine.low %v14511_v43, %v14518_v58  ;;  %v13308_v62 = vcombine.low %v12824_v28, %v12831_v46  ;;  %v15017_v13 = vcombine.low %v24414_v50, %v12817_v15  ;;  %v10416_v10 = vcombine.high %v24208_v5, %v24208_v5 }
 0x448   : > { %v13306_v24 = vrot.slane %v13299_v0, %v20373_v44  ;;  %v9429_v9 = vrot.slane %v9422_v18, %v23348_v17  ;;  %v11578_v45 = vcombine.low %v24226_v11, %v24243_v35  ;;  %v24635_v53 = vcombine.high %v24226_v11, %v24226_v11 }
 0x449   : > { %14677 = vrot.lane.b32.xlu0 %v14519_v6, %s19428_s16  ;;  %v12839_v52 = vcombine.low %v12817_v15, %v12824_v28  ;;  %v8702_v49 = vcombine.high %v24599_v19, %v24599_v19  ;;  %v13322_v58 = vrot.slane %v13308_v62, %v20373_v44  ;;  %v15024_v14 = vrot.slane %v15017_v13, %v20373_v44  ;;  %v19370_v15 = vld [vmem:[%s27416_s5 + $0x58] sm:$0xff]   ;;  %v19372_v13 = vld [vmem:[%s27416_s5 + $0x60] sm:$0xff]  }
 0x44a   : > { %v13307_v43 = vcombine.low %v24414_v50, %v13306_v24  ;;  %v9437_v0 = vcombine.low %v9429_v9, %v9436_v23  ;;  %v24643_v18 = vrot.slane %v11578_v45, %v20373_v44  ;;  %v14235_v6 = vcombine.low %v10416_v10, %v24230_v29  ;;  %v19371_v62 = vld [vmem:[%s27416_s5 + $0x18] sm:$0xff]   ;;  %18959 = vmatprep.subr.bf16.mxu1 %v19370_v15 }
 0x44b   : > { %v12810_v32 = vcombine.low %v24243_v35, %v24635_v53  ;;  %v15025_v19 = vcombine.low %v15024_v14, %v13322_v58  ;;  %v10764_v28 = vshll.u32 %v10416_v10, 16  ;;  %v12847_v23 = vrot.slane %v12839_v52, %v20373_v44  ;;  %18960 = vmatpush3.bf16.msra.mxu1 %v19371_v62 }
 0x44c   : > { %v13315_v50 = vrot.slane %v13307_v43, %v20373_v44  ;;  %v9632_v24 = vrot.slane %v9437_v0, 7  ;;  %v11608_v9 = vcombine.low %v24578_v3, %v24643_v18  ;;  %v14242_v45 = vrot.slane %v14235_v6, %v20373_v44  ;;  %v19373_v3 = vld [vmem:[%s27416_s5 + $0x20] sm:$0xff]   ;;  %18961 = vmatprep.subr.bf16.mxu1 %v19372_v13 }
 0x44d   : > { %v24663_v12 = vrot.slane %v12810_v32, %v20373_v44  ;;  %19212 = vmatmul.mubr.msk.bf16.gmra.mrb[96].mxu0 %vm1699_vm10, %v15025_v19  ;;  %v10751_v10 = vshrl.u32 %v24208_v5, 16  ;;  %v10756_v52 = vshll.u32 %v24548_v8, 16  ;;  %v10759_v43 = vshrl.u32 %v24548_v8, 16 }
 0x44e   : > { %v13323_v14 = vcombine.low %v13315_v50, %v13322_v58  ;;  %v9633_v0 = vsel %vm9604_vm3, %v9631_v30, %v9632_v24  ;;  %v24674_v32 = vrot.slane %v11608_v9, %v20373_v44  ;;  %v14243_v6 = vcombine.low %v24588_v42, %v14242_v45  ;;  %19215 = vmatprep.mubr.msk.bf16.mxu0 %vm19431_vm13, %v27698_v61 }
 0x44f   : > { %v12840_v58 = vcombine.low %v12831_v46, %v24663_v12  ;;  %v9704_v5 = vsel %vm9694_vm4, %v9633_v0, 0.0  ;;  %v24684_v8 = vsel %vm20462_vm1, %v10759_v43, %v10764_v28  ;;  %v10768_v30 = vshrl.u32 %v24212_v47, 16  ;;  %18962 = vmatpush3.bf16.msra.mxu1 %v19373_v3 }
 0x450   : > { %28013 = vst [vmem:[#allocation26_spill] sm:$0xff] %v24674_v32  ;;  %13546 = vrot.lane.b32.xlu1 %v13323_v14, %s19432_s14  ;;  %28014 = vst [vmem:[#allocation30_spill] sm:$0xff] %v24684_v8  ;;  %v10773_v15 = vshll.u32 %v24230_v29, 16  ;;  %v9719_v62 = vpack.c.bf16 %v9704_v5, %v9688_v40  ;;  %v18619_v19 = vpack.c.bf16 %v9704_v5, %v9704_v5  ;;  %v10776_v9 = vshrl.u32 %v24230_v29, 16  ;;  %v24704_v43 = vpop.f32.mrb[40].mxu1 }
 0x451   : > { %v14250_v46 = vrot.slane %v14243_v6, %v20373_v44  ;;  %v12854_v50 = vrot.slane %v12840_v58, %v20373_v44  ;;  %v10781_v28 = vshll.u32 %v24560_v51, 16  ;;  %v10784_v45 = vshrl.u32 %v24560_v51, 16  ;;  %v24713_v6 = vpop.f32.mrb[41].mxu1 }
 0x452   : > { %v24692_v24 = vsel %vm20462_vm1, %v10768_v30, %v10773_v15  ;;  %v24698_v47 = vrot.slane %v9719_v62, %v20373_v44  ;;  %v24701_v40 = vrot.slane %v18619_v19, %v20373_v44  ;;  %v10789_v29 = vshll.u32 %v24582_v36, 16  ;;  %v24730_v15 = vpop.f32.mrb[42].mxu1 }
 0x453   : > { %28015 = vst [vmem:[#allocation32_spill] sm:$0xff] %v24692_v24  ;;  %v14251_v13 = vcombine.low %v14250_v46, %v24674_v32  ;;  %v12855_v14 = vcombine.low %v12847_v23, %v12854_v50  ;;  %v24708_v0 = vsel %vm20462_vm1, %v10776_v9, %v10781_v28  ;;  %v10792_v51 = vshrl.u32 %v24582_v36, 16  ;;  %28019 = vst [vmem:[#allocation25_spill] sm:$0xff] %v24730_v15  ;;  %v19375_v32 = vld [vmem:[%s27416_s5 + $0x28] sm:$0xff]  }
 0x454   : > { %28016 = vst [vmem:[#allocation35_spill] sm:$0xff] %v24708_v0  ;;  %v10797_v3 = vshll.u32 %v24226_v11, 16  ;;  %v28017_v58 = vcombine.high %v24289_v33, %v24289_v33  ;;  %v24721_v23 = vmax.f32 %v8702_v49, 0.0  ;;  %v24728_v36 = vsel %vm20462_vm1, %v10751_v10, %v10756_v52  ;;  %v24745_v10 = vpop.f32.mrb[43].mxu1 }
 0x455   : > { %14434 = vrot.lane.b32.xlu0 %v14251_v13, %s19425_s23  ;;  %28018 = vst [vmem:[#allocation37_spill] sm:$0xff] %v24728_v36  ;;  %13175 = vrot.lane.b32.xlu1 %v12855_v14, %s19428_s16  ;;  %v24735_v33 = vsel %vm20462_vm1, %v10784_v45, %v10789_v29  ;;  %v12178_v62 = vcombine.low %v24728_v36, %v24684_v8  ;;  %28022 = vst [vmem:[#allocation51_spill] sm:$0xff] %v24745_v10  ;;  %v10800_v9 = vshrl.u32 %v24226_v11, 16 }
 0x456   : > { %v24719_v5 = vrot.slane %v28017_v58, %v20373_v44  ;;  %28020 = vst [vmem:[#allocation24_spill] sm:$0xff] %v24735_v33  ;;  %v24739_v49 = vsel %vm20462_vm1, %v10792_v51, %v10797_v3  ;;  %v12179_v19 = vcombine.low %v24692_v24, %v24708_v0  ;;  %v24751_v46 = vrot.slane %v24698_v47, %v20373_v44 }
 0x457   : > { %28021 = vst [vmem:[#allocation27_spill] sm:$0xff] %v24739_v49  ;;  %v12180_v50 = vcombine.low %v24735_v33, %v24739_v49  ;;  %v12188_v28 = vrot.slane %v12178_v62, %v20373_v44  ;;  %v10805_v13 = vshll.u32 %v24243_v35, 16  ;;  %v10808_v14 = vshrl.u32 %v24243_v35, 16 }
 0x458   : > { %v12195_v45 = vrot.slane %v12179_v19, %v20373_v44  ;;  %v10813_v51 = vshll.u32 %v24635_v53, 16  ;;  %v24764_v3 = vcombine.high %v24243_v35, %v24243_v35  ;;  %v18743_v58 = vcombine.high %v24256_v22, %v24264_v48 }
 0x459   : > { %v12202_v29 = vrot.slane %v12180_v50, %v20373_v44  ;;  %v14748_v52 = vcombine.low %v24554_v37, %v12188_v28  ;;  %v24771_v62 = vsel %vm20462_vm1, %v10800_v9, %v10805_v13  ;;  %v12858_v30 = vcombine.low %v24259_v59, %v24302_v25  ;;  %v19374_v50 = vld [vmem:[%s27416_s5 + $0x68] sm:$0xff]   ;;  %v19376_v37 = vld [vmem:[%s27416_s5 + $0x70] sm:$0xff]  }
 0x45a   : > { %28023 = vst [vmem:[#allocation81_spill] sm:$0xff] %v24771_v62  ;;  %v12210_v19 = vcombine.low %v12188_v28, %v12195_v45  ;;  %v24786_v9 = vsel %vm20462_vm1, %v10808_v14, %v10813_v51  ;;  %v12856_v13 = vcombine.low %v24764_v3, %v24264_v48  ;;  %v12873_v8 = vrot.slane %v18743_v58, %v20373_v44 }
 0x45b   : > { %v14749_v42 = vcombine.low %v12195_v45, %v12202_v29  ;;  %28024 = vst [vmem:[#allocation82_spill] sm:$0xff] %v24786_v9  ;;  %v14756_v49 = vrot.slane %v14748_v52, %v20373_v44  ;;  %v12181_v0 = vcombine.low %v24771_v62, %v24786_v9  ;;  %18963 = vmatprep.subr.bf16.mxu1 %v19374_v50  ;;  %v19378_v9 = vld [vmem:[%s27416_s5 + $0x78] sm:$0xff]  }
 0x45c   : > { %v12218_v33 = vrot.slane %v12210_v19, %v20373_v44  ;;  %v12866_v14 = vrot.slane %v12856_v13, %v20373_v44  ;;  %v24799_v51 = vrot.slane %v12858_v30, %v20373_v44  ;;  %v24803_v28 = vcombine.high %v24256_v22, %v24256_v22  ;;  %18964 = vmatpush3.bf16.msra.mxu1 %v19375_v32  ;;  %v19377_v30 = vld [vmem:[%s27416_s5 + $0x30] sm:$0xff]  }
 0x45d   : > { %v14763_v45 = vrot.slane %v14749_v42, %v20373_v44  ;;  %v24806_v52 = vrot.slane %v12181_v0, %v20373_v44  ;;  %v24810_v19 = vcombine.high %v24264_v48, %v24264_v48  ;;  %v11624_v42 = vcombine.low %v24635_v53, %v24256_v22  ;;  %18965 = vmatprep.subr.bf16.mxu1 %v19376_v37 }
 0x45e   : > { %v13324_v58 = vcombine.low %v24256_v22, %v24264_v48  ;;  %v13333_v32 = vcombine.low %v12873_v8, %v24799_v51  ;;  %v15026_v0 = vcombine.low %v24663_v12, %v12866_v14  ;;  %v11625_v13 = vcombine.low %v24264_v48, %v24803_v28 }
 0x45f   : > { %v14764_v50 = vcombine.low %v14756_v49, %v14763_v45  ;;  %v12211_v62 = vcombine.low %v12202_v29, %v24806_v52  ;;  %v11626_v37 = vcombine.low %v24810_v19, %v24259_v59  ;;  %v24830_v24 = vrot.slane %v11624_v42, %v20373_v44 }
 0x460   : > { %v13331_v49 = vrot.slane %v13324_v58, %v20373_v44  ;;  %v13347_v45 = vrot.slane %v13333_v32, %v20373_v44  ;;  %v15033_v36 = vrot.slane %v15026_v0, %v20373_v44  ;;  %v24837_v34 = vrot.slane %v11625_v13, %v20373_v44  ;;  %18966 = vmatpush3.bf16.msra.mxu1 %v19377_v30 }
 0x461   : > { %28025 = vst [vmem:[#allocation83_spill] sm:$0xff] %v24830_v24  ;;  %14970 = vrot.lane.b32.xlu0 %v14764_v50, %s19432_s14  ;;  %v24841_v29 = vcombine.high %v24259_v59, %v24259_v59  ;;  %v12225_v55 = vrot.slane %v12211_v62, %v20373_v44  ;;  %v11648_v42 = vrot.slane %v11626_v37, %v20373_v44  ;;  %v24854_v15 = vpop.f32.mrb[44].mxu1 }
 0x462   : > { %28026 = vst [vmem:[#allocation84_spill] sm:$0xff] %v24837_v34  ;;  %v14520_v58 = vcombine.low %v24643_v18, %v24830_v24  ;;  %v13332_v50 = vcombine.low %v24663_v12, %v13331_v49  ;;  %v15034_v32 = vcombine.low %v15033_v36, %v13347_v45  ;;  %v18753_v13 = vcombine.high %v24226_v11, %v24243_v35  ;;  %v19379_v18 = vld [vmem:[%s27416_s5 + $0x38] sm:$0xff]   ;;  %v24862_v37 = vpop.f32.mrb[45].mxu1 }
 0x463   : > { %v11627_v0 = vcombine.low %v24302_v25, %v24841_v29  ;;  %v18744_v10 = vcombine.high %v24259_v59, %v24302_v25  ;;  %18967 = vmatprep.subr.bf16.mxu1 %v19378_v9  ;;  %v12226_v62 = vcombine.low %v12218_v33, %v12225_v55  ;;  %v14521_v12 = vcombine.low %v24837_v34, %v11648_v42  ;;  %v24870_v24 = vpop.f32.mrb[46].mxu1 }
 0x464   : > { %v14528_v36 = vrot.slane %v14520_v58, %v20373_v44  ;;  %v13340_v30 = vrot.slane %v13332_v50, %v20373_v44  ;;  %19216 = vmatmul.mubr.msk.bf16.gmra.mrb[100].mxu0 %vm1699_vm10, %v15034_v32  ;;  %v14259_v35 = vrot.slane %v18753_v13, %v20373_v44  ;;  %v12888_v49 = vcombine.low %v12866_v14, %v12873_v8  ;;  %v24881_v32 = vpop.f32.mrb[47].mxu1 }
 0x465   : > { %v24866_v11 = vrot.slane %v11627_v0, %v20373_v44  ;;  %v12887_v9 = vrot.slane %v18744_v10, %v20373_v44  ;;  %12546 = vrot.lane.b32.xlu1 %v12226_v62, %s19425_s23  ;;  %v14535_v55 = vrot.slane %v14521_v12, %v20373_v44  ;;  %19219 = vmatprep.mubr.msk.bf16.mxu0 %vm19431_vm13, %v27698_v61  ;;  %v10816_v50 = vshrl.u32 %v24635_v53, 16 }
 0x466   : > { %v13348_v33 = vcombine.low %v13340_v30, %v13347_v45  ;;  %v24878_v58 = vcombine.high %v24328_v31, %v24328_v31  ;;  %v14260_v10 = vcombine.low %v14259_v35, %v24837_v34  ;;  %v12896_v0 = vrot.slane %v12888_v49, %v20373_v44  ;;  %18968 = vmatpush3.bf16.msra.mxu1 %v19379_v18 }
 0x467   : > { %v11657_v8 = vcombine.low %v11648_v42, %v24866_v11  ;;  %v12889_v14 = vcombine.low %v24799_v51, %v12887_v9  ;;  %v14536_v45 = vcombine.low %v14528_v36, %v14535_v55  ;;  %v24889_v13 = vcombine.high %v24491_v21, %v24491_v21 }
 0x468   : > { %v24893_v62 = vcombine.high %v24610_v7, %v24610_v7  ;;  %v12905_v53 = vcombine.low %v24610_v7, %v24878_v58  ;;  %v14267_v51 = vrot.slane %v14260_v10, %v20373_v44  ;;  %v28028_v18 = vshll.u32 %v24764_v3, 16 }
 0x469   : > { %v24898_v42 = vrot.slane %v11657_v8, %v20373_v44  ;;  %v12903_v12 = vrot.slane %v12889_v14, %v20373_v44  ;;  %14679 = vrot.lane.b32.xlu0 %v14536_v45, %s19428_s16  ;;  %13548 = vrot.lane.b32.xlu1 %v13348_v33, %s19432_s14  ;;  %v12907_v35 = vcombine.low %v24719_v5, %v24889_v13  ;;  %v10825_v55 = vshrl.u32 %v24256_v22, 16 }
 0x46a   : > { %v24906_v36 = vsel %vm20462_vm1, %v10816_v50, %v28028_v18  ;;  %v12906_v30 = vcombine.low %v24893_v62, %v24491_v21  ;;  %v24915_v49 = vrot.slane %v12905_v53, %v20373_v44  ;;  %v10830_v50 = vshll.u32 %v24264_v48, 16 }
 0x46b   : > { %28027 = vst [vmem:[#allocation85_spill] sm:$0xff] %v24898_v42  ;;  %28029 = vst [vmem:[#allocation86_spill] sm:$0xff] %v24906_v36  ;;  %v14268_v3 = vcombine.low %v14267_v51, %v24898_v42  ;;  %v12904_v8 = vcombine.low %v12896_v0, %v12903_v12  ;;  %v10833_v10 = vshrl.u32 %v24264_v48, 16  ;;  %v24925_v14 = vrot.slane %v12907_v35, %v20373_v44 }
 0x46c   : > { %v24922_v33 = vrot.slane %v12906_v30, %v20373_v44  ;;  %v15035_v45 = vcombine.low %v12887_v9, %v24915_v49  ;;  %v10838_v53 = vshll.u32 %v24803_v28, 16  ;;  %v24931_v22 = vsel %vm20462_vm1, %v10825_v55, %v10830_v50 }
 0x46d   : > { %28030 = vst [vmem:[#allocation87_spill] sm:$0xff] %v24931_v22  ;;  %v10841_v0 = vshrl.u32 %v24803_v28, 16  ;;  %v10846_v51 = vshll.u32 %v24810_v19, 16  ;;  %v10849_v48 = vshrl.u32 %v24810_v19, 16  ;;  %14436 = vrot.lane.b32.xlu0 %v14268_v3, %s19425_s23  ;;  %13177 = vrot.lane.b32.xlu1 %v12904_v8, %s19428_s16  ;;  %v10854_v30 = vshll.u32 %v24259_v59, 16  ;;  %v24954_v3 = vpop.f32.mrb[48].mxu1 }
 0x46e   : > { %v13358_v12 = vcombine.low %v24922_v33, %v24925_v14  ;;  %v15042_v9 = vrot.slane %v15035_v45, %v20373_v44  ;;  %v24943_v18 = vsel %vm20462_vm1, %v10833_v10, %v10838_v53  ;;  %v10857_v19 = vshrl.u32 %v24259_v59, 16  ;;  %v24967_v45 = vpop.f32.mrb[49].mxu1 }
 0x46f   : > { %28031 = vst [vmem:[#allocation88_spill] sm:$0xff] %v24943_v18  ;;  %v24948_v28 = vsel %vm20462_vm1, %v10841_v0, %v10846_v51  ;;  %v10862_v35 = vshll.u32 %v24302_v25, 16  ;;  %v12227_v55 = vcombine.low %v24906_v36, %v24931_v22  ;;  %v24961_v50 = vsel %vm20462_vm1, %v10849_v48, %v10854_v30  ;;  %v18935_v48 = vpop.f32.mrb[50].mxu1 }
 0x470   : > { %28032 = vst [vmem:[#allocation89_spill] sm:$0xff] %v24948_v28  ;;  %v24957_v8 = vrot.slane %v13358_v12, %v20373_v44  ;;  %28033 = vst [vmem:[#allocation90_spill] sm:$0xff] %v24961_v50  ;;  %v12228_v10 = vcombine.low %v24943_v18, %v24948_v28  ;;  %v10418_v59 = vcombine.high %v24302_v25, %v24302_v25  ;;  %v10865_v51 = vshrl.u32 %v24302_v25, 16 }
 0x471   : > { %v24971_v53 = vsel %vm20462_vm1, %v10857_v19, %v10862_v35  ;;  %v12237_v0 = vrot.slane %v12227_v55, %v20373_v44  ;;  %v10870_v12 = vshll.u32 %v24841_v29, 16  ;;  %v24978_v30 = vrot.slane %v24701_v40, %v20373_v44  ;;  %v18936_v19 = vpop.f32.mrb[51].mxu1 }
 0x472   : > { %28034 = vst [vmem:[#allocation91_spill] sm:$0xff] %v24971_v53  ;;  %v15043_v42 = vcombine.low %v15042_v9, %v24957_v8  ;;  %v12229_v34 = vcombine.low %v24961_v50, %v24971_v53  ;;  %v12244_v28 = vrot.slane %v12228_v10, %v20373_v44  ;;  %v10873_v55 = vshrl.u32 %v24841_v29, 16 }
 0x473   : > { %v14765_v35 = vcombine.low %v24806_v52, %v12237_v0  ;;  %v10878_v25 = vshll.u32 %v10418_v59, 16  ;;  %v11673_v48 = vcombine.low %v24328_v31, %v24610_v7  ;;  %v24992_v9 = vsel %vm20462_vm1, %v10865_v51, %v10870_v12 }
 0x474   : > { %19220 = vmatmul.mubr.msk.bf16.gmra.mrb[104].mxu0 %vm1699_vm10, %v15043_v42  ;;  %v12251_v22 = vrot.slane %v12229_v34, %v20373_v44  ;;  %28035 = vst [vmem:[#allocation92_spill] sm:$0xff] %v24992_v9  ;;  %v18734_v10 = vcombine.high %v24328_v31, %v24610_v7  ;;  %v11675_v52 = vcombine.low %v24491_v21, %v24719_v5 }
 0x475   : > { %v25000_v19 = vsel %vm20462_vm1, %v10873_v55, %v10878_v25  ;;  %v12259_v53 = vcombine.low %v12237_v0, %v12244_v28  ;;  %v25003_v50 = vrot.slane %v11673_v48, %v20373_v44  ;;  %v11332_v34 = vcombine.low %v23403_v27, %v23406_v57  ;;  %19223 = vmatprep.mubr.msk.bf16.mxu0 %vm19431_vm13, %v27698_v61 }
 0x476   : > { %28036 = vst [vmem:[#allocation93_spill] sm:$0xff] %v25000_v19  ;;  %v14766_v42 = vcombine.low %v12244_v28, %v12251_v22  ;;  %v14773_v51 = vrot.slane %v14765_v35, %v20373_v44  ;;  %v12230_v12 = vcombine.low %v24992_v9, %v25000_v19  ;;  %v25013_v18 = vrot.slane %v18734_v10, %v20373_v44 }
 0x477   : > { %28037 = vst [vmem:[#allocation94_spill] sm:$0xff] %v25003_v50  ;;  %v25016_v0 = vrot.slane %v11675_v52, %v20373_v44  ;;  %v14537_v55 = vcombine.low %v24866_v11, %v25003_v50  ;;  %v11333_v25 = vcombine.low %v23419_v26, %v23466_v20  ;;  %v28040_v28 = vcombine.low %v23371_v1, %v23383_v16 }
 0x478   : > { %28038 = vst [vmem:[#allocation95_spill] sm:$0xff] %v25013_v18  ;;  %v14780_v48 = vrot.slane %v14766_v42, %v20373_v44  ;;  %v25028_v27 = vrot.slane %v12230_v12, %v20373_v44  ;;  %v28041_v10 = vcombine.high %v23371_v1, %v23383_v16  ;;  %v25037_v11 = vrot.slane %v11332_v34, %v20373_v44 }
 0x479   : > { %28039 = vst [vmem:[#allocation96_spill] sm:$0xff] %v25016_v0  ;;  %v11340_v35 = vrot.slane %v28040_v28, %v20373_v44  ;;  %v14538_v26 = vcombine.low %v25013_v18, %v25016_v0  ;;  %v14545_v20 = vrot.slane %v14537_v55, %v20373_v44  ;;  %v11361_v28 = vrot.slane %v11333_v25, %v20373_v44 }
 0x47a   : > { %v25034_v52 = vrot.slane %v28041_v10, %v20373_v44  ;;  %28043 = vst [vmem:[#allocation98_spill] sm:$0xff] %v25037_v11  ;;  %v13349_v42 = vcombine.low %v24841_v29, %v24328_v31  ;;  %v14781_v12 = vcombine.low %v14773_v51, %v14780_v48  ;;  %v12260_v57 = vcombine.low %v12251_v22, %v25028_v27 }
 0x47b   : > { %v12267_v50 = vrot.slane %v12259_v53, %v20373_v44  ;;  %v14269_v10 = vcombine.low %v10418_v59, %v24610_v7  ;;  %v14552_v34 = vrot.slane %v14538_v26, %v20373_v44  ;;  %v18754_v55 = vcombine.high %v24491_v21, %v24719_v5 }
 0x47c   : > { %28042 = vst [vmem:[#allocation97_spill] sm:$0xff] %v25034_v52  ;;  %v11362_v19 = vcombine.low %v11340_v35, %v25034_v52  ;;  %v13356_v9 = vrot.slane %v13349_v42, %v20373_v44  ;;  %v28044_v29 = vcombine.high %v24698_v47, %v24698_v47  ;;  %14972 = vrot.lane.b32.xlu0 %v14781_v12, %s19432_s14  ;;  %v25071_v12 = vld [vmem:[%s27415_s4] ss:$0 sm:$0xff] }
 0x47d   : > { %v12274_v22 = vrot.slane %v12260_v57, %v20373_v44  ;;  %v14277_v59 = vrot.slane %v14269_v10, %v20373_v44  ;;  %v18910_v53 = vadd.f32 %v24404_v41, %v24392_v4  ;;  %v14553_v25 = vcombine.low %v14545_v20, %v14552_v34 }
 0x47e   : > { %v25057_v51 = vrot.slane %v28044_v29, %v20373_v44  ;;  %v11363_v35 = vcombine.low %v25037_v11, %v11361_v28  ;;  %v13357_v48 = vcombine.low %v13356_v9, %v24915_v49  ;;  %v14284_v26 = vrot.slane %v18754_v55, %v20373_v44 }
 0x47f   : > { %v12275_v42 = vcombine.low %v12267_v50, %v12274_v22  ;;  %v14285_v47 = vcombine.low %v14277_v59, %v25013_v18  ;;  %v8233_v57 = vadd.f32 %v25071_v12, %v18910_v53  ;;  %v18913_v41 = vadd.f32 %v24420_v60, %v24409_v38  ;;  %v28046_v60 = vld [vmem:[#allocation45_spill] sm:$0xff] }
 0x480   : > { %v28045_v4 = vcombine.high %v24701_v40, %v24701_v40  ;;  %v25083_v50 = vrot.slane %v11362_v19, %v20373_v44  ;;  %v13365_v20 = vrot.slane %v13357_v48, %v20373_v44  ;;  %v14286_v28 = vcombine.low %v25016_v0, %v14284_v26  ;;  %14681 = vrot.lane.b32.xlu0 %v14553_v25, %s19428_s16  ;;  %v28047_v48 = vld [vmem:[#allocation68_spill] sm:$0xff] }
 0x481   : > { %12548 = vrot.lane.b32.xlu1 %v12275_v42, %s19425_s23  ;;  %v14293_v10 = vrot.slane %v14285_v47, %v20373_v44  ;;  %v8369_v38 = vadd.f32 %v28046_v60, %v8233_v57  ;;  %v8236_v34 = vadd.f32 %v25071_v12, %v18913_v41  ;;  %v10887_v40 = vshll.u32 %v24610_v7, 16 }
 0x482   : > { %v25080_v9 = vrot.slane %v28045_v4, %v20373_v44  ;;  %v13373_v55 = vcombine.low %v13365_v20, %v24957_v8  ;;  %v14300_v19 = vrot.slane %v14286_v28, %v20373_v44  ;;  %v10882_v29 = vshrl.u32 %v24328_v31, 16 }
 0x483   : > { %v10890_v22 = vshrl.u32 %v24610_v7, 16  ;;  %v25098_v59 = vrot.slane %v11363_v35, %v20373_v44  ;;  %v8703_v53 = vcombine.high %v8369_v38, %v8369_v38  ;;  %v8710_v25 = vrot.slane %v8369_v38, %v23348_v17 }
 0x484   : > { %v8372_v26 = vadd.f32 %v28047_v48, %v8236_v34  ;;  %v14301_v42 = vcombine.low %v14293_v10, %v14300_v19  ;;  %v25104_v47 = vsel %vm20462_vm1, %v10882_v29, %v10887_v40  ;;  %v10895_v8 = vshll.u32 %v24878_v58, 16 }
 0x485   : > { %28048 = vst [vmem:[#allocation45_spill] sm:$0xff] %v25104_v47  ;;  %v10903_v57 = vshll.u32 %v24893_v62, 16  ;;  %13550 = vrot.lane.b32.xlu1 %v13373_v55, %s19432_s14  ;;  %v8717_v31 = vrot.slane %v8703_v53, %v23348_v17  ;;  %v8718_v7 = vcombine.high %v8710_v25, %v8710_v25  ;;  %v9009_v35 = vmax.f32 %v8710_v25, 0.0 }
 0x486   : > { %v8720_v41 = vcombine.high %v8372_v26, %v8372_v26  ;;  %14438 = vrot.lane.b32.xlu0 %v14301_v42, %s19425_s23  ;;  %v8727_v4 = vrot.slane %v8372_v26, %v23348_v17  ;;  %v25114_v20 = vsel %vm20462_vm1, %v10890_v22, %v10895_v8  ;;  %v10898_v28 = vshrl.u32 %v24878_v58, 16 }
 0x487   : > { %28049 = vst [vmem:[#allocation68_spill] sm:$0xff] %v25114_v20  ;;  %v10906_v10 = vshrl.u32 %v24893_v62, 16  ;;  %v8719_v60 = vcombine.high %v8717_v31, %v8717_v31  ;;  %v9010_v38 = vmax.f32 %v8718_v7, 0.0  ;;  %v9011_v34 = vmax.f32 %v8717_v31, 0.0 }
 0x488   : > { %v9438_v40 = vcombine.low %v24721_v23, %v9009_v35  ;;  %v8734_v55 = vrot.slane %v8720_v41, %v23348_v17  ;;  %v8735_v19 = vcombine.high %v8727_v4, %v8727_v4  ;;  %v25122_v29 = vsel %vm20462_vm1, %v10898_v28, %v10903_v57 }
 0x489   : > { %28050 = vst [vmem:[#allocation99_spill] sm:$0xff] %v25122_v29  ;;  %v10911_v53 = vshll.u32 %v24491_v21, 16  ;;  %v9012_v22 = vmax.f32 %v8719_v60, 0.0  ;;  %v9439_v25 = vcombine.low %v9010_v38, %v9011_v34  ;;  %v9013_v48 = vmax.f32 %v8727_v4, 0.0 }
 0x48a   : > { %v9446_v58 = vrot.slane %v9438_v40, %v23348_v17  ;;  %v8736_v62 = vcombine.high %v8734_v55, %v8734_v55  ;;  %v9014_v26 = vmax.f32 %v8735_v19, 0.0  ;;  %v10914_v23 = vshrl.u32 %v24491_v21, 16 }
 0x48b   : > { %v25128_v42 = vsel %vm20462_vm1, %v10906_v10, %v10911_v53  ;;  %v9453_v8 = vrot.slane %v9439_v25, %v23348_v17  ;;  %v9455_v31 = vcombine.low %v9012_v22, %v9013_v48  ;;  %v10919_v57 = vshll.u32 %v24719_v5, 16 }
 0x48c   : > { %28051 = vst [vmem:[#allocation100_spill] sm:$0xff] %v25128_v42  ;;  %v10922_v7 = vshrl.u32 %v24719_v5, 16  ;;  %v9016_v35 = vmax.f32 %v8736_v62, 0.0  ;;  %v9469_v41 = vrot.slane %v9014_v26, %v23348_v17  ;;  %v10927_v4 = vshll.u32 %v24889_v13, 16  ;;  %v28185_v54 = vld [vmem:[#allocation45_spill] sm:$0xff] }
 0x48d   : > { %v12276_v28 = vcombine.low %v25104_v47, %v25114_v20  ;;  %v9454_v60 = vcombine.low %v9446_v58, %v9453_v8  ;;  %v9462_v10 = vrot.slane %v9455_v31, %v23348_v17  ;;  %v25141_v21 = vsel %vm20462_vm1, %v10914_v23, %v10919_v57 }
 0x48e   : > { %28052 = vst [vmem:[#allocation101_spill] sm:$0xff] %v25141_v21  ;;  %v12277_v38 = vcombine.low %v25122_v29, %v25128_v42  ;;  %v9015_v34 = vmax.f32 %v8734_v55, 0.0  ;;  %v25147_v40 = vsel %vm20462_vm1, %v10922_v7, %v10927_v4  ;;  %v25154_v53 = vcombine.high %v24719_v5, %v24719_v5  ;;  %v25161_v55 = vpop.permute.xlu1 %13165 }
 0x48f   : > { %28053 = vst [vmem:[#allocation102_spill] sm:$0xff] %v25147_v40  ;;  %v25150_v19 = vrot.slane %v12276_v28, %v20373_v44  ;;  %v9634_v22 = vrot.slane %v9454_v60, 7  ;;  %v9470_v25 = vcombine.low %v9462_v10, %v9469_v41  ;;  %v12278_v58 = vcombine.low %v25141_v21, %v25147_v40 }
 0x490   : > { %v25159_v48 = vrot.slane %v12277_v38, %v20373_v44  ;;  %v11378_v62 = vcombine.low %v25083_v50, %v25098_v59  ;;  %v25165_v26 = vcombine.low %v9015_v34, %v9016_v35  ;;  %v12908_v5 = vcombine.low %v25154_v53, %v25057_v51 }
 0x491   : > { %v14782_v23 = vcombine.low %v25028_v27, %v25150_v19  ;;  %v9689_v8 = vsel %vm9604_vm3, 0.0, %v9634_v22  ;;  %v9635_v31 = vrot.slane %v9470_v25, 7  ;;  %v25173_v57 = vrot.slane %v12278_v58, %v20373_v44 }
 0x492   : > { %v18745_v7 = vcombine.high %v24751_v46, %v25057_v51  ;;  %v12936_v50 = vrot.slane %v12908_v5, %v20373_v44  ;;  %v12955_v59 = vcombine.low %v24978_v30, %v25080_v9  ;;  %v18746_v27 = vcombine.high %v24978_v30, %v25080_v9 }
 0x493   : > { %v14790_v41 = vrot.slane %v14782_v23, %v20373_v44  ;;  %v9636_v35 = vsel %vm9604_vm3, %v9634_v22, %v9635_v31  ;;  %v14783_v4 = vcombine.low %v25159_v48, %v25173_v57  ;;  %v12937_v60 = vcombine.low %v24915_v49, %v24922_v33  ;;  %v12537_v31 = vpop.permute.xlu1 %12536 }
 0x494   : > { %v25187_v28 = vrot.slane %v18745_v7, %v20373_v44  ;;  %v9705_v10 = vsel %vm9694_vm4, %v9636_v35, 0.0  ;;  %v25193_v38 = vrot.slane %v12955_v59, %v20373_v44  ;;  %v25196_v34 = vrot.slane %v18746_v27, %v20373_v44 }
 0x495   : > { %v12938_v25 = vcombine.low %v24925_v14, %v12936_v50  ;;  %v9720_v22 = vpack.c.bf16 %v9705_v10, %v9689_v8  ;;  %v18620_v58 = vpack.c.bf16 %v9705_v10, %v9705_v10  ;;  %v14797_v23 = vrot.slane %v14783_v4, %v20373_v44 }
 0x496   : > { %v15044_v5 = vcombine.low %v12936_v50, %v25187_v28  ;;  %v15045_v49 = vcombine.low %v25193_v38, %v25196_v34  ;;  %v12945_v33 = vrot.slane %v12937_v60, %v20373_v44  ;;  %v18916_v59 = vadd.f32 %v24479_v63, %v24468_v56 }
 0x497   : > { %v12952_v7 = vrot.slane %v12938_v25, %v20373_v44  ;;  %v10226_v27 = vrot.slane %v9720_v22, %v20373_v44  ;;  %v25209_v14 = vrot.slane %v18620_v58, %v20373_v44  ;;  %v14798_v8 = vcombine.low %v14790_v41, %v14797_v23  ;;  %v28054_v58 = vld [vmem:[#allocation70_spill] sm:$0xff] }
 0x498   : > { %v15052_v35 = vrot.slane %v15044_v5, %v20373_v44  ;;  %v15059_v50 = vrot.slane %v15045_v49, %v20373_v44  ;;  %v8241_v10 = vadd.f32 %v25071_v12, %v18916_v59  ;;  %v25216_v60 = vcombine.high %v24751_v46, %v24751_v46 }
 0x499   : > { %v12953_v4 = vcombine.low %v12945_v33, %v12952_v7  ;;  %v25219_v25 = vsel %vm1699_vm10, %v11378_v62, %v12537_v31  ;;  %v9479_v56 = vrot.slane %v25165_v26, %v23348_v17  ;;  %v10234_v63 = vcombine.high %v10226_v27, %v10226_v27  ;;  %14974 = vrot.lane.b32.xlu0 %v14798_v8, %s19432_s14 }
 0x49a   : > { %v10935_v41 = vshll.u32 %v25154_v53, 16  ;;  %v15060_v22 = vcombine.low %v15052_v35, %v15059_v50  ;;  %v8377_v23 = vadd.f32 %v28054_v58, %v8241_v10  ;;  %v25229_v5 = vcombine.high %v24978_v30, %v24978_v30 }
 0x49b   : > { %13179 = vrot.lane.b32.xlu1 %v12953_v4, %s19428_s16  ;;  %v25233_v62 = vcombine.high %v25057_v51, %v25057_v51  ;;  %v25238_v31 = vrot.slane %v10226_v27, %v20373_v44  ;;  %v11676_v53 = vcombine.low %v24889_v13, %v24751_v46  ;;  %v11722_v49 = vcombine.low %v25057_v51, %v25216_v60 }
 0x49c   : > { %19224 = vmatmul.mubr.msk.bf16.gmra.mrb[108].mxu0 %vm1699_vm10, %v15060_v22  ;;  %v8737_v33 = vcombine.high %v8377_v23, %v8377_v23  ;;  %v8744_v7 = vrot.slane %v8377_v23, %v23348_v17  ;;  %v11724_v8 = vcombine.low %v25080_v9, %v25229_v5  ;;  %v25252_v27 = vrot.slane %v25209_v14, %v20373_v44 }
 0x49d   : > { %v11723_v59 = vcombine.low %v25233_v62, %v24978_v30  ;;  %v25255_v35 = vrot.slane %v11676_v53, %v20373_v44  ;;  %v25258_v50 = vrot.slane %v11722_v49, %v20373_v44  ;;  %v18919_v4 = vadd.f32 %v24499_v2, %v24487_v39  ;;  %19227 = vmatprep.mubr.msk.bf16.mxu0 %vm19431_vm13, %v27698_v61 }
 0x49e   : > { %v8751_v10 = vrot.slane %v8737_v33, %v23348_v17  ;;  %v8752_v22 = vcombine.high %v8744_v7, %v8744_v7  ;;  %v10930_v23 = vshrl.u32 %v24889_v13, 16  ;;  %v25270_v53 = vrot.slane %v10234_v63, %v20373_v44  ;;  %v28058_v63 = vld [vmem:[#allocation69_spill] sm:$0xff] }
 0x49f   : > { %28055 = vst [vmem:[#allocation70_spill] sm:$0xff] %v25255_v35  ;;  %v25266_v58 = vrot.slane %v11723_v59, %v20373_v44  ;;  %v25273_v49 = vrot.slane %v11724_v8, %v20373_v44  ;;  %v14554_v39 = vcombine.low %v25255_v35, %v25258_v50  ;;  %v8244_v2 = vadd.f32 %v25071_v12, %v18919_v4 }
 0x4a0   : > { %v8753_v26 = vcombine.high %v8751_v10, %v8751_v10  ;;  %v9017_v18 = vmax.f32 %v8744_v7, 0.0  ;;  %v9018_v33 = vmax.f32 %v8752_v22, 0.0  ;;  %v25280_v59 = vsel %vm20462_vm1, %v10930_v23, %v10935_v41 }
 0x4a1   : > { %28056 = vst [vmem:[#allocation103_spill] sm:$0xff] %v25273_v49  ;;  %28057 = vst [vmem:[#allocation104_spill] sm:$0xff] %v25280_v59  ;;  %v14555_v13 = vcombine.low %v25266_v58, %v25273_v49  ;;  %v8380_v0 = vadd.f32 %v28058_v63, %v8244_v2  ;;  %v10939_v8 = vshrl.u32 %v24751_v46, 16  ;;  %v10944_v40 = vshll.u32 %v25057_v51, 16 }
 0x4a2   : > { %v9019_v42 = vmax.f32 %v8751_v10, 0.0  ;;  %v9020_v35 = vmax.f32 %v8753_v26, 0.0  ;;  %v9472_v21 = vcombine.low %v9017_v18, %v9018_v33  ;;  %v14562_v4 = vrot.slane %v14554_v39, %v20373_v44 }
 0x4a3   : > { %v14569_v7 = vrot.slane %v14555_v13, %v20373_v44  ;;  %v8754_v22 = vcombine.high %v8380_v0, %v8380_v0  ;;  %v8761_v41 = vrot.slane %v8380_v0, %v23348_v17  ;;  %v25292_v23 = vsel %vm20462_vm1, %v10939_v8, %v10944_v40 }
 0x4a4   : > { %28059 = vst [vmem:[#allocation69_spill] sm:$0xff] %v25292_v23  ;;  %v9486_v2 = vrot.slane %v9472_v21, %v23348_v17  ;;  %v9488_v63 = vcombine.low %v9019_v42, %v9020_v35  ;;  %v12279_v20 = vcombine.low %v25280_v59, %v25292_v23  ;;  %v12308_v18 = vcombine.low %v25150_v19, %v25159_v48 }
 0x4a5   : > { %v14570_v26 = vcombine.low %v14562_v4, %v14569_v7  ;;  %v8768_v10 = vrot.slane %v8754_v22, %v23348_v17  ;;  %v8769_v39 = vcombine.high %v8761_v41, %v8761_v41  ;;  %v9021_v33 = vmax.f32 %v8761_v41, 0.0 }
 0x4a6   : > { %v9487_v13 = vcombine.low %v9479_v56, %v9486_v2  ;;  %v9495_v0 = vrot.slane %v9488_v63, %v23348_v17  ;;  %v25302_v40 = vrot.slane %v12279_v20, %v20373_v44  ;;  %v25306_v42 = vcombine.high %v25080_v9, %v25080_v9 }
 0x4a7   : > { %14683 = vrot.lane.b32.xlu0 %v14570_v26, %s19428_s16  ;;  %v9022_v21 = vmax.f32 %v8769_v39, 0.0  ;;  %v9023_v35 = vmax.f32 %v8768_v10, 0.0  ;;  %v9502_v19 = vrot.slane %v9021_v33, %v23348_v17  ;;  %v10947_v48 = vshrl.u32 %v25057_v51, 16 }
 0x4a8   : > { %v9637_v8 = vrot.slane %v9487_v13, 7  ;;  %v12309_v56 = vcombine.low %v25173_v57, %v25302_v40  ;;  %v12316_v4 = vrot.slane %v12308_v18, %v20373_v44  ;;  %v10952_v20 = vshll.u32 %v25216_v60, 16 }
 0x4a9   : > { %v8770_v7 = vcombine.high %v8768_v10, %v8768_v10  ;;  %v9503_v22 = vcombine.low %v9495_v0, %v9502_v19  ;;  %v10955_v41 = vshrl.u32 %v25216_v60, 16  ;;  %v10960_v2 = vshll.u32 %v25233_v62, 16 }
 0x4aa   : > { %v9690_v63 = vsel %vm9604_vm3, 0.0, %v9637_v8  ;;  %v25318_v26 = vcombine.low %v9022_v21, %v9023_v35  ;;  %v12323_v39 = vrot.slane %v12309_v56, %v20373_v44  ;;  %v10963_v33 = vshrl.u32 %v25233_v62, 16 }
 0x4ab   : > { %v9638_v13 = vrot.slane %v9503_v22, 7  ;;  %v25324_v57 = vsel %vm20462_vm1, %v10947_v48, %v10952_v20  ;;  %v25328_v18 = vsel %vm20462_vm1, %v10955_v41, %v10960_v2  ;;  %v10968_v60 = vshll.u32 %v24978_v30, 16 }
 0x4ac   : > { %28060 = vst [vmem:[#allocation105_spill] sm:$0xff] %v25324_v57  ;;  %28061 = vst [vmem:[#allocation106_spill] sm:$0xff] %v25328_v18  ;;  %v12324_v10 = vcombine.low %v12316_v4, %v12323_v39  ;;  %v10971_v0 = vshrl.u32 %v24978_v30, 16  ;;  %v10976_v21 = vshll.u32 %v25080_v9, 16  ;;  %v10979_v35 = vshrl.u32 %v25080_v9, 16 }
 0x4ad   : > { %v9639_v62 = vsel %vm9604_vm3, %v9637_v8, %v9638_v13  ;;  %v25337_v19 = vsel %vm20462_vm1, %v10963_v33, %v10968_v60  ;;  %v10984_v48 = vshll.u32 %v25229_v5, 16  ;;  %v10987_v56 = vshrl.u32 %v25229_v5, 16  ;;  %v28066_v60 = vld [vmem:[#allocation25_spill] sm:$0xff] }
 0x4ae   : > { %28062 = vst [vmem:[#allocation107_spill] sm:$0xff] %v25337_v19  ;;  %v9706_v20 = vsel %vm9694_vm4, %v9639_v62, 0.0  ;;  %12550 = vrot.lane.b32.xlu1 %v12324_v10, %s19425_s23  ;;  %v25345_v30 = vsel %vm20462_vm1, %v10971_v0, %v10976_v21  ;;  %v10992_v9 = vshll.u32 %v25306_v42, 16  ;;  %v12325_v8 = vcombine.low %v25324_v57, %v25328_v18 }
 0x4af   : > { %28063 = vst [vmem:[#allocation108_spill] sm:$0xff] %v25345_v30  ;;  %v9721_v4 = vpack.c.bf16 %v9706_v20, %v9690_v63  ;;  %v18621_v22 = vpack.c.bf16 %v9706_v20, %v9706_v20  ;;  %v25352_v41 = vsel %vm20462_vm1, %v10979_v35, %v10984_v48  ;;  %v12326_v2 = vcombine.low %v25337_v19, %v25345_v30  ;;  %v28067_v63 = vld [vmem:[#allocation51_spill] sm:$0xff] }
 0x4b0   : > { %28064 = vst [vmem:[#allocation109_spill] sm:$0xff] %v25352_v41  ;;  %v25358_v39 = vsel %vm20462_vm1, %v10987_v56, %v10992_v9  ;;  %v25361_v33 = vrot.slane %v12325_v8, %v20373_v44  ;;  %v18922_v13 = vadd.f32 %v24713_v6, %v24704_v43  ;;  %v18925_v10 = vadd.f32 %v28067_v63, %v28066_v60  ;;  %v28070_v60 = vld [vmem:[#allocation16_spill] sm:$0xff] }
 0x4b1   : > { %28065 = vst [vmem:[#allocation110_spill] sm:$0xff] %v25358_v39  ;;  %v28068_v0 = vcombine.high %v25209_v14, %v25209_v14  ;;  %v10274_v35 = vrot.slane %v9721_v4, %v20373_v44  ;;  %v25375_v62 = vrot.slane %v18621_v22, %v20373_v44  ;;  %v12327_v48 = vcombine.low %v25352_v41, %v25358_v39  ;;  %v28075_v39 = vld [vmem:[#allocation71_spill] sm:$0xff]  ;;  %v28077_v41 = vld [vmem:[#allocation48_spill] sm:$0xff] }
 0x4b2   : > { %v25380_v56 = vrot.slane %v12326_v2, %v20373_v44  ;;  %v14799_v43 = vcombine.low %v25302_v40, %v25361_v33  ;;  %v8249_v6 = vadd.f32 %v25071_v12, %v18922_v13  ;;  %v8252_v14 = vadd.f32 %v25071_v12, %v18925_v10  ;;  %v28069_v40 = vld [vmem:[#allocation14_spill] sm:$0xff]  ;;  %v28072_v10 = vld [vmem:[#allocation60_spill] sm:$0xff] }
 0x4b3   : > { %v25371_v21 = vrot.slane %v28068_v0, %v20373_v44  ;;  %v9024_v20 = vmax.f32 %v8770_v7, 0.0  ;;  %v9512_v9 = vrot.slane %v25318_v26, %v23348_v17  ;;  %v10282_v8 = vcombine.high %v10274_v35, %v10274_v35 }
 0x4b4   : > { %v25391_v4 = vsel %vm1831_vm14, %v25219_v25, %v25161_v55  ;;  %v10283_v22 = vcombine.high %v25375_v62, %v25375_v62  ;;  %v25396_v2 = vrot.slane %v12327_v48, %v20373_v44  ;;  %v8385_v13 = vadd.f32 %v28069_v40, %v8249_v6  ;;  %v28071_v25 = vld [vmem:[#allocation47_spill] sm:$0xff] }
 0x4b5   : > { %v8388_v63 = vadd.f32 %v28070_v60, %v8252_v14  ;;  %v25401_v7 = vrot.slane %v10274_v35, %v20373_v44  ;;  %v25405_v26 = vrot.slane %v25375_v62, %v20373_v44  ;;  %v14807_v55 = vrot.slane %v14799_v43, %v20373_v44  ;;  %v28073_v35 = vld [vmem:[#allocation43_spill] sm:$0xff]  ;;  %v28074_v60 = vld [vmem:[#allocation62_spill] sm:$0xff]  ;;  %v28078_v43 = vld [vmem:[#allocation72_spill] sm:$0xff] }
 0x4b6   : > { %v13564_v0 = vcombine.low %v28072_v10, %v28071_v25  ;;  %v14800_v48 = vcombine.low %v25380_v56, %v25396_v2  ;;  %v8771_v23 = vcombine.high %v8385_v13, %v8385_v13  ;;  %v8778_v6 = vrot.slane %v8385_v13, %v23348_v17  ;;  %v28076_v62 = vld [vmem:[#allocation46_spill] sm:$0xff] }
 0x4b7   : > { %v8788_v40 = vcombine.high %v8388_v63, %v8388_v63  ;;  %v8795_v14 = vrot.slane %v8388_v63, %v23348_v17  ;;  %v13565_v57 = vcombine.low %v28074_v60, %v28073_v35  ;;  %v13566_v30 = vcombine.low %v28076_v62, %v28075_v39 }
 0x4b8   : > { %v13567_v18 = vcombine.low %v28078_v43, %v28077_v41  ;;  %v14814_v25 = vrot.slane %v14800_v48, %v20373_v44  ;;  %v8785_v10 = vrot.slane %v8771_v23, %v23348_v17  ;;  %v8786_v19 = vcombine.high %v8778_v6, %v8778_v6 }
 0x4b9   : > { %v9025_v59 = vmax.f32 %v8778_v6, 0.0  ;;  %v8802_v13 = vrot.slane %v8788_v40, %v23348_v17  ;;  %v8803_v29 = vcombine.high %v8795_v14, %v8795_v14  ;;  %v9029_v47 = vmax.f32 %v8795_v14, 0.0 }
 0x4ba   : > { %v13574_v63 = vrot.slane %v13564_v0, %v20373_v44  ;;  %v14815_v36 = vcombine.low %v14807_v55, %v14814_v25  ;;  %v8787_v35 = vcombine.high %v8785_v10, %v8785_v10  ;;  %v9026_v60 = vmax.f32 %v8786_v19, 0.0 }
 0x4bb   : > { %v9027_v1 = vmax.f32 %v8785_v10, 0.0  ;;  %v9505_v39 = vcombine.low %v9024_v20, %v9025_v59  ;;  %v8804_v62 = vcombine.high %v8802_v13, %v8802_v13  ;;  %v9030_v52 = vmax.f32 %v8803_v29, 0.0 }
 0x4bc   : > { %v9031_v41 = vmax.f32 %v8802_v13, 0.0  ;;  %14976 = vrot.lane.b32.xlu0 %v14815_v36, %s19432_s14  ;;  %v9028_v48 = vmax.f32 %v8787_v35, 0.0  ;;  %v13581_v6 = vrot.slane %v13565_v57, %v20373_v44  ;;  %v13588_v40 = vrot.slane %v13566_v30, %v20373_v44 }
 0x4bd   : > { %v9521_v23 = vcombine.low %v9026_v60, %v9027_v1  ;;  %v9519_v14 = vrot.slane %v9505_v39, %v23348_v17  ;;  %v9032_v43 = vmax.f32 %v8804_v62, 0.0  ;;  %v9537_v0 = vcombine.low %v9029_v47, %v9030_v52  ;;  %v13539_v52 = vpop.permute.xlu1 %13538  ;;  %v28079_v60 = vld [vmem:[#allocation63_spill] sm:$0xff]  ;;  %v28081_v39 = vld [vmem:[#allocation20_spill] sm:$0xff] }
 0x4be   : > { %v13595_v55 = vrot.slane %v13567_v18, %v20373_v44  ;;  %v25430_v19 = vrot.slane %v10282_v8, %v20373_v44  ;;  %v9535_v59 = vrot.slane %v9028_v48, %v23348_v17  ;;  %v18928_v1 = vadd.f32 %v24862_v37, %v24854_v15  ;;  %v28080_v15 = vld [vmem:[#allocation74_spill] sm:$0xff] }
 0x4bf   : > { %v9528_v29 = vrot.slane %v9521_v23, %v23348_v17  ;;  %v9520_v36 = vcombine.low %v9512_v9, %v9519_v14  ;;  %v9538_v57 = vcombine.low %v9031_v41, %v9032_v43  ;;  %v13596_v20 = vcombine.low %v13574_v63, %v13581_v6  ;;  %v28082_v43 = vld [vmem:[#allocation15_spill] sm:$0xff] }
 0x4c0   : > { %v13597_v30 = vcombine.low %v13588_v40, %v13595_v55  ;;  %v9545_v10 = vrot.slane %v9537_v0, %v23348_v17  ;;  %v8257_v47 = vadd.f32 %v25071_v12, %v18928_v1  ;;  %v18931_v18 = vadd.f32 %v24881_v32, %v24870_v24  ;;  %v14427_v40 = vpop.permute.xlu0 %14426 }
 0x4c1   : > { %v9536_v25 = vcombine.low %v9528_v29, %v9535_v59  ;;  %v9640_v8 = vrot.slane %v9520_v36, 7  ;;  %v9552_v13 = vrot.slane %v9538_v57, %v23348_v17  ;;  %v11412_v37 = vcombine.low %v28080_v15, %v28079_v60 }
 0x4c2   : > { %v13611_v35 = vrot.slane %v13597_v30, %v20373_v44  ;;  %v25445_v9 = vrot.slane %v10283_v22, %v20373_v44  ;;  %v8393_v62 = vadd.f32 %v28081_v39, %v8257_v47  ;;  %v8260_v41 = vadd.f32 %v25071_v12, %v18931_v18  ;;  %v28084_v47 = vld [vmem:[#allocation64_spill] sm:$0xff] }
 0x4c3   : > { %v9641_v63 = vrot.slane %v9536_v25, 7  ;;  %v9691_v48 = vsel %vm9604_vm3, 0.0, %v9640_v8  ;;  %v25450_v23 = vcombine.low %v9545_v10, %v9552_v13  ;;  %v25454_v24 = vsel %vm7800_vm2, %v25391_v4, %v13539_v52  ;;  %v28083_v52 = vld [vmem:[#allocation75_spill] sm:$0xff] }
 0x4c4   : > { %v13604_v32 = vrot.slane %v13596_v20, %v20373_v44  ;;  %v8805_v22 = vcombine.high %v8393_v62, %v8393_v62  ;;  %v8812_v14 = vrot.slane %v8393_v62, %v23348_v17  ;;  %v8396_v0 = vadd.f32 %v28082_v43, %v8260_v41 }
 0x4c5   : > { %v9642_v6 = vsel %vm9604_vm3, %v9640_v8, %v9641_v63  ;;  %v9643_v29 = vrot.slane %v25450_v23, 7  ;;  %v25463_v1 = vrot.slane %v11412_v37, %v20373_v44  ;;  %v13613_v18 = vcombine.low %v28084_v47, %v28083_v52  ;;  %v28085_v23 = vld [vmem:[#allocation73_spill] sm:$0xff] }
 0x4c6   : > { %v9707_v55 = vsel %vm9694_vm4, %v9642_v6, 0.0  ;;  %v13612_v59 = vcombine.low %v13604_v32, %v13611_v35  ;;  %v8819_v57 = vrot.slane %v8805_v22, %v23348_v17  ;;  %v8820_v20 = vcombine.high %v8812_v14, %v8812_v14 }
 0x4c7   : > { %v9722_v4 = vpack.c.bf16 %v9707_v55, %v9691_v48  ;;  %v18622_v36 = vpack.c.bf16 %v9707_v55, %v9707_v55  ;;  %v8822_v25 = vcombine.high %v8396_v0, %v8396_v0  ;;  %v8829_v10 = vrot.slane %v8396_v0, %v23348_v17 }
 0x4c8   : > { %v25467_v30 = vsel %vm1699_vm10, %v13612_v59, %v14427_v40  ;;  %v8821_v35 = vcombine.high %v8819_v57, %v8819_v57  ;;  %v9034_v60 = vmax.f32 %v8820_v20, 0.0  ;;  %v9033_v15 = vmax.f32 %v8812_v14, 0.0  ;;  %v25481_v40 = vpop.permute.xlu1 %13167 }
 0x4c9   : > { %v10322_v8 = vrot.slane %v9722_v4, %v20373_v44  ;;  %v10329_v13 = vrot.slane %v18622_v36, %v20373_v44  ;;  %v9035_v37 = vmax.f32 %v8819_v57, 0.0  ;;  %v8836_v63 = vrot.slane %v8822_v25, %v23348_v17  ;;  %v14672_v25 = vpop.permute.xlu0 %14671 }
 0x4ca   : > { %v8837_v39 = vcombine.high %v8829_v10, %v8829_v10  ;;  %v9692_v48 = vsel %vm9604_vm3, 0.0, %v9643_v29  ;;  %v11427_v32 = vcombine.low %v28085_v23, %v25463_v1  ;;  %v9036_v22 = vmax.f32 %v8821_v35, 0.0  ;;  %v28088_v35 = vld [vmem:[#allocation79_spill] sm:$0xff]  ;;  %v28091_v23 = vld [vmem:[#allocation12_spill] sm:$0xff] }
 0x4cb   : > { %v10330_v62 = vcombine.high %v10322_v8, %v10322_v8  ;;  %v10331_v41 = vcombine.high %v10329_v13, %v10329_v13  ;;  %v25479_v6 = vrot.slane %v10322_v8, %v20373_v44  ;;  %v9554_v43 = vcombine.low %v9033_v15, %v9034_v60  ;;  %v28087_v8 = vld [vmem:[#allocation76_spill] sm:$0xff]  ;;  %v28089_v60 = vld [vmem:[#allocation65_spill] sm:$0xff] }
 0x4cc   : > { %v9037_v0 = vmax.f32 %v8829_v10, 0.0  ;;  %v25484_v14 = vrot.slane %v10329_v13, %v20373_v44  ;;  %v9568_v55 = vrot.slane %v9035_v37, %v23348_v17  ;;  %v9038_v59 = vmax.f32 %v8837_v39, 0.0  ;;  %v28086_v10 = vld [vmem:[#allocation66_spill] sm:$0xff] }
 0x4cd   : > { %v9039_v4 = vmax.f32 %v8836_v63, 0.0  ;;  %v25488_v36 = vrot.slane %v10330_v62, %v20373_v44  ;;  %v9561_v1 = vrot.slane %v9554_v43, %v23348_v17  ;;  %v8838_v57 = vcombine.high %v8836_v63, %v8836_v63  ;;  %v28090_v62 = vld [vmem:[#allocation6_spill] sm:$0xff] }
 0x4ce   : > { %v9570_v20 = vcombine.low %v9036_v22, %v9037_v0  ;;  %v25492_v52 = vrot.slane %v10331_v41, %v20373_v44  ;;  %v13614_v13 = vcombine.low %v28087_v8, %v28086_v10  ;;  %v13615_v15 = vcombine.low %v28089_v60, %v28088_v35 }
 0x4cf   : > { %v9571_v47 = vcombine.low %v9038_v59, %v9039_v4  ;;  %v9569_v37 = vcombine.low %v9561_v1, %v9568_v55  ;;  %v13616_v11 = vcombine.low %v28091_v23, %v28090_v62  ;;  %v13623_v63 = vrot.slane %v13613_v18, %v20373_v44  ;;  %v12539_v4 = vpop.permute.xlu1 %12538 }
 0x4d0   : > { %v9578_v39 = vrot.slane %v9570_v20, %v23348_v17  ;;  %v13630_v41 = vrot.slane %v13614_v13, %v20373_v44  ;;  %v13637_v43 = vrot.slane %v13615_v15, %v20373_v44  ;;  %v13374_v0 = vcombine.low %v24751_v46, %v25057_v51 }
 0x4d1   : > { %v9585_v22 = vrot.slane %v9571_v47, %v23348_v17  ;;  %v9644_v59 = vrot.slane %v9569_v37, 7  ;;  %v13644_v55 = vrot.slane %v13616_v11, %v20373_v44  ;;  %v13375_v1 = vcombine.low %v25229_v5, %v25238_v31  ;;  %v14429_v11 = vpop.permute.xlu0 %14428 }
 0x4d2   : > { %v11754_v20 = vcombine.low %v25258_v50, %v25266_v58  ;;  %v25512_v18 = vmax.f32 %v8838_v57, 0.0  ;;  %v13382_v10 = vrot.slane %v13374_v0, %v20373_v44  ;;  %v14302_v8 = vcombine.low %v25306_v42, %v25270_v53 }
 0x4d3   : > { %v25514_v47 = vcombine.low %v9578_v39, %v9585_v22  ;;  %v9645_v46 = vsel %vm9604_vm3, %v9643_v29, %v9644_v59  ;;  %v13645_v51 = vcombine.low %v13623_v63, %v13630_v41  ;;  %v13646_v13 = vcombine.low %v13637_v43, %v13644_v55 }
 0x4d4   : > { %v13389_v35 = vrot.slane %v13375_v1, %v20373_v44  ;;  %v9708_v5 = vsel %vm9694_vm4, %v9645_v46, 0.0  ;;  %v25524_v58 = vsel %vm1699_vm10, %v11427_v32, %v12539_v4  ;;  %v13390_v57 = vcombine.low %v13382_v10, %v25187_v28 }
 0x4d5   : > { %v9646_v50 = vrot.slane %v25514_v47, 7  ;;  %v9723_v60 = vpack.c.bf16 %v9708_v5, %v9692_v48  ;;  %v18623_v15 = vpack.c.bf16 %v9708_v5, %v9708_v5  ;;  %v13660_v42 = vrot.slane %v13646_v13, %v20373_v44  ;;  %v14965_v59 = vpop.permute.xlu0 %14964  ;;  %v28094_v5 = vld [vmem:[#allocation80_spill] sm:$0xff] }
 0x4d6   : > { %v13391_v29 = vcombine.low %v25193_v38, %v13389_v35  ;;  %v15281_v37 = vsel %vm1831_vm14, %v25467_v30, %v14672_v25  ;;  %v25532_v39 = vrot.slane %v11754_v20, %v20373_v44  ;;  %v14309_v62 = vrot.slane %v14302_v8, %v20373_v44 }
 0x4d7   : > { %v18934_v32 = vadd.f32 %v24967_v45, %v24954_v3  ;;  %v10370_v23 = vrot.slane %v9723_v60, %v20373_v44  ;;  %v10377_v48 = vrot.slane %v18623_v15, %v20373_v44  ;;  %v13653_v63 = vrot.slane %v13645_v51, %v20373_v44 }
 0x4d8   : > { %28092 = vst [vmem:[#allocation25_spill] sm:$0xff] %v25532_v39  ;;  %v13405_v22 = vrot.slane %v13391_v29, %v20373_v44  ;;  %v13398_v41 = vrot.slane %v13390_v57, %v20373_v44  ;;  %v14310_v30 = vcombine.low %v25273_v49, %v14309_v62  ;;  %v25546_v43 = vcombine.high %v25238_v31, %v25238_v31  ;;  %v28095_v57 = vld [vmem:[#allocation78_spill] sm:$0xff] }
 0x4d9   : > { %v8265_v25 = vadd.f32 %v25071_v12, %v18934_v32  ;;  %v10378_v0 = vcombine.high %v10370_v23, %v10370_v23  ;;  %v25551_v3 = vsel %vm9604_vm3, 0.0, %v9646_v50  ;;  %v13661_v45 = vcombine.low %v13653_v63, %v13660_v42  ;;  %v28093_v12 = vld [vmem:[#allocation7_spill] sm:$0xff]  ;;  %v25589_v63 = vpop.permute.xlu1 %13540 }
 0x4da   : > { %v12986_v4 = vcombine.low %v25187_v28, %v25193_v38  ;;  %v10379_v55 = vcombine.high %v10377_v48, %v10377_v48  ;;  %v13406_v1 = vcombine.low %v13398_v41, %v13405_v22  ;;  %v14317_v20 = vrot.slane %v14310_v30, %v20373_v44 }
 0x4db   : > { %v8401_v10 = vadd.f32 %v28093_v12, %v8265_v25  ;;  %v25558_v8 = vrot.slane %v10370_v23, %v20373_v44  ;;  %v25561_v46 = vrot.slane %v10377_v48, %v20373_v44  ;;  %v25564_v51 = vsel %vm1699_vm10, %v13661_v45, %v14429_v11 }
 0x4dc   : > { %v12957_v13 = vcombine.low %v25270_v53, %v25546_v43  ;;  %13552 = vrot.lane.b32.xlu1 %v13406_v1, %s19432_s14  ;;  %v14318_v28 = vcombine.low %v25532_v39, %v14317_v20  ;;  %v15307_v35 = vsel %vm7800_vm2, %v15281_v37, %v14965_v59  ;;  %v11461_v60 = vcombine.low %v28095_v57, %v28094_v5 }
 0x4dd   : > { %v8845_v38 = vrot.slane %v8401_v10, %v23348_v17  ;;  %15567 = vmatprep.mubr.bf16.mxu1 %v15307_v35  ;;  %v10996_v11 = vshrl.u32 %v25238_v31, 16  ;;  %v11001_v42 = vshll.u32 %v25270_v53, 16  ;;  %v11004_v29 = vshrl.u32 %v25270_v53, 16 }
 0x4de   : > { %v25575_v15 = vrot.slane %v12957_v13, %v20373_v44  ;;  %v25581_v62 = vrot.slane %v10378_v0, %v20373_v44  ;;  %14440 = vrot.lane.b32.xlu0 %v14318_v28, %s19425_s23  ;;  %15568 = vmatmul.mubr.bf16.vlgmr.msra.gmra.mrb[52].mxu1 %v25454_v24  ;;  %v11009_v23 = vshll.u32 %v25546_v43, 16  ;;  %v25587_v48 = vrot.slane %v10379_v55, %v20373_v44 }
 0x4df   : > { %v8846_v32 = vcombine.high %v8845_v38, %v8845_v38  ;;  %v9041_v37 = vmax.f32 %v8845_v38, 0.0  ;;  %v12994_v41 = vrot.slane %v12986_v4, %v20373_v44  ;;  %v25596_v30 = vsel %vm20462_vm1, %v10996_v11, %v11001_v42 }
 0x4e0   : > { %v12987_v22 = vcombine.low %v25196_v34, %v25575_v15  ;;  %v11475_v24 = vrot.slane %v11461_v60, %v20373_v44  ;;  %v25602_v45 = vsel %vm20462_vm1, %v11004_v29, %v11009_v23  ;;  %v25609_v4 = vcombine.high %v25252_v27, %v25252_v27 }
 0x4e1   : > { %v9042_v25 = vmax.f32 %v8846_v32, 0.0  ;;  %v9587_v0 = vcombine.low %v25512_v18, %v9041_v37  ;;  %v12328_v34 = vcombine.low %v25596_v30, %v25602_v45  ;;  %v11725_v55 = vcombine.low %v25238_v31, %v25270_v53 }
 0x4e2   : > { %v13001_v59 = vrot.slane %v12987_v22, %v20373_v44  ;;  %v12357_v20 = vcombine.low %v25361_v33, %v25380_v56  ;;  %v18735_v12 = vcombine.high %v25238_v31, %v25270_v53  ;;  %v11772_v38 = vcombine.low %v25252_v27, %v25371_v21  ;;  %v25634_v31 = vpop.permute.xlu1 %13169 }
 0x4e3   : > { %v9594_v18 = vrot.slane %v9587_v0, %v23348_v17  ;;  %v9601_v1 = vrot.slane %v9042_v25, %v23348_v17  ;;  %v25620_v13 = vrot.slane %v12328_v34, %v20373_v44  ;;  %v25623_v28 = vrot.slane %v11725_v55, %v20373_v44 }
 0x4e4   : > { %v13002_v10 = vcombine.low %v12994_v41, %v13001_v59  ;;  %v11773_v5 = vcombine.low %v25609_v4, %v25401_v7  ;;  %v11781_v57 = vrot.slane %v18735_v12, %v20373_v44  ;;  %v25632_v33 = vcombine.high %v25270_v53, %v25270_v53 }
 0x4e5   : > { %v9602_v35 = vcombine.low %v9594_v18, %v9601_v1  ;;  %v12358_v56 = vcombine.low %v25396_v2, %v25620_v13  ;;  %v11788_v60 = vrot.slane %v11772_v38, %v20373_v44  ;;  %v25642_v11 = vcombine.high %v25371_v21, %v25371_v21 }
 0x4e6   : > { %13181 = vrot.lane.b32.xlu1 %v13002_v10, %s19428_s16  ;;  %v13004_v42 = vcombine.low %v25371_v21, %v25609_v4  ;;  %v25647_v53 = vrot.slane %v11773_v5, %v20373_v44  ;;  %v14571_v32 = vcombine.low %v25623_v28, %v11781_v57  ;;  %v13003_v37 = vcombine.low %v25632_v33, %v25252_v27  ;;  %v12541_v38 = vpop.permute.xlu1 %12540 }
 0x4e7   : > { %v9647_v29 = vrot.slane %v9602_v35, 7  ;;  %v12365_v2 = vrot.slane %v12357_v20, %v20373_v44  ;;  %v12372_v23 = vrot.slane %v12358_v56, %v20373_v44  ;;  %v13005_v22 = vcombine.low %v25642_v11, %v25430_v19 }
 0x4e8   : > { %28096 = vst [vmem:[#allocation51_spill] sm:$0xff] %v25647_v53  ;;  %v13020_v41 = vrot.slane %v13004_v42, %v20373_v44  ;;  %v14572_v0 = vcombine.low %v11788_v60, %v25647_v53  ;;  %v14579_v59 = vrot.slane %v14571_v32, %v20373_v44  ;;  %v13013_v34 = vrot.slane %v13003_v37, %v20373_v44  ;;  %v28097_v32 = vld [vmem:[#allocation77_spill] sm:$0xff] }
 0x4e9   : > { %v9648_v25 = vsel %vm9604_vm3, %v9646_v50, %v9647_v29  ;;  %v12373_v18 = vcombine.low %v12365_v2, %v12372_v23  ;;  %v25665_v1 = vrot.slane %v13005_v22, %v20373_v44  ;;  %v13407_v20 = vcombine.low %v25401_v7, %v25430_v19 }
 0x4ea   : > { %v9709_v55 = vsel %vm9694_vm4, %v9648_v25, 0.0  ;;  %v14586_v50 = vrot.slane %v14572_v0, %v20373_v44  ;;  %v13415_v10 = vcombine.low %v25575_v15, %v13013_v34  ;;  %v25677_v56 = vcombine.high %v25401_v7, %v25401_v7  ;;  %v25690_v0 = vpop.f32.mrb[84].mxu0 }
 0x4eb   : > { %v9724_v12 = vpack.c.bf16 %v9709_v55, %v25551_v3  ;;  %v18722_v47 = vpack.c.bf16 %v9709_v55, %v9709_v55  ;;  %12552 = vrot.lane.b32.xlu1 %v12373_v18, %s19425_s23  ;;  %v15061_v35 = vcombine.low %v13020_v41, %v25665_v1  ;;  %v13414_v5 = vrot.slane %v13407_v20, %v20373_v44  ;;  %v19201_v55 = vpop.f32.mrb[85].mxu0 }
 0x4ec   : > { %v11803_v42 = vcombine.low %v11781_v57, %v11788_v60  ;;  %v11476_v15 = vcombine.low %v28097_v32, %v11475_v24  ;;  %v14587_v37 = vcombine.low %v14579_v59, %v14586_v50  ;;  %v13423_v2 = vrot.slane %v13415_v10, %v20373_v44  ;;  %28098 = vst [vmem:[#allocation14_spill] sm:$0xff] %v25690_v0  ;;  %v25708_v50 = vpop.f32.mrb[86].mxu0  ;;  %v28106_v10 = vld [vmem:[#allocation19_spill] sm:$0xff]  ;;  %v28107_v57 = vld [vmem:[#allocation13_spill] sm:$0xff] }
 0x4ed   : > { %v25680_v29 = vrot.slane %v9724_v12, %v20373_v44  ;;  %v25683_v3 = vrot.slane %v18722_v47, %v20373_v44  ;;  %v15068_v23 = vrot.slane %v15061_v35, %v20373_v44  ;;  %v13416_v22 = vcombine.low %v13020_v41, %v13414_v5  ;;  %28101 = vst [vmem:[#allocation60_spill] sm:$0xff] %v25708_v50  ;;  %v19202_v5 = vpop.f32.mrb[87].mxu0  ;;  %v28110_v50 = vld [vmem:[#allocation9_spill] sm:$0xff] }
 0x4ee   : > { %v11774_v25 = vcombine.low %v25430_v19, %v25677_v56  ;;  %v25695_v60 = vsel %vm1699_vm10, %v11476_v15, %v12541_v38  ;;  %14685 = vrot.lane.b32.xlu0 %v14587_v37, %s19428_s16  ;;  %v11049_v24 = vshll.u32 %v25642_v11, 16  ;;  %v25700_v59 = vrot.slane %v11803_v42, %v20373_v44 }
 0x4ef   : > { %v15069_v18 = vcombine.low %v13423_v2, %v15068_v23  ;;  %v13430_v20 = vrot.slane %v13416_v22, %v20373_v44  ;;  %v18755_v47 = vcombine.high %v25252_v27, %v25371_v21  ;;  %v25714_v11 = vrot.slane %v25680_v29, %v20373_v44  ;;  %v25722_v23 = vpop.f32.mrb[88].mxu0 }
 0x4f0   : > { %28099 = vst [vmem:[#allocation16_spill] sm:$0xff] %v25700_v59  ;;  %v25704_v12 = vrot.slane %v11774_v25, %v20373_v44  ;;  %v18747_v38 = vcombine.high %v25401_v7, %v25430_v19  ;;  %v13035_v35 = vcombine.low %v13013_v34, %v13020_v41  ;;  %v11012_v15 = vshrl.u32 %v25546_v43, 16  ;;  %28102 = vst [vmem:[#allocation43_spill] sm:$0xff] %v25722_v23  ;;  %v19205_v34 = vpop.f32.mrb[89].mxu0  ;;  %v28109_v23 = vld [vmem:[#allocation11_spill] sm:$0xff] }
 0x4f1   : > { %19228 = vmatmul.mubr.msk.bf16.gmra.mrb[112].mxu0 %vm1699_vm10, %v15069_v18  ;;  %v13431_v42 = vcombine.low %v13423_v2, %v13430_v20  ;;  %v14326_v32 = vrot.slane %v18755_v47, %v20373_v44  ;;  %v11017_v37 = vshll.u32 %v25632_v33, 16  ;;  %v11020_v55 = vshrl.u32 %v25632_v33, 16  ;;  %v25748_v5 = vpop.f32.mrb[90].mxu0 }
 0x4f2   : > { %28100 = vst [vmem:[#allocation47_spill] sm:$0xff] %v25704_v12  ;;  %v25725_v22 = vrot.slane %v18747_v38, %v20373_v44  ;;  %v13043_v25 = vrot.slane %v13035_v35, %v20373_v44  ;;  %v11025_v41 = vshll.u32 %v25252_v27, 16  ;;  %19231 = vmatprep.mubr.msk.bf16.mxu0 %vm19431_vm13, %v27698_v61  ;;  %v11028_v18 = vshrl.u32 %v25252_v27, 16  ;;  %28103 = vst [vmem:[#allocation62_spill] sm:$0xff] %v25748_v5 }
 0x4f3   : > { %13554 = vrot.lane.b32.xlu1 %v13431_v42, %s19432_s14  ;;  %v14327_v43 = vcombine.low %v14326_v32, %v25704_v12  ;;  %v25736_v2 = vsel %vm20462_vm1, %v11012_v15, %v11017_v37  ;;  %v11033_v20 = vshll.u32 %v25371_v21, 16  ;;  %v11036_v38 = vshrl.u32 %v25371_v21, 16  ;;  %v19206_v15 = vpop.f32.mrb[91].mxu0 }
 0x4f4   : > { %v13036_v33 = vcombine.low %v25665_v1, %v25725_v22  ;;  %v25744_v47 = vsel %vm20462_vm1, %v11020_v55, %v11025_v41  ;;  %v11041_v35 = vshll.u32 %v25609_v4, 16  ;;  %v11044_v32 = vshrl.u32 %v25609_v4, 16 }
 0x4f5   : > { %v14334_v42 = vrot.slane %v14327_v43, %v20373_v44  ;;  %v25753_v27 = vsel %vm20462_vm1, %v11028_v18, %v11033_v20  ;;  %v11053_v1 = vshrl.u32 %v25401_v7, 16  ;;  %v11058_v55 = vshll.u32 %v25430_v19, 16 }
 0x4f6   : > { %v13050_v37 = vrot.slane %v13036_v33, %v20373_v44  ;;  %v25760_v21 = vsel %vm20462_vm1, %v11036_v38, %v11041_v35  ;;  %v12374_v41 = vcombine.low %v25736_v2, %v25744_v47  ;;  %v25767_v34 = vrot.slane %v25683_v3, %v20373_v44 }
 0x4f7   : > { %v14335_v4 = vcombine.low %v25700_v59, %v14334_v42  ;;  %v25772_v7 = vsel %vm20462_vm1, %v11044_v32, %v11049_v24  ;;  %v12375_v43 = vcombine.low %v25753_v27, %v25760_v21  ;;  %v25778_v20 = vsel %vm20462_vm1, %v11053_v1, %v11058_v55  ;;  %v28105_v55 = vld [vmem:[#allocation17_spill] sm:$0xff] }
 0x4f8   : > { %v13051_v18 = vcombine.low %v13043_v25, %v13050_v37  ;;  %v12384_v33 = vrot.slane %v12374_v41, %v20373_v44  ;;  %v25783_v38 = vcombine.high %v25430_v19, %v25430_v19  ;;  %v12376_v24 = vcombine.low %v25772_v7, %v25778_v20  ;;  %v28104_v37 = vld [vmem:[#allocation18_spill] sm:$0xff] }
 0x4f9   : > { %14442 = vrot.lane.b32.xlu0 %v14335_v4, %s19425_s23  ;;  %v12391_v35 = vrot.slane %v12375_v43, %v20373_v44  ;;  %v11061_v42 = vshrl.u32 %v25430_v19, 16  ;;  %v11066_v25 = vshll.u32 %v25677_v56, 16  ;;  %v11069_v1 = vshrl.u32 %v25677_v56, 16 }
 0x4fa   : > { %13183 = vrot.lane.b32.xlu1 %v13051_v18, %s19428_s16  ;;  %v14816_v32 = vcombine.low %v25620_v13, %v12384_v33  ;;  %v11074_v15 = vshll.u32 %v25783_v38, 16  ;;  %v13662_v41 = vcombine.low %v28105_v55, %v28104_v37  ;;  %v12398_v4 = vrot.slane %v12376_v24, %v20373_v44  ;;  %v14674_v13 = vpop.permute.xlu0 %14673  ;;  %v28111_v55 = vld [vmem:[#allocation5_spill] sm:$0xff]  ;;  %v28112_v24 = vld [vmem:[#allocation3_spill] sm:$0xff] }
 0x4fb   : > { %v25800_v43 = vsel %vm20462_vm1, %v11061_v42, %v11066_v25  ;;  %v12406_v19 = vcombine.low %v12384_v33, %v12391_v35  ;;  %v13663_v5 = vcombine.low %v28107_v57, %v28106_v10  ;;  %v13664_v37 = vcombine.low %v28110_v50, %v28109_v23 }
 0x4fc   : > { %v14824_v18 = vrot.slane %v14816_v32, %v20373_v44  ;;  %v25807_v56 = vsel %vm20462_vm1, %v11069_v1, %v11074_v15  ;;  %v13665_v17 = vcombine.low %v28112_v24, %v28111_v55  ;;  %v14817_v0 = vcombine.low %v12391_v35, %v12398_v4 }
 0x4fd   : > { %28108 = vst [vmem:[#allocation71_spill] sm:$0xff] %v25807_v56  ;;  %v12377_v33 = vcombine.low %v25800_v43, %v25807_v56  ;;  %v12414_v42 = vrot.slane %v12406_v19, %v20373_v44  ;;  %v13672_v57 = vrot.slane %v13662_v41, %v20373_v44  ;;  %v13679_v10 = vrot.slane %v13663_v5, %v20373_v44 }
 0x4fe   : > { %v13686_v25 = vrot.slane %v13664_v37, %v20373_v44  ;;  %v13693_v32 = vrot.slane %v13665_v17, %v20373_v44  ;;  %v25822_v50 = vcombine.high %v25479_v6, %v25479_v6  ;;  %v14831_v23 = vrot.slane %v14817_v0, %v20373_v44 }
 0x4ff   : > { %v25826_v35 = vrot.slane %v12377_v33, %v20373_v44  ;;  %v13052_v1 = vcombine.low %v25405_v26, %v25445_v9  ;;  %v18748_v15 = vcombine.high %v25405_v26, %v25445_v9  ;;  %v13694_v5 = vcombine.low %v13672_v57, %v13679_v10  ;;  %v25845_v33 = vpop.f32.mrb[92].mxu0 }
 0x500   : > { %v13695_v41 = vcombine.low %v13686_v25, %v13693_v32  ;;  %v13054_v17 = vcombine.low %v25488_v36, %v25822_v50  ;;  %v25836_v19 = vcombine.high %v25405_v26, %v25405_v26  ;;  %v14832_v37 = vcombine.low %v14824_v18, %v14831_v23  ;;  %28113 = vst [vmem:[#allocation46_spill] sm:$0xff] %v25845_v33  ;;  %v14431_v25 = vpop.permute.xlu0 %14430 }
 0x501   : > { %v12407_v0 = vcombine.low %v12398_v4, %v25826_v35  ;;  %v25840_v55 = vrot.slane %v13052_v1, %v20373_v44  ;;  %v25843_v24 = vrot.slane %v18748_v15, %v20373_v44  ;;  %v13702_v57 = vrot.slane %v13694_v5, %v20373_v44  ;;  %v19209_v4 = vpop.f32.mrb[93].mxu0 }
 0x502   : > { %v13709_v10 = vrot.slane %v13695_v41, %v20373_v44  ;;  %v25850_v32 = vrot.slane %v13054_v17, %v20373_v44  ;;  %v13432_v18 = vcombine.low %v25836_v19, %v25479_v6  ;;  %14978 = vrot.lane.b32.xlu0 %v14832_v37, %s19432_s14  ;;  %v11820_v15 = vcombine.low %v25783_v38, %v25405_v26  ;;  %v25862_v41 = vpop.f32.mrb[94].mxu0 }
 0x503   : > { %v12421_v23 = vrot.slane %v12407_v0, %v20373_v44  ;;  %v13440_v1 = vcombine.low %v25725_v22, %v25840_v55  ;;  %v11821_v5 = vcombine.low %v25445_v9, %v25836_v19  ;;  %28114 = vst [vmem:[#allocation48_spill] sm:$0xff] %v25862_v41  ;;  %v28115_v17 = vcombine.high %v25680_v29, %v25680_v29  ;;  %v19210_v33 = vpop.f32.mrb[95].mxu0 }
 0x504   : > { %v15070_v37 = vcombine.low %v25843_v24, %v25850_v32  ;;  %v13439_v0 = vrot.slane %v13432_v18, %v20373_v44  ;;  %v11822_v22 = vcombine.low %v25479_v6, %v25488_v36  ;;  %v13710_v53 = vcombine.low %v13702_v57, %v13709_v10  ;;  %v28117_v33 = vld [vmem:[#allocation10_spill] sm:$0xff] }
 0x505   : > { %v25868_v4 = vrot.slane %v28115_v17, %v20373_v44  ;;  %v12422_v59 = vcombine.low %v12414_v42, %v12421_v23  ;;  %v13448_v56 = vrot.slane %v13440_v1, %v20373_v44  ;;  %v11830_v41 = vrot.slane %v11820_v15, %v20373_v44  ;;  %v28118_v42 = vld [vmem:[#allocation4_spill] sm:$0xff] }
 0x506   : > { %v15077_v39 = vrot.slane %v15070_v37, %v20373_v44  ;;  %v13441_v29 = vcombine.low %v13439_v0, %v25850_v32  ;;  %v11837_v17 = vrot.slane %v11821_v5, %v20373_v44  ;;  %v25881_v49 = vrot.slane %v11822_v22, %v20373_v44  ;;  %v14967_v37 = vpop.permute.xlu0 %14966 }
 0x507   : > { %12554 = vrot.lane.b32.xlu1 %v12422_v59, %s19425_s23  ;;  %v14588_v18 = vcombine.low %v25704_v12, %v11830_v41  ;;  %v11510_v57 = vcombine.low %v28118_v42, %v28117_v33  ;;  %v10422_v10 = vcombine.high %v25445_v9, %v25445_v9  ;;  %v18736_v23 = vcombine.high %v25479_v6, %v25488_v36 }
 0x508   : > { %28116 = vst [vmem:[#allocation72_spill] sm:$0xff] %v25881_v49  ;;  %v15078_v1 = vcombine.low %v13448_v56, %v15077_v39  ;;  %v13455_v15 = vrot.slane %v13441_v29, %v20373_v44  ;;  %v14589_v5 = vcombine.low %v11837_v17, %v25881_v49  ;;  %v11852_v0 = vcombine.low %v11830_v41, %v11837_v17 }
 0x509   : > { %v28119_v59 = vcombine.high %v25683_v3, %v25683_v3  ;;  %v15283_v33 = vsel %vm1831_vm14, %v25564_v51, %v14674_v13  ;;  %v25902_v42 = vsel %vm1699_vm10, %v13710_v53, %v14431_v25  ;;  %v14596_v39 = vrot.slane %v14588_v18, %v20373_v44 }
 0x50a   : > { %19232 = vmatmul.mubr.msk.bf16.gmra.mrb[116].mxu0 %vm1699_vm10, %v15078_v1  ;;  %v13456_v29 = vcombine.low %v13448_v56, %v13455_v15  ;;  %v14603_v49 = vrot.slane %v14589_v5, %v20373_v44  ;;  %v25908_v41 = vrot.slane %v18736_v23, %v20373_v44  ;;  %v14336_v3 = vcombine.low %v10422_v10, %v25488_v36 }
 0x50b   : > { %v25897_v22 = vrot.slane %v28119_v59, %v20373_v44  ;;  %v25912_v17 = vrot.slane %v11510_v57, %v20373_v44  ;;  %v25916_v51 = vcombine.high %v25488_v36, %v25488_v36  ;;  %v13084_v53 = vcombine.low %v25840_v55, %v25843_v24  ;;  %19235 = vmatprep.mubr.msk.bf16.mxu0 %vm19431_vm13, %v27698_v61 }
 0x50c   : > { %28120 = vst [vmem:[#allocation63_spill] sm:$0xff] %v25908_v41  ;;  %v15310_v13 = vsel %vm7800_vm2, %v15283_v33, %v14967_v37  ;;  %13556 = vrot.lane.b32.xlu1 %v13456_v29, %s19432_s14  ;;  %v14604_v56 = vcombine.low %v14596_v39, %v14603_v49  ;;  %v14343_v25 = vrot.slane %v14336_v3, %v20373_v44  ;;  %v11077_v57 = vshrl.u32 %v25783_v38, 16  ;;  %v25965_v3 = vpop.permute.xlu1 %13542 }
 0x50d   : > { %15575 = vmatprep.mubr.bf16.mxu1 %v15310_v13  ;;  %v15179_v18 = vsel %vm1831_vm14, %v25524_v58, %v25481_v40  ;;  %v11106_v23 = vshll.u32 %v10422_v10, 16  ;;  %v25930_v55 = vrot.slane %v11852_v0, %v20373_v44  ;;  %v13055_v24 = vcombine.low %v25916_v51, %v25484_v14 }
 0x50e   : > { %v15206_v1 = vsel %vm7800_vm2, %v15179_v18, %v25589_v63  ;;  %14687 = vrot.lane.b32.xlu0 %v14604_v56, %s19428_s16  ;;  %v14344_v49 = vcombine.low %v14343_v25, %v25908_v41  ;;  %v13092_v15 = vrot.slane %v13084_v53, %v20373_v44  ;;  %v11082_v40 = vshll.u32 %v25405_v26, 16 }
 0x50f   : > { %28121 = vst [vmem:[#allocation74_spill] sm:$0xff] %v25930_v55  ;;  %15576 = vmatmul.mubr.bf16.gmra.mrb[56].mxu1 %v15206_v1  ;;  %v11085_v58 = vshrl.u32 %v25405_v26, 16  ;;  %v25942_v38 = vrot.slane %v13055_v24, %v20373_v44  ;;  %v11090_v10 = vshll.u32 %v25445_v9, 16  ;;  %v11093_v5 = vshrl.u32 %v25445_v9, 16 }
 0x510   : > { %v11098_v63 = vshll.u32 %v25836_v19, 16  ;;  %v14351_v37 = vrot.slane %v14344_v49, %v20373_v44  ;;  %v25950_v0 = vsel %vm20462_vm1, %v11077_v57, %v11082_v40  ;;  %v11101_v59 = vshrl.u32 %v25836_v19, 16 }
 0x511   : > { %28122 = vst [vmem:[#allocation20_spill] sm:$0xff] %v25950_v0  ;;  %v11110_v33 = vshrl.u32 %v25479_v6, 16  ;;  %v13085_v26 = vcombine.low %v25850_v32, %v25942_v38  ;;  %v25958_v39 = vsel %vm20462_vm1, %v11085_v58, %v11090_v10  ;;  %v11115_v29 = vshll.u32 %v25488_v36, 16 }
 0x512   : > { %28123 = vst [vmem:[#allocation15_spill] sm:$0xff] %v25958_v39  ;;  %v25962_v9 = vsel %vm20462_vm1, %v11093_v5, %v11098_v63  ;;  %v14352_v53 = vcombine.low %v25930_v55, %v14351_v37  ;;  %v25970_v6 = vsel %vm20462_vm1, %v11101_v59, %v11106_v23  ;;  %v11118_v19 = vshrl.u32 %v25488_v36, 16 }
 0x513   : > { %28124 = vst [vmem:[#allocation75_spill] sm:$0xff] %v25962_v9  ;;  %28125 = vst [vmem:[#allocation64_spill] sm:$0xff] %v25970_v6  ;;  %v11123_v32 = vshll.u32 %v25822_v50, 16  ;;  %v13099_v13 = vrot.slane %v13085_v26, %v20373_v44  ;;  %v25977_v56 = vsel %vm20462_vm1, %v11110_v33, %v11115_v29  ;;  %v12423_v25 = vcombine.low %v25950_v0, %v25958_v39  ;;  %v26015_v26 = vpop.permute.xlu1 %13171  ;;  %v28128_v29 = vld [vmem:[#allocation67_spill] sm:$0xff]  ;;  %v28137_v39 = vld [vmem:[#allocation21_spill] sm:$0xff] }
 0x514   : > { %28126 = vst [vmem:[#allocation73_spill] sm:$0xff] %v25977_v56  ;;  %v12424_v18 = vcombine.low %v25962_v9, %v25970_v6  ;;  %14444 = vrot.lane.b32.xlu0 %v14352_v53, %s19425_s23  ;;  %v11126_v36 = vshrl.u32 %v25822_v50, 16  ;;  %v11131_v23 = vshll.u32 %v25916_v51, 16  ;;  %v11134_v24 = vshrl.u32 %v25916_v51, 16 }
 0x515   : > { %v25986_v57 = vsel %vm20462_vm1, %v11118_v19, %v11123_v32  ;;  %v13100_v1 = vcombine.low %v13092_v15, %v13099_v13  ;;  %v12433_v40 = vrot.slane %v12423_v25, %v20373_v44  ;;  %v11139_v5 = vshll.u32 %v25484_v14, 16  ;;  %v26009_v15 = vpop.permute.xlu0 %14675 }
 0x516   : > { %28127 = vst [vmem:[#allocation66_spill] sm:$0xff] %v25986_v57  ;;  %v12425_v49 = vcombine.low %v25977_v56, %v25986_v57  ;;  %v12440_v58 = vrot.slane %v12424_v18, %v20373_v44  ;;  %v25997_v10 = vsel %vm20462_vm1, %v11126_v36, %v11131_v23  ;;  %v26002_v50 = vcombine.high %v25484_v14, %v25484_v14  ;;  %v28161_v56 = vld [vmem:[#allocation27_spill] sm:$0xff] }
 0x517   : > { %v26006_v51 = vcombine.high %v25492_v52, %v25492_v52  ;;  %13185 = vrot.lane.b32.xlu1 %v13100_v1, %s19428_s16  ;;  %v14833_v37 = vcombine.low %v25826_v35, %v12433_v40  ;;  %v18749_v33 = vcombine.high %v25558_v8, %v25581_v62  ;;  %v11525_v53 = vcombine.low %v28128_v29, %v25912_v17  ;;  %v28130_v1 = vld [vmem:[#allocation39_spill] sm:$0xff]  ;;  %v28133_v29 = vld [vmem:[#allocation40_spill] sm:$0xff] }
 0x518   : > { %v12447_v63 = vrot.slane %v12425_v49, %v20373_v44  ;;  %v12455_v59 = vcombine.low %v12433_v40, %v12440_v58  ;;  %v26021_v19 = vsel %vm20462_vm1, %v11134_v24, %v11139_v5  ;;  %v13101_v32 = vcombine.low %v25492_v52, %v26002_v50  ;;  %v28131_v49 = vld [vmem:[#allocation8_spill] sm:$0xff] }
 0x519   : > { %28129 = vst [vmem:[#allocation76_spill] sm:$0xff] %v26021_v19  ;;  %v13102_v13 = vcombine.low %v26006_v51, %v25581_v62  ;;  %v14841_v25 = vrot.slane %v14833_v37, %v20373_v44  ;;  %v12426_v18 = vcombine.low %v25997_v10, %v26021_v19  ;;  %v26034_v24 = vrot.slane %v18749_v33, %v20373_v44  ;;  %v28132_v37 = vld [vmem:[#allocation22_spill] sm:$0xff]  ;;  %v28134_v19 = vld [vmem:[#allocation29_spill] sm:$0xff]  ;;  %v28136_v33 = vld [vmem:[#allocation28_spill] sm:$0xff] }
 0x51a   : > { %v14834_v35 = vcombine.low %v12440_v58, %v12447_v63  ;;  %v12463_v36 = vrot.slane %v12455_v59, %v20373_v44  ;;  %v13111_v17 = vrot.slane %v13101_v32, %v20373_v44  ;;  %v13711_v40 = vcombine.low %v28131_v49, %v28130_v1  ;;  %v28135_v59 = vld [vmem:[#allocation23_spill] sm:$0xff] }
 0x51b   : > { %v13118_v23 = vrot.slane %v13102_v13, %v20373_v44  ;;  %v26040_v58 = vrot.slane %v12426_v18, %v20373_v44  ;;  %v13712_v55 = vcombine.low %v28133_v29, %v28132_v37  ;;  %v13713_v12 = vcombine.low %v28135_v59, %v28134_v19  ;;  %v26054_v37 = vpop.permute.xlu0 %14432  ;;  %v12543_v29 = vpop.permute.xlu1 %12542 }
 0x51c   : > { %v14848_v5 = vrot.slane %v14834_v35, %v20373_v44  ;;  %v13465_v32 = vcombine.low %v25942_v38, %v13111_v17  ;;  %v13714_v9 = vcombine.low %v28137_v39, %v28136_v33  ;;  %v13721_v1 = vrot.slane %v13711_v40, %v20373_v44 }
 0x51d   : > { %v15079_v13 = vcombine.low %v13118_v23, %v26034_v24  ;;  %v12456_v35 = vcombine.low %v12447_v63, %v26040_v58  ;;  %v13728_v18 = vrot.slane %v13712_v55, %v20373_v44  ;;  %v13735_v6 = vrot.slane %v13713_v12, %v20373_v44 }
 0x51e   : > { %v14849_v49 = vcombine.low %v14841_v25, %v14848_v5  ;;  %v13473_v19 = vrot.slane %v13465_v32, %v20373_v44  ;;  %v13742_v59 = vrot.slane %v13714_v9, %v20373_v44  ;;  %v13457_v39 = vcombine.low %v25558_v8, %v25581_v62 }
 0x51f   : > { %v15086_v38 = vrot.slane %v15079_v13, %v20373_v44  ;;  %v12470_v63 = vrot.slane %v12456_v35, %v20373_v44  ;;  %v13743_v25 = vcombine.low %v13721_v1, %v13728_v18  ;;  %v26065_v12 = vcombine.high %v25558_v8, %v25558_v8 }
 0x520   : > { %14980 = vrot.lane.b32.xlu0 %v14849_v49, %s19432_s14  ;;  %v11869_v55 = vcombine.low %v25484_v14, %v25492_v52  ;;  %v13744_v5 = vcombine.low %v13735_v6, %v13742_v59  ;;  %v13464_v32 = vrot.slane %v13457_v39, %v20373_v44  ;;  %v11870_v9 = vcombine.low %v26002_v50, %v25558_v8  ;;  %v14969_v59 = vpop.permute.xlu0 %14968 }
 0x521   : > { %v15087_v40 = vcombine.low %v13473_v19, %v15086_v38  ;;  %v26073_v13 = vsel %vm1699_vm10, %v11525_v53, %v12543_v29  ;;  %v12471_v33 = vcombine.low %v12463_v36, %v12470_v63  ;;  %v11871_v1 = vcombine.low %v25581_v62, %v26065_v12  ;;  %v26091_v36 = vpop.f32.mrb[96].mxu0 }
 0x522   : > { %v26078_v49 = vrot.slane %v11869_v55, %v20373_v44  ;;  %v26082_v35 = vrot.slane %v13743_v25, %v20373_v44  ;;  %v26085_v6 = vrot.slane %v13744_v5, %v20373_v44  ;;  %v13466_v18 = vcombine.low %v13464_v32, %v26034_v24  ;;  %28140 = vst [vmem:[#allocation6_spill] sm:$0xff] %v26091_v36  ;;  %v19213_v25 = vpop.f32.mrb[97].mxu0  ;;  %v28141_v5 = vld [vmem:[#allocation38_spill] sm:$0xff]  ;;  %v28142_v32 = vld [vmem:[#allocation36_spill] sm:$0xff] }
 0x523   : > { %19236 = vmatmul.mubr.msk.bf16.gmra.mrb[120].mxu0 %vm1699_vm10, %v15087_v40  ;;  %v26089_v53 = vrot.slane %v11870_v9, %v20373_v44  ;;  %12556 = vrot.lane.b32.xlu1 %v12471_v33, %s19425_s23  ;;  %v11893_v29 = vrot.slane %v11871_v1, %v20373_v44  ;;  %v13104_v39 = vcombine.low %v25561_v46, %v25587_v48  ;;  %v26111_v1 = vpop.f32.mrb[98].mxu0 }
 0x524   : > { %28138 = vst [vmem:[#allocation79_spill] sm:$0xff] %v26078_v49  ;;  %v14605_v38 = vcombine.low %v25908_v41, %v26078_v49  ;;  %v13133_v63 = vcombine.low %v13111_v17, %v13118_v23  ;;  %v15285_v55 = vsel %vm1831_vm14, %v25902_v42, %v26009_v15  ;;  %v13480_v40 = vrot.slane %v13466_v18, %v20373_v44  ;;  %v19214_v18 = vpop.f32.mrb[99].mxu0 }
 0x525   : > { %28139 = vst [vmem:[#allocation65_spill] sm:$0xff] %v26089_v53  ;;  %v11558_v9 = vcombine.low %v28142_v32, %v28141_v5  ;;  %v26107_v33 = vcombine.high %v25581_v62, %v25581_v62  ;;  %19239 = vmatprep.mubr.msk.bf16.mxu0 %vm19431_vm13, %v27698_v61  ;;  %28143 = vst [vmem:[#allocation12_spill] sm:$0xff] %v26111_v1  ;;  %v11163_v17 = vshll.u32 %v26006_v51, 16  ;;  %v11150_v18 = vshrl.u32 %v25492_v52, 16 }
 0x526   : > { %v14606_v42 = vcombine.low %v26089_v53, %v11893_v29  ;;  %v26118_v15 = vrot.slane %v13104_v39, %v20373_v44  ;;  %v13481_v25 = vcombine.low %v13473_v19, %v13480_v40  ;;  %v14613_v5 = vrot.slane %v14605_v38, %v20373_v44  ;;  %v26130_v53 = vpop.permute.xlu0 %14677 }
 0x527   : > { %v13141_v32 = vrot.slane %v13133_v63, %v20373_v44  ;;  %v11872_v36 = vcombine.low %v26107_v33, %v25561_v46  ;;  %v18756_v23 = vcombine.high %v25484_v14, %v25492_v52  ;;  %v15313_v39 = vsel %vm7800_vm2, %v15285_v55, %v14969_v59 }
 0x528   : > { %v14620_v1 = vrot.slane %v14606_v42, %v20373_v44  ;;  %v13134_v51 = vcombine.low %v26034_v24, %v26118_v15  ;;  %13558 = vrot.lane.b32.xlu1 %v13481_v25, %s19432_s14  ;;  %v26134_v19 = vrot.slane %v11558_v9, %v20373_v44  ;;  %15583 = vmatprep.mubr.bf16.mxu1 %v15313_v39  ;;  %v11142_v63 = vshrl.u32 %v25484_v14, 16 }
 0x529   : > { %v26137_v38 = vrot.slane %v11872_v36, %v20373_v44  ;;  %v15181_v24 = vsel %vm1831_vm14, %v25695_v60, %v25634_v31  ;;  %v14360_v55 = vrot.slane %v18756_v23, %v20373_v44  ;;  %v11147_v36 = vshll.u32 %v25492_v52, 16 }
 0x52a   : > { %v14621_v40 = vcombine.low %v14613_v5, %v14620_v1  ;;  %v13148_v59 = vrot.slane %v13134_v51, %v20373_v44  ;;  %v15209_v42 = vsel %vm7800_vm2, %v15181_v24, %v25965_v3  ;;  %v11155_v25 = vshll.u32 %v26002_v50, 16  ;;  %v26175_v51 = vpop.permute.xlu0 %14434 }
 0x52b   : > { %v11902_v9 = vcombine.low %v11893_v29, %v26137_v38  ;;  %15584 = vmatmul.mubr.bf16.gmra.mrb[60].mxu1 %v15209_v42  ;;  %v14361_v31 = vcombine.low %v26078_v49, %v14360_v55  ;;  %v11158_v60 = vshrl.u32 %v26002_v50, 16  ;;  %v11167_v1 = vshrl.u32 %v25558_v8, 16 }
 0x52c   : > { %14689 = vrot.lane.b32.xlu0 %v14621_v40, %s19428_s16  ;;  %v13149_v14 = vcombine.low %v13141_v32, %v13148_v59  ;;  %v26160_v29 = vsel %vm20462_vm1, %v11142_v63, %v11147_v36  ;;  %v26164_v52 = vsel %vm20462_vm1, %v11150_v18, %v11155_v25  ;;  %v11172_v23 = vshll.u32 %v25581_v62, 16 }
 0x52d   : > { %v26156_v3 = vrot.slane %v11902_v9, %v20373_v44  ;;  %28145 = vst [vmem:[#allocation80_spill] sm:$0xff] %v26160_v29  ;;  %28146 = vst [vmem:[#allocation78_spill] sm:$0xff] %v26164_v52  ;;  %v14368_v5 = vrot.slane %v14361_v31, %v20373_v44  ;;  %v26171_v8 = vsel %vm20462_vm1, %v11158_v60, %v11163_v17  ;;  %v11175_v50 = vshrl.u32 %v25581_v62, 16  ;;  %v26209_v31 = vpop.permute.xlu1 %13544 }
 0x52e   : > { %13187 = vrot.lane.b32.xlu1 %v13149_v14, %s19428_s16  ;;  %28147 = vst [vmem:[#allocation77_spill] sm:$0xff] %v26171_v8  ;;  %v11180_v32 = vshll.u32 %v26065_v12, 16  ;;  %v26179_v39 = vsel %vm20462_vm1, %v11167_v1, %v11172_v23  ;;  %v11183_v24 = vshrl.u32 %v26065_v12, 16  ;;  %v11188_v63 = vshll.u32 %v26107_v33, 16 }
 0x52f   : > { %28144 = vst [vmem:[#allocation7_spill] sm:$0xff] %v26156_v3  ;;  %28148 = vst [vmem:[#allocation18_spill] sm:$0xff] %v26179_v39  ;;  %v12472_v40 = vcombine.low %v26160_v29, %v26164_v52  ;;  %v14369_v17 = vcombine.low %v14368_v5, %v26156_v3  ;;  %v12473_v59 = vcombine.low %v26171_v8, %v26179_v39  ;;  %v11191_v55 = vshrl.u32 %v26107_v33, 16  ;;  %v28158_v52 = vld [vmem:[#allocation24_spill] sm:$0xff]  ;;  %v28159_v8 = vld [vmem:[#allocation35_spill] sm:$0xff] }
 0x530   : > { %v26188_v62 = vsel %vm20462_vm1, %v11175_v50, %v11180_v32  ;;  %v26195_v42 = vsel %vm20462_vm1, %v11183_v24, %v11188_v63  ;;  %v11196_v9 = vshll.u32 %v25561_v46, 16  ;;  %v11199_v36 = vshrl.u32 %v25561_v46, 16  ;;  %v26229_v63 = vpop.permute.xlu0 %14970 }
 0x531   : > { %28149 = vst [vmem:[#allocation17_spill] sm:$0xff] %v26188_v62  ;;  %28150 = vst [vmem:[#allocation19_spill] sm:$0xff] %v26195_v42  ;;  %v12482_v12 = vrot.slane %v12472_v40, %v20373_v44  ;;  %14446 = vrot.lane.b32.xlu0 %v14369_v17, %s19425_s23  ;;  %v12474_v18 = vcombine.low %v26188_v62, %v26195_v42  ;;  %v12489_v25 = vrot.slane %v12473_v59, %v20373_v44  ;;  %v26265_v3 = vpop.permute.xlu1 %13173 }
 0x532   : > { %v11204_v14 = vshll.u32 %v25587_v48, 16  ;;  %v26207_v33 = vcombine.high %v25714_v11, %v25714_v11  ;;  %v26214_v1 = vsel %vm20462_vm1, %v11191_v55, %v11196_v9  ;;  %v26218_v23 = vcombine.high %v25868_v4, %v25868_v4 }
 0x533   : > { %v14850_v60 = vcombine.low %v26040_v58, %v12482_v12  ;;  %28151 = vst [vmem:[#allocation13_spill] sm:$0xff] %v26214_v1  ;;  %v18750_v5 = vcombine.high %v25561_v46, %v25587_v48  ;;  %v12496_v50 = vrot.slane %v12474_v18, %v20373_v44  ;;  %v12504_v24 = vcombine.low %v12482_v12, %v12489_v25 }
 0x534   : > { %v26225_v32 = vsel %vm20462_vm1, %v11199_v36, %v11204_v14  ;;  %v13483_v58 = vcombine.low %v25868_v4, %v26207_v33  ;;  %v28152_v40 = vcombine.low %v26082_v35, %v26085_v6  ;;  %v13484_v12 = vcombine.low %v26218_v23, %v25767_v34 }
 0x535   : > { %v12475_v59 = vcombine.low %v26214_v1, %v26225_v32  ;;  %v26241_v55 = vrot.slane %v18750_v5, %v20373_v44  ;;  %v14851_v9 = vcombine.low %v12489_v25, %v12496_v50  ;;  %v14858_v36 = vrot.slane %v14850_v60, %v20373_v44  ;;  %v26275_v1 = vpop.permute.xlu0 %14679 }
 0x536   : > { %v26236_v17 = vsel %vm1699_vm10, %v28152_v40, %v26054_v37  ;;  %v12512_v18 = vrot.slane %v12504_v24, %v20373_v44  ;;  %v13498_v14 = vrot.slane %v13483_v58, %v20373_v44  ;;  %v13505_v37 = vrot.slane %v13484_v12, %v20373_v44  ;;  %v28153_v58 = vld [vmem:[#allocation37_spill] sm:$0xff] }
 0x537   : > { %v26249_v35 = vrot.slane %v12475_v59, %v20373_v44  ;;  %v15088_v6 = vcombine.low %v26118_v15, %v26241_v55  ;;  %v26256_v5 = vcombine.high %v25561_v46, %v25561_v46  ;;  %v14865_v25 = vrot.slane %v14851_v9, %v20373_v44  ;;  %v28154_v40 = vld [vmem:[#allocation33_spill] sm:$0xff] }
 0x538   : > { %v18757_v60 = vcombine.high %v25714_v11, %v25868_v4  ;;  %v14622_v24 = vcombine.low %v25714_v11, %v25868_v4  ;;  %v13760_v59 = vcombine.low %v28154_v40, %v28153_v58  ;;  %v13507_v49 = vcombine.low %v13498_v14, %v13505_v37  ;;  %v26277_v58 = vpop.f32.mrb[100].mxu0 }
 0x539   : > { %v12505_v12 = vcombine.low %v12496_v50, %v26249_v35  ;;  %v15095_v41 = vrot.slane %v15088_v6, %v20373_v44  ;;  %v11918_v46 = vcombine.low %v25587_v48, %v26256_v5  ;;  %v14866_v9 = vcombine.low %v14858_v36, %v14865_v25  ;;  %28155 = vst [vmem:[#allocation11_spill] sm:$0xff] %v26277_v58  ;;  %v28156_v6 = vld [vmem:[#allocation32_spill] sm:$0xff]  ;;  %v28157_v36 = vld [vmem:[#allocation30_spill] sm:$0xff]  ;;  %v28160_v58 = vld [vmem:[#allocation81_spill] sm:$0xff] }
 0x53a   : > { %v14386_v39 = vrot.slane %v18757_v60, %v20373_v44  ;;  %v14629_v62 = vrot.slane %v14622_v24, %v20373_v44  ;;  %v13482_v42 = vcombine.low %v26256_v5, %v25714_v11  ;;  %v13521_v14 = vrot.slane %v13507_v49, %v20373_v44  ;;  %v19217_v60 = vpop.f32.mrb[101].mxu0 }
 0x53b   : > { %v12519_v50 = vrot.slane %v12505_v12, %v20373_v44  ;;  %v26282_v37 = vrot.slane %v11918_v46, %v20373_v44  ;;  %v13761_v25 = vcombine.low %v28157_v36, %v28156_v6  ;;  %14982 = vrot.lane.b32.xlu0 %v14866_v9, %s19432_s14  ;;  %v13762_v29 = vcombine.low %v28159_v8, %v28158_v52  ;;  %v26292_v0 = vpop.f32.mrb[102].mxu0  ;;  %v26301_v8 = vpop.permute.xlu1 %12544 }
 0x53c   : > { %v14631_v24 = vcombine.low %v14629_v62, %v14386_v39  ;;  %v13491_v40 = vrot.slane %v13482_v42, %v20373_v44  ;;  %v13763_v12 = vcombine.low %v28161_v56, %v28160_v58  ;;  %v15096_v46 = vcombine.low %v15095_v41, %v13521_v14  ;;  %v19218_v36 = vpop.f32.mrb[103].mxu0  ;;  %v26318_v58 = vpop.permute.xlu0 %14436 }
 0x53d   : > { %v12520_v49 = vcombine.low %v12512_v18, %v12519_v50  ;;  %v14630_v57 = vcombine.low %v26137_v38, %v26282_v37  ;;  %v13770_v6 = vrot.slane %v13760_v59, %v20373_v44  ;;  %v13777_v9 = vrot.slane %v13761_v25, %v20373_v44 }
 0x53e   : > { %v14645_v62 = vrot.slane %v14631_v24, %v20373_v44  ;;  %v13506_v42 = vcombine.low %v26118_v15, %v13491_v40  ;;  %v13784_v52 = vrot.slane %v13762_v29, %v20373_v44  ;;  %19240 = vmatmul.mubr.msk.bf16.gmra.mrb[124].mxu0 %vm1699_vm10, %v15096_v46  ;;  %v13791_v56 = vrot.slane %v13763_v12, %v20373_v44  ;;  %v28162_v46 = vld [vmem:[#allocation41_spill] sm:$0xff] }
 0x53f   : > { %12558 = vrot.lane.b32.xlu1 %v12520_v49, %s19425_s23  ;;  %v14638_v41 = vrot.slane %v14630_v57, %v20373_v44  ;;  %v10424_v38 = vcombine.high %v25587_v48, %v25587_v48  ;;  %v13792_v15 = vcombine.low %v13770_v6, %v13777_v9  ;;  %19243 = vmatprep.mubr.msk.bf16.mxu0 %vm19431_vm13, %v27698_v61  ;;  %v11207_v49 = vshrl.u32 %v25587_v48, 16  ;;  %v26333_v36 = vpop.permute.xlu1 %13546 }
 0x540   : > { %v13514_v18 = vrot.slane %v13506_v42, %v20373_v44  ;;  %v14372_v29 = vcombine.low %v25767_v34, %v25897_v22  ;;  %v26316_v59 = vcombine.high %v25767_v34, %v25767_v34  ;;  %v13793_v50 = vcombine.low %v13784_v52, %v13791_v56  ;;  %v28164_v52 = vld [vmem:[#allocation97_spill] sm:$0xff] }
 0x541   : > { %v14646_v57 = vcombine.low %v14638_v41, %v14645_v62  ;;  %v14370_v25 = vcombine.low %v10424_v38, %v25868_v4  ;;  %v26323_v60 = vcombine.high %v25897_v22, %v25897_v22  ;;  %v11574_v6 = vcombine.low %v26134_v19, %v28162_v46  ;;  %v28163_v19 = vld [vmem:[#allocation98_spill] sm:$0xff] }
 0x542   : > { %v13522_v24 = vcombine.low %v13514_v18, %v13521_v14  ;;  %v26326_v40 = vrot.slane %v14372_v29, %v20373_v44  ;;  %v13523_v12 = vcombine.low %v25897_v22, %v26316_v59  ;;  %v13807_v62 = vrot.slane %v13793_v50, %v20373_v44 }
 0x543   : > { %14691 = vrot.lane.b32.xlu0 %v14646_v57, %s19428_s16  ;;  %v14379_v42 = vrot.slane %v14370_v25, %v20373_v44  ;;  %v15097_v14 = vcombine.low %v26323_v60, %v23383_v16  ;;  %v15287_v9 = vsel %vm1831_vm14, %v26236_v17, %v26130_v53  ;;  %v15106_v41 = vcombine.low %v28164_v52, %v28163_v19  ;;  %v26360_v25 = vpop.permute.xlu0 %14972 }
 0x544   : > { %13560 = vrot.lane.b32.xlu1 %v13522_v24, %s19432_s14  ;;  %v14395_v48 = vcombine.low %v14386_v39, %v26326_v40  ;;  %v11212_v56 = vshll.u32 %v26256_v5, 16  ;;  %v13800_v18 = vrot.slane %v13792_v15, %v20373_v44  ;;  %v26351_v57 = vrot.slane %v13523_v12, %v20373_v44 }
 0x545   : > { %v14394_v29 = vcombine.low %v26282_v37, %v14379_v42  ;;  %v15104_v16 = vrot.slane %v15097_v14, %v20373_v44  ;;  %v11215_v39 = vshrl.u32 %v26256_v5, 16  ;;  %v11220_v50 = vshll.u32 %v10424_v38, 16  ;;  %v26373_v38 = vpop.permute.xlu1 %13175 }
 0x546   : > { %v14409_v53 = vrot.slane %v14395_v48, %v20373_v44  ;;  %v26357_v17 = vsel %vm20462_vm1, %v11207_v49, %v11212_v56  ;;  %v13808_v24 = vcombine.low %v13800_v18, %v13807_v62  ;;  %v15120_v12 = vrot.slane %v15106_v41, %v20373_v44  ;;  %v28165_v56 = vld [vmem:[#allocation31_spill] sm:$0xff]  ;;  %v28166_v18 = vld [vmem:[#allocation34_spill] sm:$0xff] }
 0x547   : > { %v14402_v15 = vrot.slane %v14394_v29, %v20373_v44  ;;  %v15105_v46 = vcombine.low %v26351_v57, %v15104_v16  ;;  %v26367_v42 = vsel %vm20462_vm1, %v11215_v39, %v11220_v50  ;;  %v11274_v14 = vshrl.u32 %v25714_v11, 16  ;;  %v26380_v41 = vpop.f32.mrb[104].mxu0 }
 0x548   : > { %v11279_v49 = vshll.u32 %v25868_v4, 16  ;;  %v14103_v5 = vcombine.low %v26225_v32, %v26357_v17  ;;  %v12521_v19 = vcombine.low %v26357_v17, %v26367_v42  ;;  %v15316_v52 = vsel %vm7800_vm2, %v15287_v9, %v26229_v63  ;;  %v19221_v50 = vpop.f32.mrb[105].mxu0 }
 0x549   : > { %v14410_v62 = vcombine.low %v14402_v15, %v14409_v53  ;;  %v15113_v48 = vrot.slane %v15105_v46, %v20373_v44  ;;  %v11607_v29 = vcombine.low %v28166_v18, %v28165_v56  ;;  %15591 = vmatprep.mubr.bf16.mxu1 %v15316_v52  ;;  %v15183_v16 = vsel %vm1831_vm14, %v26073_v13, %v26015_v26  ;;  %v28167_v53 = vld [vmem:[#allocation53_spill] sm:$0xff]  ;;  %v28169_v50 = vld [vmem:[#allocation82_spill] sm:$0xff] }
 0x54a   : > { %v26384_v11 = vsel %vm20462_vm1, %v11274_v14, %v11279_v49  ;;  %v14647_v39 = vcombine.low %v26316_v59, %v28167_v53  ;;  %v12528_v9 = vrot.slane %v12521_v19, %v20373_v44  ;;  %v15212_v46 = vsel %vm7800_vm2, %v15183_v16, %v26209_v31  ;;  %v26399_v14 = vpop.f32.mrb[106].mxu0 }
 0x54b   : > { %14448 = vrot.lane.b32.xlu0 %v14410_v62, %s19425_s23  ;;  %v15121_v63 = vcombine.low %v15113_v48, %v15120_v12  ;;  %v15151_v26 = vsel %vm1699_vm10, %v11574_v6, %v26301_v8  ;;  %v11327_v13 = vshll.u32 %v26323_v60, 16  ;;  %15592 = vmatmul.mubr.bf16.gmra.mrb[64].mxu1 %v15212_v46  ;;  %v26405_v62 = vpop.permute.xlu0 %14681  ;;  %v19222_v12 = vpop.f32.mrb[107].mxu0  ;;  %v15255_v48 = vsel %vm1699_vm10, %v13808_v24, %v26175_v51 }
 0x54c   : > { %v14654_v49 = vrot.slane %v14647_v39, %v20373_v44  ;;  %v12535_v31 = vrot.slane %v12528_v9, %v20373_v44  ;;  %v11282_v19 = vshrl.u32 %v25868_v4, 16  ;;  %v11287_v52 = vshll.u32 %v26207_v33, 16  ;;  %v12547_v51 = vpop.permute.xlu1 %12546  ;;  %v28168_v39 = vld [vmem:[#allocation86_spill] sm:$0xff] }
 0x54d   : > { %19244 = vmatmul.mubr.msk.bf16.gmra.mrb[128].mxu0 %vm1699_vm10, %v15121_v63  ;;  %v11615_v8 = vrot.slane %v11607_v29, %v20373_v44  ;;  %v11290_v56 = vshrl.u32 %v26207_v33, 16  ;;  %v11295_v18 = vshll.u32 %v26218_v23, 16  ;;  %v11298_v4 = vshrl.u32 %v26218_v23, 16  ;;  %v28172_v12 = vld [vmem:[#allocation90_spill] sm:$0xff] }
 0x54e   : > { %v14655_v6 = vcombine.low %v26326_v40, %v14654_v49  ;;  %19247 = vmatprep.mubr.msk.bf16.mxu0 %vm19431_vm13, %v27698_v61  ;;  %12560 = vrot.lane.b32.xlu1 %v12535_v31, %s19425_s23  ;;  %v26422_v24 = vsel %vm20462_vm1, %v11282_v19, %v11287_v52  ;;  %v11303_v29 = vshll.u32 %v25767_v34, 16  ;;  %v14883_v40 = vcombine.low %v26249_v35, %v12528_v9  ;;  %v28170_v35 = vld [vmem:[#allocation88_spill] sm:$0xff]  ;;  %v28171_v9 = vld [vmem:[#allocation87_spill] sm:$0xff]  ;;  %v28173_v31 = vld [vmem:[#allocation89_spill] sm:$0xff] }
 0x54f   : > { %v26430_v16 = vsel %vm20462_vm1, %v11290_v56, %v11295_v18  ;;  %v14867_v53 = vcombine.low %v26384_v11, %v26422_v24  ;;  %v13809_v63 = vcombine.low %v28169_v50, %v28168_v39  ;;  %v13164_v46 = vrot.slane %v26241_v55, %v20373_v44  ;;  %v28174_v52 = vld [vmem:[#allocation44_spill] sm:$0xff]  ;;  %v28176_v55 = vld [vmem:[#allocation91_spill] sm:$0xff]  ;;  %v26453_v15 = vpop.permute.xlu0 %14438 }
 0x550   : > { %v14662_v33 = vrot.slane %v14655_v6, %v20373_v44  ;;  %v26440_v23 = vsel %vm20462_vm1, %v11298_v4, %v11303_v29  ;;  %v13810_v49 = vcombine.low %v28171_v9, %v28170_v35  ;;  %v13811_v19 = vcombine.low %v28173_v31, %v28172_v12  ;;  %v28175_v39 = vld [vmem:[#allocation92_spill] sm:$0xff]  ;;  %v28177_v12 = vld [vmem:[#allocation26_spill] sm:$0xff]  ;;  %v26468_v31 = vpop.permute.xlu1 %13548 }
 0x551   : > { %v15289_v56 = vsel %vm1831_vm14, %v15255_v48, %v26275_v1  ;;  %v14868_v18 = vcombine.low %v26430_v16, %v26440_v23  ;;  %v13812_v50 = vcombine.low %v28176_v55, %v28175_v39  ;;  %v13819_v4 = vrot.slane %v13809_v63, %v20373_v44 }
 0x552   : > { %v14663_v6 = vcombine.low %v14662_v33, %v28174_v52  ;;  %13189 = vrot.lane.b32.xlu1 %v13164_v46, %s19428_s16  ;;  %v13826_v29 = vrot.slane %v13810_v49, %v20373_v44  ;;  %v13833_v35 = vrot.slane %v13811_v19, %v20373_v44  ;;  %v18758_v33 = vcombine.high %v25767_v34, %v25897_v22 }
 0x553   : > { %v14875_v1 = vrot.slane %v14867_v53, %v20373_v44  ;;  %v14882_v48 = vrot.slane %v14868_v18, %v20373_v44  ;;  %v13840_v9 = vrot.slane %v13812_v50, %v20373_v44  ;;  %v15319_v46 = vsel %vm7800_vm2, %v15289_v56, %v26360_v25 }
 0x554   : > { %14693 = vrot.lane.b32.xlu0 %v14663_v6, %s19428_s16  ;;  %v11623_v63 = vcombine.low %v11615_v8, %v28177_v12  ;;  %v13537_v49 = vrot.slane %v26351_v57, %v20373_v44  ;;  %v13841_v19 = vcombine.low %v13819_v4, %v13826_v29  ;;  %15599 = vmatprep.mubr.bf16.mxu1 %v15319_v46  ;;  %v11306_v8 = vshrl.u32 %v25767_v34, 16  ;;  %v28178_v34 = vld [vmem:[#allocation54_spill] sm:$0xff]  ;;  %v28179_v29 = vld [vmem:[#allocation55_spill] sm:$0xff] }
 0x555   : > { %v15185_v52 = vsel %vm1831_vm14, %v15151_v26, %v26265_v3  ;;  %v14884_v53 = vcombine.low %v14875_v1, %v14882_v48  ;;  %v14891_v6 = vrot.slane %v14883_v40, %v20373_v44  ;;  %v13842_v18 = vcombine.low %v13833_v35, %v13840_v9 }
 0x556   : > { %v15215_v39 = vsel %vm7800_vm2, %v15185_v52, %v26333_v36  ;;  %13562 = vrot.lane.b32.xlu1 %v13537_v49, %s19432_s14  ;;  %v14418_v25 = vrot.slane %v18758_v33, %v20373_v44  ;;  %v11311_v57 = vshll.u32 %v25897_v22, 16  ;;  %v11314_v56 = vshrl.u32 %v25897_v22, 16  ;;  %v14975_v36 = vpop.permute.xlu0 %14974  ;;  %v28180_v33 = vld [vmem:[#allocation56_spill] sm:$0xff]  ;;  %v28181_v22 = vld [vmem:[#allocation57_spill] sm:$0xff]  ;;  %v26500_v49 = vpop.permute.xlu1 %13177 }
 0x557   : > { %15600 = vmatmul.mubr.bf16.gmra.mrb[68].mxu1 %v15215_v39  ;;  %v14898_v3 = vrot.slane %v14884_v53, %v20373_v44  ;;  %v13849_v26 = vrot.slane %v13841_v19, %v20373_v44  ;;  %v13856_v40 = vrot.slane %v13842_v18, %v20373_v44  ;;  %v11319_v55 = vshll.u32 %v26316_v59, 16  ;;  %v28182_v53 = vld [vmem:[#allocation84_spill] sm:$0xff]  ;;  %v28184_v39 = vld [vmem:[#allocation42_spill] sm:$0xff] }
 0x558   : > { %v26488_v50 = vsel %vm20462_vm1, %v11306_v8, %v11311_v57  ;;  %v11322_v4 = vshrl.u32 %v26316_v59, 16  ;;  %v14902_v35 = vcombine.low %v28179_v29, %v28178_v34  ;;  %v14903_v1 = vcombine.low %v28181_v22, %v28180_v33  ;;  %v28189_v29 = vld [vmem:[#allocation101_spill] sm:$0xff]  ;;  %v28191_v22 = vld [vmem:[#allocation104_spill] sm:$0xff] }
 0x559   : > { %v15154_v48 = vsel %vm1699_vm10, %v11623_v63, %v12547_v51  ;;  %v14899_v9 = vcombine.low %v14891_v6, %v14898_v3  ;;  %v13857_v46 = vcombine.low %v13849_v26, %v13856_v40  ;;  %v26498_v12 = vsel %vm20462_vm1, %v11314_v56, %v11319_v55  ;;  %v28183_v6 = vld [vmem:[#allocation83_spill] sm:$0xff]  ;;  %v28188_v55 = vld [vmem:[#allocation68_spill] sm:$0xff] }
 0x55a   : > { %v26506_v59 = vsel %vm20462_vm1, %v11322_v4, %v11327_v13  ;;  %v14900_v19 = vcombine.low %v26488_v50, %v26498_v12  ;;  %v14924_v52 = vrot.slane %v14902_v35, %v20373_v44  ;;  %v14931_v51 = vrot.slane %v14903_v1, %v20373_v44  ;;  %v28186_v13 = vld [vmem:[#allocation93_spill] sm:$0xff]  ;;  %v14684_v57 = vpop.permute.xlu0 %14683  ;;  %v28187_v40 = vld [vmem:[#allocation99_spill] sm:$0xff]  ;;  %v28190_v35 = vld [vmem:[#allocation100_spill] sm:$0xff] }
 0x55b   : > { %14984 = vrot.lane.b32.xlu0 %v14899_v9, %s19432_s14  ;;  %v14425_v63 = vrot.slane %v14418_v25, %v20373_v44  ;;  %v11656_v18 = vcombine.low %v28183_v6, %v28182_v53  ;;  %v14901_v60 = vcombine.low %v26506_v59, %v28184_v39  ;;  %v13858_v8 = vcombine.low %v28186_v13, %v28185_v54  ;;  %v28192_v1 = vld [vmem:[#allocation102_spill] sm:$0xff]  ;;  %v12549_v6 = vpop.permute.xlu1 %12548 }
 0x55c   : > { %v15258_v56 = vsel %vm1699_vm10, %v13857_v46, %v26318_v58  ;;  %v14910_v3 = vrot.slane %v14900_v19, %v20373_v44  ;;  %v14933_v26 = vcombine.low %v14924_v52, %v14931_v51  ;;  %v13859_v4 = vcombine.low %v28188_v55, %v28187_v40 }
 0x55d   : > { %v14917_v25 = vrot.slane %v14901_v60, %v20373_v44  ;;  %v15291_v34 = vsel %vm1831_vm14, %v15258_v56, %v26405_v62  ;;  %v13860_v33 = vcombine.low %v28190_v35, %v28189_v29  ;;  %v13861_v9 = vcombine.low %v28192_v1, %v28191_v22  ;;  %v28194_v56 = vld [vmem:[#allocation59_spill] sm:$0xff]  ;;  %v28198_v35 = vld [vmem:[#allocation109_spill] sm:$0xff]  ;;  %v28200_v1 = vld [vmem:[#allocation110_spill] sm:$0xff] }
 0x55e   : > { %v14947_v53 = vrot.slane %v14933_v26, %v20373_v44  ;;  %v13868_v58 = vrot.slane %v13858_v8, %v20373_v44  ;;  %v13875_v46 = vrot.slane %v13859_v4, %v20373_v44  ;;  %v15322_v19 = vsel %vm7800_vm2, %v15291_v34, %v14975_v36  ;;  %v28193_v8 = vld [vmem:[#allocation61_spill] sm:$0xff]  ;;  %v28197_v34 = vld [vmem:[#allocation106_spill] sm:$0xff] }
 0x55f   : > { %14450 = vrot.lane.b32.xlu0 %v14425_v63, %s19425_s23  ;;  %v14932_v52 = vcombine.low %v14910_v3, %v14917_v25  ;;  %v13882_v51 = vrot.slane %v13860_v33, %v20373_v44  ;;  %v13889_v62 = vrot.slane %v13861_v9, %v20373_v44  ;;  %15607 = vmatprep.mubr.bf16.mxu1 %v15322_v19  ;;  %v14977_v63 = vpop.permute.xlu0 %14976  ;;  %v28195_v25 = vld [vmem:[#allocation85_spill] sm:$0xff]  ;;  %v28199_v33 = vld [vmem:[#allocation108_spill] sm:$0xff] }
 0x560   : > { %v13890_v39 = vcombine.low %v13868_v58, %v13875_v46  ;;  %v15187_v60 = vsel %vm1831_vm14, %v15154_v48, %v26373_v38  ;;  %v14949_v26 = vcombine.low %v28194_v56, %v28193_v8  ;;  %v11664_v3 = vrot.slane %v11656_v18, %v20373_v44  ;;  %v28196_v48 = vld [vmem:[#allocation107_spill] sm:$0xff]  ;;  %v28201_v18 = vld [vmem:[#allocation58_spill] sm:$0xff] }
 0x561   : > { %v14940_v54 = vrot.slane %v14932_v52, %v20373_v44  ;;  %v13891_v13 = vcombine.low %v13882_v51, %v13889_v62  ;;  %v15218_v36 = vsel %vm7800_vm2, %v15187_v60, %v26468_v31  ;;  %v13908_v29 = vcombine.low %v28197_v34, %v28196_v48  ;;  %v13551_v52 = vpop.permute.xlu1 %13550  ;;  %v28202_v51 = vld [vmem:[#allocation105_spill] sm:$0xff]  ;;  %v28207_v48 = vld [vmem:[#allocation94_spill] sm:$0xff] }
 0x562   : > { %v13898_v40 = vrot.slane %v13890_v39, %v20373_v44  ;;  %15608 = vmatmul.mubr.bf16.gmra.mrb[72].mxu1 %v15218_v36  ;;  %v11672_v38 = vcombine.low %v11664_v3, %v28195_v25  ;;  %v13909_v22 = vcombine.low %v28199_v33, %v28198_v35  ;;  %v13910_v31 = vcombine.low %v28200_v1, %v25596_v30  ;;  %v28203_v62 = vld [vmem:[#allocation69_spill] sm:$0xff] }
 0x563   : > { %v14948_v55 = vcombine.low %v14940_v54, %v14947_v53  ;;  %v13905_v4 = vrot.slane %v13891_v13, %v20373_v44  ;;  %v14670_v9 = vrot.slane %v28201_v18, %v20373_v44  ;;  %v14956_v53 = vrot.slane %v14949_v26, %v20373_v44  ;;  %v14441_v46 = vpop.permute.xlu0 %14440  ;;  %v28205_v26 = vld [vmem:[#allocation96_spill] sm:$0xff] }
 0x564   : > { %v15157_v19 = vsel %vm1699_vm10, %v11672_v38, %v12549_v6  ;;  %v13907_v39 = vcombine.low %v28203_v62, %v28202_v51  ;;  %v13938_v60 = vrot.slane %v13910_v31, %v20373_v44  ;;  %v13924_v13 = vrot.slane %v13908_v29, %v20373_v44  ;;  %v28204_v6 = vld [vmem:[#allocation70_spill] sm:$0xff]  ;;  %v28206_v38 = vld [vmem:[#allocation95_spill] sm:$0xff] }
 0x565   : > { %14986 = vrot.lane.b32.xlu0 %v14948_v55, %s19432_s14  ;;  %v13906_v58 = vcombine.low %v13898_v40, %v13905_v4  ;;  %v13931_v8 = vrot.slane %v13909_v22, %v20373_v44  ;;  %v14963_v56 = vrot.slane %v14956_v53, %v20373_v44  ;;  %v11706_v36 = vcombine.low %v28205_v26, %v28204_v6 }
 0x566   : > { %v15189_v40 = vsel %vm1831_vm14, %v15157_v19, %v26500_v49  ;;  %v13917_v4 = vrot.slane %v13907_v39, %v20373_v44  ;;  %v11705_v34 = vcombine.low %v28207_v48, %v28206_v38  ;;  %v28208_v6 = vcombine.low %v26367_v42, %v26384_v11 }
 0x567   : > { %v15261_v30 = vsel %vm1699_vm10, %v13906_v58, %v26453_v15  ;;  %v14686_v55 = vpop.permute.xlu0 %14685  ;;  %v13180_v15 = vpop.permute.xlu1 %13179  ;;  %v13940_v25 = vcombine.low %v13931_v8, %v13938_v60  ;;  %v14106_v8 = vcombine.low %v26440_v23, %v26488_v50  ;;  %v14152_v23 = vcombine.low %v26498_v12, %v26506_v59 }
 0x568   : > { %v15293_v54 = vsel %vm1831_vm14, %v15261_v30, %v14684_v57  ;;  %v15221_v57 = vsel %vm7800_vm2, %v15189_v40, %v13551_v52  ;;  %v13939_v29 = vcombine.low %v13917_v4, %v13924_v13  ;;  %v11713_v49 = vrot.slane %v11705_v34, %v20373_v44 }
 0x569   : > { %14695 = vrot.lane.b32.xlu0 %v14670_v9, %s19428_s16  ;;  %v15325_v3 = vsel %vm7800_vm2, %v15293_v54, %v14977_v63  ;;  %v11720_v63 = vrot.slane %v11706_v36, %v20373_v44  ;;  %v13954_v35 = vrot.slane %v13940_v25, %v20373_v44  ;;  %v14105_v30 = vcombine.low %v26422_v24, %v26430_v16  ;;  %v28209_v36 = vld [vmem:[#allocation49_spill] sm:$0xff] }
 0x56a   : > { %15615 = vmatprep.mubr.bf16.mxu1 %v15325_v3  ;;  %v13947_v31 = vrot.slane %v13939_v29, %v20373_v44  ;;  %v14120_v24 = vrot.slane %v28208_v6, %v20373_v44  ;;  %v14134_v26 = vrot.slane %v14106_v8, %v20373_v44  ;;  %v28210_v3 = vld [vmem:[#allocation52_spill] sm:$0xff]  ;;  %v13959_v11 = vcombine.low %v25778_v20, %v25800_v43  ;;  %v28211_v29 = vld [vmem:[#allocation103_spill] sm:$0xff] }
 0x56b   : > { %15616 = vmatmul.mubr.bf16.gmra.mrb[76].mxu1 %v15221_v57  ;;  %v14443_v33 = vpop.permute.xlu0 %14442  ;;  %v12551_v1 = vpop.permute.xlu1 %12550  ;;  %v11721_v9 = vcombine.low %v11713_v49, %v11720_v63  ;;  %v14127_v16 = vrot.slane %v14105_v30, %v20373_v44  ;;  %v18759_v40 = vcombine.high %v28210_v3, %v28209_v36  ;;  %v13956_v57 = vcombine.low %v25602_v45, %v25736_v2  ;;  %v28215_v8 = vld [vmem:[#allocation71_spill] sm:$0xff] }
 0x56c   : > { %v13955_v53 = vcombine.low %v13947_v31, %v13954_v35  ;;  %v13957_v4 = vcombine.low %v25744_v47, %v25753_v27  ;;  %v13958_v25 = vcombine.low %v25760_v21, %v25772_v7  ;;  %v13987_v38 = vrot.slane %v13959_v11, %v20373_v44 }
 0x56d   : > { %14988 = vrot.lane.b32.xlu0 %v14963_v56, %s19432_s14  ;;  %v15160_v52 = vsel %vm1699_vm10, %v11721_v9, %v12551_v1  ;;  %v15129_v32 = vrot.slane %v18759_v40, %v20373_v44  ;;  %v13966_v34 = vrot.slane %v13956_v57, %v20373_v44  ;;  %v11755_v63 = vcombine.low %v28211_v29, %v25623_v28  ;;  %v28212_v1 = vld [vmem:[#allocation25_spill] sm:$0xff]  ;;  %v28220_v40 = vld [vmem:[#allocation47_spill] sm:$0xff] }
 0x56e   : > { %v15264_v62 = vsel %vm1699_vm10, %v13955_v53, %v14441_v46  ;;  %v15191_v13 = vsel %vm1831_vm14, %v15160_v52, %v13180_v15  ;;  %v14113_v46 = vrot.slane %v14103_v5, %v20373_v44  ;;  %v13973_v20 = vrot.slane %v13957_v4, %v20373_v44 }
 0x56f   : > { %v26584_v22 = vpop.f32.mrb[108].mxu0  ;;  %v13553_v51 = vpop.permute.xlu1 %13552  ;;  %v15295_v39 = vsel %vm1831_vm14, %v15264_v62, %v14686_v55  ;;  %v14136_v55 = vcombine.low %v14127_v16, %v14134_v26  ;;  %v15136_v5 = vrot.slane %v15129_v32, %v20373_v44  ;;  %v13980_v43 = vrot.slane %v13958_v25, %v20373_v44  ;;  %v28219_v16 = vld [vmem:[#allocation15_spill] sm:$0xff] }
 0x570   : > { %v19225_v18 = vpop.f32.mrb[109].mxu0  ;;  %v15224_v56 = vsel %vm7800_vm2, %v15191_v13, %v13553_v51  ;;  %v14135_v50 = vcombine.low %v14113_v46, %v14120_v24  ;;  %v13988_v2 = vcombine.low %v13966_v34, %v13973_v20  ;;  %v11769_v47 = vrot.slane %v11755_v63, %v20373_v44  ;;  %v28214_v13 = vld [vmem:[#allocation20_spill] sm:$0xff]  ;;  %v28216_v46 = vld [vmem:[#allocation73_spill] sm:$0xff]  ;;  %v28218_v24 = vld [vmem:[#allocation75_spill] sm:$0xff] }
 0x571   : > { %v26587_v58 = vpop.f32.mrb[110].mxu0  ;;  %v26618_v42 = vrot.slane %v14136_v55, %v20373_v44  ;;  %19248 = vmatmul.mubr.msk.bf16.gmra.mrb[132].mxu0 %vm1699_vm10, %v15136_v5  ;;  %v13989_v45 = vcombine.low %v13980_v43, %v13987_v38  ;;  %v14006_v26 = vcombine.low %v28219_v16, %v28218_v24  ;;  %v28221_v55 = vld [vmem:[#allocation51_spill] sm:$0xff]  ;;  %v28222_v43 = vld [vmem:[#allocation16_spill] sm:$0xff]  ;;  %v28228_v16 = vld [vmem:[#allocation77_spill] sm:$0xff] }
 0x572   : > { %v19226_v19 = vpop.f32.mrb[111].mxu0  ;;  %v26615_v17 = vrot.slane %v14135_v50, %v20373_v44  ;;  %v13996_v49 = vrot.slane %v13988_v2, %v20373_v44  ;;  %v11770_v31 = vcombine.low %v28212_v1, %v11769_v47  ;;  %v11804_v32 = vcombine.low %v28221_v55, %v28220_v40  ;;  %v28232_v55 = vld [vmem:[#allocation17_spill] sm:$0xff] }
 0x573   : > { %v13182_v48 = vpop.permute.xlu1 %13181  ;;  %v14003_v21 = vrot.slane %v13989_v45, %v20373_v44  ;;  %v14022_v11 = vrot.slane %v14006_v26, %v20373_v44  ;;  %v28229_v26 = vld [vmem:[#allocation78_spill] sm:$0xff] }
 0x574   : > { %v14979_v60 = vpop.permute.xlu0 %14978  ;;  %v14151_v15 = vcombine.low %v26615_v17, %v26618_v42  ;;  %v11818_v25 = vrot.slane %v11804_v32, %v20373_v44  ;;  %v28233_v32 = vld [vmem:[#allocation18_spill] sm:$0xff] }
 0x575   : > { %v15328_v54 = vsel %vm7800_vm2, %v15295_v39, %v14979_v60  ;;  %v14004_v18 = vcombine.low %v13996_v49, %v14003_v21  ;;  %v28213_v60 = vld [vmem:[#allocation66_spill] sm:$0xff] }
 0x576   : > { %15623 = vmatprep.mubr.bf16.mxu1 %v15328_v54  ;;  %v14008_v30 = vcombine.low %v28213_v60, %v25997_v10  ;;  %v11819_v29 = vcombine.low %v28222_v43, %v11818_v25 }
 0x577   : > { %15624 = vmatmul.mubr.bf16.gmra.mrb[80].mxu1 %v15224_v56  ;;  %v12553_v27 = vpop.permute.xlu1 %12552  ;;  %v15267_v19 = vsel %vm1699_vm10, %v14004_v18, %v14443_v33  ;;  %v14005_v56 = vcombine.low %v28215_v8, %v28214_v13  ;;  %v28217_v33 = vld [vmem:[#allocation64_spill] sm:$0xff]  ;;  %v26679_v18 = vld [vmem:[%s27417_s6] ss:$0 sm:$0xff] }
 0x578   : > { %v15163_v9 = vsel %vm1699_vm10, %v11770_v31, %v12553_v27  ;;  %v14007_v6 = vcombine.low %v28217_v33, %v28216_v46  ;;  %v14036_v50 = vrot.slane %v14008_v30, %v20373_v44  ;;  %v28224_v30 = vld [vmem:[#allocation80_spill] sm:$0xff] }
 0x579   : > { %v15193_v62 = vsel %vm1831_vm14, %v15163_v9, %v13182_v48  ;;  %v14015_v36 = vrot.slane %v14005_v56, %v20373_v44  ;;  %v28226_v56 = vld [vmem:[#allocation50_spill] sm:$0xff]  ;;  %v28227_v33 = vld [vmem:[#allocation60_spill] sm:$0xff] }
 0x57a   : > { %v14029_v3 = vrot.slane %v14007_v6, %v20373_v44 }
 0x57b   : > { %v13555_v53 = vpop.permute.xlu1 %13554  ;;  %v14037_v4 = vcombine.low %v14015_v36, %v14022_v11  ;;  %v28230_v36 = vld [vmem:[#allocation13_spill] sm:$0xff] }
 0x57c   : > { %v15227_v39 = vsel %vm7800_vm2, %v15193_v62, %v13555_v53  ;;  %v14038_v57 = vcombine.low %v14029_v3, %v14036_v50  ;;  %v28223_v62 = vld [vmem:[#allocation14_spill] sm:$0xff]  ;;  %v14055_v50 = vcombine.low %v28229_v26, %v28228_v16  ;;  %v28231_v3 = vld [vmem:[#allocation19_spill] sm:$0xff] }
 0x57d   : > { %v14045_v20 = vrot.slane %v14037_v4, %v20373_v44  ;;  %v14057_v40 = vcombine.low %v28231_v3, %v28230_v36 }
 0x57e   : > { %v14052_v38 = vrot.slane %v14038_v57, %v20373_v44 }
 0x57f   : > { %v13184_v54 = vpop.permute.xlu1 %13183 }
 0x580   : > { %v14688_v35 = vpop.permute.xlu0 %14687  ;;  %v14053_v63 = vcombine.low %v14045_v20, %v14052_v38 }
 0x581   : > { %v15297_v28 = vsel %vm1831_vm14, %v15267_v19, %v14688_v35 }
 0x583   : > { %v12555_v5 = vpop.permute.xlu1 %12554 }
 0x584   : > { %v15166_v35 = vsel %vm1699_vm10, %v11819_v29, %v12555_v5 }
 0x585   : > { %v15195_v49 = vsel %vm1831_vm14, %v15166_v35, %v13184_v54  ;;  %v28225_v54 = vld [vmem:[#allocation76_spill] sm:$0xff]  ;;  %v14085_v35 = vrot.slane %v14057_v40, %v20373_v44 }
 0x586   : > { %v14445_v7 = vpop.permute.xlu0 %14444  ;;  %v14054_v13 = vcombine.low %v28225_v54, %v28224_v30 }
 0x587   : > { %v13557_v34 = vpop.permute.xlu1 %13556  ;;  %v15270_v45 = vsel %vm1699_vm10, %v14053_v63, %v14445_v7  ;;  %v14071_v63 = vrot.slane %v14055_v50, %v20373_v44 }
 0x588   : > { %v15230_v1 = vsel %vm7800_vm2, %v15195_v49, %v13557_v34  ;;  %v14064_v25 = vrot.slane %v14054_v13, %v20373_v44 }
 0x58b   : > { %v26671_v27 = vpop.permute.xlu1 %13185 }
 0x592   : > { %v14981_v52 = vpop.permute.xlu0 %14980 }
 0x593   : > { %v15331_v51 = vsel %vm7800_vm2, %v15297_v28, %v14981_v52 }
 0x594   : > { %15631 = vmatprep.mubr.bf16.mxu1 %v15331_v51 }
 0x595   : > { %15632 = vmatmul.mubr.bf16.gmra.mrb[84].mxu1 %v15227_v39  ;;  %v26681_v19 = vpop.permute.xlu1 %12556 }
 0x59a   : > { %v26690_v24 = vpop.permute.xlu1 %13558 }
 0x59e   : > { %v14690_v10 = vpop.permute.xlu0 %14689 }
 0x59f   : > { %v15299_v2 = vsel %vm1831_vm14, %v15270_v45, %v14690_v10  ;;  %v14056_v10 = vcombine.low %v28233_v32, %v28232_v55 }
 0x5a3   : > { %v26664_v48 = vpop.permute.xlu0 %14446 }
 0x5ad   : > { %v14983_v47 = vpop.permute.xlu0 %14982 }
 0x5ae   : > { %v15334_v21 = vsel %vm7800_vm2, %v15299_v2, %v14983_v47  ;;  %v14078_v47 = vrot.slane %v14056_v10, %v20373_v44 }
 0x5af   : > { %15639 = vmatprep.mubr.bf16.mxu1 %v15334_v21 }
 0x5b0   : > { %15640 = vmatmul.mubr.bf16.gmra.mrb[88].mxu1 %v15230_v1  ;;  %v26709_v1 = vpop.permute.xlu1 %13187  ;;  %v14087_v30 = vcombine.low %v14078_v47, %v14085_v35 }
 0x5b1   : > { %v18969_v31 = vpop.f32.mrb[52].mxu1 }
 0x5b2   : > { %v18970_v7 = vpop.f32.mrb[53].mxu1  ;;  %v14101_v10 = vrot.slane %v14087_v30, %v20373_v44 }
 0x5b3   : > { %v18971_v9 = vadd.f32 %v18970_v7, %v18969_v31  ;;  %v18972_v53 = vpop.f32.mrb[54].mxu1 }
 0x5b4   : > { %v18973_v28 = vpop.f32.mrb[55].mxu1 }
 0x5b5   : > { %v15570_v52 = vadd.f32 %v18971_v9, %v26679_v18  ;;  %v18974_v51 = vadd.f32 %v18973_v28, %v18972_v53  ;;  %v26698_v5 = vpop.permute.xlu0 %14691  ;;  %v28234_v28 = vld [vmem:[#allocation63_spill] sm:$0xff] }
 0x5b7   : > { %v15706_v39 = vadd.f32 %v28223_v62, %v15570_v52  ;;  %v15573_v60 = vadd.f32 %v18974_v51, %v26679_v18  ;;  %v28235_v52 = vld [vmem:[#allocation72_spill] sm:$0xff] }
 0x5b8   : > { %v11853_v51 = vcombine.low %v28235_v52, %v28234_v28 }
 0x5b9   : > { %v15832_v8 = vcombine.high %v15706_v39, %v15706_v39  ;;  %v15839_v46 = vrot.slane %v15706_v39, %v28226_v56  ;;  %v15709_v6 = vadd.f32 %v28227_v33, %v15573_v60  ;;  %v14086_v60 = vcombine.low %v14064_v25, %v14071_v63 }
 0x5ba   : > { %v11867_v3 = vrot.slane %v11853_v51, %v20373_v44 }
 0x5bb   : > { %v15846_v11 = vrot.slane %v15832_v8, %v28226_v56  ;;  %v15847_v57 = vcombine.high %v15839_v46, %v15839_v46  ;;  %v15849_v4 = vcombine.high %v15709_v6, %v15709_v6  ;;  %v15856_v38 = vrot.slane %v15709_v6, %v28226_v56 }
 0x5bc   : > { %v16346_v20 = vmax.f32 %v15839_v46, 0.0 }
 0x5bd   : > { %v15848_v34 = vcombine.high %v15846_v11, %v15846_v11  ;;  %v16347_v43 = vmax.f32 %v15847_v57, 0.0  ;;  %v16348_v29 = vmax.f32 %v15846_v11, 0.0  ;;  %v26706_v45 = vrot.slane %v15849_v4, %v28226_v56  ;;  %v14449_v62 = vpop.permute.xlu0 %14448  ;;  %v12559_v11 = vpop.permute.xlu1 %12558 }
 0x5be   : > { %v15864_v2 = vcombine.high %v15856_v38, %v15856_v38  ;;  %v16350_v7 = vmax.f32 %v15856_v38, 0.0  ;;  %v14094_v38 = vrot.slane %v14086_v60, %v20373_v44 }
 0x5bf   : > { %v16349_v21 = vmax.f32 %v15848_v34, 0.0  ;;  %v16516_v49 = vcombine.low %v16346_v20, %v16347_v43  ;;  %v17117_v31 = vcombine.low %v16347_v43, %v16348_v29  ;;  %v16352_v53 = vmax.f32 %v26706_v45, 0.0 }
 0x5c0   : > { %v16351_v9 = vmax.f32 %v15864_v2, 0.0 }
 0x5c1   : > { %v16517_v39 = vcombine.low %v16348_v29, %v16349_v21  ;;  %v17118_v13 = vcombine.low %v16349_v21, %v16350_v7  ;;  %v16524_v8 = vrot.slane %v16516_v49, %v28226_v56  ;;  %v17125_v6 = vrot.slane %v17117_v31, %v28226_v56  ;;  %v28236_v49 = vld [vmem:[#allocation74_spill] sm:$0xff]  ;;  %v13561_v60 = vpop.permute.xlu1 %13560 }
 0x5c2   : > { %v16533_v54 = vcombine.low %v16350_v7, %v16351_v9  ;;  %v17134_v33 = vcombine.low %v16351_v9, %v16352_v53  ;;  %v16913_v26 = vrot.slane %v16352_v53, %v28226_v56  ;;  %v11868_v31 = vcombine.low %v28236_v49, %v11867_v3  ;;  %v28239_v3 = vld [vmem:[#allocation7_spill] sm:$0xff] }
 0x5c3   : > { %v16531_v46 = vrot.slane %v16517_v39, %v28226_v56  ;;  %v17132_v50 = vrot.slane %v17118_v13, %v28226_v56  ;;  %v14102_v9 = vcombine.low %v14094_v38, %v14101_v10  ;;  %v28238_v13 = vld [vmem:[#allocation79_spill] sm:$0xff] }
 0x5c4   : > { %v16540_v16 = vrot.slane %v16533_v54, %v28226_v56  ;;  %v26720_v36 = vpop.f32.mrb[112].mxu0  ;;  %v17141_v55 = vrot.slane %v17134_v33, %v28226_v56  ;;  %v15169_v52 = vsel %vm1699_vm10, %v11868_v31, %v26681_v19  ;;  %v28237_v54 = vld [vmem:[#allocation65_spill] sm:$0xff] }
 0x5c5   : > { %v16532_v40 = vcombine.low %v16524_v8, %v16531_v46  ;;  %v19229_v32 = vpop.f32.mrb[113].mxu0  ;;  %v17133_v4 = vcombine.low %v17125_v6, %v17132_v50  ;;  %v15273_v39 = vsel %vm1699_vm10, %v14102_v9, %v26664_v48  ;;  %v11901_v8 = vcombine.low %v28238_v13, %v28237_v54  ;;  %v12561_v50 = vpop.permute.xlu1 %12560  ;;  %v28241_v54 = vld [vmem:[#allocation62_spill] sm:$0xff] }
 0x5c6   : > { %v16914_v57 = vcombine.low %v16540_v16, %v16913_v26  ;;  %v26725_v25 = vpop.f32.mrb[114].mxu0  ;;  %v14694_v34 = vpop.permute.xlu0 %14693  ;;  %v16842_v29 = vsel %vm16841_vm5, %v16540_v16, 0.0  ;;  %v17442_v21 = vsel %vm16841_vm5, %v17141_v55, 0.0  ;;  %v15301_v46 = vsel %vm1831_vm14, %v15273_v39, %v26698_v5 }
 0x5c7   : > { %v17003_v20 = vrot.slane %v16532_v40, 1  ;;  %v16840_v43 = vsel %vm1699_vm10, %v16532_v40, 0.0  ;;  %v19230_v63 = vpop.f32.mrb[115].mxu0  ;;  %v17441_v47 = vsel %vm1699_vm10, %v17133_v4, 0.0  ;;  %v15197_v19 = vsel %vm1831_vm14, %v15169_v52, %v26671_v27 }
 0x5c8   : > { %v26730_v35 = vadd.f32 %v16842_v29, %v16840_v43  ;;  %v17004_v2 = vrot.slane %v16914_v57, 1  ;;  %v26735_v7 = vadd.f32 %v17442_v21, %v17441_v47  ;;  %v15233_v16 = vsel %vm7800_vm2, %v15197_v19, %v26690_v24 }
 0x5c9   : > { %v11909_v48 = vrot.slane %v11901_v8, %v20373_v44  ;;  %v15276_v5 = vsel %vm1699_vm10, %v14151_v15, %v14449_v62  ;;  %v13190_v10 = vpop.permute.xlu1 %13189  ;;  %v14159_v24 = vrot.slane %v14152_v23, %v20373_v44  ;;  %v11932_v15 = vrot.slane %v26282_v37, %v20373_v44 }
 0x5ca   : > { %v17005_v53 = vsel %vm9694_vm4, %v17003_v20, %v17004_v2  ;;  %v17064_v28 = vsel %vm16841_vm5, %v17004_v2, 0.0  ;;  %v15303_v27 = vsel %vm1831_vm14, %v15276_v5, %v14694_v34 }
 0x5cb   : > { %v17063_v51 = vsel %vm1699_vm10, %v17005_v53, 0.0  ;;  %v11917_v40 = vcombine.low %v11909_v48, %v28239_v3  ;;  %v14166_v42 = vrot.slane %v14159_v24, %v20373_v44  ;;  %v15175_v23 = vsel %vm1699_vm10, %v11932_v15, %v12561_v50 }
 0x5cc   : > { %v26744_v30 = vadd.f32 %v17064_v28, %v17063_v51  ;;  %v15201_v43 = vsel %vm1831_vm14, %v15175_v23, %v13190_v10  ;;  %v15865_v53 = vcombine.high %v26706_v45, %v26706_v45  ;;  %v28240_v28 = vld [vmem:[#allocation43_spill] sm:$0xff] }
 0x5cd   : > { %v14985_v33 = vpop.permute.xlu0 %14984  ;;  %v15172_v55 = vsel %vm1699_vm10, %v11917_v40, %v12559_v11  ;;  %v13563_v38 = vpop.permute.xlu1 %13562 }
 0x5ce   : > { %v15337_v6 = vsel %vm7800_vm2, %v15301_v46, %v14985_v33  ;;  %v15199_v4 = vsel %vm1831_vm14, %v15172_v55, %v26709_v1  ;;  %v15239_v44 = vsel %vm7800_vm2, %v15201_v43, %v13563_v38  ;;  %v16353_v8 = vmax.f32 %v15865_v53, 0.0 }
 0x5cf   : > { %15647 = vmatprep.mubr.bf16.mxu1 %v15337_v6  ;;  %v15236_v11 = vsel %vm7800_vm2, %v15199_v4, %v13561_v60 }
 0x5d0   : > { %15648 = vmatmul.mubr.bf16.gmra.mrb[92].mxu1 %v15233_v16 }
 0x5d1   : > { %v14451_v26 = vpop.permute.xlu0 %14450 }
 0x5d2   : > { %v15279_v12 = vsel %vm1699_vm10, %v14166_v42, %v14451_v26 }
 0x5d7   : > { %v14987_v32 = vpop.permute.xlu0 %14986 }
 0x5d8   : > { %v15340_v57 = vsel %vm7800_vm2, %v15303_v27, %v14987_v32 }
 0x5d9   : > { %15655 = vmatprep.mubr.bf16.mxu1 %v15340_v57 }
 0x5da   : > { %15656 = vmatmul.mubr.bf16.gmra.mrb[96].mxu1 %v15236_v11 }
 0x5db   : > { %v14696_v17 = vpop.permute.xlu0 %14695 }
 0x5dc   : > { %v15305_v1 = vsel %vm1831_vm14, %v15279_v12, %v14696_v17 }
 0x5dd   : > { %v26774_v62 = vpop.f32.mrb[116].mxu0 }
 0x5de   : > { %v19233_v59 = vpop.f32.mrb[117].mxu0 }
 0x5df   : > { %v14989_v34 = vpop.permute.xlu0 %14988  ;;  %v26779_v20 = vpop.f32.mrb[118].mxu0 }
 0x5e0   : > { %v15343_v29 = vsel %vm7800_vm2, %v15305_v1, %v14989_v34  ;;  %v19234_v63 = vpop.f32.mrb[119].mxu0 }
 0x5e1   : > { %15663 = vmatprep.mubr.bf16.mxu1 %v15343_v29 }
 0x5e2   : > { %v18975_v37 = vpop.f32.mrb[56].mxu1  ;;  %15664 = vmatmul.mubr.bf16.gmra.mrb[100].mxu1 %v15239_v44 }
 0x5e3   : > { %v18976_v2 = vpop.f32.mrb[57].mxu1 }
 0x5e4   : > { %v18977_v47 = vadd.f32 %v18976_v2, %v18975_v37  ;;  %v18978_v21 = vpop.f32.mrb[58].mxu1 }
 0x5e5   : > { %v18979_v49 = vpop.f32.mrb[59].mxu1 }
 0x5e6   : > { %v15578_v31 = vadd.f32 %v18977_v47, %v26679_v18  ;;  %v18980_v9 = vadd.f32 %v18979_v49, %v18978_v21 }
 0x5e8   : > { %v15714_v52 = vadd.f32 %v28240_v28, %v15578_v31  ;;  %v15581_v51 = vadd.f32 %v18980_v9, %v26679_v18 }
 0x5ea   : > { %v15866_v39 = vcombine.high %v15714_v52, %v15714_v52  ;;  %v15873_v60 = vrot.slane %v15714_v52, %v28226_v56  ;;  %v15717_v13 = vadd.f32 %v28241_v54, %v15581_v51 }
 0x5ec   : > { %v15880_v46 = vrot.slane %v15866_v39, %v28226_v56  ;;  %v15881_v33 = vcombine.high %v15873_v60, %v15873_v60  ;;  %v16354_v6 = vmax.f32 %v15873_v60, 0.0  ;;  %v15890_v19 = vrot.slane %v15717_v13, %v28226_v56 }
 0x5ed   : > { %v15883_v43 = vcombine.high %v15717_v13, %v15717_v13 }
 0x5ee   : > { %v15882_v16 = vcombine.high %v15880_v46, %v15880_v46  ;;  %v16355_v48 = vmax.f32 %v15881_v33, 0.0  ;;  %v16356_v26 = vmax.f32 %v15880_v46, 0.0  ;;  %v16541_v45 = vcombine.low %v16353_v8, %v16354_v6 }
 0x5ef   : > { %v15898_v50 = vcombine.high %v15890_v19, %v15890_v19  ;;  %v16358_v5 = vmax.f32 %v15890_v19, 0.0  ;;  %v15897_v54 = vrot.slane %v15883_v43, %v28226_v56 }
 0x5f0   : > { %v16357_v3 = vmax.f32 %v15882_v16, 0.0  ;;  %v16542_v40 = vcombine.low %v16355_v48, %v16356_v26  ;;  %v17142_v55 = vcombine.low %v16354_v6, %v16355_v48  ;;  %v16549_v32 = vrot.slane %v16541_v45, %v28226_v56 }
 0x5f1   : > { %v16359_v27 = vmax.f32 %v15898_v50, 0.0  ;;  %v15899_v16 = vcombine.high %v15897_v54, %v15897_v54  ;;  %v28242_v50 = vld [vmem:[#allocation46_spill] sm:$0xff] }
 0x5f2   : > { %v16556_v10 = vrot.slane %v16542_v40, %v28226_v56  ;;  %v17143_v24 = vcombine.low %v16356_v26, %v16357_v3  ;;  %v16558_v57 = vcombine.low %v16357_v3, %v16358_v5  ;;  %v17150_v17 = vrot.slane %v17142_v55, %v28226_v56 }
 0x5f3   : > { %v17159_v4 = vcombine.low %v16358_v5, %v16359_v27  ;;  %v16921_v38 = vrot.slane %v16359_v27, %v28226_v56  ;;  %v16361_v55 = vmax.f32 %v15899_v16, 0.0  ;;  %v28243_v27 = vld [vmem:[#allocation48_spill] sm:$0xff] }
 0x5f4   : > { %v16557_v11 = vcombine.low %v16549_v32, %v16556_v10  ;;  %v17157_v42 = vrot.slane %v17143_v24, %v28226_v56  ;;  %v16565_v15 = vrot.slane %v16558_v57, %v28226_v56  ;;  %v16360_v10 = vmax.f32 %v15897_v54, 0.0 }
 0x5f5   : > { %v17166_v12 = vrot.slane %v17159_v4, %v28226_v56 }
 0x5f6   : > { %v17158_v59 = vcombine.low %v17150_v17, %v17157_v42  ;;  %v16844_v23 = vsel %vm1699_vm10, %v16557_v11, 0.0  ;;  %v16846_v1 = vsel %vm16841_vm5, %v16565_v15, 0.0  ;;  %v26802_v34 = vpop.f32.mrb[120].mxu0  ;;  %v16922_v63 = vcombine.low %v16565_v15, %v16921_v38 }
 0x5f7   : > { %v16845_v29 = vadd.f32 %v16844_v23, %v26730_v35  ;;  %v19237_v44 = vpop.f32.mrb[121].mxu0  ;;  %v17006_v37 = vrot.slane %v16557_v11, 1  ;;  %v17446_v47 = vsel %vm16841_vm5, %v17166_v12, 0.0  ;;  %v17528_v21 = vadd.f32 %v16846_v1, %v16844_v23 }
 0x5f8   : > { %v17444_v2 = vsel %vm1699_vm10, %v17158_v59, 0.0  ;;  %v26807_v49 = vpop.f32.mrb[122].mxu0  ;;  %v17007_v9 = vrot.slane %v16922_v63, 1  ;;  %v16566_v11 = vcombine.low %v16360_v10, %v16361_v55 }
 0x5f9   : > { %v16847_v31 = vadd.f32 %v16846_v1, %v16845_v29  ;;  %v17445_v53 = vadd.f32 %v17444_v2, %v26735_v7  ;;  %v17633_v28 = vadd.f32 %v17446_v47, %v17444_v2  ;;  %v19238_v52 = vpop.f32.mrb[123].mxu0 }
 0x5fa   : > { %v17008_v51 = vsel %vm9694_vm4, %v17006_v37, %v17007_v9  ;;  %v17068_v35 = vsel %vm16841_vm5, %v17007_v9, 0.0  ;;  %v16574_v29 = vrot.slane %v16566_v11, %v28226_v56 }
 0x5fb   : > { %v17447_v39 = vadd.f32 %v17446_v47, %v17445_v53  ;;  %v17066_v60 = vsel %vm1699_vm10, %v17008_v51, 0.0 }
 0x5fc   : > { %v17067_v13 = vadd.f32 %v17066_v60, %v26744_v30  ;;  %v26815_v8 = vadd.f32 %v17068_v35, %v17066_v60 }
 0x5fe   : > { %v18981_v46 = vpop.f32.mrb[60].mxu1  ;;  %v26817_v33 = vadd.f32 %v17068_v35, %v17067_v13 }
 0x5ff   : > { %v18982_v6 = vpop.f32.mrb[61].mxu1 }
 0x600   : > { %v18983_v7 = vadd.f32 %v18982_v6, %v18981_v46  ;;  %v18984_v19 = vpop.f32.mrb[62].mxu1 }
 0x601   : > { %v18985_v48 = vpop.f32.mrb[63].mxu1 }
 0x602   : > { %v15586_v26 = vadd.f32 %v18983_v7, %v26679_v18  ;;  %v18986_v45 = vadd.f32 %v18985_v48, %v18984_v19 }
 0x604   : > { %v15722_v3 = vadd.f32 %v28242_v50, %v15586_v26  ;;  %v15589_v40 = vadd.f32 %v18986_v45, %v26679_v18 }
 0x606   : > { %v15900_v5 = vcombine.high %v15722_v3, %v15722_v3  ;;  %v15907_v30 = vrot.slane %v15722_v3, %v28226_v56  ;;  %v15725_v32 = vadd.f32 %v28243_v27, %v15589_v40 }
 0x608   : > { %v15914_v24 = vrot.slane %v15900_v5, %v28226_v56  ;;  %v15915_v57 = vcombine.high %v15907_v30, %v15907_v30  ;;  %v16362_v4 = vmax.f32 %v15907_v30, 0.0  ;;  %v15924_v17 = vrot.slane %v15725_v32, %v28226_v56 }
 0x60a   : > { %v15916_v42 = vcombine.high %v15914_v24, %v15914_v24  ;;  %v16363_v15 = vmax.f32 %v15915_v57, 0.0  ;;  %v16364_v38 = vmax.f32 %v15914_v24, 0.0  ;;  %v17167_v12 = vcombine.low %v16361_v55, %v16362_v4 }
 0x60b   : > { %v16366_v43 = vmax.f32 %v15924_v17, 0.0  ;;  %v15917_v24 = vcombine.high %v15725_v32, %v15725_v32 }
 0x60c   : > { %v16365_v59 = vmax.f32 %v15916_v42, 0.0  ;;  %v16567_v23 = vcombine.low %v16362_v4, %v16363_v15  ;;  %v17168_v1 = vcombine.low %v16363_v15, %v16364_v38  ;;  %v17175_v63 = vrot.slane %v17167_v12, %v28226_v56 }
 0x60d   : > { %v16929_v35 = vrot.slane %v16366_v43, %v28226_v56  ;;  %v15931_v12 = vrot.slane %v15917_v24, %v28226_v56 }
 0x60e   : > { %v16581_v44 = vrot.slane %v16567_v23, %v28226_v56  ;;  %v16583_v37 = vcombine.low %v16364_v38, %v16365_v59  ;;  %v17182_v2 = vrot.slane %v17168_v1, %v28226_v56  ;;  %v17184_v47 = vcombine.low %v16365_v59, %v16366_v43 }
 0x60f   : > { %v15932_v59 = vcombine.high %v15924_v17, %v15924_v17  ;;  %v15933_v1 = vcombine.high %v15931_v12, %v15931_v12 }
 0x610   : > { %v16582_v9 = vcombine.low %v16574_v29, %v16581_v44  ;;  %v17183_v53 = vcombine.low %v17175_v63, %v17182_v2  ;;  %v16590_v52 = vrot.slane %v16583_v37, %v28226_v56  ;;  %v17191_v51 = vrot.slane %v17184_v47, %v28226_v56 }
 0x611   : > { %v26836_v46 = vpop.f32.mrb[124].mxu0  ;;  %v16368_v37 = vmax.f32 %v15931_v12, 0.0 }
 0x612   : > { %v16848_v60 = vsel %vm1699_vm10, %v16582_v9, 0.0  ;;  %v17448_v54 = vsel %vm1699_vm10, %v17183_v53, 0.0  ;;  %v16850_v13 = vsel %vm16841_vm5, %v16590_v52, 0.0  ;;  %v17009_v7 = vrot.slane %v16582_v9, 1  ;;  %v19241_v48 = vpop.f32.mrb[125].mxu0 }
 0x613   : > { %v16849_v6 = vadd.f32 %v16848_v60, %v16847_v31  ;;  %v17529_v19 = vadd.f32 %v17528_v21, %v16848_v60  ;;  %v16930_v16 = vcombine.low %v16590_v52, %v16929_v35  ;;  %v17449_v26 = vadd.f32 %v17448_v54, %v17447_v39  ;;  %v26841_v40 = vpop.f32.mrb[126].mxu0 }
 0x614   : > { %v17450_v45 = vsel %vm16841_vm5, %v17191_v51, 0.0  ;;  %v17634_v50 = vadd.f32 %v17633_v28, %v17448_v54  ;;  %v26839_v3 = vadd.f32 %v16850_v13, %v16848_v60  ;;  %v19242_v31 = vpop.f32.mrb[127].mxu0  ;;  %v16369_v52 = vmax.f32 %v15933_v1, 0.0  ;;  %v28244_v51 = vld [vmem:[#allocation6_spill] sm:$0xff] }
 0x615   : > { %v26843_v55 = vadd.f32 %v16850_v13, %v16849_v6  ;;  %v17010_v5 = vrot.slane %v16930_v16, 1  ;;  %v26845_v30 = vadd.f32 %v17529_v19, %v16850_v13  ;;  %v26847_v27 = vadd.f32 %v17450_v45, %v17448_v54  ;;  %v28245_v6 = vld [vmem:[#allocation12_spill] sm:$0xff] }
 0x616   : > { %v26849_v10 = vadd.f32 %v17450_v45, %v17449_v26  ;;  %v26851_v21 = vadd.f32 %v17634_v50, %v17450_v45  ;;  %v17192_v19 = vcombine.low %v16368_v37, %v16369_v52 }
 0x617   : > { %v17011_v39 = vsel %vm9694_vm4, %v17009_v7, %v17010_v5  ;;  %v17072_v28 = vsel %vm16841_vm5, %v17010_v5, 0.0 }
 0x618   : > { %v17070_v57 = vsel %vm1699_vm10, %v17011_v39, 0.0 }
 0x619   : > { %v17071_v4 = vadd.f32 %v17070_v57, %v26817_v33  ;;  %v17575_v11 = vadd.f32 %v26815_v8, %v17070_v57  ;;  %v26858_v42 = vadd.f32 %v17072_v28, %v17070_v57  ;;  %v16367_v33 = vmax.f32 %v15932_v59, 0.0 }
 0x61b   : > { %v26860_v15 = vadd.f32 %v17072_v28, %v17071_v4  ;;  %v26862_v38 = vadd.f32 %v17575_v11, %v17072_v28  ;;  %v16591_v60 = vcombine.low %v16367_v33, %v16368_v37  ;;  %v17200_v11 = vrot.slane %v17192_v19, %v28226_v56 }
 0x61d   : > { %v16599_v50 = vrot.slane %v16591_v60, %v28226_v56 }
 0x61e   : > { %v18987_v23 = vpop.f32.mrb[64].mxu1 }
 0x61f   : > { %v18988_v32 = vpop.f32.mrb[65].mxu1 }
 0x620   : > { %v26865_v43 = vpop.f32.mrb[128].mxu0  ;;  %v18989_v63 = vadd.f32 %v18988_v32, %v18987_v23  ;;  %v18990_v44 = vpop.f32.mrb[66].mxu1 }
 0x621   : > { %v19245_v29 = vpop.f32.mrb[129].mxu0  ;;  %v18991_v2 = vpop.f32.mrb[67].mxu1 }
 0x622   : > { %v26867_v8 = vpop.f32.mrb[130].mxu0  ;;  %v15594_v9 = vadd.f32 %v18989_v63, %v26679_v18  ;;  %v18992_v53 = vadd.f32 %v18991_v2, %v18990_v44 }
 0x623   : > { %v19246_v47 = vpop.f32.mrb[131].mxu0 }
 0x624   : > { %v15730_v17 = vadd.f32 %v28244_v51, %v15594_v9  ;;  %v15597_v35 = vadd.f32 %v18992_v53, %v26679_v18 }
 0x626   : > { %v15934_v54 = vcombine.high %v15730_v17, %v15730_v17  ;;  %v15941_v13 = vrot.slane %v15730_v17, %v28226_v56  ;;  %v15733_v7 = vadd.f32 %v28245_v6, %v15597_v35 }
 0x628   : > { %v15948_v16 = vrot.slane %v15934_v54, %v28226_v56  ;;  %v15949_v48 = vcombine.high %v15941_v13, %v15941_v13  ;;  %v16370_v26 = vmax.f32 %v15941_v13, 0.0  ;;  %v15951_v45 = vcombine.high %v15733_v7, %v15733_v7 }
 0x629   : > { %v15958_v5 = vrot.slane %v15733_v7, %v28226_v56 }
 0x62a   : > { %v18993_v31 = vpop.f32.mrb[68].mxu1  ;;  %v15950_v39 = vcombine.high %v15948_v16, %v15948_v16  ;;  %v16371_v28 = vmax.f32 %v15949_v48, 0.0  ;;  %v16372_v24 = vmax.f32 %v15948_v16, 0.0  ;;  %v16592_v57 = vcombine.low %v16369_v52, %v16370_v26 }
 0x62b   : > { %v18994_v4 = vpop.f32.mrb[69].mxu1  ;;  %v15965_v12 = vrot.slane %v15951_v45, %v28226_v56  ;;  %v15966_v59 = vcombine.high %v15958_v5, %v15958_v5  ;;  %v16374_v2 = vmax.f32 %v15958_v5, 0.0 }
 0x62c   : > { %v18995_v23 = vadd.f32 %v18994_v4, %v18993_v31  ;;  %v18996_v1 = vpop.f32.mrb[70].mxu1  ;;  %v16373_v32 = vmax.f32 %v15950_v39, 0.0  ;;  %v16606_v29 = vrot.slane %v16592_v57, %v28226_v56  ;;  %v16608_v63 = vcombine.low %v16371_v28, %v16372_v24 }
 0x62d   : > { %v17193_v44 = vcombine.low %v16370_v26, %v16371_v28  ;;  %v18997_v33 = vpop.f32.mrb[71].mxu1  ;;  %v15967_v37 = vcombine.high %v15965_v12, %v15965_v12  ;;  %v16375_v47 = vmax.f32 %v15966_v59, 0.0  ;;  %v16376_v9 = vmax.f32 %v15965_v12, 0.0 }
 0x62e   : > { %v16607_v53 = vcombine.low %v16599_v50, %v16606_v29  ;;  %v16615_v52 = vrot.slane %v16608_v63, %v28226_v56  ;;  %v16937_v51 = vrot.slane %v16373_v32, %v28226_v56  ;;  %v17209_v35 = vcombine.low %v16372_v24, %v16373_v32 }
 0x62f   : > { %v17207_v17 = vrot.slane %v17193_v44, %v28226_v56  ;;  %v26883_v60 = vmax.f32 %v15967_v37, 0.0  ;;  %v16616_v54 = vcombine.low %v16374_v2, %v16375_v47  ;;  %v15602_v13 = vadd.f32 %v18995_v23, %v26679_v18 }
 0x630   : > { %v16852_v6 = vsel %vm1699_vm10, %v16607_v53, 0.0  ;;  %v16854_v7 = vsel %vm16841_vm5, %v16615_v52, 0.0  ;;  %v16938_v19 = vcombine.low %v16615_v52, %v16937_v51  ;;  %v26888_v16 = vcombine.low %v16375_v47, %v16376_v9 }
 0x631   : > { %v16853_v48 = vadd.f32 %v16852_v6, %v26843_v55  ;;  %v17208_v26 = vcombine.low %v17200_v11, %v17207_v17  ;;  %v17216_v45 = vrot.slane %v17209_v35, %v28226_v56  ;;  %v17531_v50 = vadd.f32 %v26845_v30, %v16852_v6 }
 0x632   : > { %v17012_v5 = vrot.slane %v16607_v53, 1  ;;  %v17013_v31 = vrot.slane %v16938_v19, 1  ;;  %v17699_v39 = vadd.f32 %v26839_v3, %v16852_v6  ;;  %v16617_v28 = vcombine.low %v16376_v9, %v26883_v60 }
 0x633   : > { %v16855_v24 = vadd.f32 %v16854_v7, %v16853_v48  ;;  %v17452_v57 = vsel %vm1699_vm10, %v17208_v26, 0.0  ;;  %v17532_v4 = vadd.f32 %v17531_v50, %v16854_v7  ;;  %v16624_v12 = vrot.slane %v16616_v54, %v28226_v56 }
 0x634   : > { %v17014_v59 = vsel %vm9694_vm4, %v17012_v5, %v17013_v31  ;;  %v17453_v55 = vadd.f32 %v17452_v57, %v26849_v10  ;;  %v17454_v11 = vsel %vm16841_vm5, %v17216_v45, 0.0  ;;  %v17636_v30 = vadd.f32 %v26851_v21, %v17452_v57 }
 0x635   : > { %v17074_v23 = vsel %vm1699_vm10, %v17014_v59, 0.0  ;;  %v17700_v32 = vadd.f32 %v17699_v39, %v16854_v7  ;;  %v17804_v3 = vadd.f32 %v26847_v27, %v17452_v57  ;;  %v16631_v29 = vrot.slane %v16617_v28, %v28226_v56  ;;  %v18999_v63 = vpop.f32.mrb[72].mxu1 }
 0x636   : > { %v17075_v44 = vadd.f32 %v17074_v23, %v26860_v15  ;;  %v26905_v37 = vadd.f32 %v17454_v11, %v17453_v55  ;;  %v17577_v2 = vadd.f32 %v26862_v38, %v17074_v23  ;;  %v26908_v47 = vadd.f32 %v17636_v30, %v17454_v11  ;;  %v19000_v10 = vpop.f32.mrb[73].mxu1  ;;  %v28246_v15 = vld [vmem:[#allocation11_spill] sm:$0xff] }
 0x637   : > { %v17076_v9 = vsel %vm16841_vm5, %v17013_v31, 0.0  ;;  %v17745_v21 = vadd.f32 %v26858_v42, %v17074_v23  ;;  %v26912_v53 = vadd.f32 %v17804_v3, %v17454_v11  ;;  %v26914_v52 = vcombine.low %v16624_v12, %v16631_v29  ;;  %v19002_v27 = vpop.f32.mrb[74].mxu1 }
 0x638   : > { %v26916_v51 = vadd.f32 %v17076_v9, %v17075_v44  ;;  %v26918_v17 = vadd.f32 %v17577_v2, %v17076_v9  ;;  %v15738_v35 = vadd.f32 %v28246_v15, %v15602_v13  ;;  %v18998_v54 = vadd.f32 %v18997_v33, %v18996_v1  ;;  %v19003_v38 = vpop.f32.mrb[75].mxu1 }
 0x639   : > { %v26921_v6 = vadd.f32 %v17745_v21, %v17076_v9  ;;  %v16856_v7 = vsel %vm1699_vm10, %v26914_v52, 0.0  ;;  %v19001_v19 = vadd.f32 %v19000_v10, %v18999_v63  ;;  %v19004_v39 = vadd.f32 %v19003_v38, %v19002_v27 }
 0x63a   : > { %v15968_v42 = vcombine.high %v15738_v35, %v15738_v35  ;;  %v15975_v48 = vrot.slane %v15738_v35, %v28226_v56  ;;  %v16857_v26 = vadd.f32 %v16856_v7, %v16855_v24  ;;  %v17533_v45 = vadd.f32 %v17532_v4, %v16856_v7 }
 0x63b   : > { %v17701_v50 = vadd.f32 %v17700_v32, %v16856_v7  ;;  %v15605_v5 = vadd.f32 %v18998_v54, %v26679_v18  ;;  %v15610_v31 = vadd.f32 %v19001_v19, %v26679_v18  ;;  %v17225_v1 = vrot.slane %v26888_v16, %v28226_v56 }
 0x63c   : > { %v15982_v33 = vrot.slane %v15968_v42, %v28226_v56  ;;  %v15983_v13 = vcombine.high %v15975_v48, %v15975_v48  ;;  %v16378_v28 = vmax.f32 %v15975_v48, 0.0  ;;  %v17015_v57 = vrot.slane %v26914_v52, 1 }
 0x63d   : > { %v15741_v12 = vadd.f32 %v26292_v0, %v15605_v5  ;;  %v15746_v24 = vadd.f32 %v26380_v41, %v15610_v31  ;;  %v26935_v4 = vadd.f32 %v19004_v39, %v26679_v18 }
 0x63e   : > { %v15984_v59 = vcombine.high %v15982_v33, %v15982_v33  ;;  %v16379_v55 = vmax.f32 %v15983_v13, 0.0  ;;  %v16380_v11 = vmax.f32 %v15982_v33, 0.0  ;;  %v17218_v30 = vcombine.low %v26883_v60, %v16378_v28  ;;  %v26938_v23 = vpop.f32.mrb[76].mxu1 }
 0x63f   : > { %v15985_v16 = vcombine.high %v15741_v12, %v15741_v12  ;;  %v15992_v32 = vrot.slane %v15741_v12, %v28226_v56  ;;  %v16002_v3 = vcombine.high %v15746_v24, %v15746_v24  ;;  %v26942_v29 = vrot.slane %v15746_v24, %v28226_v56  ;;  %v26944_v0 = vpop.f32.mrb[77].mxu1 }
 0x640   : > { %v16381_v41 = vmax.f32 %v15984_v59, 0.0  ;;  %v16633_v63 = vcombine.low %v16378_v28, %v16379_v55  ;;  %v16945_v44 = vrot.slane %v16380_v11, %v28226_v56  ;;  %v17232_v2 = vrot.slane %v17218_v30, %v28226_v56  ;;  %v26948_v10 = vpop.f32.mrb[78].mxu1 }
 0x641   : > { %v17234_v60 = vcombine.low %v16379_v55, %v16380_v11  ;;  %v15999_v9 = vrot.slane %v15985_v16, %v28226_v56  ;;  %v16000_v21 = vcombine.high %v15992_v32, %v15992_v32  ;;  %v16382_v52 = vmax.f32 %v15992_v32, 0.0  ;;  %v26951_v27 = vpop.f32.mrb[79].mxu1 }
 0x642   : > { %v16640_v15 = vrot.slane %v16633_v63, %v28226_v56  ;;  %v17233_v35 = vcombine.low %v17225_v1, %v17232_v2  ;;  %v16016_v54 = vrot.slane %v16002_v3, %v28226_v56  ;;  %v16017_v38 = vcombine.high %v26942_v29, %v26942_v29 }
 0x643   : > { %v17241_v7 = vrot.slane %v17234_v60, %v28226_v56  ;;  %v16001_v19 = vcombine.high %v15999_v9, %v15999_v9  ;;  %v16383_v42 = vmax.f32 %v16000_v21, 0.0  ;;  %v16384_v48 = vmax.f32 %v15999_v9, 0.0 }
 0x644   : > { %v16858_v5 = vsel %vm16841_vm5, %v16640_v15, 0.0  ;;  %v16946_v31 = vcombine.low %v16640_v15, %v16945_v44  ;;  %v17456_v39 = vsel %vm1699_vm10, %v17233_v35, 0.0  ;;  %v16641_v33 = vcombine.low %v16381_v41, %v16382_v52 }
 0x645   : > { %v16859_v13 = vadd.f32 %v16858_v5, %v16857_v26  ;;  %v17457_v28 = vadd.f32 %v17456_v39, %v26905_v37  ;;  %v17458_v1 = vsel %vm16841_vm5, %v17241_v7, 0.0  ;;  %v17534_v12 = vadd.f32 %v17533_v45, %v16858_v5 }
 0x646   : > { %v17016_v24 = vrot.slane %v16946_v31, 1  ;;  %v17638_v59 = vadd.f32 %v26908_v47, %v17456_v39  ;;  %v17702_v55 = vadd.f32 %v17701_v50, %v16858_v5  ;;  %v17806_v11 = vadd.f32 %v26912_v53, %v17456_v39 }
 0x647   : > { %v17459_v30 = vadd.f32 %v17458_v1, %v17457_v28  ;;  %v16385_v16 = vmax.f32 %v16001_v19, 0.0  ;;  %v16642_v32 = vcombine.low %v16383_v42, %v16384_v48  ;;  %v16649_v3 = vrot.slane %v16641_v33, %v28226_v56 }
 0x648   : > { %v17017_v63 = vsel %vm9694_vm4, %v17015_v57, %v17016_v24  ;;  %v17080_v26 = vsel %vm16841_vm5, %v17016_v24, 0.0  ;;  %v17639_v41 = vadd.f32 %v17638_v59, %v17458_v1  ;;  %v17807_v37 = vadd.f32 %v17806_v11, %v17458_v1 }
 0x649   : > { %v17078_v44 = vsel %vm1699_vm10, %v17017_v63, 0.0  ;;  %v16656_v45 = vrot.slane %v16642_v32, %v28226_v56  ;;  %v17242_v2 = vcombine.low %v16382_v52, %v16383_v42  ;;  %v17243_v47 = vcombine.low %v16384_v48, %v16385_v16 }
 0x64a   : > { %v17079_v50 = vadd.f32 %v17078_v44, %v26916_v51  ;;  %v17579_v53 = vadd.f32 %v26918_v17, %v17078_v44  ;;  %v17747_v60 = vadd.f32 %v26921_v6, %v17078_v44  ;;  %v16018_v9 = vcombine.high %v16016_v54, %v16016_v54  ;;  %v19011_v7 = vpop.f32.mrb[80].mxu1 }
 0x64b   : > { %v16657_v21 = vcombine.low %v16649_v3, %v16656_v45  ;;  %v17250_v57 = vrot.slane %v17242_v2, %v28226_v56  ;;  %v17257_v15 = vrot.slane %v17243_v47, %v28226_v56  ;;  %v16386_v35 = vmax.f32 %v26942_v29, 0.0  ;;  %v19012_v42 = vpop.f32.mrb[81].mxu1 }
 0x64c   : > { %v17081_v19 = vadd.f32 %v17080_v26, %v17079_v50  ;;  %v17580_v5 = vadd.f32 %v17579_v53, %v17080_v26  ;;  %v17748_v31 = vadd.f32 %v17747_v60, %v17080_v26  ;;  %v16387_v52 = vmax.f32 %v16017_v38, 0.0  ;;  %v19014_v6 = vpop.f32.mrb[82].mxu1 }
 0x64d   : > { %v16860_v51 = vsel %vm1699_vm10, %v16657_v21, 0.0  ;;  %v17018_v48 = vrot.slane %v16657_v21, 1  ;;  %v17258_v17 = vcombine.low %v17250_v57, %v17257_v15  ;;  %v16388_v39 = vmax.f32 %v16016_v54, 0.0  ;;  %v19015_v59 = vpop.f32.mrb[83].mxu1 }
 0x64e   : > { %v16389_v33 = vmax.f32 %v16018_v9, 0.0  ;;  %v16658_v28 = vcombine.low %v16385_v16, %v16386_v35  ;;  %v16861_v1 = vadd.f32 %v16860_v51, %v16859_v13  ;;  %v16953_v24 = vrot.slane %v16387_v52, %v28226_v56 }
 0x64f   : > { %v17460_v29 = vsel %vm1699_vm10, %v17258_v17, 0.0  ;;  %v17259_v11 = vcombine.low %v16386_v35, %v16387_v52  ;;  %v17535_v32 = vadd.f32 %v17534_v12, %v16860_v51  ;;  %v17703_v3 = vadd.f32 %v17702_v55, %v16860_v51 }
 0x650   : > { %v16665_v38 = vrot.slane %v16658_v28, %v28226_v56  ;;  %v26979_v63 = vcombine.low %v16388_v39, %v16389_v33  ;;  %v17461_v26 = vadd.f32 %v17460_v29, %v17459_v30  ;;  %v17640_v44 = vadd.f32 %v17639_v41, %v17460_v29  ;;  %v26991_v30 = vpop.f32.mrb[132].mxu0 }
 0x651   : > { %v17266_v54 = vrot.slane %v17259_v11, %v28226_v56  ;;  %v17808_v45 = vadd.f32 %v17807_v37, %v17460_v29  ;;  %v15749_v13 = vadd.f32 %v26399_v14, %v26935_v4  ;;  %v19007_v16 = vadd.f32 %v26944_v0, %v26938_v23  ;;  %v19249_v4 = vpop.f32.mrb[133].mxu0 }
 0x652   : > { %v16674_v2 = vrot.slane %v26979_v63, %v28226_v56  ;;  %v16862_v12 = vsel %vm16841_vm5, %v16665_v38, 0.0  ;;  %v16954_v55 = vcombine.low %v16665_v38, %v16953_v24  ;;  %v19010_v47 = vadd.f32 %v26951_v27, %v26948_v10  ;;  %v15804_v9 = vpop.f32.mrb[134].mxu0 }
 0x653   : > { %v26993_v41 = vadd.f32 %v16862_v12, %v16861_v1  ;;  %v17462_v37 = vsel %vm16841_vm5, %v17266_v54, 0.0  ;;  %v26996_v50 = vadd.f32 %v17535_v32, %v16862_v12  ;;  %v26998_v14 = vadd.f32 %v17703_v3, %v16862_v12  ;;  %v19250_v15 = vpop.f32.mrb[135].mxu0 }
 0x654   : > { %v17019_v23 = vrot.slane %v16954_v55, 1  ;;  %v27000_v0 = vadd.f32 %v17462_v37, %v17461_v26  ;;  %v27002_v53 = vadd.f32 %v17640_v44, %v17462_v37  ;;  %v27004_v60 = vadd.f32 %v17808_v45, %v17462_v37  ;;  %v27030_v55 = vld [vmem:[%s27417_s6] ss:$0 sm:$0xff] }
 0x655   : > { %v16019_v10 = vcombine.high %v15749_v13, %v15749_v13  ;;  %v16026_v27 = vrot.slane %v15749_v13, %v28226_v56  ;;  %v15618_v21 = vadd.f32 %v19007_v16, %v26679_v18  ;;  %v15621_v57 = vadd.f32 %v19010_v47, %v26679_v18 }
 0x656   : > { %v17020_v35 = vsel %vm9694_vm4, %v17018_v48, %v17019_v23  ;;  %v17084_v52 = vsel %vm16841_vm5, %v17019_v23, 0.0  ;;  %v19013_v51 = vadd.f32 %v19012_v42, %v19011_v7  ;;  %v19016_v17 = vadd.f32 %v19015_v59, %v19014_v6 }
 0x657   : > { %v17082_v39 = vsel %vm1699_vm10, %v17020_v35, 0.0  ;;  %v16033_v28 = vrot.slane %v16019_v10, %v28226_v56  ;;  %v16034_v1 = vcombine.high %v16026_v27, %v16026_v27  ;;  %v16390_v24 = vmax.f32 %v16026_v27, 0.0 }
 0x658   : > { %v17083_v29 = vadd.f32 %v17082_v39, %v17081_v19  ;;  %v17581_v11 = vadd.f32 %v17580_v5, %v17082_v39  ;;  %v17749_v32 = vadd.f32 %v17748_v31, %v17082_v39  ;;  %v15754_v3 = vadd.f32 %v26584_v22, %v15618_v21 }
 0x659   : > { %v16035_v38 = vcombine.high %v16033_v28, %v16033_v28  ;;  %v16391_v63 = vmax.f32 %v16034_v1, 0.0  ;;  %v16392_v26 = vmax.f32 %v16033_v28, 0.0  ;;  %v17267_v44 = vcombine.low %v16389_v33, %v16390_v24 }
 0x65a   : > { %v27014_v48 = vadd.f32 %v17084_v52, %v17083_v29  ;;  %v27016_v54 = vadd.f32 %v17581_v11, %v17084_v52  ;;  %v27018_v7 = vadd.f32 %v17749_v32, %v17084_v52  ;;  %v16036_v42 = vcombine.high %v15754_v3, %v15754_v3 }
 0x65b   : > { %v16393_v6 = vmax.f32 %v16035_v38, 0.0  ;;  %v16667_v59 = vcombine.low %v16390_v24, %v16391_v63  ;;  %v17268_v45 = vcombine.low %v16391_v63, %v16392_v26  ;;  %v17275_v19 = vrot.slane %v17267_v44, %v28226_v56 }
 0x65c   : > { %v16043_v5 = vrot.slane %v15754_v3, %v28226_v56  ;;  %v16050_v22 = vrot.slane %v16036_v42, %v28226_v56  ;;  %v15757_v31 = vadd.f32 %v26587_v58, %v15621_v57  ;;  %v15626_v33 = vadd.f32 %v19013_v51, %v26679_v18 }
 0x65d   : > { %v16681_v13 = vrot.slane %v16667_v59, %v28226_v56  ;;  %v16683_v16 = vcombine.low %v16392_v26, %v16393_v6  ;;  %v17282_v12 = vrot.slane %v17268_v45, %v28226_v56  ;;  %v27033_v47 = vadd.f32 %v27030_v55, %v19016_v17 }
 0x65e   : > { %v16051_v37 = vcombine.high %v16043_v5, %v16043_v5  ;;  %v16052_v4 = vcombine.high %v16050_v22, %v16050_v22  ;;  %v16394_v23 = vmax.f32 %v16043_v5, 0.0  ;;  %v16396_v9 = vmax.f32 %v16050_v22, 0.0 }
 0x65f   : > { %v16682_v58 = vcombine.low %v16674_v2, %v16681_v13  ;;  %v17283_v10 = vcombine.low %v17275_v19, %v17282_v12  ;;  %v16690_v18 = vrot.slane %v16683_v16, %v28226_v56  ;;  %v16053_v27 = vcombine.high %v15757_v31, %v15757_v31 }
 0x660   : > { %v16395_v21 = vmax.f32 %v16051_v37, 0.0  ;;  %v16397_v57 = vmax.f32 %v16052_v4, 0.0  ;;  %v16961_v15 = vrot.slane %v16394_v23, %v28226_v56  ;;  %v17284_v35 = vcombine.low %v16393_v6, %v16394_v23 }
 0x661   : > { %v16864_v52 = vsel %vm1699_vm10, %v16682_v58, 0.0  ;;  %v17021_v51 = vrot.slane %v16682_v58, 1  ;;  %v17464_v17 = vsel %vm1699_vm10, %v17283_v10, 0.0  ;;  %v16866_v39 = vsel %vm16841_vm5, %v16690_v18, 0.0 }
 0x662   : > { %v16865_v28 = vadd.f32 %v16864_v52, %v26993_v41  ;;  %v17537_v2 = vadd.f32 %v26996_v50, %v16864_v52  ;;  %v17705_v1 = vadd.f32 %v26998_v14, %v16864_v52  ;;  %v16691_v24 = vcombine.low %v16395_v21, %v16396_v9 }
 0x663   : > { %v16962_v29 = vcombine.low %v16690_v18, %v16961_v15  ;;  %v17291_v11 = vrot.slane %v17284_v35, %v28226_v56  ;;  %v27044_v32 = vcombine.low %v16396_v9, %v16397_v57  ;;  %v17465_v3 = vadd.f32 %v17464_v17, %v27000_v0 }
 0x664   : > { %v16699_v38 = vrot.slane %v16691_v24, %v28226_v56  ;;  %v27048_v63 = vadd.f32 %v16866_v39, %v16865_v28  ;;  %v27050_v26 = vadd.f32 %v17537_v2, %v16866_v39  ;;  %v17642_v41 = vadd.f32 %v27002_v53, %v17464_v17  ;;  %v19382_v28 = vld [vmem:[%s27418_s7 + $0x48] sm:$0xff]  }
 0x665   : > { %v17022_v44 = vrot.slane %v16962_v29, 1  ;;  %v17300_v50 = vrot.slane %v27044_v32, %v28226_v56  ;;  %v17466_v14 = vsel %vm16841_vm5, %v17291_v11, 0.0  ;;  %v17706_v42 = vadd.f32 %v17705_v1, %v16866_v39 }
 0x666   : > { %v27056_v6 = vadd.f32 %v17466_v14, %v17465_v3  ;;  %v27058_v59 = vadd.f32 %v17642_v41, %v17466_v14  ;;  %v17810_v0 = vadd.f32 %v27004_v60, %v17464_v17  ;;  %v16060_v45 = vrot.slane %v15757_v31, %v28226_v56 }
 0x667   : > { %v17023_v19 = vsel %vm9694_vm4, %v17021_v51, %v17022_v44  ;;  %v17088_v5 = vsel %vm16841_vm5, %v17022_v44, 0.0  ;;  %v16067_v53 = vrot.slane %v16053_v27, %v28226_v56  ;;  %v15762_v22 = vadd.f32 %v26720_v36, %v15626_v33 }
 0x668   : > { %v27066_v13 = vpop.f32.mrb[84].mxu1  ;;  %v17086_v16 = vsel %vm1699_vm10, %v17023_v19, 0.0  ;;  %v27069_v12 = vadd.f32 %v17810_v0, %v17466_v14  ;;  %v16068_v37 = vcombine.high %v16060_v45, %v16060_v45  ;;  %v16398_v4 = vmax.f32 %v16060_v45, 0.0  ;;  %v19383_v19 = vld [vmem:[%s27418_s7 + $0x8] sm:$0xff]  }
 0x669   : > { %v27071_v23 = vpop.f32.mrb[85].mxu1  ;;  %v17087_v60 = vadd.f32 %v17086_v16, %v27014_v48  ;;  %v17583_v31 = vadd.f32 %v27016_v54, %v17086_v16  ;;  %v17751_v9 = vadd.f32 %v27018_v7, %v17086_v16  ;;  %v16069_v58 = vcombine.high %v16067_v53, %v16067_v53  ;;  %v19380_v7 = vld [vmem:[%s27418_s7 + $0x40] sm:$0xff]  }
 0x66a   : > { %v27076_v10 = vpop.f32.mrb[86].mxu1  ;;  %v16399_v36 = vmax.f32 %v16068_v37, 0.0  ;;  %v16400_v33 = vmax.f32 %v16067_v53, 0.0  ;;  %v16692_v18 = vcombine.low %v16397_v57, %v16398_v4  ;;  %v16070_v27 = vcombine.high %v15762_v22, %v15762_v22  ;;  %v19381_v57 = vld [vmem:[%s27418_s7] sm:$0xff]   ;;  %19062 = vmatprep.subr.bf16.mxu1 %v19380_v7  ;;  %v19384_v53 = vld [vmem:[%s27418_s7 + $0x50] sm:$0xff]  }
 0x66b   : > { %v27078_v21 = vpop.f32.mrb[87].mxu1  ;;  %v17089_v15 = vadd.f32 %v17088_v5, %v17087_v60  ;;  %v17584_v35 = vadd.f32 %v17583_v31, %v17088_v5  ;;  %v17752_v52 = vadd.f32 %v17751_v9, %v17088_v5  ;;  %v16401_v51 = vmax.f32 %v16069_v58, 0.0  ;;  %19063 = vmatpush3.bf16.msra.mxu1 %v19381_v57 }
 0x66c   : > { %v16706_v17 = vrot.slane %v16692_v18, %v28226_v56  ;;  %v16708_v48 = vcombine.low %v16399_v36, %v16400_v33  ;;  %v17293_v39 = vcombine.low %v16398_v4, %v16399_v36  ;;  %v16077_v54 = vrot.slane %v15762_v22, %v28226_v56  ;;  %19064 = vmatprep.subr.bf16.mxu1 %v19382_v28 }
 0x66d   : > { %v16969_v2 = vrot.slane %v16401_v51, %v28226_v56  ;;  %v17309_v1 = vcombine.low %v16400_v33, %v16401_v51  ;;  %v16084_v24 = vrot.slane %v16070_v27, %v28226_v56  ;;  %v15765_v29 = vadd.f32 %v26725_v25, %v27033_v47  ;;  %v19385_v51 = vld [vmem:[%s27418_s7 + $0x10] sm:$0xff]  }
 0x66e   : > { %v16707_v11 = vcombine.low %v16699_v38, %v16706_v17  ;;  %v16715_v32 = vrot.slane %v16708_v48, %v28226_v56  ;;  %v17307_v3 = vrot.slane %v17293_v39, %v28226_v56  ;;  %v16085_v41 = vcombine.high %v16077_v54, %v16077_v54  ;;  %v19386_v17 = vld [vmem:[%s27418_s7 + $0x58] sm:$0xff]  }
 0x66f   : > { %v17316_v44 = vrot.slane %v17309_v1, %v28226_v56  ;;  %v16086_v14 = vcombine.high %v16084_v24, %v16084_v24  ;;  %v16402_v0 = vmax.f32 %v16077_v54, 0.0  ;;  %v16404_v45 = vmax.f32 %v16084_v24, 0.0  ;;  %19065 = vmatpush3.bf16.msra.mxu1 %v19383_v19 }
 0x670   : > { %v16868_v5 = vsel %vm1699_vm10, %v16707_v11, 0.0  ;;  %v16870_v25 = vsel %vm16841_vm5, %v16715_v32, 0.0  ;;  %v16970_v47 = vcombine.low %v16715_v32, %v16969_v2  ;;  %v17024_v38 = vrot.slane %v16707_v11, 1  ;;  %19066 = vmatprep.subr.bf16.mxu1 %v19384_v53  ;;  %v19387_v32 = vld [vmem:[%s27418_s7 + $0x18] sm:$0xff]  }
 0x671   : > { %v16869_v22 = vadd.f32 %v16868_v5, %v27048_v63  ;;  %v17308_v16 = vcombine.low %v17300_v50, %v17307_v3  ;;  %v17470_v37 = vsel %vm16841_vm5, %v17316_v44, 0.0  ;;  %v17539_v4 = vadd.f32 %v27050_v26, %v16868_v5 }
 0x672   : > { %v17025_v60 = vrot.slane %v16970_v47, 1  ;;  %v17707_v31 = vadd.f32 %v17706_v42, %v16868_v5  ;;  %v16403_v9 = vmax.f32 %v16085_v41, 0.0  ;;  %v16405_v58 = vmax.f32 %v16086_v14, 0.0 }
 0x673   : > { %v16871_v36 = vadd.f32 %v16870_v25, %v16869_v22  ;;  %v17468_v33 = vsel %vm1699_vm10, %v17308_v16, 0.0  ;;  %v17540_v18 = vadd.f32 %v17539_v4, %v16870_v25  ;;  %v16087_v27 = vcombine.high %v15765_v29, %v15765_v29  ;;  %19067 = vmatpush3.bf16.msra.mxu1 %v19385_v51 }
 0x674   : > { %v17026_v63 = vsel %vm9694_vm4, %v17024_v38, %v17025_v60  ;;  %v17092_v50 = vsel %vm16841_vm5, %v17025_v60, 0.0  ;;  %v17469_v26 = vadd.f32 %v17468_v33, %v27056_v6  ;;  %v17644_v42 = vadd.f32 %v27058_v59, %v17468_v33  ;;  %19068 = vmatprep.subr.bf16.mxu1 %v19386_v17  ;;  %v19389_v38 = vld [vmem:[%s27418_s7 + $0x20] sm:$0xff]  }
 0x675   : > { %v17090_v48 = vsel %vm1699_vm10, %v17026_v63, 0.0  ;;  %v17708_v39 = vadd.f32 %v17707_v31, %v16870_v25  ;;  %v17812_v54 = vadd.f32 %v27069_v12, %v17468_v33  ;;  %v16716_v7 = vcombine.low %v16402_v0, %v16403_v9  ;;  %v19391_v63 = vld [vmem:[%s27418_s7 + $0x28] sm:$0xff]  }
 0x676   : > { %v17091_v57 = vadd.f32 %v17090_v48, %v17089_v15  ;;  %v17471_v28 = vadd.f32 %v17470_v37, %v17469_v26  ;;  %v17585_v2 = vadd.f32 %v17584_v35, %v17090_v48  ;;  %v17645_v1 = vadd.f32 %v17644_v42, %v17470_v37  ;;  %v19388_v35 = vld [vmem:[%s27418_s7 + $0x60] sm:$0xff]  }
 0x677   : > { %v17753_v24 = vadd.f32 %v17752_v52, %v17090_v48  ;;  %v27122_v11 = vadd.f32 %v17812_v54, %v17470_v37  ;;  %v16717_v6 = vcombine.low %v16404_v45, %v16405_v58  ;;  %v16724_v59 = vrot.slane %v16716_v7, %v28226_v56  ;;  %19069 = vmatpush3.bf16.msra.mxu1 %v19387_v32 }
 0x678   : > { %v27128_v3 = vadd.f32 %v17092_v50, %v17091_v57  ;;  %v27130_v41 = vadd.f32 %v17585_v2, %v17092_v50  ;;  %v17317_v12 = vcombine.low %v16403_v9, %v16404_v45  ;;  %v16094_v15 = vrot.slane %v15765_v29, %v28226_v56  ;;  %19070 = vmatprep.subr.bf16.mxu1 %v19388_v35 }
 0x679   : > { %v27136_v52 = vadd.f32 %v17753_v24, %v17092_v50  ;;  %v16731_v44 = vrot.slane %v16717_v6, %v28226_v56  ;;  %v16101_v14 = vrot.slane %v16087_v27, %v28226_v56  ;;  %v19019_v0 = vadd.f32 %v27071_v23, %v27066_v13  ;;  %v19390_v13 = vld [vmem:[%s27418_s7 + $0x68] sm:$0xff]  }
 0x67a   : > { %v16102_v19 = vcombine.high %v16094_v15, %v16094_v15  ;;  %v16406_v5 = vmax.f32 %v16094_v15, 0.0  ;;  %v19022_v45 = vadd.f32 %v27078_v21, %v27076_v10  ;;  %v17325_v21 = vrot.slane %v17317_v12, %v28226_v56  ;;  %v19393_v12 = vld [vmem:[%s27418_s7 + $0x30] sm:$0xff]  }
 0x67b   : > { %v16732_v29 = vcombine.low %v16724_v59, %v16731_v44  ;;  %v16408_v25 = vmax.f32 %v16101_v14, 0.0  ;;  %v15634_v47 = vadd.f32 %v27030_v55, %v19019_v0  ;;  %v16103_v37 = vcombine.high %v16101_v14, %v16101_v14  ;;  %19071 = vmatpush3.bf16.msra.mxu1 %v19389_v38 }
 0x67c   : > { %v16407_v53 = vmax.f32 %v16102_v19, 0.0  ;;  %v17318_v22 = vcombine.low %v16405_v58, %v16406_v5  ;;  %v15637_v16 = vadd.f32 %v27030_v55, %v19022_v45  ;;  %19072 = vmatprep.subr.bf16.mxu1 %v19390_v13 }
 0x67d   : > { %v16872_v23 = vsel %vm1699_vm10, %v16732_v29, 0.0  ;;  %v17027_v10 = vrot.slane %v16732_v29, 1  ;;  %v15770_v27 = vadd.f32 %v26774_v62, %v15634_v47  ;;  %v16977_v26 = vrot.slane %v16408_v25, %v28226_v56 }
 0x67e   : > { %v16733_v4 = vcombine.low %v16406_v5, %v16407_v53  ;;  %v16873_v60 = vadd.f32 %v16872_v23, %v16871_v36  ;;  %v17332_v31 = vrot.slane %v17318_v22, %v28226_v56  ;;  %v17334_v9 = vcombine.low %v16407_v53, %v16408_v25 }
 0x67f   : > { %v17541_v33 = vadd.f32 %v17540_v18, %v16872_v23  ;;  %v17709_v58 = vadd.f32 %v17708_v39, %v16872_v23  ;;  %v15773_v51 = vadd.f32 %v26779_v20, %v15637_v16  ;;  %v19392_v18 = vld [vmem:[%s27418_s7 + $0x70] sm:$0xff]   ;;  %v16409_v62 = vmax.f32 %v16103_v37, 0.0  ;;  %19073 = vmatpush3.bf16.msra.mxu1 %v19391_v63 }
 0x680   : > { %v16740_v50 = vrot.slane %v16733_v4, %v28226_v56  ;;  %v17333_v42 = vcombine.low %v17325_v21, %v17332_v31  ;;  %v17341_v36 = vrot.slane %v17334_v9, %v28226_v56  ;;  %v16104_v17 = vcombine.high %v15770_v27, %v15770_v27  ;;  %19074 = vmatprep.subr.bf16.mxu1 %v19392_v18 }
 0x681   : > { %v16111_v20 = vrot.slane %v15770_v27, %v28226_v56  ;;  %v16121_v48 = vcombine.high %v15773_v51, %v15773_v51  ;;  %v16128_v38 = vrot.slane %v15773_v51, %v28226_v56 }
 0x682   : > { %v16874_v39 = vsel %vm16841_vm5, %v16740_v50, 0.0  ;;  %v16978_v54 = vcombine.low %v16740_v50, %v16977_v26  ;;  %v17472_v7 = vsel %vm1699_vm10, %v17333_v42, 0.0  ;;  %v17474_v57 = vsel %vm16841_vm5, %v17341_v36, 0.0 }
 0x683   : > { %v16875_v2 = vadd.f32 %v16874_v39, %v16873_v60  ;;  %v17473_v24 = vadd.f32 %v17472_v7, %v17471_v28  ;;  %v17542_v6 = vadd.f32 %v17541_v33, %v16874_v39  ;;  %v17646_v59 = vadd.f32 %v17645_v1, %v17472_v7  ;;  %v19023_v32 = vpop.f32.mrb[88].mxu1  ;;  %19075 = vmatpush3.bf16.msra.mxu1 %v19393_v12 }
 0x684   : > { %v17028_v15 = vrot.slane %v16978_v54, 1  ;;  %v17710_v35 = vadd.f32 %v17709_v58, %v16874_v39  ;;  %v17814_v44 = vadd.f32 %v27122_v11, %v17472_v7  ;;  %v16118_v14 = vrot.slane %v16104_v17, %v28226_v56  ;;  %v19024_v0 = vpop.f32.mrb[89].mxu1 }
 0x685   : > { %v17475_v19 = vadd.f32 %v17474_v57, %v17473_v24  ;;  %v17647_v5 = vadd.f32 %v17646_v59, %v17474_v57  ;;  %v16119_v45 = vcombine.high %v16111_v20, %v16111_v20  ;;  %v16410_v28 = vmax.f32 %v16111_v20, 0.0  ;;  %v19026_v29 = vpop.f32.mrb[90].mxu1 }
 0x686   : > { %v17029_v1 = vsel %vm9694_vm4, %v17027_v10, %v17028_v15  ;;  %v17815_v25 = vadd.f32 %v17814_v44, %v17474_v57  ;;  %v16120_v47 = vcombine.high %v16118_v14, %v16118_v14  ;;  %v19027_v53 = vpop.f32.mrb[91].mxu1  ;;  %v16412_v11 = vmax.f32 %v16118_v14, 0.0 }
 0x687   : > { %v17094_v22 = vsel %vm1699_vm10, %v17029_v1, 0.0  ;;  %v16411_v16 = vmax.f32 %v16119_v45, 0.0  ;;  %v16741_v13 = vcombine.low %v16409_v62, %v16410_v28  ;;  %v17096_v10 = vsel %vm16841_vm5, %v17028_v15, 0.0 }
 0x688   : > { %v17095_v23 = vadd.f32 %v17094_v22, %v27128_v3  ;;  %v17587_v21 = vadd.f32 %v27130_v41, %v17094_v22  ;;  %v17755_v37 = vadd.f32 %v27136_v52, %v17094_v22  ;;  %v16413_v4 = vmax.f32 %v16120_v47, 0.0 }
 0x689   : > { %v16742_v60 = vcombine.low %v16411_v16, %v16412_v11  ;;  %v17342_v31 = vcombine.low %v16410_v28, %v16411_v16  ;;  %v16135_v9 = vrot.slane %v16121_v48, %v28226_v56  ;;  %v16749_v63 = vrot.slane %v16741_v13, %v28226_v56 }
 0x68a   : > { %v17097_v33 = vadd.f32 %v17096_v10, %v17095_v23  ;;  %v17588_v58 = vadd.f32 %v17587_v21, %v17096_v10  ;;  %v17756_v27 = vadd.f32 %v17755_v37, %v17096_v10  ;;  %v17343_v51 = vcombine.low %v16412_v11, %v16413_v4 }
 0x68b   : > { %v16756_v50 = vrot.slane %v16742_v60, %v28226_v56  ;;  %v16136_v3 = vcombine.high %v16128_v38, %v16128_v38  ;;  %v16137_v26 = vcombine.high %v16135_v9, %v16135_v9  ;;  %v17350_v41 = vrot.slane %v17342_v31, %v28226_v56 }
 0x68c   : > { %v17357_v52 = vrot.slane %v17343_v51, %v28226_v56  ;;  %v16414_v42 = vmax.f32 %v16128_v38, 0.0  ;;  %v19025_v36 = vadd.f32 %v19024_v0, %v19023_v32  ;;  %v19028_v17 = vadd.f32 %v19027_v53, %v19026_v29 }
 0x68d   : > { %v16757_v18 = vcombine.low %v16749_v63, %v16756_v50  ;;  %v16415_v62 = vmax.f32 %v16136_v3, 0.0  ;;  %v16416_v48 = vmax.f32 %v16135_v9, 0.0  ;;  %v16417_v7 = vmax.f32 %v16137_v26, 0.0 }
 0x68e   : > { %v17358_v20 = vcombine.low %v17350_v41, %v17357_v52  ;;  %v16758_v39 = vcombine.low %v16413_v4, %v16414_v42  ;;  %v15642_v24 = vadd.f32 %v27030_v55, %v19025_v36  ;;  %v15645_v23 = vadd.f32 %v27030_v55, %v19028_v17 }
 0x68f   : > { %v16876_v54 = vsel %vm1699_vm10, %v16757_v18, 0.0  ;;  %v16985_v57 = vrot.slane %v16415_v62, %v28226_v56  ;;  %v17359_v44 = vcombine.low %v16414_v42, %v16415_v62  ;;  %v17030_v32 = vrot.slane %v16757_v18, 1 }
 0x690   : > { %v17476_v59 = vsel %vm1699_vm10, %v17358_v20, 0.0  ;;  %v16765_v12 = vrot.slane %v16758_v39, %v28226_v56  ;;  %v16877_v15 = vadd.f32 %v16876_v54, %v16875_v2  ;;  %v17543_v0 = vadd.f32 %v17542_v6, %v16876_v54 }
 0x691   : > { %v17477_v14 = vadd.f32 %v17476_v59, %v17475_v19  ;;  %v17648_v45 = vadd.f32 %v17647_v5, %v17476_v59  ;;  %v17366_v1 = vrot.slane %v17359_v44, %v28226_v56  ;;  %v17711_v47 = vadd.f32 %v17710_v35, %v16876_v54 }
 0x692   : > { %v16878_v28 = vsel %vm16841_vm5, %v16765_v12, 0.0  ;;  %v16986_v29 = vcombine.low %v16765_v12, %v16985_v57  ;;  %v17816_v22 = vadd.f32 %v17815_v25, %v17476_v59  ;;  %v15778_v16 = vadd.f32 %v26802_v34, %v15642_v24 }
 0x693   : > { %v16879_v38 = vadd.f32 %v16878_v28, %v16877_v15  ;;  %v17544_v53 = vadd.f32 %v17543_v0, %v16878_v28  ;;  %v17478_v13 = vsel %vm16841_vm5, %v17366_v1, 0.0  ;;  %v17712_v2 = vadd.f32 %v17711_v47, %v16878_v28 }
 0x694   : > { %v17031_v11 = vrot.slane %v16986_v29, 1  ;;  %v17479_v19 = vadd.f32 %v17478_v13, %v17477_v14  ;;  %v17649_v6 = vadd.f32 %v17648_v45, %v17478_v13  ;;  %v27197_v5 = vadd.f32 %v17816_v22, %v17478_v13 }
 0x695   : > { %v16138_v21 = vcombine.high %v15778_v16, %v15778_v16  ;;  %v16145_v35 = vrot.slane %v15778_v16, %v28226_v56  ;;  %v15781_v4 = vadd.f32 %v26807_v49, %v15645_v23  ;;  %v16766_v25 = vcombine.low %v16416_v48, %v16417_v7 }
 0x696   : > { %v17032_v37 = vsel %vm9694_vm4, %v17030_v32, %v17031_v11  ;;  %v17100_v10 = vsel %vm16841_vm5, %v17031_v11, 0.0 }
 0x697   : > { %v17098_v34 = vsel %vm1699_vm10, %v17032_v37, 0.0  ;;  %v16152_v60 = vrot.slane %v16138_v21, %v28226_v56  ;;  %v16153_v63 = vcombine.high %v16145_v35, %v16145_v35  ;;  %v16418_v3 = vmax.f32 %v16145_v35, 0.0 }
 0x698   : > { %v17099_v31 = vadd.f32 %v17098_v34, %v17097_v33  ;;  %v17589_v9 = vadd.f32 %v17588_v58, %v17098_v34  ;;  %v17757_v51 = vadd.f32 %v17756_v27, %v17098_v34  ;;  %v16155_v41 = vcombine.high %v15781_v4, %v15781_v4 }
 0x699   : > { %v16154_v50 = vcombine.high %v16152_v60, %v16152_v60  ;;  %v16420_v26 = vmax.f32 %v16152_v60, 0.0  ;;  %v16419_v18 = vmax.f32 %v16153_v63, 0.0  ;;  %v17367_v62 = vcombine.low %v16417_v7, %v16418_v3 }
 0x69a   : > { %v17101_v52 = vadd.f32 %v17100_v10, %v17099_v31  ;;  %v17590_v42 = vadd.f32 %v17589_v9, %v17100_v10  ;;  %v17758_v36 = vadd.f32 %v17757_v51, %v17100_v10  ;;  %v16162_v17 = vrot.slane %v15781_v4, %v28226_v56 }
 0x69b   : > { %v16421_v49 = vmax.f32 %v16154_v50, 0.0  ;;  %v16767_v20 = vcombine.low %v16418_v3, %v16419_v18  ;;  %v17368_v48 = vcombine.low %v16419_v18, %v16420_v26  ;;  %v16774_v39 = vrot.slane %v16766_v25, %v28226_v56 }
 0x69c   : > { %v17375_v58 = vrot.slane %v17367_v62, %v28226_v56  ;;  %v16169_v27 = vrot.slane %v16155_v41, %v28226_v56  ;;  %v16170_v24 = vcombine.high %v16162_v17, %v16162_v17  ;;  %v16422_v59 = vmax.f32 %v16162_v17, 0.0 }
 0x69d   : > { %v16783_v33 = vcombine.low %v16420_v26, %v16421_v49  ;;  %v16781_v54 = vrot.slane %v16767_v20, %v28226_v56  ;;  %v17382_v57 = vrot.slane %v17368_v48, %v28226_v56 }
 0x69e   : > { %v16993_v44 = vrot.slane %v16422_v59, %v28226_v56  ;;  %v17384_v32 = vcombine.low %v16421_v49, %v16422_v59  ;;  %v16171_v14 = vcombine.high %v16169_v27, %v16169_v27  ;;  %v16424_v0 = vmax.f32 %v16169_v27, 0.0 }
 0x69f   : > { %v16790_v12 = vrot.slane %v16783_v33, %v28226_v56  ;;  %v16782_v7 = vcombine.low %v16774_v39, %v16781_v54  ;;  %v17383_v15 = vcombine.low %v17375_v58, %v17382_v57  ;;  %v16423_v29 = vmax.f32 %v16170_v24, 0.0 }
 0x6a0   : > { %v17391_v37 = vrot.slane %v17384_v32, %v28226_v56 }
 0x6a1   : > { %v16880_v45 = vsel %vm1699_vm10, %v16782_v7, 0.0  ;;  %v17480_v28 = vsel %vm1699_vm10, %v17383_v15, 0.0  ;;  %v16994_v1 = vcombine.low %v16790_v12, %v16993_v44  ;;  %v16882_v11 = vsel %vm16841_vm5, %v16790_v12, 0.0 }
 0x6a2   : > { %v16881_v47 = vadd.f32 %v16880_v45, %v16879_v38  ;;  %v17545_v22 = vadd.f32 %v17544_v53, %v16880_v45  ;;  %v17713_v16 = vadd.f32 %v17712_v2, %v16880_v45  ;;  %v17033_v23 = vrot.slane %v16782_v7, 1 }
 0x6a3   : > { %v19029_v13 = vpop.f32.mrb[92].mxu1  ;;  %v17034_v21 = vrot.slane %v16994_v1, 1  ;;  %v17481_v35 = vadd.f32 %v17480_v28, %v17479_v19  ;;  %v17650_v10 = vadd.f32 %v17649_v6, %v17480_v28  ;;  %v16425_v38 = vmax.f32 %v16171_v14, 0.0 }
 0x6a4   : > { %v19030_v4 = vpop.f32.mrb[93].mxu1  ;;  %v27217_v25 = vadd.f32 %v16882_v11, %v16881_v47  ;;  %v27219_v34 = vadd.f32 %v17545_v22, %v16882_v11  ;;  %v27221_v60 = vadd.f32 %v17713_v16, %v16882_v11  ;;  %v17482_v2 = vsel %vm16841_vm5, %v17391_v37, 0.0 }
 0x6a5   : > { %v19032_v31 = vpop.f32.mrb[94].mxu1  ;;  %v17035_v53 = vsel %vm9694_vm4, %v17033_v23, %v17034_v21  ;;  %v17818_v9 = vadd.f32 %v27197_v5, %v17480_v28  ;;  %v27227_v19 = vadd.f32 %v17482_v2, %v17481_v35  ;;  %v27229_v50 = vadd.f32 %v17650_v10, %v17482_v2 }
 0x6a6   : > { %v19033_v51 = vpop.f32.mrb[95].mxu1  ;;  %v17102_v63 = vsel %vm1699_vm10, %v17035_v53, 0.0  ;;  %v19031_v3 = vadd.f32 %v19030_v4, %v19029_v13  ;;  %v17104_v49 = vsel %vm16841_vm5, %v17034_v21, 0.0 }
 0x6a7   : > { %v17103_v26 = vadd.f32 %v17102_v63, %v17101_v52  ;;  %v17591_v6 = vadd.f32 %v17590_v42, %v17102_v63  ;;  %v17759_v41 = vadd.f32 %v17758_v36, %v17102_v63  ;;  %v27231_v18 = vadd.f32 %v17818_v9, %v17482_v2 }
 0x6a8   : > { %v15650_v62 = vadd.f32 %v27030_v55, %v19031_v3  ;;  %v19034_v17 = vadd.f32 %v19033_v51, %v19032_v31  ;;  %v16791_v52 = vcombine.low %v16423_v29, %v16424_v0  ;;  %v17392_v42 = vcombine.low %v16424_v0, %v16425_v38 }
 0x6a9   : > { %v27235_v20 = vadd.f32 %v17104_v49, %v17103_v26  ;;  %v27237_v5 = vadd.f32 %v17591_v6, %v17104_v49  ;;  %v27239_v48 = vadd.f32 %v17759_v41, %v17104_v49 }
 0x6aa   : > { %v15786_v39 = vadd.f32 %v26836_v46, %v15650_v62  ;;  %v15653_v33 = vadd.f32 %v27030_v55, %v19034_v17  ;;  %v16799_v46 = vrot.slane %v16791_v52, %v28226_v56  ;;  %v17400_v44 = vrot.slane %v17392_v42, %v28226_v56 }
 0x6ac   : > { %v16172_v36 = vcombine.high %v15786_v39, %v15786_v39  ;;  %v16179_v58 = vrot.slane %v15786_v39, %v28226_v56  ;;  %v15789_v27 = vadd.f32 %v26841_v40, %v15653_v33 }
 0x6ad   : > { %v19035_v54 = vpop.f32.mrb[96].mxu1 }
 0x6ae   : > { %v19036_v57 = vpop.f32.mrb[97].mxu1  ;;  %v16186_v24 = vrot.slane %v16172_v36, %v28226_v56  ;;  %v16187_v59 = vcombine.high %v16179_v58, %v16179_v58  ;;  %v16426_v12 = vmax.f32 %v16179_v58, 0.0  ;;  %v16189_v7 = vcombine.high %v15789_v27, %v15789_v27 }
 0x6af   : > { %v27246_v15 = vpop.f32.mrb[98].mxu1  ;;  %v16196_v32 = vrot.slane %v15789_v27, %v28226_v56  ;;  %v19037_v14 = vadd.f32 %v19036_v57, %v19035_v54 }
 0x6b0   : > { %v19039_v0 = vpop.f32.mrb[99].mxu1  ;;  %v16188_v45 = vcombine.high %v16186_v24, %v16186_v24  ;;  %v16427_v28 = vmax.f32 %v16187_v59, 0.0  ;;  %v16428_v40 = vmax.f32 %v16186_v24, 0.0  ;;  %v16792_v29 = vcombine.low %v16425_v38, %v16426_v12 }
 0x6b1   : > { %v16203_v1 = vrot.slane %v16189_v7, %v28226_v56  ;;  %v16204_v47 = vcombine.high %v16196_v32, %v16196_v32  ;;  %v16430_v22 = vmax.f32 %v16196_v32, 0.0  ;;  %v15658_v16 = vadd.f32 %v27030_v55, %v19037_v14 }
 0x6b2   : > { %v16429_v11 = vmax.f32 %v16188_v45, 0.0  ;;  %v16806_v13 = vrot.slane %v16792_v29, %v28226_v56  ;;  %v16808_v23 = vcombine.low %v16427_v28, %v16428_v40  ;;  %v17393_v21 = vcombine.low %v16426_v12, %v16427_v28 }
 0x6b3   : > { %v16205_v37 = vcombine.high %v16203_v1, %v16203_v1  ;;  %v16431_v35 = vmax.f32 %v16204_v47, 0.0  ;;  %v16432_v4 = vmax.f32 %v16203_v1, 0.0  ;;  %v15794_v10 = vadd.f32 %v26865_v43, %v15658_v16 }
 0x6b4   : > { %v16807_v31 = vcombine.low %v16799_v46, %v16806_v13  ;;  %v16815_v53 = vrot.slane %v16808_v23, %v28226_v56  ;;  %v17001_v38 = vrot.slane %v16429_v11, %v28226_v56  ;;  %v17407_v2 = vrot.slane %v17393_v21, %v28226_v56 }
 0x6b5   : > { %v19041_v9 = vpop.f32.mrb[100].mxu1  ;;  %v17409_v51 = vcombine.low %v16428_v40, %v16429_v11  ;;  %v16433_v63 = vmax.f32 %v16205_v37, 0.0  ;;  %v17501_v3 = vcombine.low %v16430_v22, %v16431_v35  ;;  %v17606_v26 = vcombine.low %v16431_v35, %v16432_v4 }
 0x6b6   : > { %v19042_v6 = vpop.f32.mrb[101].mxu1  ;;  %v16884_v41 = vsel %vm1699_vm10, %v16807_v31, 0.0  ;;  %v16886_v49 = vsel %vm16841_vm5, %v16815_v53, 0.0  ;;  %v17002_v62 = vcombine.low %v16815_v53, %v17001_v38  ;;  %v17036_v17 = vrot.slane %v16807_v31, 1 }
 0x6b7   : > { %v19044_v43 = vpop.f32.mrb[102].mxu1  ;;  %v16885_v39 = vadd.f32 %v16884_v41, %v27217_v25  ;;  %v17408_v33 = vcombine.low %v17400_v44, %v17407_v2  ;;  %v17416_v52 = vrot.slane %v17409_v51, %v28226_v56  ;;  %v17547_v42 = vadd.f32 %v27219_v34, %v16884_v41 }
 0x6b8   : > { %v19045_v36 = vpop.f32.mrb[103].mxu1  ;;  %v17037_v58 = vrot.slane %v17002_v62, 1  ;;  %v17715_v27 = vadd.f32 %v27221_v60, %v16884_v41  ;;  %v17502_v54 = vcombine.low %v16432_v4, %v16433_v63  ;;  %v17509_v57 = vrot.slane %v17501_v3, %v28226_v56 }
 0x6b9   : > { %v17484_v24 = vsel %vm1699_vm10, %v17408_v33, 0.0  ;;  %v17486_v59 = vsel %vm16841_vm5, %v17416_v52, 0.0  ;;  %v17548_v12 = vadd.f32 %v17547_v42, %v16886_v49  ;;  %v17614_v7 = vrot.slane %v17606_v26, %v28226_v56 }
 0x6ba   : > { %v17038_v25 = vsel %vm9694_vm4, %v17036_v17, %v17037_v58  ;;  %v17108_v46 = vsel %vm16841_vm5, %v17037_v58, 0.0  ;;  %v17652_v34 = vadd.f32 %v27229_v50, %v17484_v24  ;;  %v17716_v44 = vadd.f32 %v17715_v27, %v16886_v49 }
 0x6bb   : > { %v17106_v32 = vsel %vm1699_vm10, %v17038_v25, 0.0  ;;  %v17820_v60 = vadd.f32 %v27231_v18, %v17484_v24  ;;  %v17516_v14 = vrot.slane %v17502_v54, %v28226_v56  ;;  %v16206_v45 = vcombine.high %v15794_v10, %v15794_v10 }
 0x6bc   : > { %v17593_v28 = vadd.f32 %v27237_v5, %v17106_v32  ;;  %v17653_v40 = vadd.f32 %v17652_v34, %v17486_v59  ;;  %v17761_v29 = vadd.f32 %v27239_v48, %v17106_v32  ;;  %v16213_v1 = vrot.slane %v15794_v10, %v28226_v56 }
 0x6bd   : > { %v17821_v47 = vadd.f32 %v17820_v60, %v17486_v59  ;;  %v17517_v22 = vcombine.low %v17509_v57, %v17516_v14  ;;  %v16220_v16 = vrot.slane %v16206_v45, %v28226_v56  ;;  %v19040_v50 = vadd.f32 %v19039_v0, %v27246_v15 }
 0x6be   : > { %v27279_v11 = vadd.f32 %v17593_v28, %v17108_v46  ;;  %v17762_v13 = vadd.f32 %v17761_v29, %v17108_v46  ;;  %v16221_v18 = vcombine.high %v16213_v1, %v16213_v1  ;;  %v16434_v23 = vmax.f32 %v16213_v1, 0.0 }
 0x6bf   : > { %v17549_v21 = vsel %vm1699_vm10, %v17517_v22, 0.0  ;;  %v17569_v37 = vrot.slane %v17517_v22, 1  ;;  %v16222_v5 = vcombine.high %v16220_v16, %v16220_v16  ;;  %v16436_v35 = vmax.f32 %v16220_v16, 0.0 }
 0x6c0   : > { %v16435_v4 = vmax.f32 %v16221_v18, 0.0  ;;  %v17550_v48 = vadd.f32 %v17549_v21, %v17548_v12  ;;  %v17607_v31 = vcombine.low %v16433_v63, %v16434_v23  ;;  %v15661_v10 = vadd.f32 %v27030_v55, %v19040_v50 }
 0x6c1   : > { %v16437_v53 = vmax.f32 %v16222_v5, 0.0  ;;  %v17567_v38 = vrot.slane %v16436_v35, %v28226_v56  ;;  %v19043_v2 = vadd.f32 %v19042_v6, %v19041_v9  ;;  %v17717_v15 = vadd.f32 %v17716_v44, %v17549_v21 }
 0x6c2   : > { %v17518_v0 = vcombine.low %v16434_v23, %v16435_v4  ;;  %v17621_v51 = vrot.slane %v17607_v31, %v28226_v56  ;;  %v17623_v3 = vcombine.low %v16435_v4, %v16436_v35  ;;  %v15797_v26 = vadd.f32 %v26867_v8, %v15661_v10 }
 0x6c3   : > { %v15666_v41 = vadd.f32 %v27030_v55, %v19043_v2  ;;  %v17107_v62 = vadd.f32 %v17106_v32, %v27235_v20  ;;  %v17485_v17 = vadd.f32 %v17484_v24, %v27227_v19  ;;  %v27289_v63 = vadd.f32 %v16886_v49, %v16885_v39 }
 0x6c4   : > { %v17525_v43 = vrot.slane %v17518_v0, %v28226_v56  ;;  %v17622_v33 = vcombine.low %v17614_v7, %v17621_v51  ;;  %v17630_v9 = vrot.slane %v17623_v3, %v28226_v56  ;;  %v16223_v6 = vcombine.high %v15797_v26, %v15797_v26 }
 0x6c5   : > { %v16230_v52 = vrot.slane %v15797_v26, %v28226_v56  ;;  %v15802_v42 = vadd.f32 %v26991_v30, %v15666_v41  ;;  %v17109_v36 = vadd.f32 %v17108_v46, %v17107_v62  ;;  %v17487_v8 = vadd.f32 %v17486_v59, %v17485_v17 }
 0x6c6   : > { %v17551_v55 = vsel %vm16841_vm5, %v17525_v43, 0.0  ;;  %v17568_v58 = vcombine.low %v17525_v43, %v17567_v38  ;;  %v17654_v20 = vsel %vm1699_vm10, %v17622_v33, 0.0  ;;  %v17656_v19 = vsel %vm16841_vm5, %v17630_v9, 0.0 }
 0x6c7   : > { %v27298_v49 = vadd.f32 %v17551_v55, %v17550_v48  ;;  %v17655_v39 = vadd.f32 %v17654_v20, %v17653_v40  ;;  %v16237_v27 = vrot.slane %v16223_v6, %v28226_v56  ;;  %v16238_v54 = vcombine.high %v16230_v52, %v16230_v52 }
 0x6c8   : > { %v17570_v57 = vrot.slane %v17568_v58, 1  ;;  %v16438_v24 = vmax.f32 %v16230_v52, 0.0  ;;  %v16246_v12 = vrot.slane %v15802_v42, %v28226_v56  ;;  %v17718_v30 = vadd.f32 %v17717_v15, %v17551_v55 }
 0x6c9   : > { %v16439_v7 = vmax.f32 %v16238_v54, 0.0  ;;  %v16440_v59 = vmax.f32 %v16237_v27, 0.0  ;;  %v16239_v25 = vcombine.high %v16237_v27, %v16237_v27  ;;  %v17822_v46 = vadd.f32 %v17821_v47, %v17654_v20 }
 0x6ca   : > { %v17571_v34 = vsel %vm9694_vm4, %v17569_v37, %v17570_v57  ;;  %v27304_v44 = vsel %vm16841_vm5, %v17570_v57, 0.0  ;;  %v17671_v32 = vcombine.low %v16437_v53, %v16438_v24  ;;  %v16247_v60 = vcombine.high %v16246_v12, %v16246_v12 }
 0x6cb   : > { %v17672_v14 = vcombine.low %v16439_v7, %v16440_v59  ;;  %v17776_v45 = vcombine.low %v16438_v24, %v16439_v7  ;;  %v16441_v28 = vmax.f32 %v16239_v25, 0.0  ;;  %v16442_v40 = vmax.f32 %v16246_v12, 0.0 }
 0x6cc   : > { %v17679_v29 = vrot.slane %v17671_v32, %v28226_v56  ;;  %v16443_v1 = vmax.f32 %v16247_v60, 0.0  ;;  %v17595_v22 = vsel %vm1699_vm10, %v17571_v34, 0.0  ;;  %v17823_v16 = vadd.f32 %v17822_v46, %v17656_v19 }
 0x6cd   : > { %v17686_v50 = vrot.slane %v17672_v14, %v28226_v56  ;;  %v17784_v47 = vrot.slane %v17776_v45, %v28226_v56  ;;  %v17688_v18 = vcombine.low %v16441_v28, %v16442_v40  ;;  %v17763_v23 = vadd.f32 %v17762_v13, %v17595_v22 }
 0x6ce   : > { %v17737_v21 = vrot.slane %v16443_v1, %v28226_v56  ;;  %v17777_v37 = vcombine.low %v16440_v59, %v16441_v28  ;;  %v17793_v5 = vcombine.low %v16442_v40, %v16443_v1  ;;  %v17110_v35 = vrot.slane %v17109_v36, 4  ;;  %v19394_v59 = vld [vmem:[%s27418_s7 + $0x78] sm:$0xff]  }
 0x6cf   : > { %v17687_v4 = vcombine.low %v17679_v29, %v17686_v50  ;;  %v17695_v48 = vrot.slane %v17688_v18, %v28226_v56  ;;  %v17764_v31 = vadd.f32 %v17763_v23, %v27304_v44  ;;  %v17657_v10 = vadd.f32 %v17656_v19, %v17655_v39  ;;  %19076 = vmatprep.subr.bf16.mxu1 %v19394_v59 }
 0x6d0   : > { %v17791_v53 = vrot.slane %v17777_v37, %v28226_v56  ;;  %v17800_v38 = vrot.slane %v17793_v5, %v28226_v56  ;;  %v17111_v2 = vadd.f32 %v17110_v35, %v17109_v36  ;;  %v17488_v15 = vrot.slane %v17487_v8, 4 }
 0x6d1   : > { %v17719_v0 = vsel %vm1699_vm10, %v17687_v4, 0.0  ;;  %v17721_v13 = vsel %vm16841_vm5, %v17695_v48, 0.0  ;;  %v17738_v51 = vcombine.low %v17695_v48, %v17737_v21  ;;  %v17739_v3 = vrot.slane %v17687_v4, 1 }
 0x6d2   : > { %v17720_v26 = vadd.f32 %v17719_v0, %v17718_v30  ;;  %v17792_v41 = vcombine.low %v17784_v47, %v17791_v53  ;;  %v17112_v62 = vrot.slane %v17111_v2, 2  ;;  %v17658_v43 = vrot.slane %v17657_v10, 4 }
 0x6d3   : > { %v17740_v17 = vrot.slane %v17738_v51, 1  ;;  %v17489_v33 = vadd.f32 %v17488_v15, %v17487_v8  ;;  %v17553_v9 = vrot.slane %v27298_v49, 4  ;;  %v17826_v56 = vsel %vm16841_vm5, %v17800_v38, 0.0 }
 0x6d4   : > { %v17722_v6 = vadd.f32 %v17721_v13, %v17720_v26  ;;  %v17824_v52 = vsel %vm1699_vm10, %v17792_v41, 0.0  ;;  %v17113_v42 = vadd.f32 %v17112_v62, %v17111_v2  ;;  %v17659_v58 = vadd.f32 %v17658_v43, %v17657_v10 }
 0x6d5   : > { %v17741_v36 = vsel %vm9694_vm4, %v17739_v3, %v17740_v17  ;;  %v17825_v55 = vadd.f32 %v17824_v52, %v17823_v16  ;;  %v17490_v27 = vrot.slane %v17489_v33, 2  ;;  %v17554_v24 = vadd.f32 %v17553_v9, %v27298_v49  ;;  %v19395_v49 = vld [vmem:[%s27418_s7 + $0x38] sm:$0xff]  }
 0x6d6   : > { %v17723_v20 = vrot.slane %v17722_v6, 4  ;;  %v17765_v19 = vsel %vm1699_vm10, %v17741_v36, 0.0  ;;  %v17114_v39 = vrot.slane %v17113_v42, 1  ;;  %v17660_v8 = vrot.slane %v17659_v58, 2  ;;  %19077 = vmatpush3.bf16.msra.mxu1 %v19395_v49 }
 0x6d7   : > { %v17766_v54 = vadd.f32 %v17765_v19, %v17764_v31  ;;  %v17827_v57 = vadd.f32 %v17826_v56, %v17825_v55  ;;  %v17767_v30 = vsel %vm16841_vm5, %v17740_v17, 0.0  ;;  %v17491_v7 = vadd.f32 %v17490_v27, %v17489_v33  ;;  %19251 = vmatprep.subr.bf16.mxu1 %v27698_v61 }
 0x6d8   : > { %v17724_v12 = vadd.f32 %v17723_v20, %v17722_v6  ;;  %v17661_v46 = vadd.f32 %v17660_v8, %v17659_v58  ;;  %v17555_v34 = vrot.slane %v17554_v24, 2  ;;  %v17115_v45 = vadd.f32 %v17114_v39, %v17113_v42 }
 0x6d9   : > { %v17768_v25 = vadd.f32 %v17767_v30, %v17766_v54  ;;  %v17492_v32 = vrot.slane %v17491_v7, 1  ;;  %v17596_v1 = vadd.f32 %v17595_v22, %v27279_v11  ;;  %v16888_v13 = vrot.slane %v27289_v63, 4 }
 0x6da   : > { %v17725_v60 = vrot.slane %v17724_v12, 2  ;;  %v17662_v28 = vrot.slane %v17661_v46, 1  ;;  %v17556_v40 = vadd.f32 %v17555_v34, %v17554_v24  ;;  %v17116_v21 = vmul.f32 0.0069444445, %v17115_v45  ;;  %v19396_v45 = vld [vmem:[%s27418_s7 + $0x80] sm:$0xff]  }
 0x6db   : > { %v17769_v14 = vrot.slane %v17768_v25, 4  ;;  %v17493_v47 = vadd.f32 %v17492_v32, %v17491_v7  ;;  %v17598_v23 = vadd.f32 %v27304_v44, %v17596_v1  ;;  %v16889_v3 = vadd.f32 %v16888_v13, %v27289_v63 }
 0x6dc   : > { %v17726_v29 = vadd.f32 %v17725_v60, %v17724_v12  ;;  %v17663_v16 = vadd.f32 %v17662_v28, %v17661_v46  ;;  %v17557_v5 = vrot.slane %v17556_v40, 1  ;;  %v17828_v17 = vrot.slane %v17827_v57, 4 }
 0x6dd   : > { %v17770_v50 = vadd.f32 %v17769_v14, %v17768_v25  ;;  %v17494_v10 = vmul.f32 0.0069444445, %v17493_v47  ;;  %v17599_v51 = vrot.slane %v17598_v23, 4  ;;  %v16890_v41 = vrot.slane %v16889_v3, 2 }
 0x6de   : > { %v17727_v18 = vrot.slane %v17726_v29, 1  ;;  %v17664_v37 = vmul.f32 0.0069444445, %v17663_v16  ;;  %v17558_v11 = vadd.f32 %v17557_v5, %v17556_v40  ;;  %v17829_v9 = vadd.f32 %v17828_v17, %v17827_v57  ;;  %v19397_v40 = vld [vmem:[%s27418_s7 + $0x88] sm:$0xff]   ;;  %v18113_v17 = vld [vmem:[%s27421_s10] sm:$0x1] }
 0x6df   : > { %v17771_v35 = vrot.slane %v17770_v50, 2  ;;  %v17600_v26 = vadd.f32 %v17599_v51, %v17598_v23  ;;  %v16891_v43 = vadd.f32 %v16890_v41, %v16889_v3  ;;  %v17904_v23 = vld [vmem:[%s27419_s8] sm:$0x1] }
 0x6e0   : > { %v17728_v4 = vadd.f32 %v17727_v18, %v17726_v29  ;;  %v19306_v48 = vpack.i.bf16 %v17116_v21, %v17664_v37  ;;  %v17559_v44 = vmul.f32 0.0069444445, %v17558_v11  ;;  %v17830_v56 = vrot.slane %v17829_v9, 2  ;;  %v18111_v41 = vld [vmem:[%s27420_s9] sm:$0x1] }
 0x6e1   : > { %v17772_v31 = vadd.f32 %v17771_v35, %v17770_v50  ;;  %v17601_v62 = vrot.slane %v17600_v26, 2  ;;  %v16892_v6 = vrot.slane %v16891_v43, 1 }
 0x6e2   : > { %v17729_v53 = vmul.f32 0.0069444445, %v17728_v4  ;;  %19307 = vrot.lane.b32.xlu0 %v19306_v48, %s19425_s23  ;;  %v17831_v20 = vadd.f32 %v17830_v56, %v17829_v9  ;;  %v19402_v9 = vld [vmem:[%s27424_s13] sm:$0xff]   ;;  %v19404_v56 = vld [vmem:[%s27424_s13 + $0x10] sm:$0xff]  }
 0x6e3   : > { %v17773_v22 = vrot.slane %v17772_v31, 1  ;;  %v17602_v33 = vadd.f32 %v17601_v62, %v17600_v26  ;;  %v16893_v36 = vadd.f32 %v16892_v6, %v16891_v43 }
 0x6e4   : > { %v19311_v38 = vpack.i.bf16 %v17494_v10, %v17729_v53  ;;  %v17832_v12 = vrot.slane %v17831_v20, 1 }
 0x6e5   : > { %v17774_v2 = vadd.f32 %v17773_v22, %v17772_v31  ;;  %v17603_v52 = vrot.slane %v17602_v33, 1  ;;  %v16894_v63 = vmul.f32 0.0069444445, %v16893_v36  ;;  %v18124_v36 = vld [vmem:[%s27423_s12] sm:$0x1] }
 0x6e6   : > { %19312 = vrot.lane.b32.xlu1 %v19311_v38, %s19428_s16  ;;  %v17833_v28 = vadd.f32 %v17832_v12, %v17831_v20 }
 0x6e7   : > { %v17775_v15 = vmul.f32 0.0069444445, %v17774_v2  ;;  %v17604_v55 = vadd.f32 %v17603_v52, %v17602_v33  ;;  %v19398_v2 = vld [vmem:[%s27422_s11] sm:$0xff]   ;;  %v19403_v52 = vld [vmem:[%s27424_s13 + $0x8] sm:$0xff]  }
 0x6e8   : > { %v17834_v49 = vmul.f32 0.0069444445, %v17833_v28 }
 0x6e9   : > { %v19316_v0 = vpack.i.bf16 %v17559_v44, %v17775_v15  ;;  %v17605_v8 = vmul.f32 0.0069444445, %v17604_v55  ;;  %v19399_v44 = vld [vmem:[%s27422_s11 + $0x8] sm:$0xff]   ;;  %v19400_v15 = vld [vmem:[%s27422_s11 + $0x10] sm:$0xff]  }
 0x6ea   : > { %v17867_v29 = vpack.c.bf16 %v17834_v49, %v17834_v49 }
 0x6eb   : > { %19317 = vrot.lane.b32.xlu0 %v19316_v0, %s19432_s14  ;;  %v19401_v0 = vld [vmem:[%s27422_s11 + $0x18] sm:$0xff]   ;;  %s492_s14 = scalar_lea.vmem %s27426_s15, %s28248_s21 }
 0x754   : > { %v19308_v42 = vpop.permute.xlu0 %19307 }
 0x755   : > { %v19310_v19 = vunpack.i.h.bf16 %v19308_v42  ;;  %v19309_v39 = vunpack.i.l.bf16 %v19308_v42  ;;  %v19405_v42 = vld [vmem:[%s27424_s13 + $0x18] sm:$0xff]  }
 0x757   : > { %v17859_v30 = vsel %vm1699_vm10, %v16894_v63, %v19310_v19  ;;  %v17862_v57 = vsel %vm1699_vm10, %v17605_v8, %v19309_v39  ;;  %v18202_v63 = vld [vmem:[#allocation2] sm:$0x1] }
 0x758   : > { %v19313_v58 = vpop.permute.xlu1 %19312 }
 0x759   : > { %v19315_v27 = vunpack.i.h.bf16 %v19313_v58  ;;  %v19314_v54 = vunpack.i.l.bf16 %v19313_v58 }
 0x75b   : > { %v17860_v25 = vsel %vm1831_vm14, %v17859_v30, %v19315_v27  ;;  %v17863_v46 = vsel %vm1831_vm14, %v17862_v57, %v19314_v54 }
 0x75d   : > { %v19318_v24 = vpop.permute.xlu0 %19317 }
 0x75e   : > { %v19320_v7 = vunpack.i.h.bf16 %v19318_v24  ;;  %v19319_v59 = vunpack.i.l.bf16 %v19318_v24 }
 0x760   : > { %v17861_v34 = vsel %vm7800_vm2, %v17860_v25, %v19320_v7  ;;  %v17864_v32 = vsel %vm7800_vm2, %v17863_v46, %v19319_v59 }
 0x761   : > { %v17865_v60 = vpack.c.bf16 %v17861_v34, %v17861_v34  ;;  %v17866_v14 = vpack.c.bf16 %v17864_v32, %v17864_v32 }
 0x763   : > { %18048 = vmatprep.mubr.bf16.mxu1 %v17866_v14 }
 0x764   : > { %18049 = vmatmul.mubr.bf16.vlgmr.msra.gmra.mrb[104].mxu1 %v17865_v60 }
 0x765   : > { %19252 = vmatpush3.bf16.msra.mxu1 %v19396_v45  ;;  %19255 = vmatprep.mubr.msk.bf16.mxu1 %vm19431_vm13, %v27698_v61 }
 0x766   : > { %19253 = vmatprep.subr.bf16.mxu1 %v27698_v61 }
 0x769   : > { %19254 = vmatpush3.bf16.msra.mxu1 %v19397_v40 }
 0x76a   : > { %19259 = vmatprep.subr.bf16.mxu1 %v27698_v61 }
 0x76c   : > { %19256 = vmatmul.mubr.msk.bf16.vlgmr.msra.gmra.mrb[108].mxu1 %vm1699_vm10, %v17867_v29  ;;  %vm18270_vm10 = vcmask 0  }
 0x76d   : > { %19267 = vmatprep.mubr.msk.bf16.mxu1 %vm19431_vm13, %v27698_v61  ;;  %19260 = vmatpush3.bf16.msra.mxu1 %v19398_v2 }
 0x76e   : > { %19261 = vmatprep.subr.bf16.mxu1 %v27698_v61 }
 0x771   : > { %19262 = vmatpush3.bf16.msra.mxu1 %v19399_v44 }
 0x772   : > { %19263 = vmatprep.subr.bf16.mxu1 %v27698_v61 }
 0x775   : > { %19264 = vmatpush3.bf16.msra.mxu1 %v19400_v15 }
 0x776   : > { %19265 = vmatprep.subr.bf16.mxu1 %v27698_v61 }
 0x779   : > { %19266 = vmatpush3.bf16.msra.mxu1 %v19401_v0 }
 0x77a   : > { %19271 = vmatprep.subr.bf16.mxu1 %v27698_v61 }
 0x837   : > { %v19078_v1 = vpop.f32.mrb[104].mxu1 }
 0x838   : > { %v19079_v16 = vpop.f32.mrb[105].mxu1 }
 0x839   : > { %v19080_v50 = vadd.f32 %v19079_v16, %v19078_v1  ;;  %v19081_v47 = vpop.f32.mrb[106].mxu1 }
 0x83a   : > { %v19082_v18 = vpop.f32.mrb[107].mxu1 }
 0x83b   : > { %v18051_v21 = vadd.f32 %v19080_v50, %v17904_v23 }
 0x83f   : > { %v18090_v37 = vpop.f32.mrb[108].mxu1 }
 0x840   : > { %v18091_v5 = vadd.f32 %v18090_v37, %v18051_v21  ;;  %v19257_v35 = vpop.f32.mrb[109].mxu1 }
 0x841   : > { %v18093_v4 = vpop.f32.mrb[110].mxu1 }
 0x842   : > { %v19258_v48 = vpop.f32.mrb[111].mxu1  ;;  %v18097_v31 = vsel %vm18096_vm6, %v18091_v5, 0.0 }
 0x843   : > { %18098 = vadd.xlane.f32.xlu1 %v18097_v31 }
 0x8d0   : > { %v18099_v10 = vpop.xlane.xlu1 %18098 }
 0x8d1   : > { %v18101_v53 = vmul.f32 0.015625, %v18099_v10 }
 0x8d3   : > { %v18102_v11 = vsub.f32 %v18091_v5, %v18101_v53 }
 0x8d5   : > { %v18103_v22 = vmul.f32 %v18102_v11, %v18102_v11 }
 0x8d7   : > { %v18104_v38 = vsel %vm18096_vm6, %v18103_v22, 0.0 }
 0x8d8   : > { %18105 = vadd.xlane.f32.xlu0 %v18104_v38 }
 0x965   : > { %v18106_v13 = vpop.xlane.xlu0 %18105 }
 0x966   : > { %v18107_v51 = vmul.f32 0.015625, %v18106_v13 }
 0x968   : > { %v18108_v3 = vadd.f32 1e-05, %v18107_v51 }
 0x96a   : > { %19406 = vrsqrt.f32 %v18108_v3 }
 0x974   : > { %v19407_v26 = vpop.eup %19406 }
 0x975   : > { %v18110_v62 = vmul.f32 %v19407_v26, %v18102_v11 }
 0x977   : > { %v18112_v43 = vmul.f32 %v18111_v41, %v18110_v62 }
 0x979   : > { %v18114_v33 = vadd.f32 %v18113_v17, %v18112_v43 }
 0x97b   : > { %v18115_v6 = vpack.c.bf16 %v18114_v33, %v18114_v33 }
 0x97d   : > { %19268 = vmatmul.mubr.msk.bf16.vlgmr.msra.gmra.mrb[112].mxu1 %vm1831_vm14, %v18115_v6 }
 0x97e   : > { %19272 = vmatpush3.bf16.msra.mxu1 %v19402_v9  ;;  %19279 = vmatprep.mubr.msk.bf16.mxu1 %vm19431_vm13, %v27698_v61 }
 0x97f   : > { %19273 = vmatprep.subr.bf16.mxu1 %v27698_v61 }
 0x982   : > { %19274 = vmatpush3.bf16.msra.mxu1 %v19403_v52 }
 0x983   : > { %19275 = vmatprep.subr.bf16.mxu1 %v27698_v61 }
 0x986   : > { %19276 = vmatpush3.bf16.msra.mxu1 %v19404_v56 }
 0x987   : > { %19277 = vmatprep.subr.bf16.mxu1 %v27698_v61 }
 0x98a   : > { %19278 = vmatpush3.bf16.msra.mxu1 %v19405_v42 }
 0xa50   : > { %v18186_v55 = vpop.f32.mrb[112].mxu1 }
 0xa51   : > { %v18187_v58 = vadd.f32 %v18186_v55, %v18124_v36  ;;  %v19269_v20 = vpop.f32.mrb[113].mxu1 }
 0xa52   : > { %v18189_v19 = vpop.f32.mrb[114].mxu1 }
 0xa53   : > { %v18192_v39 = vmax.f32 %v18187_v58, 0.0  ;;  %v19270_v27 = vpop.f32.mrb[115].mxu1 }
 0xa55   : > { %v18193_v54 = vpack.c.bf16 %v18192_v39, %v18192_v39 }
 0xa57   : > { %19280 = vmatmul.mubr.msk.bf16.vlgmr.msra.gmra.mrb[116].mxu1 %vm1831_vm14, %v18193_v54 }
 0xb2a   : > { %v18264_v61 = vpop.f32.mrb[116].mxu1 }
 0xb2b   : > { %v18265_v8 = vadd.f32 %v18264_v61, %v18202_v63  ;;  %v19281_v24 = vpop.f32.mrb[117].mxu1 }
 0xb2c   : > { %v18267_v12 = vpop.f32.mrb[118].mxu1 }
 0xb2d   : > { %18271 = vst.msk [vmem:[%s492_s14] sm:$0x1] %vm18270_vm10, %v18265_v8  ;;  %v19282_v30 = vpop.f32.mrb[119].mxu1 }
 0xb2e PF: > { %s27_s20 = sadd.s32 1, %s19419_s20  }
 0xb2f   : > { %p24_p4 = scmp.ge.s32.totalorder %s27_s20, 4  }
 0xb31   :  { %26 = sbr.rel (!%p24_p4) target bundleno = 3 (0x3), region = 110 }

</bundles_post_ra>
